<compile_context>
chip_gen: v6e
topology: v6e:2x2x1
jax: 0.10.0
libtpu: 0.0.40
codegen_flags: <defaults>
</compile_context>

<pallas_src>
import functools

import jax
import jax.numpy as jnp
from jax import lax
from jax.experimental import pallas as pl
from jax.experimental.pallas import tpu as pltpu


def _fused_attn_kernel(x_ref, gmask_ref, gamma_ref, beta_ref,
                       wqkv_ref, bqkv_ref, wo_ref, bo_ref,
                       o_ref, racc_ref,
                       *, n_head, n_groups, eps, matmul_dtype):
    """Fused GroupNorm + (proj_in o QKV) + MHSA + to_out + residual; block_b elems/step."""
    block_b, L, C = x_ref.shape
    d_k = C // n_head
    scale = d_k ** -0.5
    inv_n = 1.0 / float(L * (C // n_groups))

    gmask = gmask_ref[...]                       # (C, C) f32, 1 iff same group
    gamma = gamma_ref[...]                       # (1, C) f32
    beta = beta_ref[...]                         # (1, C) f32
    wqkv = wqkv_ref[...]                         # (C, 3C) matmul_dtype
    bqkv = bqkv_ref[...]                         # (1, 3C) f32
    wo = wo_ref[...]                             # (C, C)  matmul_dtype
    bo = bo_ref[...]                             # (1, C)  f32

    for bi in range(block_b):
        x = x_ref[bi]                            # (L, C) f32

        # ---- GroupNorm (biased variance, centered two-pass form) ----
        s1 = jnp.sum(x, axis=0, keepdims=True)                                  # (1, C)
        mean_c = jnp.dot(s1, gmask, preferred_element_type=jnp.float32) * inv_n
        xc = x - mean_c
        s2 = jnp.sum(xc * xc, axis=0, keepdims=True)                            # (1, C)
        var_c = jnp.dot(s2, gmask, preferred_element_type=jnp.float32) * inv_n
        xn = xc * lax.rsqrt(var_c + eps) * gamma + beta

        # ---- fused proj_in + q/k/v: one (L,C)@(C,3C) matmul ----
        qkv = jnp.dot(xn.astype(matmul_dtype), wqkv,
                      preferred_element_type=jnp.float32) + bqkv               # (L, 3C) f32
        qkv = qkv.astype(matmul_dtype)

        # ---- per-head scaled-dot-product attention ----
        for h in range(n_head):
            qh = qkv[:, h * d_k:(h + 1) * d_k]
            kh = qkv[:, C + h * d_k:C + (h + 1) * d_k]
            vh = qkv[:, 2 * C + h * d_k:2 * C + (h + 1) * d_k]
            s = lax.dot_general(qh, kh, (((1,), (1,)), ((), ())),
                                preferred_element_type=jnp.float32) * scale    # (L, L)
            s = s - jnp.max(s, axis=-1, keepdims=True)
            p = jnp.exp(s)
            p = p * pl.reciprocal(jnp.sum(p, axis=-1, keepdims=True), approx=True)
            racc_ref[h * L:(h + 1) * L, :] = jnp.dot(
                p.astype(matmul_dtype), vh, preferred_element_type=jnp.float32)

        # ---- exact PyTorch `res.view(b, -1, n_channels)` head/sequence interleave ----
        # merged[l', j*d_k + d] == racc[l'*n_head + j, d]  -> column block j is every
        # n_head-th row of the head-major scratch.
        res = jnp.concatenate(
            [racc_ref[pl.ds(j, L, stride=n_head), :] for j in range(n_head)], axis=1)

        # ---- to_out + residual (lane-dense (L, C) store) ----
        o_ref[bi] = (jnp.dot(res.astype(matmul_dtype), wo,
                             preferred_element_type=jnp.float32) + bo + x)


def _pick_block_b(B, L, C, budget_bytes=4 * 1024 * 1024):
    """Largest divisor of B whose per-step working set stays within a VMEM budget."""
    per_elem = 4 * (6 * L * C + 2 * L * L)          # rough f32 in-kernel working set
    bb = int(max(1, min(B, budget_bytes // max(per_elem, 1))))
    while B % bb:
        bb -= 1
    return bb


def attention_block(x_nchw, params, *, n_head=8, n_groups=32, eps=1e-5,
                    matmul_dtype=jnp.bfloat16, block_b=None):
    """Pallas TPU forward of AttentionBlock.  x_nchw: (B, C, H, W) float32."""
    B, C, H, W = x_nchw.shape
    L = H * W
    d_k = C // n_head
    assert C % n_groups == 0 and C % n_head == 0

    # 'b c h w -> b (h w) c'
    x_blc = jnp.transpose(x_nchw, (0, 2, 3, 1)).reshape(B, L, C)

    gamma = params["gamma"].reshape(1, C).astype(jnp.float32)
    beta = params["beta"].reshape(1, C).astype(jnp.float32)

    # Fold proj_in (1x1 conv) into q/k/v:  q = (xn@wp+bp)@wq+bq == xn@(wp@wq) + (bp@wq+bq)
    with jax.default_matmul_precision("float32"):
        w_stack = jnp.concatenate([params["wq"], params["wk"], params["wv"]], axis=1)  # (C,3C)
        wqkv = params["wp"] @ w_stack                                                  # (C,3C)
        bqkv = (params["bp"] @ w_stack
                + jnp.concatenate([params["bq"], params["bk"], params["bv"]]))
    wqkv = wqkv.astype(matmul_dtype)
    bqkv = bqkv.reshape(1, 3 * C).astype(jnp.float32)
    wo = params["wo"].astype(matmul_dtype)
    bo = params["bo"].reshape(1, C).astype(jnp.float32)

    # Group-membership matrix, hoisted out of the kernel (constant input).
    grp = jnp.arange(C, dtype=jnp.int32) // (C // n_groups)
    gmask = (grp[:, None] == grp[None, :]).astype(jnp.float32)                         # (C,C)

    if block_b is None:
        block_b = _pick_block_b(B, L, C)
    grid = (B // block_b,)

    def const2d(shape):
        return pl.BlockSpec(shape, lambda b: (0, 0))

    flops = B * (2 * L * C * 3 * C + 4 * L * L * C + 2 * L * C * C)
    transcend = B * (n_head * L * L + n_head * L + C)
    bytes_acc = 4 * 2 * B * L * C + 4 * (C * 3 * C + 2 * C * C + 6 * C)

    out = pl.pallas_call(
        functools.partial(_fused_attn_kernel, n_head=n_head, n_groups=n_groups,
                          eps=eps, matmul_dtype=matmul_dtype),
        out_shape=jax.ShapeDtypeStruct((B, L, C), jnp.float32),
        grid=grid,
        in_specs=[
            pl.BlockSpec((block_b, L, C), lambda b: (b, 0, 0)),   # x
            const2d((C, C)),                                      # gmask
            const2d((1, C)),                                      # gamma
            const2d((1, C)),                                      # beta
            const2d((C, 3 * C)),                                  # wqkv (folded proj_in)
            const2d((1, 3 * C)),                                  # bqkv
            const2d((C, C)),                                      # wo
            const2d((1, C)),                                      # bo
        ],
        out_specs=pl.BlockSpec((block_b, L, C), lambda b: (b, 0, 0)),
        scratch_shapes=[pltpu.VMEM((n_head * L, d_k), jnp.float32)],
        compiler_params=pltpu.CompilerParams(
            dimension_semantics=("parallel",),
            vmem_limit_bytes=32 * 1024 * 1024),
        cost_estimate=pl.CostEstimate(flops=int(flops),
                                      transcendentals=int(transcend),
                                      bytes_accessed=int(bytes_acc)),
    )(x_blc, gmask, gamma, beta, wqkv, bqkv, wo, bo)

    # 'b (h w) c -> b c h w'   (matches res.transpose(1,2).view(b, c, h, w))
    return jnp.transpose(out, (0, 2, 1)).reshape(B, C, H, W)


def init_params(key, C):
    """Deterministic synthetic parameters (weights already stored as (in, out))."""
    ks = jax.random.split(key, 12)
    s = 0.05
    return {
        "gamma": 1.0 + 0.1 * jax.random.normal(ks[0], (C,), jnp.float32),
        "beta": 0.1 * jax.random.normal(ks[1], (C,), jnp.float32),
        "wp": s * jax.random.normal(ks[2], (C, C), jnp.float32),
        "bp": s * jax.random.normal(ks[3], (C,), jnp.float32),
        "wq": s * jax.random.normal(ks[4], (C, C), jnp.float32),
        "bq": s * jax.random.normal(ks[5], (C,), jnp.float32),
        "wk": s * jax.random.normal(ks[6], (C, C), jnp.float32),
        "bk": s * jax.random.normal(ks[7], (C,), jnp.float32),
        "wv": s * jax.random.normal(ks[8], (C, C), jnp.float32),
        "bv": s * jax.random.normal(ks[9], (C,), jnp.float32),
        "wo": s * jax.random.normal(ks[10], (C, C), jnp.float32),
        "bo": s * jax.random.normal(ks[11], (C,), jnp.float32),
    }


def reference(x, params, *, n_head, n_groups, eps=1e-5):
    """Pure-JAX replica of the PyTorch forward (including its head-merge view)."""
    B, C, H, W = x.shape
    L = H * W
    cg = C // n_groups
    d_k = C // n_head
    with jax.default_matmul_precision("float32"):
        xg = x.reshape(B, n_groups, cg, H, W)
        mean = xg.mean(axis=(2, 3, 4), keepdims=True)
        var = ((xg - mean) ** 2).mean(axis=(2, 3, 4), keepdims=True)
        xn = ((xg - mean) / jnp.sqrt(var + eps)).reshape(B, C, H, W)
        xn = xn * params["gamma"][None, :, None, None] + params["beta"][None, :, None, None]
        x1 = jnp.einsum("bchw,cd->bdhw", xn, params["wp"]) + params["bp"][None, :, None, None]
        x1 = jnp.transpose(x1, (0, 2, 3, 1)).reshape(B, L, C)
        q = x1 @ params["wq"] + params["bq"]
        k = x1 @ params["wk"] + params["bk"]
        v = x1 @ params["wv"] + params["bv"]

        def split(t):
            return jnp.transpose(t.reshape(B, L, n_head, d_k), (0, 2, 1, 3)).reshape(B * n_head, L, d_k)

        q, k, v = split(q), split(k), split(v)
        attn = jnp.einsum("bic,bjc->bij", q, k) * (d_k ** -0.5)
        score = jax.nn.softmax(attn, axis=-1)
        res = jnp.einsum("bij,bjc->bic", score, v)
        res = res.reshape(B, L, C)          # == torch `res.view(b, -1, n_channels)`
        res = res @ params["wo"] + params["bo"]
        res = jnp.transpose(res, (0, 2, 1)).reshape(B, C, H, W)
        return res + x


if __name__ == "__main__":
    key = jax.random.PRNGKey(0)
    kx, kp = jax.random.split(key)

    # n_channels must be divisible by n_groups (=32) and n_head (=8)
    B, C, H, W = 2, 64, 8, 8
    n_head, n_groups = 8, 32

    x = jax.random.normal(kx, (B, C, H, W), jnp.float32)
    params = init_params(kp, C)

    ref = reference(x, params, n_head=n_head, n_groups=n_groups)

    # Strict f32 path (exact module semantics).
    out_f32 = attention_block(x, params, n_head=n_head, n_groups=n_groups,
                              matmul_dtype=jnp.float32)
    out_f32 = jax.block_until_ready(out_f32)
    assert out_f32.shape == (B, C, H, W)
    err32 = float(jnp.max(jnp.abs(out_f32 - ref)))
    assert err32 < 2e-3, f"f32 max abs err {err32}"

    # bf16-MXU-operand fast path (v5e/v6e/v7x MXUs are bf16-native); f32 accumulation
    # and f32 softmax statistics, so only operand rounding differs -> looser tolerance.
    out_bf16 = attention_block(x, params, n_head=n_head, n_groups=n_groups,
                               matmul_dtype=jnp.bfloat16)
    out_bf16 = jax.block_until_ready(out_bf16)
    err16 = float(jnp.max(jnp.abs(out_bf16 - ref)))
    assert err16 < 1e-2, f"bf16 max abs err {err16}"

    print("KERNEL_OK")
</pallas_src>

<mosaic_0001>
module attributes {stable_mosaic.version = 11 : i64} {
  func.func @_fused_attn_kernel(%arg0: i32, %arg1: memref<2x64x64xf32, #tpu.memory_space<vmem>>, %arg2: memref<64x64xf32, #tpu.memory_space<vmem>>, %arg3: memref<1x64xf32, #tpu.memory_space<vmem>>, %arg4: memref<1x64xf32, #tpu.memory_space<vmem>>, %arg5: memref<64x192xf32, #tpu.memory_space<vmem>>, %arg6: memref<1x192xf32, #tpu.memory_space<vmem>>, %arg7: memref<64x64xf32, #tpu.memory_space<vmem>>, %arg8: memref<1x64xf32, #tpu.memory_space<vmem>>, %arg9: memref<2x64x64xf32, #tpu.memory_space<vmem>>, %arg10: memref<512x8xf32, #tpu.memory_space<vmem>>) attributes {dimension_semantics = [#tpu.dimension_semantics<parallel>], iteration_bounds = array<i64: 1>, scalar_prefetch = 0 : i64, scratch_operands = 1 : i64, tpu.core_type = #tpu.core_type<tc>, window_params = [{transform_indices = @transform_0, window_bounds = array<i64: 2, 64, 64>}, {pipeline_mode = #tpu.pipeline_mode<synchronous>, transform_indices = @transform_1, window_bounds = array<i64: 64, 64>}, {pipeline_mode = #tpu.pipeline_mode<synchronous>, transform_indices = @transform_2, window_bounds = array<i64: 1, 64>}, {pipeline_mode = #tpu.pipeline_mode<synchronous>, transform_indices = @transform_3, window_bounds = array<i64: 1, 64>}, {pipeline_mode = #tpu.pipeline_mode<synchronous>, transform_indices = @transform_4, window_bounds = array<i64: 64, 192>}, {pipeline_mode = #tpu.pipeline_mode<synchronous>, transform_indices = @transform_5, window_bounds = array<i64: 1, 192>}, {pipeline_mode = #tpu.pipeline_mode<synchronous>, transform_indices = @transform_6, window_bounds = array<i64: 64, 64>}, {pipeline_mode = #tpu.pipeline_mode<synchronous>, transform_indices = @transform_7, window_bounds = array<i64: 1, 64>}, {transform_indices = @transform_8, window_bounds = array<i64: 2, 64, 64>}]} {
    %c0 = arith.constant 0 : index
    %c0_0 = arith.constant 0 : index
    %0 = vector.load %arg2[%c0, %c0_0] : memref<64x64xf32, #tpu.memory_space<vmem>>, vector<64x64xf32>
    %c0_1 = arith.constant 0 : index
    %c0_2 = arith.constant 0 : index
    %1 = vector.load %arg3[%c0_1, %c0_2] : memref<1x64xf32, #tpu.memory_space<vmem>>, vector<1x64xf32>
    %c0_3 = arith.constant 0 : index
    %c0_4 = arith.constant 0 : index
    %2 = vector.load %arg4[%c0_3, %c0_4] : memref<1x64xf32, #tpu.memory_space<vmem>>, vector<1x64xf32>
    %c0_5 = arith.constant 0 : index
    %c0_6 = arith.constant 0 : index
    %3 = vector.load %arg5[%c0_5, %c0_6] : memref<64x192xf32, #tpu.memory_space<vmem>>, vector<64x192xf32>
    %c0_7 = arith.constant 0 : index
    %c0_8 = arith.constant 0 : index
    %4 = vector.load %arg6[%c0_7, %c0_8] : memref<1x192xf32, #tpu.memory_space<vmem>>, vector<1x192xf32>
    %c0_9 = arith.constant 0 : index
    %c0_10 = arith.constant 0 : index
    %5 = vector.load %arg7[%c0_9, %c0_10] : memref<64x64xf32, #tpu.memory_space<vmem>>, vector<64x64xf32>
    %c0_11 = arith.constant 0 : index
    %c0_12 = arith.constant 0 : index
    %6 = vector.load %arg8[%c0_11, %c0_12] : memref<1x64xf32, #tpu.memory_space<vmem>>, vector<1x64xf32>
    %c0_13 = arith.constant 0 : index
    %c0_14 = arith.constant 0 : index
    %c0_15 = arith.constant 0 : index
    %7 = vector.load %arg1[%c0_13, %c0_14, %c0_15] : memref<2x64x64xf32, #tpu.memory_space<vmem>>, vector<1x64x64xf32>
    %8 = vector.shape_cast %7 : vector<1x64x64xf32> to vector<64x64xf32>
    %cst = arith.constant dense<0.000000e+00> : vector<64xf32>
    %9 = vector.multi_reduction <add>, %8, %cst [0] : vector<64x64xf32> to vector<64xf32>
    %10 = vector.shape_cast %9 : vector<64xf32> to vector<1x64xf32>
    %cst_16 = arith.constant dense<0.000000e+00> : vector<1x64xf32>
    %11 = tpu.matmul %10, %0, %cst_16 {dimension_numbers = #tpu.dot_dimension_numbers<[1], [0], [0], [1], [0, 0, 1, 1], [], []>} : vector<1x64xf32>, vector<64x64xf32>, vector<1x64xf32> -> vector<1x64xf32>
    %cst_17 = arith.constant 7.812500e-03 : f32
    %12 = vector.broadcast %cst_17 : f32 to vector<1x64xf32>
    %13 = arith.mulf %11, %12 : vector<1x64xf32>
    %14 = vector.broadcast %13 : vector<1x64xf32> to vector<64x64xf32>
    %15 = arith.subf %8, %14 : vector<64x64xf32>
    %16 = arith.mulf %15, %15 : vector<64x64xf32>
    %cst_18 = arith.constant dense<0.000000e+00> : vector<64xf32>
    %17 = vector.multi_reduction <add>, %16, %cst_18 [0] : vector<64x64xf32> to vector<64xf32>
    %18 = vector.shape_cast %17 : vector<64xf32> to vector<1x64xf32>
    %cst_19 = arith.constant dense<0.000000e+00> : vector<1x64xf32>
    %19 = tpu.matmul %18, %0, %cst_19 {dimension_numbers = #tpu.dot_dimension_numbers<[1], [0], [0], [1], [0, 0, 1, 1], [], []>} : vector<1x64xf32>, vector<64x64xf32>, vector<1x64xf32> -> vector<1x64xf32>
    %cst_20 = arith.constant 7.812500e-03 : f32
    %20 = vector.broadcast %cst_20 : f32 to vector<1x64xf32>
    %21 = arith.mulf %19, %20 : vector<1x64xf32>
    %cst_21 = arith.constant 9.99999974E-6 : f32
    %22 = vector.broadcast %cst_21 : f32 to vector<1x64xf32>
    %23 = arith.addf %21, %22 : vector<1x64xf32>
    %24 = math.rsqrt %23 : vector<1x64xf32>
    %25 = vector.broadcast %24 : vector<1x64xf32> to vector<64x64xf32>
    %26 = arith.mulf %15, %25 : vector<64x64xf32>
    %27 = vector.broadcast %1 : vector<1x64xf32> to vector<64x64xf32>
    %28 = arith.mulf %26, %27 : vector<64x64xf32>
    %29 = vector.broadcast %2 : vector<1x64xf32> to vector<64x64xf32>
    %30 = arith.addf %28, %29 : vector<64x64xf32>
    %cst_22 = arith.constant dense<0.000000e+00> : vector<64x192xf32>
    %31 = tpu.matmul %30, %3, %cst_22 {dimension_numbers = #tpu.dot_dimension_numbers<[1], [0], [0], [1], [0, 0, 1, 1], [], []>} : vector<64x64xf32>, vector<64x192xf32>, vector<64x192xf32> -> vector<64x192xf32>
    %32 = vector.broadcast %4 : vector<1x192xf32> to vector<64x192xf32>
    %33 = arith.addf %31, %32 : vector<64x192xf32>
    %34 = vector.extract_strided_slice %33 {offsets = [0, 0], sizes = [64, 8], strides = [1, 1]} : vector<64x192xf32> to vector<64x8xf32>
    %35 = vector.extract_strided_slice %33 {offsets = [0, 64], sizes = [64, 8], strides = [1, 1]} : vector<64x192xf32> to vector<64x8xf32>
    %36 = vector.extract_strided_slice %33 {offsets = [0, 128], sizes = [64, 8], strides = [1, 1]} : vector<64x192xf32> to vector<64x8xf32>
    %cst_23 = arith.constant dense<0.000000e+00> : vector<64x64xf32>
    %37 = tpu.matmul %34, %35, %cst_23 {dimension_numbers = #tpu.dot_dimension_numbers<[1], [1], [0], [0], [0, 0, 1, 0], [], []>} : vector<64x8xf32>, vector<64x8xf32>, vector<64x64xf32> -> vector<64x64xf32>
    %cst_24 = arith.constant 0.353553385 : f32
    %38 = vector.broadcast %cst_24 : f32 to vector<64x64xf32>
    %39 = arith.mulf %37, %38 : vector<64x64xf32>
    %cst_25 = arith.constant dense<0xFF800000> : vector<64xf32>
    %40 = vector.multi_reduction <maximumf>, %39, %cst_25 [1] : vector<64x64xf32> to vector<64xf32>
    %41 = vector.shape_cast %40 : vector<64xf32> to vector<64x1xf32>
    %42 = vector.broadcast %41 : vector<64x1xf32> to vector<64x64xf32>
    %43 = arith.subf %39, %42 : vector<64x64xf32>
    %44 = math.exp %43 : vector<64x64xf32>
    %cst_26 = arith.constant dense<0.000000e+00> : vector<64xf32>
    %45 = vector.multi_reduction <add>, %44, %cst_26 [1] : vector<64x64xf32> to vector<64xf32>
    %46 = vector.shape_cast %45 : vector<64xf32> to vector<64x1xf32>
    %47 = tpu.reciprocal %46 {approx = true} : vector<64x1xf32> -> vector<64x1xf32>
    %48 = vector.broadcast %47 : vector<64x1xf32> to vector<64x64xf32>
    %49 = arith.mulf %44, %48 : vector<64x64xf32>
    %cst_27 = arith.constant dense<0.000000e+00> : vector<64x8xf32>
    %50 = tpu.matmul %49, %36, %cst_27 {dimension_numbers = #tpu.dot_dimension_numbers<[1], [0], [0], [1], [0, 0, 1, 1], [], []>} : vector<64x64xf32>, vector<64x8xf32>, vector<64x8xf32> -> vector<64x8xf32>
    %c0_28 = arith.constant 0 : index
    %c0_29 = arith.constant 0 : index
    %51 = vector.load %arg10[%c0_28, %c0_29] : memref<512x8xf32, #tpu.memory_space<vmem>>, vector<64x8xf32>
    tpu.vector_store %arg10[%c0_28, %c0_29], %50 {strides = array<i32>} : memref<512x8xf32, #tpu.memory_space<vmem>>, vector<64x8xf32>,
    %52 = vector.extract_strided_slice %33 {offsets = [0, 8], sizes = [64, 8], strides = [1, 1]} : vector<64x192xf32> to vector<64x8xf32>
    %53 = vector.extract_strided_slice %33 {offsets = [0, 72], sizes = [64, 8], strides = [1, 1]} : vector<64x192xf32> to vector<64x8xf32>
    %54 = vector.extract_strided_slice %33 {offsets = [0, 136], sizes = [64, 8], strides = [1, 1]} : vector<64x192xf32> to vector<64x8xf32>
    %cst_30 = arith.constant dense<0.000000e+00> : vector<64x64xf32>
    %55 = tpu.matmul %52, %53, %cst_30 {dimension_numbers = #tpu.dot_dimension_numbers<[1], [1], [0], [0], [0, 0, 1, 0], [], []>} : vector<64x8xf32>, vector<64x8xf32>, vector<64x64xf32> -> vector<64x64xf32>
    %cst_31 = arith.constant 0.353553385 : f32
    %56 = vector.broadcast %cst_31 : f32 to vector<64x64xf32>
    %57 = arith.mulf %55, %56 : vector<64x64xf32>
    %cst_32 = arith.constant dense<0xFF800000> : vector<64xf32>
    %58 = vector.multi_reduction <maximumf>, %57, %cst_32 [1] : vector<64x64xf32> to vector<64xf32>
    %59 = vector.shape_cast %58 : vector<64xf32> to vector<64x1xf32>
    %60 = vector.broadcast %59 : vector<64x1xf32> to vector<64x64xf32>
    %61 = arith.subf %57, %60 : vector<64x64xf32>
    %62 = math.exp %61 : vector<64x64xf32>
    %cst_33 = arith.constant dense<0.000000e+00> : vector<64xf32>
    %63 = vector.multi_reduction <add>, %62, %cst_33 [1] : vector<64x64xf32> to vector<64xf32>
    %64 = vector.shape_cast %63 : vector<64xf32> to vector<64x1xf32>
    %65 = tpu.reciprocal %64 {approx = true} : vector<64x1xf32> -> vector<64x1xf32>
    %66 = vector.broadcast %65 : vector<64x1xf32> to vector<64x64xf32>
    %67 = arith.mulf %62, %66 : vector<64x64xf32>
    %cst_34 = arith.constant dense<0.000000e+00> : vector<64x8xf32>
    %68 = tpu.matmul %67, %54, %cst_34 {dimension_numbers = #tpu.dot_dimension_numbers<[1], [0], [0], [1], [0, 0, 1, 1], [], []>} : vector<64x64xf32>, vector<64x8xf32>, vector<64x8xf32> -> vector<64x8xf32>
    %c64 = arith.constant 64 : index
    %c0_35 = arith.constant 0 : index
    %69 = vector.load %arg10[%c64, %c0_35] : memref<512x8xf32, #tpu.memory_space<vmem>>, vector<64x8xf32>
    tpu.vector_store %arg10[%c64, %c0_35], %68 {strides = array<i32>} : memref<512x8xf32, #tpu.memory_space<vmem>>, vector<64x8xf32>,
    %70 = vector.extract_strided_slice %33 {offsets = [0, 16], sizes = [64, 8], strides = [1, 1]} : vector<64x192xf32> to vector<64x8xf32>
    %71 = vector.extract_strided_slice %33 {offsets = [0, 80], sizes = [64, 8], strides = [1, 1]} : vector<64x192xf32> to vector<64x8xf32>
    %72 = vector.extract_strided_slice %33 {offsets = [0, 144], sizes = [64, 8], strides = [1, 1]} : vector<64x192xf32> to vector<64x8xf32>
    %cst_36 = arith.constant dense<0.000000e+00> : vector<64x64xf32>
    %73 = tpu.matmul %70, %71, %cst_36 {dimension_numbers = #tpu.dot_dimension_numbers<[1], [1], [0], [0], [0, 0, 1, 0], [], []>} : vector<64x8xf32>, vector<64x8xf32>, vector<64x64xf32> -> vector<64x64xf32>
    %cst_37 = arith.constant 0.353553385 : f32
    %74 = vector.broadcast %cst_37 : f32 to vector<64x64xf32>
    %75 = arith.mulf %73, %74 : vector<64x64xf32>
    %cst_38 = arith.constant dense<0xFF800000> : vector<64xf32>
    %76 = vector.multi_reduction <maximumf>, %75, %cst_38 [1] : vector<64x64xf32> to vector<64xf32>
    %77 = vector.shape_cast %76 : vector<64xf32> to vector<64x1xf32>
    %78 = vector.broadcast %77 : vector<64x1xf32> to vector<64x64xf32>
    %79 = arith.subf %75, %78 : vector<64x64xf32>
    %80 = math.exp %79 : vector<64x64xf32>
    %cst_39 = arith.constant dense<0.000000e+00> : vector<64xf32>
    %81 = vector.multi_reduction <add>, %80, %cst_39 [1] : vector<64x64xf32> to vector<64xf32>
    %82 = vector.shape_cast %81 : vector<64xf32> to vector<64x1xf32>
    %83 = tpu.reciprocal %82 {approx = true} : vector<64x1xf32> -> vector<64x1xf32>
    %84 = vector.broadcast %83 : vector<64x1xf32> to vector<64x64xf32>
    %85 = arith.mulf %80, %84 : vector<64x64xf32>
    %cst_40 = arith.constant dense<0.000000e+00> : vector<64x8xf32>
    %86 = tpu.matmul %85, %72, %cst_40 {dimension_numbers = #tpu.dot_dimension_numbers<[1], [0], [0], [1], [0, 0, 1, 1], [], []>} : vector<64x64xf32>, vector<64x8xf32>, vector<64x8xf32> -> vector<64x8xf32>
    %c128 = arith.constant 128 : index
    %c0_41 = arith.constant 0 : index
    %87 = vector.load %arg10[%c128, %c0_41] : memref<512x8xf32, #tpu.memory_space<vmem>>, vector<64x8xf32>
    tpu.vector_store %arg10[%c128, %c0_41], %86 {strides = array<i32>} : memref<512x8xf32, #tpu.memory_space<vmem>>, vector<64x8xf32>,
    %88 = vector.extract_strided_slice %33 {offsets = [0, 24], sizes = [64, 8], strides = [1, 1]} : vector<64x192xf32> to vector<64x8xf32>
    %89 = vector.extract_strided_slice %33 {offsets = [0, 88], sizes = [64, 8], strides = [1, 1]} : vector<64x192xf32> to vector<64x8xf32>
    %90 = vector.extract_strided_slice %33 {offsets = [0, 152], sizes = [64, 8], strides = [1, 1]} : vector<64x192xf32> to vector<64x8xf32>
    %cst_42 = arith.constant dense<0.000000e+00> : vector<64x64xf32>
    %91 = tpu.matmul %88, %89, %cst_42 {dimension_numbers = #tpu.dot_dimension_numbers<[1], [1], [0], [0], [0, 0, 1, 0], [], []>} : vector<64x8xf32>, vector<64x8xf32>, vector<64x64xf32> -> vector<64x64xf32>
    %cst_43 = arith.constant 0.353553385 : f32
    %92 = vector.broadcast %cst_43 : f32 to vector<64x64xf32>
    %93 = arith.mulf %91, %92 : vector<64x64xf32>
    %cst_44 = arith.constant dense<0xFF800000> : vector<64xf32>
    %94 = vector.multi_reduction <maximumf>, %93, %cst_44 [1] : vector<64x64xf32> to vector<64xf32>
    %95 = vector.shape_cast %94 : vector<64xf32> to vector<64x1xf32>
    %96 = vector.broadcast %95 : vector<64x1xf32> to vector<64x64xf32>
    %97 = arith.subf %93, %96 : vector<64x64xf32>
    %98 = math.exp %97 : vector<64x64xf32>
    %cst_45 = arith.constant dense<0.000000e+00> : vector<64xf32>
    %99 = vector.multi_reduction <add>, %98, %cst_45 [1] : vector<64x64xf32> to vector<64xf32>
    %100 = vector.shape_cast %99 : vector<64xf32> to vector<64x1xf32>
    %101 = tpu.reciprocal %100 {approx = true} : vector<64x1xf32> -> vector<64x1xf32>
    %102 = vector.broadcast %101 : vector<64x1xf32> to vector<64x64xf32>
    %103 = arith.mulf %98, %102 : vector<64x64xf32>
    %cst_46 = arith.constant dense<0.000000e+00> : vector<64x8xf32>
    %104 = tpu.matmul %103, %90, %cst_46 {dimension_numbers = #tpu.dot_dimension_numbers<[1], [0], [0], [1], [0, 0, 1, 1], [], []>} : vector<64x64xf32>, vector<64x8xf32>, vector<64x8xf32> -> vector<64x8xf32>
    %c192 = arith.constant 192 : index
    %c0_47 = arith.constant 0 : index
    %105 = vector.load %arg10[%c192, %c0_47] : memref<512x8xf32, #tpu.memory_space<vmem>>, vector<64x8xf32>
    tpu.vector_store %arg10[%c192, %c0_47], %104 {strides = array<i32>} : memref<512x8xf32, #tpu.memory_space<vmem>>, vector<64x8xf32>,
    %106 = vector.extract_strided_slice %33 {offsets = [0, 32], sizes = [64, 8], strides = [1, 1]} : vector<64x192xf32> to vector<64x8xf32>
    %107 = vector.extract_strided_slice %33 {offsets = [0, 96], sizes = [64, 8], strides = [1, 1]} : vector<64x192xf32> to vector<64x8xf32>
    %108 = vector.extract_strided_slice %33 {offsets = [0, 160], sizes = [64, 8], strides = [1, 1]} : vector<64x192xf32> to vector<64x8xf32>
    %cst_48 = arith.constant dense<0.000000e+00> : vector<64x64xf32>
    %109 = tpu.matmul %106, %107, %cst_48 {dimension_numbers = #tpu.dot_dimension_numbers<[1], [1], [0], [0], [0, 0, 1, 0], [], []>} : vector<64x8xf32>, vector<64x8xf32>, vector<64x64xf32> -> vector<64x64xf32>
    %cst_49 = arith.constant 0.353553385 : f32
    %110 = vector.broadcast %cst_49 : f32 to vector<64x64xf32>
    %111 = arith.mulf %109, %110 : vector<64x64xf32>
    %cst_50 = arith.constant dense<0xFF800000> : vector<64xf32>
    %112 = vector.multi_reduction <maximumf>, %111, %cst_50 [1] : vector<64x64xf32> to vector<64xf32>
    %113 = vector.shape_cast %112 : vector<64xf32> to vector<64x1xf32>
    %114 = vector.broadcast %113 : vector<64x1xf32> to vector<64x64xf32>
    %115 = arith.subf %111, %114 : vector<64x64xf32>
    %116 = math.exp %115 : vector<64x64xf32>
    %cst_51 = arith.constant dense<0.000000e+00> : vector<64xf32>
    %117 = vector.multi_reduction <add>, %116, %cst_51 [1] : vector<64x64xf32> to vector<64xf32>
    %118 = vector.shape_cast %117 : vector<64xf32> to vector<64x1xf32>
    %119 = tpu.reciprocal %118 {approx = true} : vector<64x1xf32> -> vector<64x1xf32>
    %120 = vector.broadcast %119 : vector<64x1xf32> to vector<64x64xf32>
    %121 = arith.mulf %116, %120 : vector<64x64xf32>
    %cst_52 = arith.constant dense<0.000000e+00> : vector<64x8xf32>
    %122 = tpu.matmul %121, %108, %cst_52 {dimension_numbers = #tpu.dot_dimension_numbers<[1], [0], [0], [1], [0, 0, 1, 1], [], []>} : vector<64x64xf32>, vector<64x8xf32>, vector<64x8xf32> -> vector<64x8xf32>
    %c256 = arith.constant 256 : index
    %c0_53 = arith.constant 0 : index
    %123 = vector.load %arg10[%c256, %c0_53] : memref<512x8xf32, #tpu.memory_space<vmem>>, vector<64x8xf32>
    tpu.vector_store %arg10[%c256, %c0_53], %122 {strides = array<i32>} : memref<512x8xf32, #tpu.memory_space<vmem>>, vector<64x8xf32>,
    %124 = vector.extract_strided_slice %33 {offsets = [0, 40], sizes = [64, 8], strides = [1, 1]} : vector<64x192xf32> to vector<64x8xf32>
    %125 = vector.extract_strided_slice %33 {offsets = [0, 104], sizes = [64, 8], strides = [1, 1]} : vector<64x192xf32> to vector<64x8xf32>
    %126 = vector.extract_strided_slice %33 {offsets = [0, 168], sizes = [64, 8], strides = [1, 1]} : vector<64x192xf32> to vector<64x8xf32>
    %cst_54 = arith.constant dense<0.000000e+00> : vector<64x64xf32>
    %127 = tpu.matmul %124, %125, %cst_54 {dimension_numbers = #tpu.dot_dimension_numbers<[1], [1], [0], [0], [0, 0, 1, 0], [], []>} : vector<64x8xf32>, vector<64x8xf32>, vector<64x64xf32> -> vector<64x64xf32>
    %cst_55 = arith.constant 0.353553385 : f32
    %128 = vector.broadcast %cst_55 : f32 to vector<64x64xf32>
    %129 = arith.mulf %127, %128 : vector<64x64xf32>
    %cst_56 = arith.constant dense<0xFF800000> : vector<64xf32>
    %130 = vector.multi_reduction <maximumf>, %129, %cst_56 [1] : vector<64x64xf32> to vector<64xf32>
    %131 = vector.shape_cast %130 : vector<64xf32> to vector<64x1xf32>
    %132 = vector.broadcast %131 : vector<64x1xf32> to vector<64x64xf32>
    %133 = arith.subf %129, %132 : vector<64x64xf32>
    %134 = math.exp %133 : vector<64x64xf32>
    %cst_57 = arith.constant dense<0.000000e+00> : vector<64xf32>
    %135 = vector.multi_reduction <add>, %134, %cst_57 [1] : vector<64x64xf32> to vector<64xf32>
    %136 = vector.shape_cast %135 : vector<64xf32> to vector<64x1xf32>
    %137 = tpu.reciprocal %136 {approx = true} : vector<64x1xf32> -> vector<64x1xf32>
    %138 = vector.broadcast %137 : vector<64x1xf32> to vector<64x64xf32>
    %139 = arith.mulf %134, %138 : vector<64x64xf32>
    %cst_58 = arith.constant dense<0.000000e+00> : vector<64x8xf32>
    %140 = tpu.matmul %139, %126, %cst_58 {dimension_numbers = #tpu.dot_dimension_numbers<[1], [0], [0], [1], [0, 0, 1, 1], [], []>} : vector<64x64xf32>, vector<64x8xf32>, vector<64x8xf32> -> vector<64x8xf32>
    %c320 = arith.constant 320 : index
    %c0_59 = arith.constant 0 : index
    %141 = vector.load %arg10[%c320, %c0_59] : memref<512x8xf32, #tpu.memory_space<vmem>>, vector<64x8xf32>
    tpu.vector_store %arg10[%c320, %c0_59], %140 {strides = array<i32>} : memref<512x8xf32, #tpu.memory_space<vmem>>, vector<64x8xf32>,
    %142 = vector.extract_strided_slice %33 {offsets = [0, 48], sizes = [64, 8], strides = [1, 1]} : vector<64x192xf32> to vector<64x8xf32>
    %143 = vector.extract_strided_slice %33 {offsets = [0, 112], sizes = [64, 8], strides = [1, 1]} : vector<64x192xf32> to vector<64x8xf32>
    %144 = vector.extract_strided_slice %33 {offsets = [0, 176], sizes = [64, 8], strides = [1, 1]} : vector<64x192xf32> to vector<64x8xf32>
    %cst_60 = arith.constant dense<0.000000e+00> : vector<64x64xf32>
    %145 = tpu.matmul %142, %143, %cst_60 {dimension_numbers = #tpu.dot_dimension_numbers<[1], [1], [0], [0], [0, 0, 1, 0], [], []>} : vector<64x8xf32>, vector<64x8xf32>, vector<64x64xf32> -> vector<64x64xf32>
    %cst_61 = arith.constant 0.353553385 : f32
    %146 = vector.broadcast %cst_61 : f32 to vector<64x64xf32>
    %147 = arith.mulf %145, %146 : vector<64x64xf32>
    %cst_62 = arith.constant dense<0xFF800000> : vector<64xf32>
    %148 = vector.multi_reduction <maximumf>, %147, %cst_62 [1] : vector<64x64xf32> to vector<64xf32>
    %149 = vector.shape_cast %148 : vector<64xf32> to vector<64x1xf32>
    %150 = vector.broadcast %149 : vector<64x1xf32> to vector<64x64xf32>
    %151 = arith.subf %147, %150 : vector<64x64xf32>
    %152 = math.exp %151 : vector<64x64xf32>
    %cst_63 = arith.constant dense<0.000000e+00> : vector<64xf32>
    %153 = vector.multi_reduction <add>, %152, %cst_63 [1] : vector<64x64xf32> to vector<64xf32>
    %154 = vector.shape_cast %153 : vector<64xf32> to vector<64x1xf32>
    %155 = tpu.reciprocal %154 {approx = true} : vector<64x1xf32> -> vector<64x1xf32>
    %156 = vector.broadcast %155 : vector<64x1xf32> to vector<64x64xf32>
    %157 = arith.mulf %152, %156 : vector<64x64xf32>
    %cst_64 = arith.constant dense<0.000000e+00> : vector<64x8xf32>
    %158 = tpu.matmul %157, %144, %cst_64 {dimension_numbers = #tpu.dot_dimension_numbers<[1], [0], [0], [1], [0, 0, 1, 1], [], []>} : vector<64x64xf32>, vector<64x8xf32>, vector<64x8xf32> -> vector<64x8xf32>
    %c384 = arith.constant 384 : index
    %c0_65 = arith.constant 0 : index
    %159 = vector.load %arg10[%c384, %c0_65] : memref<512x8xf32, #tpu.memory_space<vmem>>, vector<64x8xf32>
    tpu.vector_store %arg10[%c384, %c0_65], %158 {strides = array<i32>} : memref<512x8xf32, #tpu.memory_space<vmem>>, vector<64x8xf32>,
    %160 = vector.extract_strided_slice %33 {offsets = [0, 56], sizes = [64, 8], strides = [1, 1]} : vector<64x192xf32> to vector<64x8xf32>
    %161 = vector.extract_strided_slice %33 {offsets = [0, 120], sizes = [64, 8], strides = [1, 1]} : vector<64x192xf32> to vector<64x8xf32>
    %162 = vector.extract_strided_slice %33 {offsets = [0, 184], sizes = [64, 8], strides = [1, 1]} : vector<64x192xf32> to vector<64x8xf32>
    %cst_66 = arith.constant dense<0.000000e+00> : vector<64x64xf32>
    %163 = tpu.matmul %160, %161, %cst_66 {dimension_numbers = #tpu.dot_dimension_numbers<[1], [1], [0], [0], [0, 0, 1, 0], [], []>} : vector<64x8xf32>, vector<64x8xf32>, vector<64x64xf32> -> vector<64x64xf32>
    %cst_67 = arith.constant 0.353553385 : f32
    %164 = vector.broadcast %cst_67 : f32 to vector<64x64xf32>
    %165 = arith.mulf %163, %164 : vector<64x64xf32>
    %cst_68 = arith.constant dense<0xFF800000> : vector<64xf32>
    %166 = vector.multi_reduction <maximumf>, %165, %cst_68 [1] : vector<64x64xf32> to vector<64xf32>
    %167 = vector.shape_cast %166 : vector<64xf32> to vector<64x1xf32>
    %168 = vector.broadcast %167 : vector<64x1xf32> to vector<64x64xf32>
    %169 = arith.subf %165, %168 : vector<64x64xf32>
    %170 = math.exp %169 : vector<64x64xf32>
    %cst_69 = arith.constant dense<0.000000e+00> : vector<64xf32>
    %171 = vector.multi_reduction <add>, %170, %cst_69 [1] : vector<64x64xf32> to vector<64xf32>
    %172 = vector.shape_cast %171 : vector<64xf32> to vector<64x1xf32>
    %173 = tpu.reciprocal %172 {approx = true} : vector<64x1xf32> -> vector<64x1xf32>
    %174 = vector.broadcast %173 : vector<64x1xf32> to vector<64x64xf32>
    %175 = arith.mulf %170, %174 : vector<64x64xf32>
    %cst_70 = arith.constant dense<0.000000e+00> : vector<64x8xf32>
    %176 = tpu.matmul %175, %162, %cst_70 {dimension_numbers = #tpu.dot_dimension_numbers<[1], [0], [0], [1], [0, 0, 1, 1], [], []>} : vector<64x64xf32>, vector<64x8xf32>, vector<64x8xf32> -> vector<64x8xf32>
    %c448 = arith.constant 448 : index
    %c0_71 = arith.constant 0 : index
    %177 = vector.load %arg10[%c448, %c0_71] : memref<512x8xf32, #tpu.memory_space<vmem>>, vector<64x8xf32>
    tpu.vector_store %arg10[%c448, %c0_71], %176 {strides = array<i32>} : memref<512x8xf32, #tpu.memory_space<vmem>>, vector<64x8xf32>,
    %c0_72 = arith.constant 0 : index
    %c0_73 = arith.constant 0 : index
    %178 = tpu.strided_load %arg10[%c0_72, %c0_73] {strides = array<i32: 8, 1>} : memref<512x8xf32, #tpu.memory_space<vmem>>, vector<64x8xf32>
    %c1 = arith.constant 1 : index
    %c0_74 = arith.constant 0 : index
    %179 = tpu.strided_load %arg10[%c1, %c0_74] {strides = array<i32: 8, 1>} : memref<512x8xf32, #tpu.memory_space<vmem>>, vector<64x8xf32>
    %c2 = arith.constant 2 : index
    %c0_75 = arith.constant 0 : index
    %180 = tpu.strided_load %arg10[%c2, %c0_75] {strides = array<i32: 8, 1>} : memref<512x8xf32, #tpu.memory_space<vmem>>, vector<64x8xf32>
    %c3 = arith.constant 3 : index
    %c0_76 = arith.constant 0 : index
    %181 = tpu.strided_load %arg10[%c3, %c0_76] {strides = array<i32: 8, 1>} : memref<512x8xf32, #tpu.memory_space<vmem>>, vector<64x8xf32>
    %c4 = arith.constant 4 : index
    %c0_77 = arith.constant 0 : index
    %182 = tpu.strided_load %arg10[%c4, %c0_77] {strides = array<i32: 8, 1>} : memref<512x8xf32, #tpu.memory_space<vmem>>, vector<64x8xf32>
    %c5 = arith.constant 5 : index
    %c0_78 = arith.constant 0 : index
    %183 = tpu.strided_load %arg10[%c5, %c0_78] {strides = array<i32: 8, 1>} : memref<512x8xf32, #tpu.memory_space<vmem>>, vector<64x8xf32>
    %c6 = arith.constant 6 : index
    %c0_79 = arith.constant 0 : index
    %184 = tpu.strided_load %arg10[%c6, %c0_79] {strides = array<i32: 8, 1>} : memref<512x8xf32, #tpu.memory_space<vmem>>, vector<64x8xf32>
    %c7 = arith.constant 7 : index
    %c0_80 = arith.constant 0 : index
    %185 = tpu.strided_load %arg10[%c7, %c0_80] {strides = array<i32: 8, 1>} : memref<512x8xf32, #tpu.memory_space<vmem>>, vector<64x8xf32>
    %186 = tpu.concatenate %178, %179, %180, %181, %182, %183, %184, %185 in 1 : vector<64x8xf32>, vector<64x8xf32>, vector<64x8xf32>, vector<64x8xf32>, vector<64x8xf32>, vector<64x8xf32>, vector<64x8xf32>, vector<64x8xf32> -> vector<64x64xf32>
    %cst_81 = arith.constant dense<0.000000e+00> : vector<64x64xf32>
    %187 = tpu.matmul %186, %5, %cst_81 {dimension_numbers = #tpu.dot_dimension_numbers<[1], [0], [0], [1], [0, 0, 1, 1], [], []>} : vector<64x64xf32>, vector<64x64xf32>, vector<64x64xf32> -> vector<64x64xf32>
    %188 = vector.broadcast %6 : vector<1x64xf32> to vector<64x64xf32>
    %189 = arith.addf %187, %188 : vector<64x64xf32>
    %190 = arith.addf %189, %8 : vector<64x64xf32>
    %c0_82 = arith.constant 0 : index
    %c0_83 = arith.constant 0 : index
    %c0_84 = arith.constant 0 : index
    %191 = vector.load %arg9[%c0_82, %c0_83, %c0_84] : memref<2x64x64xf32, #tpu.memory_space<vmem>>, vector<1x64x64xf32>
    %192 = vector.shape_cast %191 : vector<1x64x64xf32> to vector<64x64xf32>
    %193 = vector.shape_cast %190 : vector<64x64xf32> to vector<1x64x64xf32>
    tpu.vector_store %arg9[%c0_82, %c0_83, %c0_84], %193 {strides = array<i32>} : memref<2x64x64xf32, #tpu.memory_space<vmem>>, vector<1x64x64xf32>,
    %c1_85 = arith.constant 1 : index
    %c0_86 = arith.constant 0 : index
    %c0_87 = arith.constant 0 : index
    %194 = vector.load %arg1[%c1_85, %c0_86, %c0_87] : memref<2x64x64xf32, #tpu.memory_space<vmem>>, vector<1x64x64xf32>
    %195 = vector.shape_cast %194 : vector<1x64x64xf32> to vector<64x64xf32>
    %cst_88 = arith.constant dense<0.000000e+00> : vector<64xf32>
    %196 = vector.multi_reduction <add>, %195, %cst_88 [0] : vector<64x64xf32> to vector<64xf32>
    %197 = vector.shape_cast %196 : vector<64xf32> to vector<1x64xf32>
    %cst_89 = arith.constant dense<0.000000e+00> : vector<1x64xf32>
    %198 = tpu.matmul %197, %0, %cst_89 {dimension_numbers = #tpu.dot_dimension_numbers<[1], [0], [0], [1], [0, 0, 1, 1], [], []>} : vector<1x64xf32>, vector<64x64xf32>, vector<1x64xf32> -> vector<1x64xf32>
    %cst_90 = arith.constant 7.812500e-03 : f32
    %199 = vector.broadcast %cst_90 : f32 to vector<1x64xf32>
    %200 = arith.mulf %198, %199 : vector<1x64xf32>
    %201 = vector.broadcast %200 : vector<1x64xf32> to vector<64x64xf32>
    %202 = arith.subf %195, %201 : vector<64x64xf32>
    %203 = arith.mulf %202, %202 : vector<64x64xf32>
    %cst_91 = arith.constant dense<0.000000e+00> : vector<64xf32>
    %204 = vector.multi_reduction <add>, %203, %cst_91 [0] : vector<64x64xf32> to vector<64xf32>
    %205 = vector.shape_cast %204 : vector<64xf32> to vector<1x64xf32>
    %cst_92 = arith.constant dense<0.000000e+00> : vector<1x64xf32>
    %206 = tpu.matmul %205, %0, %cst_92 {dimension_numbers = #tpu.dot_dimension_numbers<[1], [0], [0], [1], [0, 0, 1, 1], [], []>} : vector<1x64xf32>, vector<64x64xf32>, vector<1x64xf32> -> vector<1x64xf32>
    %cst_93 = arith.constant 7.812500e-03 : f32
    %207 = vector.broadcast %cst_93 : f32 to vector<1x64xf32>
    %208 = arith.mulf %206, %207 : vector<1x64xf32>
    %cst_94 = arith.constant 9.99999974E-6 : f32
    %209 = vector.broadcast %cst_94 : f32 to vector<1x64xf32>
    %210 = arith.addf %208, %209 : vector<1x64xf32>
    %211 = math.rsqrt %210 : vector<1x64xf32>
    %212 = vector.broadcast %211 : vector<1x64xf32> to vector<64x64xf32>
    %213 = arith.mulf %202, %212 : vector<64x64xf32>
    %214 = vector.broadcast %1 : vector<1x64xf32> to vector<64x64xf32>
    %215 = arith.mulf %213, %214 : vector<64x64xf32>
    %216 = vector.broadcast %2 : vector<1x64xf32> to vector<64x64xf32>
    %217 = arith.addf %215, %216 : vector<64x64xf32>
    %cst_95 = arith.constant dense<0.000000e+00> : vector<64x192xf32>
    %218 = tpu.matmul %217, %3, %cst_95 {dimension_numbers = #tpu.dot_dimension_numbers<[1], [0], [0], [1], [0, 0, 1, 1], [], []>} : vector<64x64xf32>, vector<64x192xf32>, vector<64x192xf32> -> vector<64x192xf32>
    %219 = vector.broadcast %4 : vector<1x192xf32> to vector<64x192xf32>
    %220 = arith.addf %218, %219 : vector<64x192xf32>
    %221 = vector.extract_strided_slice %220 {offsets = [0, 0], sizes = [64, 8], strides = [1, 1]} : vector<64x192xf32> to vector<64x8xf32>
    %222 = vector.extract_strided_slice %220 {offsets = [0, 64], sizes = [64, 8], strides = [1, 1]} : vector<64x192xf32> to vector<64x8xf32>
    %223 = vector.extract_strided_slice %220 {offsets = [0, 128], sizes = [64, 8], strides = [1, 1]} : vector<64x192xf32> to vector<64x8xf32>
    %cst_96 = arith.constant dense<0.000000e+00> : vector<64x64xf32>
    %224 = tpu.matmul %221, %222, %cst_96 {dimension_numbers = #tpu.dot_dimension_numbers<[1], [1], [0], [0], [0, 0, 1, 0], [], []>} : vector<64x8xf32>, vector<64x8xf32>, vector<64x64xf32> -> vector<64x64xf32>
    %cst_97 = arith.constant 0.353553385 : f32
    %225 = vector.broadcast %cst_97 : f32 to vector<64x64xf32>
    %226 = arith.mulf %224, %225 : vector<64x64xf32>
    %cst_98 = arith.constant dense<0xFF800000> : vector<64xf32>
    %227 = vector.multi_reduction <maximumf>, %226, %cst_98 [1] : vector<64x64xf32> to vector<64xf32>
    %228 = vector.shape_cast %227 : vector<64xf32> to vector<64x1xf32>
    %229 = vector.broadcast %228 : vector<64x1xf32> to vector<64x64xf32>
    %230 = arith.subf %226, %229 : vector<64x64xf32>
    %231 = math.exp %230 : vector<64x64xf32>
    %cst_99 = arith.constant dense<0.000000e+00> : vector<64xf32>
    %232 = vector.multi_reduction <add>, %231, %cst_99 [1] : vector<64x64xf32> to vector<64xf32>
    %233 = vector.shape_cast %232 : vector<64xf32> to vector<64x1xf32>
    %234 = tpu.reciprocal %233 {approx = true} : vector<64x1xf32> -> vector<64x1xf32>
    %235 = vector.broadcast %234 : vector<64x1xf32> to vector<64x64xf32>
    %236 = arith.mulf %231, %235 : vector<64x64xf32>
    %cst_100 = arith.constant dense<0.000000e+00> : vector<64x8xf32>
    %237 = tpu.matmul %236, %223, %cst_100 {dimension_numbers = #tpu.dot_dimension_numbers<[1], [0], [0], [1], [0, 0, 1, 1], [], []>} : vector<64x64xf32>, vector<64x8xf32>, vector<64x8xf32> -> vector<64x8xf32>
    %c0_101 = arith.constant 0 : index
    %c0_102 = arith.constant 0 : index
    %238 = vector.load %arg10[%c0_101, %c0_102] : memref<512x8xf32, #tpu.memory_space<vmem>>, vector<64x8xf32>
    tpu.vector_store %arg10[%c0_101, %c0_102], %237 {strides = array<i32>} : memref<512x8xf32, #tpu.memory_space<vmem>>, vector<64x8xf32>,
    %239 = vector.extract_strided_slice %220 {offsets = [0, 8], sizes = [64, 8], strides = [1, 1]} : vector<64x192xf32> to vector<64x8xf32>
    %240 = vector.extract_strided_slice %220 {offsets = [0, 72], sizes = [64, 8], strides = [1, 1]} : vector<64x192xf32> to vector<64x8xf32>
    %241 = vector.extract_strided_slice %220 {offsets = [0, 136], sizes = [64, 8], strides = [1, 1]} : vector<64x192xf32> to vector<64x8xf32>
    %cst_103 = arith.constant dense<0.000000e+00> : vector<64x64xf32>
    %242 = tpu.matmul %239, %240, %cst_103 {dimension_numbers = #tpu.dot_dimension_numbers<[1], [1], [0], [0], [0, 0, 1, 0], [], []>} : vector<64x8xf32>, vector<64x8xf32>, vector<64x64xf32> -> vector<64x64xf32>
    %cst_104 = arith.constant 0.353553385 : f32
    %243 = vector.broadcast %cst_104 : f32 to vector<64x64xf32>
    %244 = arith.mulf %242, %243 : vector<64x64xf32>
    %cst_105 = arith.constant dense<0xFF800000> : vector<64xf32>
    %245 = vector.multi_reduction <maximumf>, %244, %cst_105 [1] : vector<64x64xf32> to vector<64xf32>
    %246 = vector.shape_cast %245 : vector<64xf32> to vector<64x1xf32>
    %247 = vector.broadcast %246 : vector<64x1xf32> to vector<64x64xf32>
    %248 = arith.subf %244, %247 : vector<64x64xf32>
    %249 = math.exp %248 : vector<64x64xf32>
    %cst_106 = arith.constant dense<0.000000e+00> : vector<64xf32>
    %250 = vector.multi_reduction <add>, %249, %cst_106 [1] : vector<64x64xf32> to vector<64xf32>
    %251 = vector.shape_cast %250 : vector<64xf32> to vector<64x1xf32>
    %252 = tpu.reciprocal %251 {approx = true} : vector<64x1xf32> -> vector<64x1xf32>
    %253 = vector.broadcast %252 : vector<64x1xf32> to vector<64x64xf32>
    %254 = arith.mulf %249, %253 : vector<64x64xf32>
    %cst_107 = arith.constant dense<0.000000e+00> : vector<64x8xf32>
    %255 = tpu.matmul %254, %241, %cst_107 {dimension_numbers = #tpu.dot_dimension_numbers<[1], [0], [0], [1], [0, 0, 1, 1], [], []>} : vector<64x64xf32>, vector<64x8xf32>, vector<64x8xf32> -> vector<64x8xf32>
    %c64_108 = arith.constant 64 : index
    %c0_109 = arith.constant 0 : index
    %256 = vector.load %arg10[%c64_108, %c0_109] : memref<512x8xf32, #tpu.memory_space<vmem>>, vector<64x8xf32>
    tpu.vector_store %arg10[%c64_108, %c0_109], %255 {strides = array<i32>} : memref<512x8xf32, #tpu.memory_space<vmem>>, vector<64x8xf32>,
    %257 = vector.extract_strided_slice %220 {offsets = [0, 16], sizes = [64, 8], strides = [1, 1]} : vector<64x192xf32> to vector<64x8xf32>
    %258 = vector.extract_strided_slice %220 {offsets = [0, 80], sizes = [64, 8], strides = [1, 1]} : vector<64x192xf32> to vector<64x8xf32>
    %259 = vector.extract_strided_slice %220 {offsets = [0, 144], sizes = [64, 8], strides = [1, 1]} : vector<64x192xf32> to vector<64x8xf32>
    %cst_110 = arith.constant dense<0.000000e+00> : vector<64x64xf32>
    %260 = tpu.matmul %257, %258, %cst_110 {dimension_numbers = #tpu.dot_dimension_numbers<[1], [1], [0], [0], [0, 0, 1, 0], [], []>} : vector<64x8xf32>, vector<64x8xf32>, vector<64x64xf32> -> vector<64x64xf32>
    %cst_111 = arith.constant 0.353553385 : f32
    %261 = vector.broadcast %cst_111 : f32 to vector<64x64xf32>
    %262 = arith.mulf %260, %261 : vector<64x64xf32>
    %cst_112 = arith.constant dense<0xFF800000> : vector<64xf32>
    %263 = vector.multi_reduction <maximumf>, %262, %cst_112 [1] : vector<64x64xf32> to vector<64xf32>
    %264 = vector.shape_cast %263 : vector<64xf32> to vector<64x1xf32>
    %265 = vector.broadcast %264 : vector<64x1xf32> to vector<64x64xf32>
    %266 = arith.subf %262, %265 : vector<64x64xf32>
    %267 = math.exp %266 : vector<64x64xf32>
    %cst_113 = arith.constant dense<0.000000e+00> : vector<64xf32>
    %268 = vector.multi_reduction <add>, %267, %cst_113 [1] : vector<64x64xf32> to vector<64xf32>
    %269 = vector.shape_cast %268 : vector<64xf32> to vector<64x1xf32>
    %270 = tpu.reciprocal %269 {approx = true} : vector<64x1xf32> -> vector<64x1xf32>
    %271 = vector.broadcast %270 : vector<64x1xf32> to vector<64x64xf32>
    %272 = arith.mulf %267, %271 : vector<64x64xf32>
    %cst_114 = arith.constant dense<0.000000e+00> : vector<64x8xf32>
    %273 = tpu.matmul %272, %259, %cst_114 {dimension_numbers = #tpu.dot_dimension_numbers<[1], [0], [0], [1], [0, 0, 1, 1], [], []>} : vector<64x64xf32>, vector<64x8xf32>, vector<64x8xf32> -> vector<64x8xf32>
    %c128_115 = arith.constant 128 : index
    %c0_116 = arith.constant 0 : index
    %274 = vector.load %arg10[%c128_115, %c0_116] : memref<512x8xf32, #tpu.memory_space<vmem>>, vector<64x8xf32>
    tpu.vector_store %arg10[%c128_115, %c0_116], %273 {strides = array<i32>} : memref<512x8xf32, #tpu.memory_space<vmem>>, vector<64x8xf32>,
    %275 = vector.extract_strided_slice %220 {offsets = [0, 24], sizes = [64, 8], strides = [1, 1]} : vector<64x192xf32> to vector<64x8xf32>
    %276 = vector.extract_strided_slice %220 {offsets = [0, 88], sizes = [64, 8], strides = [1, 1]} : vector<64x192xf32> to vector<64x8xf32>
    %277 = vector.extract_strided_slice %220 {offsets = [0, 152], sizes = [64, 8], strides = [1, 1]} : vector<64x192xf32> to vector<64x8xf32>
    %cst_117 = arith.constant dense<0.000000e+00> : vector<64x64xf32>
    %278 = tpu.matmul %275, %276, %cst_117 {dimension_numbers = #tpu.dot_dimension_numbers<[1], [1], [0], [0], [0, 0, 1, 0], [], []>} : vector<64x8xf32>, vector<64x8xf32>, vector<64x64xf32> -> vector<64x64xf32>
    %cst_118 = arith.constant 0.353553385 : f32
    %279 = vector.broadcast %cst_118 : f32 to vector<64x64xf32>
    %280 = arith.mulf %278, %279 : vector<64x64xf32>
    %cst_119 = arith.constant dense<0xFF800000> : vector<64xf32>
    %281 = vector.multi_reduction <maximumf>, %280, %cst_119 [1] : vector<64x64xf32> to vector<64xf32>
    %282 = vector.shape_cast %281 : vector<64xf32> to vector<64x1xf32>
    %283 = vector.broadcast %282 : vector<64x1xf32> to vector<64x64xf32>
    %284 = arith.subf %280, %283 : vector<64x64xf32>
    %285 = math.exp %284 : vector<64x64xf32>
    %cst_120 = arith.constant dense<0.000000e+00> : vector<64xf32>
    %286 = vector.multi_reduction <add>, %285, %cst_120 [1] : vector<64x64xf32> to vector<64xf32>
    %287 = vector.shape_cast %286 : vector<64xf32> to vector<64x1xf32>
    %288 = tpu.reciprocal %287 {approx = true} : vector<64x1xf32> -> vector<64x1xf32>
    %289 = vector.broadcast %288 : vector<64x1xf32> to vector<64x64xf32>
    %290 = arith.mulf %285, %289 : vector<64x64xf32>
    %cst_121 = arith.constant dense<0.000000e+00> : vector<64x8xf32>
    %291 = tpu.matmul %290, %277, %cst_121 {dimension_numbers = #tpu.dot_dimension_numbers<[1], [0], [0], [1], [0, 0, 1, 1], [], []>} : vector<64x64xf32>, vector<64x8xf32>, vector<64x8xf32> -> vector<64x8xf32>
    %c192_122 = arith.constant 192 : index
    %c0_123 = arith.constant 0 : index
    %292 = vector.load %arg10[%c192_122, %c0_123] : memref<512x8xf32, #tpu.memory_space<vmem>>, vector<64x8xf32>
    tpu.vector_store %arg10[%c192_122, %c0_123], %291 {strides = array<i32>} : memref<512x8xf32, #tpu.memory_space<vmem>>, vector<64x8xf32>,
    %293 = vector.extract_strided_slice %220 {offsets = [0, 32], sizes = [64, 8], strides = [1, 1]} : vector<64x192xf32> to vector<64x8xf32>
    %294 = vector.extract_strided_slice %220 {offsets = [0, 96], sizes = [64, 8], strides = [1, 1]} : vector<64x192xf32> to vector<64x8xf32>
    %295 = vector.extract_strided_slice %220 {offsets = [0, 160], sizes = [64, 8], strides = [1, 1]} : vector<64x192xf32> to vector<64x8xf32>
    %cst_124 = arith.constant dense<0.000000e+00> : vector<64x64xf32>
    %296 = tpu.matmul %293, %294, %cst_124 {dimension_numbers = #tpu.dot_dimension_numbers<[1], [1], [0], [0], [0, 0, 1, 0], [], []>} : vector<64x8xf32>, vector<64x8xf32>, vector<64x64xf32> -> vector<64x64xf32>
    %cst_125 = arith.constant 0.353553385 : f32
    %297 = vector.broadcast %cst_125 : f32 to vector<64x64xf32>
    %298 = arith.mulf %296, %297 : vector<64x64xf32>
    %cst_126 = arith.constant dense<0xFF800000> : vector<64xf32>
    %299 = vector.multi_reduction <maximumf>, %298, %cst_126 [1] : vector<64x64xf32> to vector<64xf32>
    %300 = vector.shape_cast %299 : vector<64xf32> to vector<64x1xf32>
    %301 = vector.broadcast %300 : vector<64x1xf32> to vector<64x64xf32>
    %302 = arith.subf %298, %301 : vector<64x64xf32>
    %303 = math.exp %302 : vector<64x64xf32>
    %cst_127 = arith.constant dense<0.000000e+00> : vector<64xf32>
    %304 = vector.multi_reduction <add>, %303, %cst_127 [1] : vector<64x64xf32> to vector<64xf32>
    %305 = vector.shape_cast %304 : vector<64xf32> to vector<64x1xf32>
    %306 = tpu.reciprocal %305 {approx = true} : vector<64x1xf32> -> vector<64x1xf32>
    %307 = vector.broadcast %306 : vector<64x1xf32> to vector<64x64xf32>
    %308 = arith.mulf %303, %307 : vector<64x64xf32>
    %cst_128 = arith.constant dense<0.000000e+00> : vector<64x8xf32>
    %309 = tpu.matmul %308, %295, %cst_128 {dimension_numbers = #tpu.dot_dimension_numbers<[1], [0], [0], [1], [0, 0, 1, 1], [], []>} : vector<64x64xf32>, vector<64x8xf32>, vector<64x8xf32> -> vector<64x8xf32>
    %c256_129 = arith.constant 256 : index
    %c0_130 = arith.constant 0 : index
    %310 = vector.load %arg10[%c256_129, %c0_130] : memref<512x8xf32, #tpu.memory_space<vmem>>, vector<64x8xf32>
    tpu.vector_store %arg10[%c256_129, %c0_130], %309 {strides = array<i32>} : memref<512x8xf32, #tpu.memory_space<vmem>>, vector<64x8xf32>,
    %311 = vector.extract_strided_slice %220 {offsets = [0, 40], sizes = [64, 8], strides = [1, 1]} : vector<64x192xf32> to vector<64x8xf32>
    %312 = vector.extract_strided_slice %220 {offsets = [0, 104], sizes = [64, 8], strides = [1, 1]} : vector<64x192xf32> to vector<64x8xf32>
    %313 = vector.extract_strided_slice %220 {offsets = [0, 168], sizes = [64, 8], strides = [1, 1]} : vector<64x192xf32> to vector<64x8xf32>
    %cst_131 = arith.constant dense<0.000000e+00> : vector<64x64xf32>
    %314 = tpu.matmul %311, %312, %cst_131 {dimension_numbers = #tpu.dot_dimension_numbers<[1], [1], [0], [0], [0, 0, 1, 0], [], []>} : vector<64x8xf32>, vector<64x8xf32>, vector<64x64xf32> -> vector<64x64xf32>
    %cst_132 = arith.constant 0.353553385 : f32
    %315 = vector.broadcast %cst_132 : f32 to vector<64x64xf32>
    %316 = arith.mulf %314, %315 : vector<64x64xf32>
    %cst_133 = arith.constant dense<0xFF800000> : vector<64xf32>
    %317 = vector.multi_reduction <maximumf>, %316, %cst_133 [1] : vector<64x64xf32> to vector<64xf32>
    %318 = vector.shape_cast %317 : vector<64xf32> to vector<64x1xf32>
    %319 = vector.broadcast %318 : vector<64x1xf32> to vector<64x64xf32>
    %320 = arith.subf %316, %319 : vector<64x64xf32>
    %321 = math.exp %320 : vector<64x64xf32>
    %cst_134 = arith.constant dense<0.000000e+00> : vector<64xf32>
    %322 = vector.multi_reduction <add>, %321, %cst_134 [1] : vector<64x64xf32> to vector<64xf32>
    %323 = vector.shape_cast %322 : vector<64xf32> to vector<64x1xf32>
    %324 = tpu.reciprocal %323 {approx = true} : vector<64x1xf32> -> vector<64x1xf32>
    %325 = vector.broadcast %324 : vector<64x1xf32> to vector<64x64xf32>
    %326 = arith.mulf %321, %325 : vector<64x64xf32>
    %cst_135 = arith.constant dense<0.000000e+00> : vector<64x8xf32>
    %327 = tpu.matmul %326, %313, %cst_135 {dimension_numbers = #tpu.dot_dimension_numbers<[1], [0], [0], [1], [0, 0, 1, 1], [], []>} : vector<64x64xf32>, vector<64x8xf32>, vector<64x8xf32> -> vector<64x8xf32>
    %c320_136 = arith.constant 320 : index
    %c0_137 = arith.constant 0 : index
    %328 = vector.load %arg10[%c320_136, %c0_137] : memref<512x8xf32, #tpu.memory_space<vmem>>, vector<64x8xf32>
    tpu.vector_store %arg10[%c320_136, %c0_137], %327 {strides = array<i32>} : memref<512x8xf32, #tpu.memory_space<vmem>>, vector<64x8xf32>,
    %329 = vector.extract_strided_slice %220 {offsets = [0, 48], sizes = [64, 8], strides = [1, 1]} : vector<64x192xf32> to vector<64x8xf32>
    %330 = vector.extract_strided_slice %220 {offsets = [0, 112], sizes = [64, 8], strides = [1, 1]} : vector<64x192xf32> to vector<64x8xf32>
    %331 = vector.extract_strided_slice %220 {offsets = [0, 176], sizes = [64, 8], strides = [1, 1]} : vector<64x192xf32> to vector<64x8xf32>
    %cst_138 = arith.constant dense<0.000000e+00> : vector<64x64xf32>
    %332 = tpu.matmul %329, %330, %cst_138 {dimension_numbers = #tpu.dot_dimension_numbers<[1], [1], [0], [0], [0, 0, 1, 0], [], []>} : vector<64x8xf32>, vector<64x8xf32>, vector<64x64xf32> -> vector<64x64xf32>
    %cst_139 = arith.constant 0.353553385 : f32
    %333 = vector.broadcast %cst_139 : f32 to vector<64x64xf32>
    %334 = arith.mulf %332, %333 : vector<64x64xf32>
    %cst_140 = arith.constant dense<0xFF800000> : vector<64xf32>
    %335 = vector.multi_reduction <maximumf>, %334, %cst_140 [1] : vector<64x64xf32> to vector<64xf32>
    %336 = vector.shape_cast %335 : vector<64xf32> to vector<64x1xf32>
    %337 = vector.broadcast %336 : vector<64x1xf32> to vector<64x64xf32>
    %338 = arith.subf %334, %337 : vector<64x64xf32>
    %339 = math.exp %338 : vector<64x64xf32>
    %cst_141 = arith.constant dense<0.000000e+00> : vector<64xf32>
    %340 = vector.multi_reduction <add>, %339, %cst_141 [1] : vector<64x64xf32> to vector<64xf32>
    %341 = vector.shape_cast %340 : vector<64xf32> to vector<64x1xf32>
    %342 = tpu.reciprocal %341 {approx = true} : vector<64x1xf32> -> vector<64x1xf32>
    %343 = vector.broadcast %342 : vector<64x1xf32> to vector<64x64xf32>
    %344 = arith.mulf %339, %343 : vector<64x64xf32>
    %cst_142 = arith.constant dense<0.000000e+00> : vector<64x8xf32>
    %345 = tpu.matmul %344, %331, %cst_142 {dimension_numbers = #tpu.dot_dimension_numbers<[1], [0], [0], [1], [0, 0, 1, 1], [], []>} : vector<64x64xf32>, vector<64x8xf32>, vector<64x8xf32> -> vector<64x8xf32>
    %c384_143 = arith.constant 384 : index
    %c0_144 = arith.constant 0 : index
    %346 = vector.load %arg10[%c384_143, %c0_144] : memref<512x8xf32, #tpu.memory_space<vmem>>, vector<64x8xf32>
    tpu.vector_store %arg10[%c384_143, %c0_144], %345 {strides = array<i32>} : memref<512x8xf32, #tpu.memory_space<vmem>>, vector<64x8xf32>,
    %347 = vector.extract_strided_slice %220 {offsets = [0, 56], sizes = [64, 8], strides = [1, 1]} : vector<64x192xf32> to vector<64x8xf32>
    %348 = vector.extract_strided_slice %220 {offsets = [0, 120], sizes = [64, 8], strides = [1, 1]} : vector<64x192xf32> to vector<64x8xf32>
    %349 = vector.extract_strided_slice %220 {offsets = [0, 184], sizes = [64, 8], strides = [1, 1]} : vector<64x192xf32> to vector<64x8xf32>
    %cst_145 = arith.constant dense<0.000000e+00> : vector<64x64xf32>
    %350 = tpu.matmul %347, %348, %cst_145 {dimension_numbers = #tpu.dot_dimension_numbers<[1], [1], [0], [0], [0, 0, 1, 0], [], []>} : vector<64x8xf32>, vector<64x8xf32>, vector<64x64xf32> -> vector<64x64xf32>
    %cst_146 = arith.constant 0.353553385 : f32
    %351 = vector.broadcast %cst_146 : f32 to vector<64x64xf32>
    %352 = arith.mulf %350, %351 : vector<64x64xf32>
    %cst_147 = arith.constant dense<0xFF800000> : vector<64xf32>
    %353 = vector.multi_reduction <maximumf>, %352, %cst_147 [1] : vector<64x64xf32> to vector<64xf32>
    %354 = vector.shape_cast %353 : vector<64xf32> to vector<64x1xf32>
    %355 = vector.broadcast %354 : vector<64x1xf32> to vector<64x64xf32>
    %356 = arith.subf %352, %355 : vector<64x64xf32>
    %357 = math.exp %356 : vector<64x64xf32>
    %cst_148 = arith.constant dense<0.000000e+00> : vector<64xf32>
    %358 = vector.multi_reduction <add>, %357, %cst_148 [1] : vector<64x64xf32> to vector<64xf32>
    %359 = vector.shape_cast %358 : vector<64xf32> to vector<64x1xf32>
    %360 = tpu.reciprocal %359 {approx = true} : vector<64x1xf32> -> vector<64x1xf32>
    %361 = vector.broadcast %360 : vector<64x1xf32> to vector<64x64xf32>
    %362 = arith.mulf %357, %361 : vector<64x64xf32>
    %cst_149 = arith.constant dense<0.000000e+00> : vector<64x8xf32>
    %363 = tpu.matmul %362, %349, %cst_149 {dimension_numbers = #tpu.dot_dimension_numbers<[1], [0], [0], [1], [0, 0, 1, 1], [], []>} : vector<64x64xf32>, vector<64x8xf32>, vector<64x8xf32> -> vector<64x8xf32>
    %c448_150 = arith.constant 448 : index
    %c0_151 = arith.constant 0 : index
    %364 = vector.load %arg10[%c448_150, %c0_151] : memref<512x8xf32, #tpu.memory_space<vmem>>, vector<64x8xf32>
    tpu.vector_store %arg10[%c448_150, %c0_151], %363 {strides = array<i32>} : memref<512x8xf32, #tpu.memory_space<vmem>>, vector<64x8xf32>,
    %c0_152 = arith.constant 0 : index
    %c0_153 = arith.constant 0 : index
    %365 = tpu.strided_load %arg10[%c0_152, %c0_153] {strides = array<i32: 8, 1>} : memref<512x8xf32, #tpu.memory_space<vmem>>, vector<64x8xf32>
    %c1_154 = arith.constant 1 : index
    %c0_155 = arith.constant 0 : index
    %366 = tpu.strided_load %arg10[%c1_154, %c0_155] {strides = array<i32: 8, 1>} : memref<512x8xf32, #tpu.memory_space<vmem>>, vector<64x8xf32>
    %c2_156 = arith.constant 2 : index
    %c0_157 = arith.constant 0 : index
    %367 = tpu.strided_load %arg10[%c2_156, %c0_157] {strides = array<i32: 8, 1>} : memref<512x8xf32, #tpu.memory_space<vmem>>, vector<64x8xf32>
    %c3_158 = arith.constant 3 : index
    %c0_159 = arith.constant 0 : index
    %368 = tpu.strided_load %arg10[%c3_158, %c0_159] {strides = array<i32: 8, 1>} : memref<512x8xf32, #tpu.memory_space<vmem>>, vector<64x8xf32>
    %c4_160 = arith.constant 4 : index
    %c0_161 = arith.constant 0 : index
    %369 = tpu.strided_load %arg10[%c4_160, %c0_161] {strides = array<i32: 8, 1>} : memref<512x8xf32, #tpu.memory_space<vmem>>, vector<64x8xf32>
    %c5_162 = arith.constant 5 : index
    %c0_163 = arith.constant 0 : index
    %370 = tpu.strided_load %arg10[%c5_162, %c0_163] {strides = array<i32: 8, 1>} : memref<512x8xf32, #tpu.memory_space<vmem>>, vector<64x8xf32>
    %c6_164 = arith.constant 6 : index
    %c0_165 = arith.constant 0 : index
    %371 = tpu.strided_load %arg10[%c6_164, %c0_165] {strides = array<i32: 8, 1>} : memref<512x8xf32, #tpu.memory_space<vmem>>, vector<64x8xf32>
    %c7_166 = arith.constant 7 : index
    %c0_167 = arith.constant 0 : index
    %372 = tpu.strided_load %arg10[%c7_166, %c0_167] {strides = array<i32: 8, 1>} : memref<512x8xf32, #tpu.memory_space<vmem>>, vector<64x8xf32>
    %373 = tpu.concatenate %365, %366, %367, %368, %369, %370, %371, %372 in 1 : vector<64x8xf32>, vector<64x8xf32>, vector<64x8xf32>, vector<64x8xf32>, vector<64x8xf32>, vector<64x8xf32>, vector<64x8xf32>, vector<64x8xf32> -> vector<64x64xf32>
    %cst_168 = arith.constant dense<0.000000e+00> : vector<64x64xf32>
    %374 = tpu.matmul %373, %5, %cst_168 {dimension_numbers = #tpu.dot_dimension_numbers<[1], [0], [0], [1], [0, 0, 1, 1], [], []>} : vector<64x64xf32>, vector<64x64xf32>, vector<64x64xf32> -> vector<64x64xf32>
    %375 = vector.broadcast %6 : vector<1x64xf32> to vector<64x64xf32>
    %376 = arith.addf %374, %375 : vector<64x64xf32>
    %377 = arith.addf %376, %195 : vector<64x64xf32>
    %c1_169 = arith.constant 1 : index
    %c0_170 = arith.constant 0 : index
    %c0_171 = arith.constant 0 : index
    %378 = vector.load %arg9[%c1_169, %c0_170, %c0_171] : memref<2x64x64xf32, #tpu.memory_space<vmem>>, vector<1x64x64xf32>
    %379 = vector.shape_cast %378 : vector<1x64x64xf32> to vector<64x64xf32>
    %380 = vector.shape_cast %377 : vector<64x64xf32> to vector<1x64x64xf32>
    tpu.vector_store %arg9[%c1_169, %c0_170, %c0_171], %380 {strides = array<i32>} : memref<2x64x64xf32, #tpu.memory_space<vmem>>, vector<1x64x64xf32>,
    return
  }
  func.func @transform_0(%arg0: i32) -> (i32, i32, i32) {
    %c0_i32 = arith.constant 0 : i32
    %c0_i32_0 = arith.constant 0 : i32
    %c0_i32_1 = arith.constant 0 : i32
    return %arg0, %c0_i32, %c0_i32_0 : i32, i32, i32
  }
  func.func @transform_1(%arg0: i32) -> (i32, i32) {
    %c0_i32 = arith.constant 0 : i32
    %c0_i32_0 = arith.constant 0 : i32
    %c0_i32_1 = arith.constant 0 : i32
    return %c0_i32, %c0_i32_0 : i32, i32
  }
  func.func @transform_2(%arg0: i32) -> (i32, i32) {
    %c0_i32 = arith.constant 0 : i32
    %c0_i32_0 = arith.constant 0 : i32
    %c0_i32_1 = arith.constant 0 : i32
    return %c0_i32, %c0_i32_0 : i32, i32
  }
  func.func @transform_3(%arg0: i32) -> (i32, i32) {
    %c0_i32 = arith.constant 0 : i32
    %c0_i32_0 = arith.constant 0 : i32
    %c0_i32_1 = arith.constant 0 : i32
    return %c0_i32, %c0_i32_0 : i32, i32
  }
  func.func @transform_4(%arg0: i32) -> (i32, i32) {
    %c0_i32 = arith.constant 0 : i32
    %c0_i32_0 = arith.constant 0 : i32
    %c0_i32_1 = arith.constant 0 : i32
    return %c0_i32, %c0_i32_0 : i32, i32
  }
  func.func @transform_5(%arg0: i32) -> (i32, i32) {
    %c0_i32 = arith.constant 0 : i32
    %c0_i32_0 = arith.constant 0 : i32
    %c0_i32_1 = arith.constant 0 : i32
    return %c0_i32, %c0_i32_0 : i32, i32
  }
  func.func @transform_6(%arg0: i32) -> (i32, i32) {
    %c0_i32 = arith.constant 0 : i32
    %c0_i32_0 = arith.constant 0 : i32
    %c0_i32_1 = arith.constant 0 : i32
    return %c0_i32, %c0_i32_0 : i32, i32
  }
  func.func @transform_7(%arg0: i32) -> (i32, i32) {
    %c0_i32 = arith.constant 0 : i32
    %c0_i32_0 = arith.constant 0 : i32
    %c0_i32_1 = arith.constant 0 : i32
    return %c0_i32, %c0_i32_0 : i32, i32
  }
  func.func @transform_8(%arg0: i32) -> (i32, i32, i32) {
    %c0_i32 = arith.constant 0 : i32
    %c0_i32_0 = arith.constant 0 : i32
    %c0_i32_1 = arith.constant 0 : i32
    return %arg0, %c0_i32, %c0_i32_0 : i32, i32, i32
  }
}

</mosaic_0001>

<bundles_post_ra>
// kernel: tpu_custom_call.1
= control target key start
LH: loop header
LB: loop body
LE: loop exit
PB: predicated region body
PF: predicated region fallthrough
CT: control target
= control target key end

     0   :  { %13 = vsyncpa [#allocation4], 0  ;;  %s15064_s0 = inlined_call_operand.hbm [shape: f32[2,64,64], index: 0, kind: input, shape index: {}]   ;;  %s15065_s1 = inlined_call_operand.hbm [shape: f32[64,64], index: 1, kind: input, shape index: {}]   ;;  %s15066_s2 = inlined_call_operand.vmem [shape: f32[1,64], index: 2, kind: input, shape index: {}]   ;;  %s15067_s3 = inlined_call_operand.vmem [shape: f32[1,64], index: 3, kind: input, shape index: {}]   ;;  %s15068_s4 = inlined_call_operand.hbm [shape: f32[64,192], index: 4, kind: input, shape index: {}]   ;;  %s15069_s5 = inlined_call_operand.vmem [shape: f32[1,192], index: 5, kind: input, shape index: {}]   ;;  %s15070_s6 = inlined_call_operand.hbm [shape: f32[64,64], index: 6, kind: input, shape index: {}]   ;;  %s15071_s7 = inlined_call_operand.vmem [shape: f32[1,64], index: 7, kind: input, shape index: {}]   ;;  %s15072_s8 = inlined_call_operand.hbm [shape: f32[2,64,64], index: 8, kind: output, shape index: {}]  }
   0x1   :  { %14 = vsyncpa [#allocation7], 0 }
   0x2   :  { %15 = vsyncpa [#allocation10], 0 }
   0x3   :  { %16 = vsyncpa [#allocation5], 0  ;;  %s11752_s27 = smov [#allocation6]   ;;  %s11753_s29 = smov [#allocation3]  }
   0x4   :  { %s34_s28 = sshll.u32 %s11752_s27, 4  ;;  %s22_s30 = sshll.u32 %s11753_s29, 4  ;;  %s35_s28 = int_to_ptr.vmem [resolvable:$true] %s34_s28  ;;  %s23_s30 = int_to_ptr.vmem [resolvable:$true] %s22_s30 }
   0x5   :  { %s11652_s9 = scalar_lea.vmem %s35_s28, 1024  ;;  %p11657_p1 = scmp.lt.s32.totalorder %s35_s28, %s35_s28 }
   0x6   :  { %p11653_p0 = scmp.ne.s32.totalorder %s35_s28, %s11652_s9  ;;  %p11658_p2 = scmp.lt.s32.totalorder %s11652_s9, %s11652_s9 }
   0x8   :  { %p11659_p3 = por %p11658_p2, %p11657_p1 }
   0xa   :  { %p11660_p4 = pnand %p11659_p3, %p11653_p0 }
   0xc   :  { %11663 = shalt.err (!%p11660_p4)
}
   0xd   :  { %s11754_s10 = smov 128   ;;  %s11755_s11 = smov 8  }
   0xe   :  { %40 = dma.hbm_to_vmem [thread:$0]  %s15065_s1, 1024, %s35_s28, [#allocation7], %s11754_s10, %s11754_s10, %s11755_s11  }
   0xf   :  { %s11672_s14 = scalar_lea.vmem %s23_s30, 2048  ;;  %p11677_p6 = scmp.lt.s32.totalorder %s23_s30, %s23_s30 }
  0x10   :  { %p11673_p5 = scmp.ne.s32.totalorder %s23_s30, %s11672_s14  ;;  %p11678_p7 = scmp.lt.s32.totalorder %s11672_s14, %s11672_s14 }
  0x12   :  { %p11679_p8 = por %p11678_p7, %p11677_p6 }
  0x14   :  { %p11680_p9 = pnand %p11679_p8, %p11673_p5 }
  0x16   :  { %11683 = shalt.err (!%p11680_p9)
}
  0x17   :  { %28 = dma.hbm_to_vmem [thread:$0]  %s15064_s0, 2048, %s23_s30, [#allocation4], %s11754_s10, %s11754_s10, %s11755_s11  }
  0x18   :  { %s11756_s17 = smov [#allocation8]  }
  0x19   :  { %s50_s18 = sshll.u32 %s11756_s17, 4  ;;  %s51_s18 = int_to_ptr.vmem [resolvable:$true] %s50_s18 }
  0x1a   :  { %s11692_s19 = scalar_lea.vmem %s51_s18, 2048  ;;  %p11697_p11 = scmp.lt.s32.totalorder %s51_s18, %s51_s18 }
  0x1b   :  { %p11693_p10 = scmp.ne.s32.totalorder %s51_s18, %s11692_s19  ;;  %p11698_p12 = scmp.lt.s32.totalorder %s11692_s19, %s11692_s19 }
  0x1d   :  { %p11699_p13 = por %p11698_p12, %p11697_p11 }
  0x1f   :  { %p11700_p0 = pnand %p11699_p13, %p11693_p10 }
  0x21   :  { %11703 = shalt.err (!%p11700_p0)
}
  0x22   :  { %s11757_s1 = smov 256   ;;  %s11758_s20 = smov 16  }
  0x23   :  { %56 = dma.hbm_to_vmem [thread:$0]  %s15068_s4, 2048, %s51_s18, [#allocation7], %s11757_s1, %s11757_s1, %s11758_s20  }
  0x24   :  { %s11759_s23 = smov [#allocation9]  }
  0x25   :  { %s64_s24 = sshll.u32 %s11759_s23, 4  ;;  %s65_s24 = int_to_ptr.vmem [resolvable:$true] %s64_s24 }
  0x26   :  { %s11712_s0 = scalar_lea.vmem %s65_s24, 1024  ;;  %p11717_p2 = scmp.lt.s32.totalorder %s65_s24, %s65_s24 }
  0x27   :  { %p11713_p1 = scmp.ne.s32.totalorder %s65_s24, %s11712_s0  ;;  %p11718_p3 = scmp.lt.s32.totalorder %s11712_s0, %s11712_s0 }
  0x29   :  { %p11719_p4 = por %p11718_p3, %p11717_p2 }
  0x2b   :  { %p11720_p5 = pnand %p11719_p4, %p11713_p1 }
  0x2d   :  { %11723 = shalt.err (!%p11720_p5)
}
  0x2e   :  { %70 = dma.hbm_to_vmem [thread:$0]  %s15070_s6, 1024, %s65_s24, [#allocation10], %s11754_s10, %s11754_s10, %s11755_s11  }
  0x2f   :  { %11744 = dma.done.wait [#allocation4], 2048  }
  0x30   :  { %11745 = vsyncadd [#allocation4], 4294965248 }
  0x31   :  { %11746 = dma.done.wait [#allocation7], 3072  }
  0x32   :  { %11747 = vsyncadd [#allocation7], 4294964224 }
  0x33   :  { %11748 = dma.done.wait [#allocation10], 1024  }
  0x34   :  { %11749 = vsyncadd [#allocation10], 4294966272  ;;  %v11760_v0 = vmov 0.0   ;;  %vm11761_vm0 = vmmov 0   ;;  %v92_v1 = vld [vmem:[#allocation6 + $0x38] sm:$0xff]  ;;  %v91_v2 = vld [vmem:[#allocation6 + $0x30] sm:$0xff]  ;;  %v225_v38 = vlaneseq }
  0x35   :  { %10017 = vmatprep.subr.mxu0 %v11760_v0  ;;  %10033 = vmatprep.mubr.msk.f32.mxu0 %vm11761_vm0, %v11760_v0  ;;  %vm129_vm1 = vcmask 523264   ;;  %v90_v3 = vld [vmem:[#allocation6 + $0x28] sm:$0xff]  ;;  %v11850_v4 = vld [vmem:[#allocation3] sm:$0xff]  ;;  %v11855_v6 = vld [vmem:[#allocation3 + $0x10] sm:$0xff]  ;;  %vm554_vm2 = vcmask 64512   ;;  %s11763_s9 = smov 56  }
  0x36   :  { %10036 = vmatprep.subr.mxu1 %v11760_v0  ;;  %10052 = vmatprep.mubr.msk.f32.mxu1 %vm11761_vm0, %v11760_v0  ;;  %v11853_v5 = vld [vmem:[#allocation3 + $0x8] sm:$0xff]  ;;  %v11857_v7 = vld [vmem:[#allocation3 + $0x18] sm:$0xff]  ;;  %v130_v8 = vsel %vm129_vm1, %v11850_v4, 0.0  ;;  %v89_v9 = vld [vmem:[#allocation6 + $0x20] sm:$0xff]  ;;  %v133_v11 = vsel %vm129_vm1, %v11855_v6, 0.0  ;;  %v11885_v39 = vshrl.u32 %v225_v38, 7 }
  0x37   :  { %10018 = vmatpush3.msra.mxu0 %v92_v1  ;;  %10037 = vmatpush3.msra.mxu1 %v92_v1  ;;  %v131_v10 = vsel %vm129_vm1, %v11853_v5, 0.0  ;;  %v125_v12 = vld [vmem:[#allocation3 + $0x20] sm:$0xff]  ;;  %v88_v14 = vld [vmem:[#allocation6 + $0x18] sm:$0xff]  ;;  %v135_v15 = vsel %vm129_vm1, %v11857_v7, 0.0  ;;  %v126_v16 = vld [vmem:[#allocation3 + $0x28] sm:$0xff]  ;;  %s11764_s12 = smov 120  }
  0x38   :  { %10019 = vmatprep.subr.mxu0 %v11760_v0  ;;  %10038 = vmatprep.subr.mxu1 %v11760_v0  ;;  %v132_v13 = vadd.f32 %v131_v10, %v130_v8  ;;  %v87_v18 = vld [vmem:[#allocation6 + $0x10] sm:$0xff]  ;;  %v137_v19 = vsel %vm129_vm1, %v125_v12, 0.0  ;;  %v86_v22 = vld [vmem:[#allocation6 + $0x8] sm:$0xff]  ;;  %v139_v23 = vsel %vm129_vm1, %v126_v16, 0.0  ;;  %v128_v24 = vld [vmem:[#allocation3 + $0x38] sm:$0xff]  ;;  %v11888_v40 = vsub.s32 0, %v11885_v39 }
  0x39   :  { %10020 = vmatpush3.msra.mxu0 %v91_v2  ;;  %10039 = vmatpush3.msra.mxu1 %v91_v2  ;;  %v127_v20 = vld [vmem:[#allocation3 + $0x30] sm:$0xff]  ;;  %v85_v26 = vld [vmem:[#allocation6] sm:$0xff]  ;;  %v143_v29 = vsel %vm129_vm1, %v128_v24, 0.0  ;;  %s11765_s13 = smov 48   ;;  %s11766_s14 = smov 112   ;;  %vm4402_vm3 = vcmask 130048  }
  0x3a   :  { %10021 = vmatprep.subr.mxu0 %v11760_v0  ;;  %10040 = vmatprep.subr.mxu1 %v11760_v0  ;;  %v134_v17 = vadd.f32 %v133_v11, %v132_v13  ;;  %v141_v27 = vsel %vm129_vm1, %v127_v20, 0.0  ;;  %s11767_s15 = smov 40   ;;  %s11768_s16 = smov 104   ;;  %vm4411_vm4 = vcmask 195584   ;;  %vm4420_vm5 = vcmask 261120  }
  0x3b   :  { %10022 = vmatpush3.msra.mxu0 %v90_v3  ;;  %10041 = vmatpush3.msra.mxu1 %v90_v3  ;;  %s11769_s17 = smov 32   ;;  %s11770_s18 = smov 96   ;;  %vm4429_vm6 = vcmask 326656   ;;  %vm4438_vm7 = vcmask 392192   ;;  %vm4447_vm8 = vcmask 457728  }
  0x3c   :  { %10023 = vmatprep.subr.mxu0 %v11760_v0  ;;  %10042 = vmatprep.subr.mxu1 %v11760_v0  ;;  %v136_v21 = vadd.f32 %v135_v15, %v134_v17  ;;  %s11771_s19 = smov 24   ;;  %s11772_s1 = smov 88  }
  0x3d   :  { %10024 = vmatpush3.msra.mxu0 %v89_v9  ;;  %10043 = vmatpush3.msra.mxu1 %v89_v9  ;;  %s11773_s21 = smov 80   ;;  %s11774_s22 = smov 72  }
  0x3e   :  { %10025 = vmatprep.subr.mxu0 %v11760_v0  ;;  %10044 = vmatprep.subr.mxu1 %v11760_v0  ;;  %v138_v25 = vadd.f32 %v137_v19, %v136_v21  ;;  %v110_v19 = vld [vmem:[#allocation8 + $0x78] sm:$0xff]  ;;  %v108_v21 = vld [vmem:[#allocation8 + $0x68] sm:$0xff] }
  0x3f   :  { %10026 = vmatpush3.msra.mxu0 %v88_v14  ;;  %10045 = vmatpush3.msra.mxu1 %v88_v14 }
  0x40   :  { %10027 = vmatprep.subr.mxu0 %v11760_v0  ;;  %10046 = vmatprep.subr.mxu1 %v11760_v0  ;;  %v140_v28 = vadd.f32 %v139_v23, %v138_v25  ;;  %v106_v23 = vld [vmem:[#allocation8 + $0x58] sm:$0xff]  ;;  %v104_v25 = vld [vmem:[#allocation8 + $0x48] sm:$0xff] }
  0x41   :  { %10028 = vmatpush3.msra.mxu0 %v87_v18  ;;  %10047 = vmatpush3.msra.mxu1 %v87_v18 }
  0x42   :  { %10029 = vmatprep.subr.mxu0 %v11760_v0  ;;  %10048 = vmatprep.subr.mxu1 %v11760_v0  ;;  %v142_v30 = vadd.f32 %v141_v27, %v140_v28  ;;  %v102_v27 = vld [vmem:[#allocation8 + $0x38] sm:$0xff]  ;;  %v101_v28 = vld [vmem:[#allocation8 + $0x30] sm:$0xff] }
  0x43   :  { %10030 = vmatpush3.msra.mxu0 %v86_v22  ;;  %10049 = vmatpush3.msra.mxu1 %v86_v22  ;;  %v107_v22 = vld [vmem:[#allocation8 + $0x60] sm:$0xff] }
  0x44   :  { %10031 = vmatprep.subr.mxu0 %v11760_v0  ;;  %10050 = vmatprep.subr.mxu1 %v11760_v0  ;;  %v144_v31 = vadd.f32 %v143_v29, %v142_v30  ;;  %v100_v29 = vld [vmem:[#allocation8 + $0x28] sm:$0xff]  ;;  %v99_v30 = vld [vmem:[#allocation8 + $0x20] sm:$0xff] }
  0x45   :  { %10032 = vmatpush3.msra.mxu0 %v85_v26  ;;  %10051 = vmatpush3.msra.mxu1 %v85_v26  ;;  %v103_v26 = vld [vmem:[#allocation8 + $0x40] sm:$0xff] }
  0x46   :  { %v145_v32 = vrot.slane %v144_v31, 4  ;;  %433 = vmatprep.subr.mxu0 %v110_v19 }
  0x48   :  { %v146_v33 = vadd.f32 %v145_v32, %v144_v31  ;;  %v98_v31 = vld [vmem:[#allocation8 + $0x18] sm:$0xff]  ;;  %v97_v32 = vld [vmem:[#allocation8 + $0x10] sm:$0xff] }
  0x4a   :  { %v147_v34 = vrot.slane %v146_v33, 2 }
  0x4c   :  { %v148_v35 = vadd.f32 %v147_v34, %v146_v33  ;;  %v96_v33 = vld [vmem:[#allocation8 + $0x8] sm:$0xff]  ;;  %v95_v34 = vld [vmem:[#allocation8] sm:$0xff] }
  0x4e   :  { %v149_v36 = vrot.slane %v148_v35, 1 }
  0x50   :  { %v150_v37 = vadd.f32 %v149_v36, %v148_v35 }
  0x52   :  { %10034 = vmatmul.mubr.msk.f32.vlgmr.msra.gmra.mxu0 %vm129_vm1, %v150_v37 }
  0x53   :  { %481 = vmatprep.mubr.f32.mxu0 %v11760_v0 }
 0x112   :  { %v220_v41 = vpop.f32.mrf.mxu0 }
 0x113   :  { %v224_v42 = vmul.f32 0.0078125, %v220_v41 }
 0x114   :  { %v10035_v43 = vpop.f32.mrf.mxu0 }
 0x115   :  { %v228_v44 = vrot.slane %v224_v42, %v11888_v40  ;;  %v9016_v43 = vld [vmem:[%s15066_s2] ss:$0 sm:$0xff] }
 0x117   :  { %v11892_v45 = vsub.f32 %v11850_v4, %v228_v44  ;;  %v11895_v46 = vsub.f32 %v11853_v5, %v228_v44  ;;  %v11898_v47 = vsub.f32 %v11855_v6, %v228_v44  ;;  %v11901_v48 = vsub.f32 %v11857_v7, %v228_v44 }
 0x118   :  { %v11903_v49 = vsub.f32 %v125_v12, %v228_v44  ;;  %v11911_v53 = vsub.f32 %v126_v16, %v228_v44  ;;  %v11917_v58 = vsub.f32 %v127_v20, %v228_v44  ;;  %v11922_v62 = vsub.f32 %v128_v24, %v228_v44  ;;  %v109_v20 = vld [vmem:[#allocation8 + $0x70] sm:$0xff] }
 0x119   :  { %v237_v50 = vmul.f32 %v11892_v45, %v11892_v45  ;;  %v238_v51 = vmul.f32 %v11895_v46, %v11895_v46  ;;  %v239_v52 = vmul.f32 %v11898_v47, %v11898_v47  ;;  %v240_v54 = vmul.f32 %v11901_v48, %v11901_v48  ;;  %434 = vmatpush1.msra.mxu0 %v109_v20  ;;  %v105_v24 = vld [vmem:[#allocation8 + $0x50] sm:$0xff] }
 0x11a   :  { %v241_v59 = vmul.f32 %v11903_v49, %v11903_v49  ;;  %v242_v63 = vmul.f32 %v11911_v53, %v11911_v53  ;;  %v243_v3 = vmul.f32 %v11917_v58, %v11917_v58  ;;  %v244_v6 = vmul.f32 %v11922_v62, %v11922_v62  ;;  %435 = vmatprep.subr.mxu0 %v108_v21 }
 0x11b   :  { %v245_v55 = vsel %vm129_vm1, %v237_v50, 0.0  ;;  %v246_v56 = vsel %vm129_vm1, %v238_v51, 0.0  ;;  %v248_v60 = vsel %vm129_vm1, %v239_v52, 0.0  ;;  %v250_v1 = vsel %vm129_vm1, %v240_v54, 0.0  ;;  %436 = vmatpush1.msra.mxu0 %v107_v22  ;;  %v9017_v51 = vld [vmem:[%s15067_s3] ss:$0 sm:$0xff] }
 0x11c   :  { %v247_v57 = vadd.f32 %v246_v56, %v245_v55  ;;  %v252_v4 = vsel %vm129_vm1, %v241_v59, 0.0  ;;  %v254_v7 = vsel %vm129_vm1, %v242_v63, 0.0  ;;  %v256_v9 = vsel %vm129_vm1, %v243_v3, 0.0  ;;  %437 = vmatprep.subr.mxu0 %v106_v23 }
 0x11d   :  { %v258_v11 = vsel %vm129_vm1, %v244_v6, 0.0  ;;  %438 = vmatpush1.msra.mxu0 %v105_v24  ;;  %v389_v23 = vsub.s32 1, %v11885_v39 }
 0x11e   :  { %v249_v61 = vadd.f32 %v248_v60, %v247_v57  ;;  %439 = vmatprep.subr.mxu0 %v104_v25 }
 0x11f   :  { %440 = vmatpush1.msra.mxu0 %v103_v26 }
 0x120   :  { %v251_v2 = vadd.f32 %v250_v1, %v249_v61  ;;  %441 = vmatprep.subr.mxu0 %v102_v27 }
 0x121   :  { %442 = vmatpush1.msra.mxu0 %v101_v28 }
 0x122   :  { %v253_v5 = vadd.f32 %v252_v4, %v251_v2  ;;  %443 = vmatprep.subr.mxu0 %v100_v29 }
 0x123   :  { %444 = vmatpush1.msra.mxu0 %v99_v30 }
 0x124   :  { %v255_v8 = vadd.f32 %v254_v7, %v253_v5  ;;  %445 = vmatprep.subr.mxu0 %v98_v31 }
 0x125   :  { %446 = vmatpush1.msra.mxu0 %v97_v32 }
 0x126   :  { %v257_v10 = vadd.f32 %v256_v9, %v255_v8  ;;  %447 = vmatprep.subr.mxu0 %v96_v33 }
 0x127   :  { %448 = vmatpush1.msra.mxu0 %v95_v34 }
 0x128   :  { %v259_v12 = vadd.f32 %v258_v11, %v257_v10 }
 0x12a   :  { %v260_v13 = vrot.slane %v259_v12, 4 }
 0x12c   :  { %v261_v14 = vadd.f32 %v260_v13, %v259_v12 }
 0x12e   :  { %v262_v15 = vrot.slane %v261_v14, 2 }
 0x130   :  { %v263_v16 = vadd.f32 %v262_v15, %v261_v14 }
 0x132   :  { %v264_v17 = vrot.slane %v263_v16, 1 }
 0x134   :  { %v265_v18 = vadd.f32 %v264_v17, %v263_v16 }
 0x136   :  { %10053 = vmatmul.mubr.msk.f32.vlgmr.msra.gmra.mxu1 %vm129_vm1, %v265_v18 }
 0x1f6   :  { %v335_v35 = vpop.f32.mrf.mxu1 }
 0x1f7   :  { %v339_v36 = vmul.f32 0.0078125, %v335_v35 }
 0x1f8   :  { %v10054_v37 = vpop.f32.mrf.mxu1 }
 0x1f9   :  { %v340_v38 = vadd.f32 1e-05, %v339_v36 }
 0x1fb   :  { %11069 = vrsqrt.f32 %v340_v38 }
 0x208   :  { %v11070_v41 = vpop.eup %11069 }
 0x209   :  { %v345_v42 = vrot.slane %v11070_v41, %v11888_v40 }
 0x20b   :  { %v346_v44 = vmul.f32 %v345_v42, %v11892_v45  ;;  %v347_v50 = vmul.f32 %v345_v42, %v11895_v46  ;;  %v348_v56 = vmul.f32 %v345_v42, %v11898_v47  ;;  %v349_v60 = vmul.f32 %v345_v42, %v11901_v48 }
 0x20c   :  { %v350_v61 = vmul.f32 %v345_v42, %v11903_v49  ;;  %v351_v1 = vmul.f32 %v345_v42, %v11911_v53  ;;  %v352_v3 = vmul.f32 %v345_v42, %v11917_v58  ;;  %v353_v5 = vmul.f32 %v345_v42, %v11922_v62  ;;  %v111_v58 = vld [vmem:[%s15069_s5] sm:$0x3]  ;;  %s11762_s5 = smov 64  }
 0x20d   :  { %v360_v52 = vmul.f32 %v9016_v43, %v346_v44  ;;  %v361_v55 = vmul.f32 %v9016_v43, %v347_v50  ;;  %v362_v59 = vmul.f32 %v9016_v43, %v348_v56  ;;  %v363_v46 = vmul.f32 %v9016_v43, %v349_v60 }
 0x20e   :  { %v364_v63 = vmul.f32 %v9016_v43, %v350_v61  ;;  %v365_v2 = vmul.f32 %v9016_v43, %v351_v1  ;;  %v366_v4 = vmul.f32 %v9016_v43, %v352_v3  ;;  %v367_v6 = vmul.f32 %v9016_v43, %v353_v5 }
 0x20f   :  { %v374_v54 = vadd.f32 %v9017_v51, %v360_v52  ;;  %v375_v57 = vadd.f32 %v9017_v51, %v361_v55  ;;  %v376_v45 = vadd.f32 %v9017_v51, %v362_v59  ;;  %v377_v47 = vadd.f32 %v9017_v51, %v363_v46 }
 0x210   :  { %v378_v48 = vadd.f32 %v9017_v51, %v364_v63  ;;  %v379_v49 = vadd.f32 %v9017_v51, %v365_v2  ;;  %v380_v53 = vadd.f32 %v9017_v51, %v366_v4  ;;  %v381_v7 = vadd.f32 %v9017_v51, %v367_v6 }
 0x211   :  { %9018 = vmatmul.mubr.msk.f32.vlgmr.msra.gmra.mxu0 %vm129_vm1, %v374_v54  ;;  %v11970_v8 = vrot.slane %v111_v58, %v11888_v40  ;;  %v11988_v27 = vrot.slane %v111_v58, %v389_v23 }
 0x212   :  { %487 = vmatprep.mubr.f32.mxu0 %v11760_v0 }
 0x215   :  { %9019 = vmatmul.mubr.msk.f32.gmra.mxu0 %vm129_vm1, %v375_v57 }
 0x216   :  { %493 = vmatprep.mubr.f32.mxu0 %v11760_v0 }
 0x219   :  { %9020 = vmatmul.mubr.msk.f32.gmra.mxu0 %vm129_vm1, %v376_v45 }
 0x21a   :  { %499 = vmatprep.mubr.f32.mxu0 %v11760_v0 }
 0x21d   :  { %9021 = vmatmul.mubr.msk.f32.gmra.mxu0 %vm129_vm1, %v377_v47 }
 0x21e   :  { %505 = vmatprep.mubr.f32.mxu0 %v11760_v0 }
 0x221   :  { %9022 = vmatmul.mubr.msk.f32.gmra.mxu0 %vm129_vm1, %v378_v48 }
 0x222   :  { %511 = vmatprep.mubr.f32.mxu0 %v11760_v0 }
 0x225   :  { %9023 = vmatmul.mubr.msk.f32.gmra.mxu0 %vm129_vm1, %v379_v49 }
 0x226   :  { %517 = vmatprep.mubr.f32.mxu0 %v11760_v0 }
 0x229   :  { %9024 = vmatmul.mubr.msk.f32.gmra.mxu0 %vm129_vm1, %v380_v53 }
 0x22a   :  { %523 = vmatprep.mubr.f32.mxu0 %v11760_v0 }
 0x22d   :  { %9025 = vmatmul.mubr.msk.f32.gmra.mxu0 %vm129_vm1, %v381_v7 }
 0x2d1   :  { %v483_v62 = vpop.f32.mrf.mxu0 }
 0x2d2   :  { %v11973_v9 = vadd.f32 %v483_v62, %v11970_v8 }
 0x2d3   :  { %v485_v10 = vpop.f32.mrf.mxu0 }
 0x2d4   :  { %10071 = vmatprep.mubr.msk.f32.mxu1 %vm554_vm2, %v11973_v9  ;;  %v12055_v42 = vadd.f32 %v485_v10, %v11988_v27 }
 0x2d5   :  { %v489_v11 = vpop.f32.mrf.mxu0 }
 0x2d6   :  { %v12038_v37 = vadd.f32 %v489_v11, %v11970_v8 }
 0x2d7   :  { %v491_v12 = vpop.f32.mrf.mxu0 }
 0x2d8   :  { %v12046_v41 = vadd.f32 %v491_v12, %v11988_v27 }
 0x2d9   :  { %v495_v13 = vpop.f32.mrf.mxu0 }
 0x2da   :  { %v11991_v28 = vadd.f32 %v495_v13, %v11970_v8 }
 0x2db   :  { %v497_v14 = vpop.f32.mrf.mxu0 }
 0x2dc   :  { %v12041_v38 = vadd.f32 %v497_v14, %v11988_v27 }
 0x2dd   :  { %v501_v15 = vpop.f32.mrf.mxu0 }
 0x2de   :  { %v12021_v34 = vadd.f32 %v501_v15, %v11970_v8 }
 0x2df   :  { %v503_v16 = vpop.f32.mrf.mxu0 }
 0x2e0   :  { %v12029_v36 = vadd.f32 %v503_v16, %v11988_v27 }
 0x2e1   :  { %v507_v17 = vpop.f32.mrf.mxu0 }
 0x2e2   :  { %v11984_v24 = vadd.f32 %v507_v17, %v11970_v8 }
 0x2e3   :  { %v509_v18 = vpop.f32.mrf.mxu0 }
 0x2e4   :  { %v12024_v35 = vadd.f32 %v509_v18, %v11988_v27 }
 0x2e5   :  { %v513_v19 = vpop.f32.mrf.mxu0 }
 0x2e6   :  { %v11978_v20 = vadd.f32 %v513_v19, %v11970_v8 }
 0x2e7   :  { %v515_v21 = vpop.f32.mrf.mxu0 }
 0x2e8   :  { %548 = vrot.lane.b32.xlu1 %v11978_v20, %s11762_s5  ;;  %v12012_v33 = vadd.f32 %v515_v21, %v11988_v27 }
 0x2e9   :  { %v519_v22 = vpop.f32.mrf.mxu0 }
 0x2ea   :  { %v12004_v39 = vadd.f32 %v519_v22, %v11970_v8 }
 0x2eb   :  { %v521_v25 = vpop.f32.mrf.mxu0 }
 0x2ec   :  { %546 = vrot.lane.b32.xlu1 %v11984_v24, %s11762_s5  ;;  %v12007_v32 = vadd.f32 %v521_v25, %v11988_v27 }
 0x2ed   :  { %v525_v26 = vpop.f32.mrf.mxu0 }
 0x2ee   :  { %v11994_v29 = vadd.f32 %v525_v26, %v11970_v8 }
 0x2ef   :  { %v527_v30 = vpop.f32.mrf.mxu0 }
 0x2f0   :  { %v11997_v31 = vadd.f32 %v527_v30, %v11988_v27  ;;  %552 = vrot.lane.b32.xlu0 %v11994_v29, %s11762_s5  ;;  %542 = vrot.lane.b32.xlu1 %v11991_v28, %s11762_s5 }
 0x2f2   :  { %10083 = vmatprep.subr.mxu0 %v11997_v31 }
 0x2f3   :  { %10084 = vmatpush3.msra.mxu0 %v11997_v31 }
 0x2f4   :  { %10085 = vmatprep.subr.mxu0 %v12007_v32  ;;  %550 = vrot.lane.b32.xlu0 %v12004_v39, %s11762_s5 }
 0x2f5   :  { %538 = vrot.lane.b32.xlu1 %v11973_v9, %s11762_s5  ;;  %10086 = vmatpush3.msra.mxu0 %v12007_v32 }
 0x2f6   :  { %10087 = vmatprep.subr.mxu0 %v12012_v33 }
 0x2f7   :  { %10088 = vmatpush3.msra.mxu0 %v12012_v33 }
 0x2f8   :  { %10089 = vmatprep.subr.mxu0 %v12024_v35  ;;  %544 = vrot.lane.b32.xlu0 %v12021_v34, %s11762_s5 }
 0x2f9   :  { %953 = vrot.lane.b32.xlu1 %v12004_v39, %s11763_s9  ;;  %10090 = vmatpush3.msra.mxu0 %v12024_v35 }
 0x2fa   :  { %10091 = vmatprep.subr.mxu0 %v12029_v36 }
 0x2fb   :  { %10092 = vmatpush3.msra.mxu0 %v12029_v36 }
 0x2fc   :  { %10093 = vmatprep.subr.mxu0 %v12041_v38  ;;  %540 = vrot.lane.b32.xlu0 %v12038_v37, %s11762_s5 }
 0x2fd   :  { %949 = vrot.lane.b32.xlu1 %v11984_v24, %s11763_s9  ;;  %10094 = vmatpush3.msra.mxu0 %v12041_v38 }
 0x2fe   :  { %10095 = vmatprep.subr.mxu0 %v12046_v41 }
 0x2ff   :  { %10096 = vmatpush3.msra.mxu0 %v12046_v41 }
 0x300   :  { %955 = vrot.lane.b32.xlu0 %v11994_v29, %s11763_s9  ;;  %10097 = vmatprep.subr.mxu0 %v12055_v42 }
 0x301   :  { %945 = vrot.lane.b32.xlu1 %v11991_v28, %s11763_s9  ;;  %10098 = vmatpush3.msra.mxu0 %v12055_v42 }
 0x304   :  { %951 = vrot.lane.b32.xlu0 %v11978_v20, %s11763_s9 }
 0x305   :  { %941 = vrot.lane.b32.xlu1 %v11973_v9, %s11763_s9 }
 0x308   :  { %947 = vrot.lane.b32.xlu0 %v12021_v34, %s11763_s9 }
 0x309   :  { %927 = vrot.lane.b32.xlu1 %v12038_v37, %s11764_s12 }
 0x30c   :  { %943 = vrot.lane.b32.xlu0 %v12038_v37, %s11763_s9 }
 0x30d   :  { %931 = vrot.lane.b32.xlu1 %v12021_v34, %s11764_s12 }
 0x310   :  { %925 = vrot.lane.b32.xlu0 %v11973_v9, %s11764_s12 }
 0x311   :  { %935 = vrot.lane.b32.xlu1 %v11978_v20, %s11764_s12 }
 0x314   :  { %929 = vrot.lane.b32.xlu0 %v11991_v28, %s11764_s12 }
 0x315   :  { %939 = vrot.lane.b32.xlu1 %v11994_v29, %s11764_s12 }
 0x318   :  { %933 = vrot.lane.b32.xlu0 %v11984_v24, %s11764_s12 }
 0x319   :  { %1208 = vrot.lane.b32.xlu1 %v12012_v33, %s11764_s12 }
 0x31c   :  { %937 = vrot.lane.b32.xlu0 %v12004_v39, %s11764_s12 }
 0x31d   :  { %1206 = vrot.lane.b32.xlu1 %v12024_v35, %s11764_s12 }
 0x320   :  { %1210 = vrot.lane.b32.xlu0 %v12007_v32, %s11764_s12 }
 0x321   :  { %1202 = vrot.lane.b32.xlu1 %v12041_v38, %s11764_s12 }
 0x324   :  { %1204 = vrot.lane.b32.xlu0 %v12029_v36, %s11764_s12 }
 0x325   :  { %1198 = vrot.lane.b32.xlu1 %v12055_v42, %s11764_s12 }
 0x328   :  { %1200 = vrot.lane.b32.xlu0 %v12046_v41, %s11764_s12 }
 0x329   :  { %1387 = vrot.lane.b32.xlu1 %v12004_v39, %s11765_s13 }
 0x32c   :  { %1389 = vrot.lane.b32.xlu0 %v11994_v29, %s11765_s13 }
 0x32d   :  { %1212 = vrot.lane.b32.xlu1 %v11997_v31, %s11764_s12 }
 0x35a   :  { %v549_v43 = vpop.permute.xlu1 %548 }
 0x35e   :  { %v547_v44 = vpop.permute.xlu1 %546 }
 0x362   :  { %v553_v50 = vpop.permute.xlu0 %552  ;;  %v543_v51 = vpop.permute.xlu1 %542 }
 0x363   :  { %10055 = vmatprep.subr.msk.mxu1 %vm554_vm2, %v553_v50 }
 0x364   :  { %10056 = vmatpush3.xpose.msk.msra.mxu1 %vm554_vm2, %v553_v50 }
 0x366   :  { %v551_v52 = vpop.permute.xlu0 %550 }
 0x367   :  { %v539_v54 = vpop.permute.xlu1 %538  ;;  %10057 = vmatprep.subr.msk.mxu1 %vm554_vm2, %v551_v52 }
 0x368   :  { %10058 = vmatpush3.xpose.msk.msra.mxu1 %vm554_vm2, %v551_v52 }
 0x369   :  { %10059 = vmatprep.subr.msk.mxu1 %vm554_vm2, %v549_v43 }
 0x36a   :  { %v545_v55 = vpop.permute.xlu0 %544 }
 0x36b   :  { %v954_v56 = vpop.permute.xlu1 %953 }
 0x36c   :  { %10060 = vmatpush3.xpose.msk.msra.mxu1 %vm554_vm2, %v549_v43 }
 0x36d   :  { %10061 = vmatprep.subr.msk.mxu1 %vm554_vm2, %v547_v44 }
 0x36e   :  { %v541_v59 = vpop.permute.xlu0 %540 }
 0x36f   :  { %v950_v57 = vpop.permute.xlu1 %949 }
 0x370   :  { %10062 = vmatpush3.xpose.msk.msra.mxu1 %vm554_vm2, %v547_v44 }
 0x371   :  { %10063 = vmatprep.subr.msk.mxu1 %vm554_vm2, %v545_v55 }
 0x372   :  { %v956_v45 = vpop.permute.xlu0 %955 }
 0x373   :  { %v946_v60 = vpop.permute.xlu1 %945 }
 0x374   :  { %10064 = vmatpush3.xpose.msk.msra.mxu1 %vm554_vm2, %v545_v55 }
 0x375   :  { %10065 = vmatprep.subr.msk.mxu1 %vm554_vm2, %v543_v51 }
 0x376   :  { %v952_v47 = vpop.permute.xlu0 %951 }
 0x377   :  { %v942_v46 = vpop.permute.xlu1 %941 }
 0x378   :  { %10066 = vmatpush3.xpose.msk.msra.mxu1 %vm554_vm2, %v543_v51 }
 0x379   :  { %10067 = vmatprep.subr.msk.mxu1 %vm554_vm2, %v541_v59 }
 0x37a   :  { %v948_v1 = vpop.permute.xlu0 %947 }
 0x37b   :  { %v928_v61 = vpop.permute.xlu1 %927 }
 0x37c   :  { %10068 = vmatpush3.xpose.msk.msra.mxu1 %vm554_vm2, %v541_v59 }
 0x37d   :  { %10069 = vmatprep.subr.msk.mxu1 %vm554_vm2, %v539_v54 }
 0x37e   :  { %v944_v3 = vpop.permute.xlu0 %943 }
 0x37f   :  { %v932_v63 = vpop.permute.xlu1 %931 }
 0x380   :  { %10070 = vmatpush3.xpose.msk.msra.mxu1 %vm554_vm2, %v539_v54 }
 0x381   :  { %10111 = vmatprep.subr.msk.mxu1 %vm554_vm2, %v956_v45 }
 0x382   :  { %v926_v4 = vpop.permute.xlu0 %925 }
 0x383   :  { %v936_v48 = vpop.permute.xlu1 %935  ;;  %10072 = vmatmul.mubr.msk.f32.vlgmr.msra.gmra.mxu1 %vm554_vm2, %v12038_v37 }
 0x384   :  { %10074 = vmatprep.mubr.msk.f32.mxu1 %vm554_vm2, %v11991_v28  ;;  %10112 = vmatpush3.xpose.msk.msra.mxu1 %vm554_vm2, %v956_v45 }
 0x385   :  { %10113 = vmatprep.subr.msk.mxu1 %vm554_vm2, %v954_v56 }
 0x386   :  { %v930_v58 = vpop.permute.xlu0 %929 }
 0x387   :  { %v940_v2 = vpop.permute.xlu1 %939  ;;  %10075 = vmatmul.mubr.msk.f32.gmra.mxu1 %vm554_vm2, %v12021_v34 }
 0x388   :  { %10077 = vmatprep.mubr.msk.f32.mxu1 %vm554_vm2, %v11984_v24  ;;  %10114 = vmatpush3.xpose.msk.msra.mxu1 %vm554_vm2, %v954_v56 }
 0x389   :  { %10115 = vmatprep.subr.msk.mxu1 %vm554_vm2, %v952_v47 }
 0x38a   :  { %v934_v10 = vpop.permute.xlu0 %933 }
 0x38b   :  { %v12138_v49 = vpop.permute.xlu1 %1208  ;;  %10078 = vmatmul.mubr.msk.f32.gmra.mxu1 %vm554_vm2, %v11978_v20 }
 0x38c   :  { %10080 = vmatprep.mubr.msk.f32.mxu1 %vm554_vm2, %v12004_v39  ;;  %10116 = vmatpush3.xpose.msk.msra.mxu1 %vm554_vm2, %v952_v47 }
 0x38d   :  { %10117 = vmatprep.subr.msk.mxu1 %vm554_vm2, %v950_v57 }
 0x38e   :  { %v938_v11 = vpop.permute.xlu0 %937 }
 0x38f   :  { %v12146_v5 = vpop.permute.xlu1 %1206  ;;  %10081 = vmatmul.mubr.msk.f32.gmra.mxu1 %vm554_vm2, %v11994_v29 }
 0x390   :  { %10118 = vmatpush3.xpose.msk.msra.mxu1 %vm554_vm2, %v950_v57  ;;  %10127 = vmatprep.mubr.msk.f32.mxu1 %vm554_vm2, %v926_v4 }
 0x391   :  { %10119 = vmatprep.subr.msk.mxu1 %vm554_vm2, %v948_v1 }
 0x393   :  { %v12153_v53 = vpop.permute.xlu1 %1202 }
 0x394   :  { %10120 = vmatpush3.xpose.msk.msra.mxu1 %vm554_vm2, %v948_v1 }
 0x395   :  { %10121 = vmatprep.subr.msk.mxu1 %vm554_vm2, %v946_v60 }
 0x397   :  { %v12157_v6 = vpop.permute.xlu1 %1198 }
 0x398   :  { %10122 = vmatpush3.xpose.msk.msra.mxu1 %vm554_vm2, %v946_v60 }
 0x399   :  { %10123 = vmatprep.subr.msk.mxu1 %vm554_vm2, %v944_v3 }
 0x39b   :  { %v12161_v7 = vpop.permute.xlu1 %1387 }
 0x39c   :  { %10124 = vmatpush3.xpose.msk.msra.mxu1 %vm554_vm2, %v944_v3 }
 0x39d   :  { %10125 = vmatprep.subr.msk.mxu1 %vm554_vm2, %v942_v46 }
 0x39f   :  { %v12165_v62 = vpop.permute.xlu1 %1212 }
 0x3a0   :  { %10139 = vmatprep.subr.mxu0 %v12165_v62  ;;  %10126 = vmatpush3.xpose.msk.msra.mxu1 %vm554_vm2, %v942_v46 }
 0x3a3   :  { %10128 = vmatmul.mubr.msk.f32.vlgmr.msra.gmra.mxu1 %vm554_vm2, %v928_v61 }
 0x3a4   :  { %10130 = vmatprep.mubr.msk.f32.mxu1 %vm554_vm2, %v930_v58 }
 0x3a7   :  { %10131 = vmatmul.mubr.msk.f32.gmra.mxu1 %vm554_vm2, %v932_v63 }
 0x3a8   :  { %10133 = vmatprep.mubr.msk.f32.mxu1 %vm554_vm2, %v934_v10 }
 0x3ab   :  { %10134 = vmatmul.mubr.msk.f32.gmra.mxu1 %vm554_vm2, %v936_v48 }
 0x3ac   :  { %10136 = vmatprep.mubr.msk.f32.mxu1 %vm554_vm2, %v938_v11 }
 0x3af   :  { %10137 = vmatmul.mubr.msk.f32.gmra.mxu1 %vm554_vm2, %v940_v2 }
 0x443   :  { %v10073_v12 = vpop.f32.mrf.mxu1 }
 0x444   :  { %v12176_v13 = vmul.f32 0.35355338, %v10073_v12 }
 0x445   :  { %v653_v14 = vpop.f32.mrf.mxu1 }
 0x446   :  { %v12178_v15 = vmul.f32 0.35355338, %v653_v14  ;;  %v703_v16 = vsel %vm129_vm1, %v12176_v13, -inf }
 0x447   :  { %704 = vmax.xlane.f32.xlu1 %v703_v16  ;;  %v10076_v17 = vpop.f32.mrf.mxu1 }
 0x448   :  { %v12182_v18 = vmul.f32 0.35355338, %v10076_v17  ;;  %v700_v19 = vsel %vm129_vm1, %v12178_v15, -inf }
 0x449   :  { %701 = vmax.xlane.f32.xlu0 %v700_v19  ;;  %v663_v21 = vpop.f32.mrf.mxu1 }
 0x44a   :  { %v12186_v23 = vmul.f32 0.35355338, %v663_v21  ;;  %v709_v25 = vsel %vm129_vm1, %v12182_v18, -inf }
 0x44b   :  { %v10079_v22 = vpop.f32.mrf.mxu1 }
 0x44c   :  { %v12192_v44 = vmul.f32 0.35355338, %v10079_v22  ;;  %v706_v50 = vsel %vm129_vm1, %v12186_v23, -inf }
 0x44d   :  { %710 = vmax.xlane.f32.xlu0 %v709_v25  ;;  %v673_v26 = vpop.f32.mrf.mxu1 }
 0x44e   :  { %v12190_v30 = vmul.f32 0.35355338, %v673_v26  ;;  %v715_v56 = vsel %vm129_vm1, %v12192_v44, -inf }
 0x44f   :  { %v10082_v43 = vpop.f32.mrf.mxu1 }
 0x450   :  { %v712_v51 = vsel %vm129_vm1, %v12190_v30, -inf  ;;  %v12200_v55 = vmul.f32 0.35355338, %v10082_v43 }
 0x451   :  { %707 = vmax.xlane.f32.xlu0 %v706_v50  ;;  %713 = vmax.xlane.f32.xlu1 %v712_v51  ;;  %v683_v52 = vpop.f32.mrf.mxu1  ;;  %v12244_v50 = vpop.permute.xlu0 %1210 }
 0x452   :  { %v12198_v54 = vmul.f32 0.35355338, %v683_v52  ;;  %v721_v59 = vsel %vm129_vm1, %v12200_v55, -inf }
 0x454   :  { %v718_v57 = vsel %vm129_vm1, %v12198_v54, -inf }
 0x455   :  { %716 = vmax.xlane.f32.xlu0 %v715_v56  ;;  %719 = vmax.xlane.f32.xlu1 %v718_v57  ;;  %v12246_v51 = vpop.permute.xlu0 %1204 }
 0x459   :  { %722 = vmax.xlane.f32.xlu0 %v721_v59  ;;  %v12248_v52 = vpop.permute.xlu0 %1200 }
 0x45d   :  { %v12250_v56 = vpop.permute.xlu0 %1389 }
 0x463   :  { %v10129_v60 = vpop.f32.mrf.mxu1 }
 0x464   :  { %v12208_v45 = vmul.f32 0.35355338, %v10129_v60 }
 0x465   :  { %v1055_v46 = vpop.f32.mrf.mxu1 }
 0x466   :  { %v12210_v61 = vmul.f32 0.35355338, %v1055_v46  ;;  %v1105_v47 = vsel %vm129_vm1, %v12208_v45, -inf }
 0x467   :  { %1106 = vmax.xlane.f32.xlu0 %v1105_v47  ;;  %v10132_v63 = vpop.f32.mrf.mxu1 }
 0x468   :  { %v12214_v1 = vmul.f32 0.35355338, %v10132_v63  ;;  %v1102_v48 = vsel %vm129_vm1, %v12210_v61, -inf }
 0x469   :  { %v1065_v2 = vpop.f32.mrf.mxu1  ;;  %1103 = vmax.xlane.f32.xlu1 %v1102_v48 }
 0x46a   :  { %v12218_v3 = vmul.f32 0.35355338, %v1065_v2  ;;  %v1111_v4 = vsel %vm129_vm1, %v12214_v1, -inf }
 0x46b   :  { %1112 = vmax.xlane.f32.xlu0 %v1111_v4  ;;  %v10135_v58 = vpop.f32.mrf.mxu1 }
 0x46c   :  { %v12222_v10 = vmul.f32 0.35355338, %v10135_v58  ;;  %v1108_v11 = vsel %vm129_vm1, %v12218_v3, -inf }
 0x46d   :  { %v1075_v12 = vpop.f32.mrf.mxu1  ;;  %1109 = vmax.xlane.f32.xlu1 %v1108_v11 }
 0x46e   :  { %v12226_v14 = vmul.f32 0.35355338, %v1075_v12  ;;  %v1117_v16 = vsel %vm129_vm1, %v12222_v10, -inf }
 0x46f   :  { %1118 = vmax.xlane.f32.xlu0 %v1117_v16  ;;  %v10138_v17 = vpop.f32.mrf.mxu1 }
 0x470   :  { %v12230_v19 = vmul.f32 0.35355338, %v10138_v17  ;;  %v1114_v21 = vsel %vm129_vm1, %v12226_v14, -inf }
 0x471   :  { %v1085_v22 = vpop.f32.mrf.mxu1  ;;  %1115 = vmax.xlane.f32.xlu1 %v1114_v21 }
 0x472   :  { %v12234_v25 = vmul.f32 0.35355338, %v1085_v22  ;;  %v1123_v26 = vsel %vm129_vm1, %v12230_v19, -inf }
 0x473   :  { %1124 = vmax.xlane.f32.xlu0 %v1123_v26 }
 0x474   :  { %v1120_v43 = vsel %vm129_vm1, %v12234_v25, -inf }
 0x475   :  { %1121 = vmax.xlane.f32.xlu1 %v1120_v43 }
 0x486   :  { %1383 = vrot.lane.b32.xlu1 %v11984_v24, %s11765_s13 }
 0x489   :  { %1385 = vrot.lane.b32.xlu0 %v11978_v20, %s11765_s13 }
 0x4d0   :  { %v705_v57 = vpop.xlane.xlu1 %704 }
 0x4d1   :  { %v725_v59 = vsub.f32 %v12176_v13, %v705_v57 }
 0x4d2   :  { %v702_v60 = vpop.xlane.xlu0 %701 }
 0x4d3   :  { %v734_v46 = vmul.f32 1.442695, %v725_v59  ;;  %v724_v47 = vsub.f32 %v12178_v15, %v702_v60 }
 0x4d5   :  { %11071 = vpow2.f32 %v734_v46  ;;  %v732_v63 = vmul.f32 1.442695, %v724_v47 }
 0x4d6   :  { %v711_v48 = vpop.xlane.xlu0 %710 }
 0x4d7   :  { %11073 = vpow2.f32 %v732_v63  ;;  %v727_v2 = vsub.f32 %v12182_v18, %v711_v48 }
 0x4d9   :  { %v738_v4 = vmul.f32 1.442695, %v727_v2 }
 0x4da   :  { %v708_v58 = vpop.xlane.xlu0 %707  ;;  %v714_v11 = vpop.xlane.xlu1 %713 }
 0x4db   :  { %11075 = vpow2.f32 %v738_v4  ;;  %v726_v12 = vsub.f32 %v12186_v23, %v708_v58  ;;  %v728_v16 = vsub.f32 %v12190_v30, %v714_v11 }
 0x4dd   :  { %v736_v17 = vmul.f32 1.442695, %v726_v12  ;;  %v740_v13 = vmul.f32 1.442695, %v728_v16 }
 0x4de   :  { %v717_v21 = vpop.xlane.xlu0 %716  ;;  %v720_v22 = vpop.xlane.xlu1 %719 }
 0x4df   :  { %11077 = vpow2.f32 %v736_v17  ;;  %v729_v15 = vsub.f32 %v12192_v44, %v717_v21  ;;  %v730_v26 = vsub.f32 %v12198_v54, %v720_v22 }
 0x4e0   :  { %11079 = vpow2.f32 %v740_v13 }
 0x4e1   :  { %v742_v43 = vmul.f32 1.442695, %v729_v15  ;;  %v744_v18 = vmul.f32 1.442695, %v730_v26 }
 0x4e2   :  { %v12259_v57 = vpop.eup %11071  ;;  %v723_v59 = vpop.xlane.xlu0 %722 }
 0x4e3   :  { %11081 = vpow2.f32 %v742_v43  ;;  %v731_v23 = vsub.f32 %v12200_v55, %v723_v59  ;;  %v751_v30 = vsel %vm129_vm1, %v12259_v57, 0.0 }
 0x4e4   :  { %v12264_v60 = vpop.eup %11073  ;;  %752 = vadd.xlane.f32.xlu0 %v751_v30  ;;  %11083 = vpow2.f32 %v744_v18 }
 0x4e5   :  { %v746_v46 = vmul.f32 1.442695, %v731_v23  ;;  %v748_v44 = vsel %vm129_vm1, %v12264_v60, 0.0 }
 0x4e6   :  { %749 = vadd.xlane.f32.xlu1 %v748_v44 }
 0x4e7   :  { %11085 = vpow2.f32 %v746_v46 }
 0x4e8   :  { %v12268_v54 = vpop.eup %11075 }
 0x4e9   :  { %v757_v47 = vsel %vm129_vm1, %v12268_v54, 0.0 }
 0x4ea   :  { %758 = vadd.xlane.f32.xlu0 %v757_v47 }
 0x4ec   :  { %v12272_v55 = vpop.eup %11077 }
 0x4ed   :  { %v754_v63 = vsel %vm129_vm1, %v12272_v55, 0.0  ;;  %v12276_v48 = vpop.eup %11079 }
 0x4ee   :  { %755 = vadd.xlane.f32.xlu1 %v754_v63  ;;  %v760_v12 = vsel %vm129_vm1, %v12276_v48, 0.0 }
 0x4f0   :  { %v12278_v2 = vpop.eup %11081  ;;  %v1107_v4 = vpop.xlane.xlu0 %1106 }
 0x4f1   :  { %v1127_v58 = vsub.f32 %v12208_v45, %v1107_v4  ;;  %v763_v11 = vsel %vm129_vm1, %v12278_v2, 0.0  ;;  %v12285_v16 = vpop.eup %11083 }
 0x4f2   :  { %764 = vadd.xlane.f32.xlu0 %v763_v11  ;;  %761 = vadd.xlane.f32.xlu1 %v760_v12  ;;  %v1104_v17 = vpop.xlane.xlu1 %1103  ;;  %v766_v26 = vsel %vm129_vm1, %v12285_v16, 0.0 }
 0x4f3   :  { %v1136_v13 = vmul.f32 1.442695, %v1127_v58  ;;  %v1126_v21 = vsub.f32 %v12210_v61, %v1104_v17 }
 0x4f4   :  { %v12288_v22 = vpop.eup %11085  ;;  %v1113_v30 = vpop.xlane.xlu0 %1112 }
 0x4f5   :  { %11087 = vpow2.f32 %v1136_v13  ;;  %v1134_v15 = vmul.f32 1.442695, %v1126_v21  ;;  %v769_v45 = vsel %vm129_vm1, %v12288_v22, 0.0  ;;  %v1129_v63 = vsub.f32 %v12214_v1, %v1113_v30 }
 0x4f6   :  { %770 = vadd.xlane.f32.xlu0 %v769_v45  ;;  %767 = vadd.xlane.f32.xlu1 %v766_v26  ;;  %v1110_v23 = vpop.xlane.xlu1 %1109 }
 0x4f7   :  { %11089 = vpow2.f32 %v1134_v15  ;;  %v1128_v44 = vsub.f32 %v12218_v3, %v1110_v23  ;;  %v1140_v12 = vmul.f32 1.442695, %v1129_v63 }
 0x4f8   :  { %v1119_v47 = vpop.xlane.xlu0 %1118 }
 0x4f9   :  { %v1138_v4 = vmul.f32 1.442695, %v1128_v44  ;;  %v1131_v17 = vsub.f32 %v12222_v10, %v1119_v47 }
 0x4fa   :  { %v1116_v46 = vpop.xlane.xlu1 %1115 }
 0x4fb   :  { %v1130_v58 = vsub.f32 %v12226_v14, %v1116_v46  ;;  %11091 = vpow2.f32 %v1138_v4  ;;  %v1144_v45 = vmul.f32 1.442695, %v1131_v17 }
 0x4fc   :  { %v1125_v13 = vpop.xlane.xlu0 %1124  ;;  %11093 = vpow2.f32 %v1140_v12 }
 0x4fd   :  { %v1142_v21 = vmul.f32 1.442695, %v1130_v58  ;;  %v1133_v26 = vsub.f32 %v12230_v19, %v1125_v13 }
 0x4fe   :  { %v1122_v11 = vpop.xlane.xlu1 %1121 }
 0x4ff   :  { %v1132_v15 = vsub.f32 %v12234_v25, %v1122_v11  ;;  %11095 = vpow2.f32 %v1142_v21  ;;  %v1148_v1 = vmul.f32 1.442695, %v1133_v26 }
 0x500   :  { %11097 = vpow2.f32 %v1144_v45  ;;  %v12358_v4 = vpop.permute.xlu0 %1385 }
 0x501   :  { %v1146_v3 = vmul.f32 1.442695, %v1132_v15 }
 0x502   :  { %v12294_v43 = vpop.eup %11087  ;;  %v12360_v58 = vpop.permute.xlu1 %1383 }
 0x503   :  { %v1153_v18 = vsel %vm129_vm1, %v12294_v43, 0.0  ;;  %11099 = vpow2.f32 %v1146_v3 }
 0x504   :  { %v12298_v59 = vpop.eup %11089  ;;  %1154 = vadd.xlane.f32.xlu0 %v1153_v18  ;;  %11101 = vpow2.f32 %v1148_v1 }
 0x505   :  { %v1150_v61 = vsel %vm129_vm1, %v12298_v59, 0.0 }
 0x506   :  { %1151 = vadd.xlane.f32.xlu1 %v1150_v61 }
 0x508   :  { %v12312_v14 = vpop.eup %11091 }
 0x509   :  { %v12314_v18 = vpop.eup %11093  ;;  %v1156_v10 = vsel %vm129_vm1, %v12312_v14, 0.0 }
 0x50a   :  { %v1159_v25 = vsel %vm129_vm1, %v12314_v18, 0.0 }
 0x50c   :  { %v12318_v61 = vpop.eup %11095 }
 0x50d   :  { %v12322_v19 = vpop.eup %11097  ;;  %v1162_v23 = vsel %vm129_vm1, %v12318_v61, 0.0 }
 0x50e   :  { %v1165_v46 = vsel %vm129_vm1, %v12322_v19, 0.0 }
 0x510   :  { %v12326_v30 = vpop.eup %11099 }
 0x511   :  { %v12330_v44 = vpop.eup %11101  ;;  %v1168_v47 = vsel %vm129_vm1, %v12326_v30, 0.0 }
 0x512   :  { %v1171_v63 = vsel %vm129_vm1, %v12330_v44, 0.0 }
 0x517   :  { %1379 = vrot.lane.b32.xlu1 %v11991_v28, %s11765_s13 }
 0x51a   :  { %1381 = vrot.lane.b32.xlu0 %v12021_v34, %s11765_s13 }
 0x539   :  { %1157 = vadd.xlane.f32.xlu0 %v1156_v10 }
 0x53b   :  { %1160 = vadd.xlane.f32.xlu1 %v1159_v25 }
 0x53d   :  { %1163 = vadd.xlane.f32.xlu0 %v1162_v23 }
 0x53f   :  { %1166 = vadd.xlane.f32.xlu1 %v1165_v46 }
 0x541   :  { %1169 = vadd.xlane.f32.xlu0 %v1168_v47 }
 0x543   :  { %1172 = vadd.xlane.f32.xlu1 %v1171_v63 }
 0x554   :  { %1375 = vrot.lane.b32.xlu1 %v11973_v9, %s11765_s13 }
 0x557   :  { %1377 = vrot.lane.b32.xlu0 %v12038_v37, %s11765_s13 }
 0x558   :  { %1361 = vrot.lane.b32.xlu1 %v12038_v37, %s11766_s14 }
 0x55b   :  { %1359 = vrot.lane.b32.xlu0 %v11973_v9, %s11766_s14 }
 0x55c   :  { %1365 = vrot.lane.b32.xlu1 %v12021_v34, %s11766_s14 }
 0x55f   :  { %1363 = vrot.lane.b32.xlu0 %v11991_v28, %s11766_s14 }
 0x560   :  { %1369 = vrot.lane.b32.xlu1 %v11978_v20, %s11766_s14 }
 0x563   :  { %1367 = vrot.lane.b32.xlu0 %v11984_v24, %s11766_s14 }
 0x564   :  { %1373 = vrot.lane.b32.xlu1 %v11994_v29, %s11766_s14 }
 0x567   :  { %1371 = vrot.lane.b32.xlu0 %v12004_v39, %s11766_s14 }
 0x568   :  { %1638 = vrot.lane.b32.xlu1 %v11997_v31, %s11766_s14 }
 0x56b   :  { %1636 = vrot.lane.b32.xlu0 %v12007_v32, %s11766_s14 }
 0x56c   :  { %1634 = vrot.lane.b32.xlu1 %v12012_v33, %s11766_s14 }
 0x56d   :  { %v753_v11 = vpop.xlane.xlu0 %752 }
 0x56e   :  { %11103 = vrcp.f32 %v753_v11 }
 0x56f   :  { %1630 = vrot.lane.b32.xlu0 %v12029_v36, %s11766_s14  ;;  %v750_v12 = vpop.xlane.xlu1 %749 }
 0x570   :  { %11105 = vrcp.f32 %v750_v12  ;;  %1632 = vrot.lane.b32.xlu1 %v12024_v35, %s11766_s14 }
 0x573   :  { %1626 = vrot.lane.b32.xlu0 %v12046_v41, %s11766_s14  ;;  %v759_v17 = vpop.xlane.xlu0 %758 }
 0x574   :  { %1628 = vrot.lane.b32.xlu1 %v12041_v38, %s11766_s14  ;;  %11107 = vrcp.f32 %v759_v17 }
 0x577   :  { %1815 = vrot.lane.b32.xlu0 %v11994_v29, %s11767_s15  ;;  %v756_v13 = vpop.xlane.xlu1 %755 }
 0x578   :  { %11109 = vrcp.f32 %v756_v13  ;;  %1624 = vrot.lane.b32.xlu1 %v12055_v42, %s11766_s14 }
 0x57b   :  { %v765_v21 = vpop.xlane.xlu0 %764  ;;  %v762_v15 = vpop.xlane.xlu1 %761 }
 0x57c   :  { %v11104_v45 = vpop.eup %11103  ;;  %11111 = vrcp.f32 %v765_v21  ;;  %1813 = vrot.lane.b32.xlu1 %v12004_v39, %s11767_s15 }
 0x57d   :  { %v11106_v26 = vpop.eup %11105  ;;  %11113 = vrcp.f32 %v762_v15  ;;  %v781_v1 = vmul.f32 %v11104_v45, %v12259_v57 }
 0x57e   :  { %v780_v3 = vmul.f32 %v11106_v26, %v12264_v60 }
 0x57f   :  { %v771_v10 = vpop.xlane.xlu0 %770  ;;  %v768_v25 = vpop.xlane.xlu1 %767 }
 0x580   :  { %11115 = vrcp.f32 %v771_v10  ;;  %10099 = vmatprep.mubr.msk.f32.mxu0 %vm129_vm1, %v780_v3 }
 0x581   :  { %11117 = vrcp.f32 %v768_v25  ;;  %10100 = vmatmul.mubr.msk.f32.vlgmr.msra.gmra.mxu0 %vm129_vm1, %v781_v1  ;;  %v11108_v23 = vpop.eup %11107 }
 0x582   :  { %10140 = vmatpush3.msra.mxu0 %v12165_v62  ;;  %v783_v60 = vmul.f32 %v11108_v23, %v12268_v54 }
 0x583   :  { %10141 = vmatprep.subr.mxu0 %v12244_v50 }
 0x584   :  { %10142 = vmatpush3.msra.mxu0 %v12244_v50 }
 0x585   :  { %v11110_v46 = vpop.eup %11109  ;;  %10143 = vmatprep.subr.mxu0 %v12138_v49 }
 0x586   :  { %10144 = vmatpush3.msra.mxu0 %v12138_v49  ;;  %v782_v57 = vmul.f32 %v11110_v46, %v12272_v55 }
 0x587   :  { %10145 = vmatprep.subr.mxu0 %v12146_v5 }
 0x588   :  { %10146 = vmatpush3.msra.mxu0 %v12146_v5  ;;  %10102 = vmatprep.mubr.msk.f32.mxu0 %vm129_vm1, %v782_v57 }
 0x589   :  { %v11112_v62 = vpop.eup %11111  ;;  %10147 = vmatprep.subr.mxu0 %v12246_v51  ;;  %10103 = vmatmul.mubr.msk.f32.gmra.mxu0 %vm129_vm1, %v783_v60 }
 0x58a   :  { %v11114_v50 = vpop.eup %11113  ;;  %10148 = vmatpush3.msra.mxu0 %v12246_v51  ;;  %v785_v49 = vmul.f32 %v11112_v62, %v12278_v2 }
 0x58b   :  { %10149 = vmatprep.subr.mxu0 %v12153_v53  ;;  %v784_v55 = vmul.f32 %v11114_v50, %v12276_v48 }
 0x58c   :  { %10150 = vmatpush3.msra.mxu0 %v12153_v53 }
 0x58d   :  { %v11116_v54 = vpop.eup %11115  ;;  %10105 = vmatprep.mubr.msk.f32.mxu0 %vm129_vm1, %v784_v55  ;;  %10151 = vmatprep.subr.mxu0 %v12248_v52  ;;  %v1155_v5 = vpop.xlane.xlu0 %1154 }
 0x58e   :  { %v11118_v47 = vpop.eup %11117  ;;  %10106 = vmatmul.mubr.msk.f32.gmra.mxu0 %vm129_vm1, %v785_v49  ;;  %v787_v63 = vmul.f32 %v11116_v54, %v12288_v22  ;;  %11119 = vrcp.f32 %v1155_v5 }
 0x58f   :  { %10152 = vmatpush3.msra.mxu0 %v12248_v52  ;;  %v1152_v51 = vpop.xlane.xlu1 %1151  ;;  %v786_v2 = vmul.f32 %v11118_v47, %v12285_v16 }
 0x590   :  { %10153 = vmatprep.subr.mxu0 %v12157_v6  ;;  %11121 = vrcp.f32 %v1152_v51 }
 0x591   :  { %10154 = vmatpush3.msra.mxu0 %v12157_v6  ;;  %10108 = vmatprep.mubr.msk.f32.mxu0 %vm129_vm1, %v786_v2  ;;  %v1382_v6 = vpop.permute.xlu0 %1381 }
 0x592   :  { %10167 = vmatprep.subr.msk.mxu0 %vm554_vm2, %v12250_v56  ;;  %10109 = vmatmul.mubr.msk.f32.gmra.mxu0 %vm129_vm1, %v787_v63 }
 0x59b   :  { %v11120_v53 = vpop.eup %11119 }
 0x59c   :  { %v1183_v52 = vmul.f32 %v11120_v53, %v12294_v43 }
 0x59d   :  { %v11122_v48 = vpop.eup %11121 }
 0x59e   :  { %v1182_v22 = vmul.f32 %v11122_v48, %v12298_v59 }
 0x5a0   :  { %10155 = vmatprep.mubr.msk.f32.mxu0 %vm129_vm1, %v1182_v22 }
 0x5a1   :  { %10156 = vmatmul.mubr.msk.f32.vlgmr.msra.gmra.mxu0 %vm129_vm1, %v1183_v52 }
 0x5a2   :  { %10168 = vmatpush3.xpose.msk.msra.mxu0 %vm554_vm2, %v12250_v56  ;;  %v1380_v56 = vpop.permute.xlu1 %1379 }
 0x5a3   :  { %10169 = vmatprep.subr.msk.mxu0 %vm554_vm2, %v12161_v7 }
 0x5a6   :  { %10170 = vmatpush3.xpose.msk.msra.mxu0 %vm554_vm2, %v12161_v7 }
 0x5a7   :  { %10171 = vmatprep.subr.msk.mxu0 %vm554_vm2, %v12358_v4 }
 0x5aa   :  { %10172 = vmatpush3.xpose.msk.msra.mxu0 %vm554_vm2, %v12358_v4 }
 0x5ab   :  { %10173 = vmatprep.subr.msk.mxu0 %vm554_vm2, %v12360_v58 }
 0x5ae   :  { %10174 = vmatpush3.xpose.msk.msra.mxu0 %vm554_vm2, %v12360_v58 }
 0x5af   :  { %10175 = vmatprep.subr.msk.mxu0 %vm554_vm2, %v1382_v6 }
 0x5b2   :  { %10176 = vmatpush3.xpose.msk.msra.mxu0 %vm554_vm2, %v1382_v6 }
 0x5b3   :  { %10177 = vmatprep.subr.msk.mxu0 %vm554_vm2, %v1380_v56 }
 0x5b6   :  { %10178 = vmatpush3.xpose.msk.msra.mxu0 %vm554_vm2, %v1380_v56 }
 0x5c2   :  { %v1158_v7 = vpop.xlane.xlu0 %1157 }
 0x5c3   :  { %11123 = vrcp.f32 %v1158_v7 }
 0x5c4   :  { %v1161_v16 = vpop.xlane.xlu1 %1160 }
 0x5c5   :  { %11125 = vrcp.f32 %v1161_v16 }
 0x5c6   :  { %v1164_v43 = vpop.xlane.xlu0 %1163 }
 0x5c7   :  { %11127 = vrcp.f32 %v1164_v43 }
 0x5c8   :  { %v1167_v59 = vpop.xlane.xlu1 %1166 }
 0x5c9   :  { %11129 = vrcp.f32 %v1167_v59 }
 0x5ca   :  { %v1170_v4 = vpop.xlane.xlu0 %1169 }
 0x5cb   :  { %11131 = vrcp.f32 %v1170_v4 }
 0x5cc   :  { %v1173_v58 = vpop.xlane.xlu1 %1172 }
 0x5cd   :  { %11133 = vrcp.f32 %v1173_v58 }
 0x5ce   :  { %v1378_v11 = vpop.permute.xlu0 %1377 }
 0x5cf   :  { %10179 = vmatprep.subr.msk.mxu0 %vm554_vm2, %v1378_v11 }
 0x5d0   :  { %v11124_v12 = vpop.eup %11123  ;;  %10180 = vmatpush3.xpose.msk.msra.mxu0 %vm554_vm2, %v1378_v11  ;;  %v1376_v17 = vpop.permute.xlu1 %1375 }
 0x5d1   :  { %10181 = vmatprep.subr.msk.mxu0 %vm554_vm2, %v1376_v17  ;;  %v1184_v13 = vmul.f32 %v11124_v12, %v12312_v14 }
 0x5d2   :  { %v11126_v21 = vpop.eup %11125  ;;  %v1360_v15 = vpop.permute.xlu0 %1359 }
 0x5d3   :  { %10158 = vmatprep.mubr.msk.f32.mxu0 %vm129_vm1, %v1184_v13  ;;  %v1185_v45 = vmul.f32 %v11126_v21, %v12314_v18 }
 0x5d4   :  { %v11128_v26 = vpop.eup %11127  ;;  %10182 = vmatpush3.xpose.msk.msra.mxu0 %vm554_vm2, %v1376_v17  ;;  %v1362_v3 = vpop.permute.xlu1 %1361 }
 0x5d5   :  { %10159 = vmatmul.mubr.msk.f32.gmra.mxu0 %vm129_vm1, %v1185_v45  ;;  %v1186_v1 = vmul.f32 %v11128_v26, %v12318_v61 }
 0x5d6   :  { %v11130_v10 = vpop.eup %11129  ;;  %v1364_v25 = vpop.permute.xlu0 %1363 }
 0x5d7   :  { %10161 = vmatprep.mubr.msk.f32.mxu0 %vm129_vm1, %v1186_v1  ;;  %v1187_v14 = vmul.f32 %v11130_v10, %v12322_v19 }
 0x5d8   :  { %v11132_v23 = vpop.eup %11131  ;;  %v1366_v46 = vpop.permute.xlu1 %1365 }
 0x5d9   :  { %10162 = vmatmul.mubr.msk.f32.gmra.mxu0 %vm129_vm1, %v1187_v14  ;;  %v1188_v18 = vmul.f32 %v11132_v23, %v12326_v30 }
 0x5da   :  { %v11134_v57 = vpop.eup %11133  ;;  %v1368_v60 = vpop.permute.xlu0 %1367 }
 0x5db   :  { %10164 = vmatprep.mubr.msk.f32.mxu0 %vm129_vm1, %v1188_v18  ;;  %v1189_v62 = vmul.f32 %v11134_v57, %v12330_v44 }
 0x5dc   :  { %v1370_v50 = vpop.permute.xlu1 %1369 }
 0x5dd   :  { %10165 = vmatmul.mubr.msk.f32.gmra.mxu0 %vm129_vm1, %v1189_v62 }
 0x5de   :  { %v1372_v61 = vpop.permute.xlu0 %1371  ;;  %10183 = vmatprep.mubr.msk.f32.mxu0 %vm554_vm2, %v1360_v15 }
 0x5e0   :  { %v1374_v49 = vpop.permute.xlu1 %1373 }
 0x5e1   :  { %10184 = vmatmul.mubr.msk.f32.vlgmr.msra.gmra.mxu0 %vm554_vm2, %v1362_v3 }
 0x5e2   :  { %10186 = vmatprep.mubr.msk.f32.mxu0 %vm554_vm2, %v1364_v25  ;;  %v1637_v19 = vpop.permute.xlu0 %1636 }
 0x5e4   :  { %v1639_v55 = vpop.permute.xlu1 %1638 }
 0x5e5   :  { %10187 = vmatmul.mubr.msk.f32.gmra.mxu0 %vm554_vm2, %v1366_v46  ;;  %10195 = vmatprep.subr.mxu1 %v1639_v55 }
 0x5e6   :  { %10189 = vmatprep.mubr.msk.f32.mxu0 %vm554_vm2, %v1368_v60  ;;  %10196 = vmatpush3.msra.mxu1 %v1639_v55  ;;  %v1631_v44 = vpop.permute.xlu0 %1630 }
 0x5e7   :  { %10197 = vmatprep.subr.mxu1 %v1637_v19 }
 0x5e8   :  { %10198 = vmatpush3.msra.mxu1 %v1637_v19  ;;  %v1635_v30 = vpop.permute.xlu1 %1634 }
 0x5e9   :  { %10190 = vmatmul.mubr.msk.f32.gmra.mxu0 %vm554_vm2, %v1370_v50  ;;  %10199 = vmatprep.subr.mxu1 %v1635_v30 }
 0x5ea   :  { %10192 = vmatprep.mubr.msk.f32.mxu0 %vm554_vm2, %v1372_v61  ;;  %10200 = vmatpush3.msra.mxu1 %v1635_v30  ;;  %v1627_v5 = vpop.permute.xlu0 %1626 }
 0x5ec   :  { %v1633_v54 = vpop.permute.xlu1 %1632 }
 0x5ed   :  { %10193 = vmatmul.mubr.msk.f32.gmra.mxu0 %vm554_vm2, %v1374_v49  ;;  %10201 = vmatprep.subr.mxu1 %v1633_v54 }
 0x5ee   :  { %10202 = vmatpush3.msra.mxu1 %v1633_v54  ;;  %v12459_v51 = vpop.permute.xlu0 %1815 }
 0x5ef   :  { %10203 = vmatprep.subr.mxu1 %v1631_v44 }
 0x5f0   :  { %10204 = vmatpush3.msra.mxu1 %v1631_v44  ;;  %v1629_v47 = vpop.permute.xlu1 %1628 }
 0x5f1   :  { %10205 = vmatprep.subr.mxu1 %v1629_v47 }
 0x5f2   :  { %10206 = vmatpush3.msra.mxu1 %v1629_v47 }
 0x5f3   :  { %10207 = vmatprep.subr.mxu1 %v1627_v5 }
 0x5f4   :  { %10208 = vmatpush3.msra.mxu1 %v1627_v5  ;;  %v1625_v63 = vpop.permute.xlu1 %1624 }
 0x5f5   :  { %10209 = vmatprep.subr.mxu1 %v1625_v63 }
 0x5f6   :  { %10210 = vmatpush3.msra.mxu1 %v1625_v63 }
 0x5f7   :  { %10223 = vmatprep.subr.msk.mxu1 %vm554_vm2, %v12459_v51 }
 0x5f8   :  { %v12491_v5 = vpop.permute.xlu1 %1813 }
 0x641   :  { %v10101_v2 = vpop.f32.mrf.mxu0 }
 0x642   :  { %918 = vst.msk [vmem:[#allocation2 + $0x8] sm:$0xff] %vm554_vm2, %v10101_v2 }
 0x643   :  { %v878_v53 = vpop.f32.mrf.mxu0 }
 0x644   :  { %917 = vst.msk [vmem:[#allocation2] sm:$0xff] %vm554_vm2, %v878_v53 }
 0x649   :  { %v10104_v48 = vpop.f32.mrf.mxu0 }
 0x64a   :  { %920 = vst.msk [vmem:[#allocation2 + $0x18] sm:$0xff] %vm554_vm2, %v10104_v48 }
 0x64b   :  { %v888_v22 = vpop.f32.mrf.mxu0 }
 0x64c   :  { %919 = vst.msk [vmem:[#allocation2 + $0x10] sm:$0xff] %vm554_vm2, %v888_v22 }
 0x64e   :  { %v10107_v52 = vpop.f32.mrf.mxu0 }
 0x64f   :  { %922 = vst.msk [vmem:[#allocation2 + $0x28] sm:$0xff] %vm554_vm2, %v10107_v52 }
 0x650   :  { %v898_v6 = vpop.f32.mrf.mxu0 }
 0x651   :  { %921 = vst.msk [vmem:[#allocation2 + $0x20] sm:$0xff] %vm554_vm2, %v898_v6 }
 0x652   :  { %v10110_v56 = vpop.f32.mrf.mxu0 }
 0x653   :  { %924 = vst.msk [vmem:[#allocation2 + $0x38] sm:$0xff] %vm554_vm2, %v10110_v56 }
 0x654   :  { %v908_v7 = vpop.f32.mrf.mxu0 }
 0x655   :  { %923 = vst.msk [vmem:[#allocation2 + $0x30] sm:$0xff] %vm554_vm2, %v908_v7 }
 0x661   :  { %v10157_v16 = vpop.f32.mrf.mxu0 }
 0x662   :  { %1352 = vst.msk [vmem:[#allocation2 + $0x48] sm:$0xff] %vm554_vm2, %v10157_v16 }
 0x663   :  { %v1312_v43 = vpop.f32.mrf.mxu0 }
 0x664   :  { %1351 = vst.msk [vmem:[#allocation2 + $0x40] sm:$0xff] %vm554_vm2, %v1312_v43 }
 0x695   :  { %v10160_v59 = vpop.f32.mrf.mxu0 }
 0x696   :  { %1354 = vst.msk [vmem:[#allocation2 + $0x58] sm:$0xff] %vm554_vm2, %v10160_v59 }
 0x697   :  { %v1322_v4 = vpop.f32.mrf.mxu0 }
 0x698   :  { %1353 = vst.msk [vmem:[#allocation2 + $0x50] sm:$0xff] %vm554_vm2, %v1322_v4 }
 0x699   :  { %v10163_v58 = vpop.f32.mrf.mxu0 }
 0x69a   :  { %1356 = vst.msk [vmem:[#allocation2 + $0x68] sm:$0xff] %vm554_vm2, %v10163_v58 }
 0x69b   :  { %v1332_v11 = vpop.f32.mrf.mxu0 }
 0x69c   :  { %1355 = vst.msk [vmem:[#allocation2 + $0x60] sm:$0xff] %vm554_vm2, %v1332_v11 }
 0x69d   :  { %v10166_v12 = vpop.f32.mrf.mxu0 }
 0x69e   :  { %1358 = vst.msk [vmem:[#allocation2 + $0x78] sm:$0xff] %vm554_vm2, %v10166_v12 }
 0x69f   :  { %v1342_v17 = vpop.f32.mrf.mxu0 }
 0x6a0   :  { %1357 = vst.msk [vmem:[#allocation2 + $0x70] sm:$0xff] %vm554_vm2, %v1342_v17 }
 0x6a1   :  { %v10185_v13 = vpop.f32.mrf.mxu0 }
 0x6a2   :  { %v1529_v21 = vmul.f32 0.35355338, %v10185_v13 }
 0x6a3   :  { %v1489_v15 = vpop.f32.mrf.mxu0 }
 0x6a4   :  { %v1528_v45 = vmul.f32 0.35355338, %v1489_v15  ;;  %v1539_v26 = vsel %vm129_vm1, %v1529_v21, -inf }
 0x6a5   :  { %1540 = vmax.xlane.f32.xlu1 %v1539_v26  ;;  %v10188_v3 = vpop.f32.mrf.mxu0 }
 0x6a6   :  { %v1531_v1 = vmul.f32 0.35355338, %v10188_v3  ;;  %v1536_v10 = vsel %vm129_vm1, %v1528_v45, -inf }
 0x6a7   :  { %1537 = vmax.xlane.f32.xlu0 %v1536_v10  ;;  %v1499_v25 = vpop.f32.mrf.mxu0 }
 0x6a8   :  { %v1530_v23 = vmul.f32 0.35355338, %v1499_v25  ;;  %v1545_v46 = vsel %vm129_vm1, %v1531_v1, -inf }
 0x6a9   :  { %v10191_v14 = vpop.f32.mrf.mxu0 }
 0x6aa   :  { %v1533_v62 = vmul.f32 0.35355338, %v10191_v14  ;;  %v1542_v50 = vsel %vm129_vm1, %v1530_v23, -inf }
 0x6ab   :  { %1546 = vmax.xlane.f32.xlu0 %v1545_v46  ;;  %v1509_v18 = vpop.f32.mrf.mxu0 }
 0x6ac   :  { %v1532_v57 = vmul.f32 0.35355338, %v1509_v18  ;;  %v1551_v30 = vsel %vm129_vm1, %v1533_v62, -inf }
 0x6ad   :  { %v10194_v60 = vpop.f32.mrf.mxu0 }
 0x6ae   :  { %v1548_v61 = vsel %vm129_vm1, %v1532_v57, -inf  ;;  %v1535_v55 = vmul.f32 0.35355338, %v10194_v60 }
 0x6af   :  { %1543 = vmax.xlane.f32.xlu0 %v1542_v50  ;;  %1549 = vmax.xlane.f32.xlu1 %v1548_v61  ;;  %v1519_v49 = vpop.f32.mrf.mxu0 }
 0x6b0   :  { %v1534_v19 = vmul.f32 0.35355338, %v1519_v49  ;;  %v1557_v54 = vsel %vm129_vm1, %v1535_v55, -inf }
 0x6b2   :  { %v1554_v44 = vsel %vm129_vm1, %v1534_v19, -inf }
 0x6b3   :  { %1552 = vmax.xlane.f32.xlu0 %v1551_v30  ;;  %1555 = vmax.xlane.f32.xlu1 %v1554_v44 }
 0x6b7   :  { %1558 = vmax.xlane.f32.xlu0 %v1557_v54 }
 0x6c4   :  { %1809 = vrot.lane.b32.xlu1 %v11984_v24, %s11767_s15 }
 0x6cd   :  { %1811 = vrot.lane.b32.xlu0 %v11978_v20, %s11767_s15 }
 0x72e   :  { %v1541_v47 = vpop.xlane.xlu1 %1540 }
 0x72f   :  { %v1561_v63 = vsub.f32 %v1529_v21, %v1541_v47 }
 0x730   :  { %v1538_v2 = vpop.xlane.xlu0 %1537 }
 0x731   :  { %v1570_v53 = vmul.f32 1.442695, %v1561_v63  ;;  %v1560_v48 = vsub.f32 %v1528_v45, %v1538_v2 }
 0x733   :  { %11135 = vpow2.f32 %v1570_v53  ;;  %v1568_v22 = vmul.f32 1.442695, %v1560_v48 }
 0x734   :  { %v1547_v16 = vpop.xlane.xlu0 %1546 }
 0x735   :  { %11137 = vpow2.f32 %v1568_v22  ;;  %v1563_v11 = vsub.f32 %v1531_v1, %v1547_v16 }
 0x737   :  { %v1574_v21 = vmul.f32 1.442695, %v1563_v11 }
 0x738   :  { %v1544_v43 = vpop.xlane.xlu0 %1543  ;;  %v1550_v59 = vpop.xlane.xlu1 %1549 }
 0x739   :  { %v1562_v4 = vsub.f32 %v1530_v23, %v1544_v43  ;;  %v1564_v17 = vsub.f32 %v1532_v57, %v1550_v59 }
 0x73b   :  { %v1572_v12 = vmul.f32 1.442695, %v1562_v4  ;;  %v1576_v26 = vmul.f32 1.442695, %v1564_v17 }
 0x73c   :  { %v1553_v58 = vpop.xlane.xlu0 %1552  ;;  %v1556_v13 = vpop.xlane.xlu1 %1555 }
 0x73d   :  { %v1565_v15 = vsub.f32 %v1533_v62, %v1553_v58  ;;  %11139 = vpow2.f32 %v1572_v12  ;;  %v1566_v3 = vsub.f32 %v1534_v19, %v1556_v13 }
 0x73e   :  { %11141 = vpow2.f32 %v1574_v21 }
 0x73f   :  { %v1578_v10 = vmul.f32 1.442695, %v1565_v15  ;;  %11143 = vpow2.f32 %v1576_v26  ;;  %v1580_v14 = vmul.f32 1.442695, %v1566_v3 }
 0x740   :  { %v12493_v52 = vpop.eup %11135  ;;  %v1559_v45 = vpop.xlane.xlu0 %1558 }
 0x741   :  { %v1587_v6 = vsel %vm129_vm1, %v12493_v52, 0.0  ;;  %v1567_v25 = vsub.f32 %v1535_v55, %v1559_v45  ;;  %11145 = vpow2.f32 %v1578_v10  ;;  %v1810_v54 = vpop.permute.xlu1 %1809 }
 0x742   :  { %v12497_v56 = vpop.eup %11137  ;;  %1588 = vadd.xlane.f32.xlu0 %v1587_v6  ;;  %11147 = vpow2.f32 %v1580_v14 }
 0x743   :  { %v1584_v7 = vsel %vm129_vm1, %v12497_v56, 0.0  ;;  %v1582_v46 = vmul.f32 1.442695, %v1567_v25 }
 0x744   :  { %1585 = vadd.xlane.f32.xlu1 %v1584_v7  ;;  %v1812_v44 = vpop.permute.xlu0 %1811 }
 0x745   :  { %11149 = vpow2.f32 %v1582_v46 }
 0x74a   :  { %v12505_v23 = vpop.eup %11139 }
 0x74b   :  { %v12507_v1 = vpop.eup %11141  ;;  %v1590_v18 = vsel %vm129_vm1, %v12505_v23, 0.0 }
 0x74c   :  { %v12511_v57 = vpop.eup %11143  ;;  %v1593_v60 = vsel %vm129_vm1, %v12507_v1, 0.0 }
 0x74d   :  { %v1596_v50 = vsel %vm129_vm1, %v12511_v57, 0.0 }
 0x74e   :  { %v12515_v62 = vpop.eup %11145 }
 0x74f   :  { %v12519_v61 = vpop.eup %11147  ;;  %v1599_v49 = vsel %vm129_vm1, %v12515_v62, 0.0 }
 0x750   :  { %v1602_v55 = vsel %vm129_vm1, %v12519_v61, 0.0 }
 0x752   :  { %v12523_v19 = vpop.eup %11149 }
 0x753   :  { %v1605_v30 = vsel %vm129_vm1, %v12523_v19, 0.0 }
 0x755   :  { %1805 = vrot.lane.b32.xlu1 %v11991_v28, %s11767_s15 }
 0x758   :  { %1807 = vrot.lane.b32.xlu0 %v12021_v34, %s11767_s15 }
 0x777   :  { %1591 = vadd.xlane.f32.xlu0 %v1590_v18 }
 0x779   :  { %1594 = vadd.xlane.f32.xlu1 %v1593_v60 }
 0x77b   :  { %1597 = vadd.xlane.f32.xlu0 %v1596_v50 }
 0x77d   :  { %1600 = vadd.xlane.f32.xlu1 %v1599_v49 }
 0x77f   :  { %1603 = vadd.xlane.f32.xlu0 %v1602_v55 }
 0x781   :  { %1606 = vadd.xlane.f32.xlu1 %v1605_v30 }
 0x792   :  { %1801 = vrot.lane.b32.xlu1 %v11973_v9, %s11767_s15 }
 0x795   :  { %1803 = vrot.lane.b32.xlu0 %v12038_v37, %s11767_s15 }
 0x796   :  { %1787 = vrot.lane.b32.xlu1 %v12038_v37, %s11768_s16 }
 0x799   :  { %1785 = vrot.lane.b32.xlu0 %v11973_v9, %s11768_s16 }
 0x79a   :  { %1791 = vrot.lane.b32.xlu1 %v12021_v34, %s11768_s16 }
 0x79d   :  { %1789 = vrot.lane.b32.xlu0 %v11991_v28, %s11768_s16 }
 0x79e   :  { %1795 = vrot.lane.b32.xlu1 %v11978_v20, %s11768_s16 }
 0x7a1   :  { %1793 = vrot.lane.b32.xlu0 %v11984_v24, %s11768_s16 }
 0x7a2   :  { %1799 = vrot.lane.b32.xlu1 %v11994_v29, %s11768_s16 }
 0x7a5   :  { %1797 = vrot.lane.b32.xlu0 %v12004_v39, %s11768_s16 }
 0x7a6   :  { %2064 = vrot.lane.b32.xlu1 %v11997_v31, %s11768_s16 }
 0x7a9   :  { %2062 = vrot.lane.b32.xlu0 %v12007_v32, %s11768_s16 }
 0x7aa   :  { %2060 = vrot.lane.b32.xlu1 %v12012_v33, %s11768_s16 }
 0x7ad   :  { %2056 = vrot.lane.b32.xlu0 %v12029_v36, %s11768_s16 }
 0x7ae   :  { %2058 = vrot.lane.b32.xlu1 %v12024_v35, %s11768_s16 }
 0x7b1   :  { %2052 = vrot.lane.b32.xlu0 %v12046_v41, %s11768_s16 }
 0x7b2   :  { %2054 = vrot.lane.b32.xlu1 %v12041_v38, %s11768_s16 }
 0x7b5   :  { %2241 = vrot.lane.b32.xlu0 %v11994_v29, %s11769_s17 }
 0x7b6   :  { %2050 = vrot.lane.b32.xlu1 %v12055_v42, %s11768_s16 }
 0x7ba   :  { %2239 = vrot.lane.b32.xlu1 %v12004_v39, %s11769_s17 }
 0x7cb   :  { %v1589_v47 = vpop.xlane.xlu0 %1588 }
 0x7cc   :  { %11151 = vrcp.f32 %v1589_v47 }
 0x7cd   :  { %v1586_v63 = vpop.xlane.xlu1 %1585 }
 0x7ce   :  { %11153 = vrcp.f32 %v1586_v63 }
 0x7d1   :  { %v1806_v6 = vpop.permute.xlu1 %1805 }
 0x7d9   :  { %v11152_v2 = vpop.eup %11151 }
 0x7da   :  { %v1617_v22 = vmul.f32 %v11152_v2, %v12493_v52  ;;  %v1808_v52 = vpop.permute.xlu0 %1807 }
 0x7db   :  { %v11154_v53 = vpop.eup %11153 }
 0x7dc   :  { %v1616_v48 = vmul.f32 %v11154_v53, %v12497_v56 }
 0x7de   :  { %10211 = vmatprep.mubr.msk.f32.mxu1 %vm129_vm1, %v1616_v48 }
 0x7df   :  { %10212 = vmatmul.mubr.msk.f32.vlgmr.msra.gmra.mxu1 %vm129_vm1, %v1617_v22 }
 0x7e0   :  { %10224 = vmatpush3.xpose.msk.msra.mxu1 %vm554_vm2, %v12459_v51 }
 0x7e1   :  { %10225 = vmatprep.subr.msk.mxu1 %vm554_vm2, %v12491_v5 }
 0x7e4   :  { %10226 = vmatpush3.xpose.msk.msra.mxu1 %vm554_vm2, %v12491_v5 }
 0x7e5   :  { %10227 = vmatprep.subr.msk.mxu1 %vm554_vm2, %v1812_v44 }
 0x7e8   :  { %10228 = vmatpush3.xpose.msk.msra.mxu1 %vm554_vm2, %v1812_v44 }
 0x7e9   :  { %10229 = vmatprep.subr.msk.mxu1 %vm554_vm2, %v1810_v54 }
 0x7ec   :  { %10230 = vmatpush3.xpose.msk.msra.mxu1 %vm554_vm2, %v1810_v54 }
 0x7ed   :  { %10231 = vmatprep.subr.msk.mxu1 %vm554_vm2, %v1808_v52 }
 0x7f0   :  { %10232 = vmatpush3.xpose.msk.msra.mxu1 %vm554_vm2, %v1808_v52 }
 0x7f1   :  { %10233 = vmatprep.subr.msk.mxu1 %vm554_vm2, %v1806_v6 }
 0x7f4   :  { %10234 = vmatpush3.xpose.msk.msra.mxu1 %vm554_vm2, %v1806_v6 }
 0x800   :  { %v1592_v51 = vpop.xlane.xlu0 %1591 }
 0x801   :  { %11155 = vrcp.f32 %v1592_v51 }
 0x802   :  { %v1595_v5 = vpop.xlane.xlu1 %1594 }
 0x803   :  { %11157 = vrcp.f32 %v1595_v5 }
 0x804   :  { %v1598_v56 = vpop.xlane.xlu0 %1597 }
 0x805   :  { %11159 = vrcp.f32 %v1598_v56 }
 0x806   :  { %v1601_v7 = vpop.xlane.xlu1 %1600 }
 0x807   :  { %11161 = vrcp.f32 %v1601_v7 }
 0x808   :  { %v1604_v16 = vpop.xlane.xlu0 %1603 }
 0x809   :  { %11163 = vrcp.f32 %v1604_v16 }
 0x80a   :  { %v1607_v43 = vpop.xlane.xlu1 %1606 }
 0x80b   :  { %11165 = vrcp.f32 %v1607_v43 }
 0x80c   :  { %v1804_v59 = vpop.permute.xlu0 %1803 }
 0x80d   :  { %10235 = vmatprep.subr.msk.mxu1 %vm554_vm2, %v1804_v59 }
 0x80e   :  { %v11156_v4 = vpop.eup %11155  ;;  %10236 = vmatpush3.xpose.msk.msra.mxu1 %vm554_vm2, %v1804_v59  ;;  %v1802_v58 = vpop.permute.xlu1 %1801 }
 0x80f   :  { %10237 = vmatprep.subr.msk.mxu1 %vm554_vm2, %v1802_v58  ;;  %v1618_v11 = vmul.f32 %v11156_v4, %v12505_v23 }
 0x810   :  { %v11158_v12 = vpop.eup %11157  ;;  %v1786_v17 = vpop.permute.xlu0 %1785 }
 0x811   :  { %10214 = vmatprep.mubr.msk.f32.mxu1 %vm129_vm1, %v1618_v11  ;;  %v1619_v13 = vmul.f32 %v11158_v12, %v12507_v1 }
 0x812   :  { %v11160_v21 = vpop.eup %11159  ;;  %10238 = vmatpush3.xpose.msk.msra.mxu1 %vm554_vm2, %v1802_v58  ;;  %v1788_v15 = vpop.permute.xlu1 %1787 }
 0x813   :  { %10215 = vmatmul.mubr.msk.f32.gmra.mxu1 %vm129_vm1, %v1619_v13  ;;  %v1620_v45 = vmul.f32 %v11160_v21, %v12511_v57 }
 0x814   :  { %v11162_v26 = vpop.eup %11161  ;;  %v1790_v3 = vpop.permute.xlu0 %1789 }
 0x815   :  { %10217 = vmatprep.mubr.msk.f32.mxu1 %vm129_vm1, %v1620_v45  ;;  %v1621_v10 = vmul.f32 %v11162_v26, %v12515_v62 }
 0x816   :  { %v11164_v25 = vpop.eup %11163  ;;  %v1792_v14 = vpop.permute.xlu1 %1791 }
 0x817   :  { %10218 = vmatmul.mubr.msk.f32.gmra.mxu1 %vm129_vm1, %v1621_v10  ;;  %v1622_v46 = vmul.f32 %v11164_v25, %v12519_v61 }
 0x818   :  { %v11166_v23 = vpop.eup %11165  ;;  %v1794_v1 = vpop.permute.xlu0 %1793 }
 0x819   :  { %10220 = vmatprep.mubr.msk.f32.mxu1 %vm129_vm1, %v1622_v46  ;;  %v1623_v18 = vmul.f32 %v11166_v23, %v12523_v19 }
 0x81a   :  { %v1796_v60 = vpop.permute.xlu1 %1795 }
 0x81b   :  { %10221 = vmatmul.mubr.msk.f32.gmra.mxu1 %vm129_vm1, %v1623_v18 }
 0x81c   :  { %v1798_v57 = vpop.permute.xlu0 %1797  ;;  %10239 = vmatprep.mubr.msk.f32.mxu1 %vm554_vm2, %v1786_v17 }
 0x81e   :  { %v1800_v50 = vpop.permute.xlu1 %1799 }
 0x81f   :  { %10240 = vmatmul.mubr.msk.f32.vlgmr.msra.gmra.mxu1 %vm554_vm2, %v1788_v15 }
 0x820   :  { %10242 = vmatprep.mubr.msk.f32.mxu1 %vm554_vm2, %v1790_v3  ;;  %v2063_v62 = vpop.permute.xlu0 %2062 }
 0x822   :  { %v2065_v49 = vpop.permute.xlu1 %2064 }
 0x823   :  { %10243 = vmatmul.mubr.msk.f32.gmra.mxu1 %vm554_vm2, %v1792_v14  ;;  %10251 = vmatprep.subr.mxu0 %v2065_v49 }
 0x824   :  { %10245 = vmatprep.mubr.msk.f32.mxu1 %vm554_vm2, %v1794_v1  ;;  %10252 = vmatpush3.msra.mxu0 %v2065_v49  ;;  %v2057_v19 = vpop.permute.xlu0 %2056 }
 0x825   :  { %10253 = vmatprep.subr.mxu0 %v2063_v62 }
 0x826   :  { %10254 = vmatpush3.msra.mxu0 %v2063_v62  ;;  %v2061_v61 = vpop.permute.xlu1 %2060 }
 0x827   :  { %10246 = vmatmul.mubr.msk.f32.gmra.mxu1 %vm554_vm2, %v1796_v60  ;;  %10255 = vmatprep.subr.mxu0 %v2061_v61 }
 0x828   :  { %10248 = vmatprep.mubr.msk.f32.mxu1 %vm554_vm2, %v1798_v57  ;;  %10256 = vmatpush3.msra.mxu0 %v2061_v61  ;;  %v2053_v30 = vpop.permute.xlu0 %2052 }
 0x82a   :  { %v2059_v55 = vpop.permute.xlu1 %2058 }
 0x82b   :  { %10249 = vmatmul.mubr.msk.f32.gmra.mxu1 %vm554_vm2, %v1800_v50  ;;  %10257 = vmatprep.subr.mxu0 %v2059_v55 }
 0x82c   :  { %10258 = vmatpush3.msra.mxu0 %v2059_v55  ;;  %v12611_v47 = vpop.permute.xlu0 %2241 }
 0x82d   :  { %10259 = vmatprep.subr.mxu0 %v2057_v19 }
 0x82e   :  { %10260 = vmatpush3.msra.mxu0 %v2057_v19  ;;  %v2055_v44 = vpop.permute.xlu1 %2054 }
 0x82f   :  { %10261 = vmatprep.subr.mxu0 %v2055_v44 }
 0x830   :  { %10262 = vmatpush3.msra.mxu0 %v2055_v44 }
 0x831   :  { %10263 = vmatprep.subr.mxu0 %v2053_v30 }
 0x832   :  { %10264 = vmatpush3.msra.mxu0 %v2053_v30  ;;  %v2051_v54 = vpop.permute.xlu1 %2050 }
 0x833   :  { %10265 = vmatprep.subr.mxu0 %v2051_v54 }
 0x834   :  { %10266 = vmatpush3.msra.mxu0 %v2051_v54 }
 0x835   :  { %10279 = vmatprep.subr.msk.mxu0 %vm554_vm2, %v12611_v47 }
 0x836   :  { %v12635_v60 = vpop.permute.xlu1 %2239 }
 0x89f   :  { %v10213_v63 = vpop.f32.mrf.mxu1 }
 0x8a0   :  { %1778 = vst.msk [vmem:[#allocation2 + $0x88] sm:$0xff] %vm554_vm2, %v10213_v63 }
 0x8a1   :  { %v1738_v2 = vpop.f32.mrf.mxu1 }
 0x8a2   :  { %1777 = vst.msk [vmem:[#allocation2 + $0x80] sm:$0xff] %vm554_vm2, %v1738_v2 }
 0x8d3   :  { %v10216_v53 = vpop.f32.mrf.mxu1 }
 0x8d4   :  { %1780 = vst.msk [vmem:[#allocation2 + $0x98] sm:$0xff] %vm554_vm2, %v10216_v53 }
 0x8d5   :  { %v1748_v48 = vpop.f32.mrf.mxu1 }
 0x8d6   :  { %1779 = vst.msk [vmem:[#allocation2 + $0x90] sm:$0xff] %vm554_vm2, %v1748_v48 }
 0x8d7   :  { %v10219_v22 = vpop.f32.mrf.mxu1 }
 0x8d8   :  { %1782 = vst.msk [vmem:[#allocation2 + $0xa8] sm:$0xff] %vm554_vm2, %v10219_v22 }
 0x8d9   :  { %v1758_v52 = vpop.f32.mrf.mxu1 }
 0x8da   :  { %1781 = vst.msk [vmem:[#allocation2 + $0xa0] sm:$0xff] %vm554_vm2, %v1758_v52 }
 0x8db   :  { %v10222_v6 = vpop.f32.mrf.mxu1 }
 0x8dc   :  { %1784 = vst.msk [vmem:[#allocation2 + $0xb8] sm:$0xff] %vm554_vm2, %v10222_v6 }
 0x8dd   :  { %v1768_v51 = vpop.f32.mrf.mxu1 }
 0x8de   :  { %1783 = vst.msk [vmem:[#allocation2 + $0xb0] sm:$0xff] %vm554_vm2, %v1768_v51 }
 0x8df   :  { %v10241_v5 = vpop.f32.mrf.mxu1 }
 0x8e0   :  { %v1955_v56 = vmul.f32 0.35355338, %v10241_v5 }
 0x8e1   :  { %v1915_v7 = vpop.f32.mrf.mxu1 }
 0x8e2   :  { %v1954_v16 = vmul.f32 0.35355338, %v1915_v7  ;;  %v1965_v43 = vsel %vm129_vm1, %v1955_v56, -inf }
 0x8e3   :  { %1966 = vmax.xlane.f32.xlu1 %v1965_v43  ;;  %v10244_v59 = vpop.f32.mrf.mxu1 }
 0x8e4   :  { %v1957_v4 = vmul.f32 0.35355338, %v10244_v59  ;;  %v1962_v58 = vsel %vm129_vm1, %v1954_v16, -inf }
 0x8e5   :  { %1963 = vmax.xlane.f32.xlu0 %v1962_v58  ;;  %v1925_v11 = vpop.f32.mrf.mxu1 }
 0x8e6   :  { %v1956_v17 = vmul.f32 0.35355338, %v1925_v11  ;;  %v1971_v13 = vsel %vm129_vm1, %v1957_v4, -inf }
 0x8e7   :  { %v10247_v12 = vpop.f32.mrf.mxu1 }
 0x8e8   :  { %v1959_v26 = vmul.f32 0.35355338, %v10247_v12  ;;  %v1968_v3 = vsel %vm129_vm1, %v1956_v17, -inf }
 0x8e9   :  { %1972 = vmax.xlane.f32.xlu0 %v1971_v13  ;;  %v1935_v21 = vpop.f32.mrf.mxu1 }
 0x8ea   :  { %v1958_v15 = vmul.f32 0.35355338, %v1935_v21  ;;  %v1977_v23 = vsel %vm129_vm1, %v1959_v26, -inf }
 0x8eb   :  { %v10250_v45 = vpop.f32.mrf.mxu1 }
 0x8ec   :  { %v1974_v10 = vsel %vm129_vm1, %v1958_v15, -inf  ;;  %v1961_v46 = vmul.f32 0.35355338, %v10250_v45 }
 0x8ed   :  { %1969 = vmax.xlane.f32.xlu0 %v1968_v3  ;;  %1975 = vmax.xlane.f32.xlu1 %v1974_v10  ;;  %v1945_v25 = vpop.f32.mrf.mxu1 }
 0x8ee   :  { %v1960_v14 = vmul.f32 0.35355338, %v1945_v25  ;;  %v1983_v18 = vsel %vm129_vm1, %v1961_v46, -inf }
 0x8f0   :  { %v1980_v1 = vsel %vm129_vm1, %v1960_v14, -inf }
 0x8f1   :  { %1978 = vmax.xlane.f32.xlu0 %v1977_v23  ;;  %1981 = vmax.xlane.f32.xlu1 %v1980_v1 }
 0x8f5   :  { %1984 = vmax.xlane.f32.xlu0 %v1983_v18 }
 0x902   :  { %2235 = vrot.lane.b32.xlu1 %v11984_v24, %s11769_s17 }
 0x90b   :  { %2237 = vrot.lane.b32.xlu0 %v11978_v20, %s11769_s17 }
 0x96c   :  { %v1967_v57 = vpop.xlane.xlu1 %1966 }
 0x96d   :  { %v1987_v50 = vsub.f32 %v1955_v56, %v1967_v57 }
 0x96e   :  { %v1964_v62 = vpop.xlane.xlu0 %1963 }
 0x96f   :  { %v1996_v49 = vmul.f32 1.442695, %v1987_v50  ;;  %v1986_v61 = vsub.f32 %v1954_v16, %v1964_v62 }
 0x971   :  { %11167 = vpow2.f32 %v1996_v49  ;;  %v1994_v19 = vmul.f32 1.442695, %v1986_v61 }
 0x972   :  { %v1973_v63 = vpop.xlane.xlu0 %1972 }
 0x973   :  { %11169 = vpow2.f32 %v1994_v19  ;;  %v1989_v52 = vsub.f32 %v1957_v4, %v1973_v63 }
 0x975   :  { %v2000_v56 = vmul.f32 1.442695, %v1989_v52 }
 0x976   :  { %v1970_v2 = vpop.xlane.xlu0 %1969  ;;  %v1976_v53 = vpop.xlane.xlu1 %1975 }
 0x977   :  { %v1988_v48 = vsub.f32 %v1956_v17, %v1970_v2  ;;  %v1990_v51 = vsub.f32 %v1958_v15, %v1976_v53 }
 0x979   :  { %v1998_v6 = vmul.f32 1.442695, %v1988_v48  ;;  %v2002_v43 = vmul.f32 1.442695, %v1990_v51 }
 0x97a   :  { %v1979_v22 = vpop.xlane.xlu0 %1978  ;;  %v1982_v5 = vpop.xlane.xlu1 %1981 }
 0x97b   :  { %v1991_v7 = vsub.f32 %v1959_v26, %v1979_v22  ;;  %11171 = vpow2.f32 %v1998_v6  ;;  %v1992_v59 = vsub.f32 %v1960_v14, %v1982_v5 }
 0x97c   :  { %11173 = vpow2.f32 %v2000_v56 }
 0x97d   :  { %v2004_v58 = vmul.f32 1.442695, %v1991_v7  ;;  %11175 = vpow2.f32 %v2002_v43  ;;  %v2006_v12 = vmul.f32 1.442695, %v1992_v59 }
 0x97e   :  { %v12637_v55 = vpop.eup %11167  ;;  %v1985_v16 = vpop.xlane.xlu0 %1984 }
 0x97f   :  { %v2013_v30 = vsel %vm129_vm1, %v12637_v55, 0.0  ;;  %v1993_v11 = vsub.f32 %v1961_v46, %v1985_v16  ;;  %11177 = vpow2.f32 %v2004_v58  ;;  %v2236_v18 = vpop.permute.xlu1 %2235 }
 0x980   :  { %v12641_v44 = vpop.eup %11169  ;;  %2014 = vadd.xlane.f32.xlu0 %v2013_v30  ;;  %11179 = vpow2.f32 %v2006_v12 }
 0x981   :  { %v2010_v54 = vsel %vm129_vm1, %v12641_v44, 0.0  ;;  %v2008_v13 = vmul.f32 1.442695, %v1993_v11 }
 0x982   :  { %2011 = vadd.xlane.f32.xlu1 %v2010_v54  ;;  %v2238_v1 = vpop.permute.xlu0 %2237 }
 0x983   :  { %11181 = vpow2.f32 %v2008_v13 }
 0x988   :  { %v12649_v17 = vpop.eup %11171 }
 0x989   :  { %v12651_v4 = vpop.eup %11173  ;;  %v2016_v21 = vsel %vm129_vm1, %v12649_v17, 0.0 }
 0x98a   :  { %v12655_v15 = vpop.eup %11175  ;;  %v2019_v45 = vsel %vm129_vm1, %v12651_v4, 0.0 }
 0x98b   :  { %v2022_v3 = vsel %vm129_vm1, %v12655_v15, 0.0 }
 0x98c   :  { %v12659_v26 = vpop.eup %11177 }
 0x98d   :  { %v12663_v10 = vpop.eup %11179  ;;  %v2025_v25 = vsel %vm129_vm1, %v12659_v26, 0.0 }
 0x98e   :  { %v2028_v46 = vsel %vm129_vm1, %v12663_v10, 0.0 }
 0x990   :  { %v12667_v14 = vpop.eup %11181 }
 0x991   :  { %v2031_v23 = vsel %vm129_vm1, %v12667_v14, 0.0 }
 0x993   :  { %2231 = vrot.lane.b32.xlu1 %v11991_v28, %s11769_s17 }
 0x996   :  { %2233 = vrot.lane.b32.xlu0 %v12021_v34, %s11769_s17 }
 0x9b5   :  { %2017 = vadd.xlane.f32.xlu0 %v2016_v21 }
 0x9b7   :  { %2020 = vadd.xlane.f32.xlu1 %v2019_v45 }
 0x9b9   :  { %2023 = vadd.xlane.f32.xlu0 %v2022_v3 }
 0x9bb   :  { %2026 = vadd.xlane.f32.xlu1 %v2025_v25 }
 0x9bd   :  { %2029 = vadd.xlane.f32.xlu0 %v2028_v46 }
 0x9bf   :  { %2032 = vadd.xlane.f32.xlu1 %v2031_v23 }
 0x9d0   :  { %2227 = vrot.lane.b32.xlu1 %v11973_v9, %s11769_s17 }
 0x9d3   :  { %2229 = vrot.lane.b32.xlu0 %v12038_v37, %s11769_s17 }
 0x9d4   :  { %2213 = vrot.lane.b32.xlu1 %v12038_v37, %s11770_s18 }
 0x9d7   :  { %2211 = vrot.lane.b32.xlu0 %v11973_v9, %s11770_s18 }
 0x9d8   :  { %2217 = vrot.lane.b32.xlu1 %v12021_v34, %s11770_s18 }
 0x9db   :  { %2215 = vrot.lane.b32.xlu0 %v11991_v28, %s11770_s18 }
 0x9dc   :  { %2221 = vrot.lane.b32.xlu1 %v11978_v20, %s11770_s18 }
 0x9df   :  { %2219 = vrot.lane.b32.xlu0 %v11984_v24, %s11770_s18 }
 0x9e0   :  { %2225 = vrot.lane.b32.xlu1 %v11994_v29, %s11770_s18 }
 0x9e3   :  { %2223 = vrot.lane.b32.xlu0 %v12004_v39, %s11770_s18 }
 0x9e4   :  { %2490 = vrot.lane.b32.xlu1 %v11997_v31, %s11770_s18 }
 0x9e7   :  { %2488 = vrot.lane.b32.xlu0 %v12007_v32, %s11770_s18 }
 0x9e8   :  { %2486 = vrot.lane.b32.xlu1 %v12012_v33, %s11770_s18 }
 0x9eb   :  { %2482 = vrot.lane.b32.xlu0 %v12029_v36, %s11770_s18 }
 0x9ec   :  { %2484 = vrot.lane.b32.xlu1 %v12024_v35, %s11770_s18 }
 0x9ef   :  { %2478 = vrot.lane.b32.xlu0 %v12046_v41, %s11770_s18 }
 0x9f0   :  { %2480 = vrot.lane.b32.xlu1 %v12041_v38, %s11770_s18 }
 0x9f3   :  { %2667 = vrot.lane.b32.xlu0 %v11994_v29, %s11771_s19 }
 0x9f4   :  { %2476 = vrot.lane.b32.xlu1 %v12055_v42, %s11770_s18 }
 0x9f8   :  { %2665 = vrot.lane.b32.xlu1 %v12004_v39, %s11771_s19 }
 0xa09   :  { %v2015_v57 = vpop.xlane.xlu0 %2014 }
 0xa0a   :  { %11183 = vrcp.f32 %v2015_v57 }
 0xa0b   :  { %v2012_v50 = vpop.xlane.xlu1 %2011 }
 0xa0c   :  { %11185 = vrcp.f32 %v2012_v50 }
 0xa0f   :  { %v2232_v30 = vpop.permute.xlu1 %2231 }
 0xa17   :  { %v11184_v62 = vpop.eup %11183 }
 0xa18   :  { %v2043_v19 = vmul.f32 %v11184_v62, %v12637_v55  ;;  %v2234_v55 = vpop.permute.xlu0 %2233 }
 0xa19   :  { %v11186_v49 = vpop.eup %11185 }
 0xa1a   :  { %v2042_v61 = vmul.f32 %v11186_v49, %v12641_v44 }
 0xa1c   :  { %10267 = vmatprep.mubr.msk.f32.mxu0 %vm129_vm1, %v2042_v61 }
 0xa1d   :  { %10268 = vmatmul.mubr.msk.f32.vlgmr.msra.gmra.mxu0 %vm129_vm1, %v2043_v19 }
 0xa1e   :  { %10280 = vmatpush3.xpose.msk.msra.mxu0 %vm554_vm2, %v12611_v47 }
 0xa1f   :  { %10281 = vmatprep.subr.msk.mxu0 %vm554_vm2, %v12635_v60 }
 0xa22   :  { %10282 = vmatpush3.xpose.msk.msra.mxu0 %vm554_vm2, %v12635_v60 }
 0xa23   :  { %10283 = vmatprep.subr.msk.mxu0 %vm554_vm2, %v2238_v1 }
 0xa26   :  { %10284 = vmatpush3.xpose.msk.msra.mxu0 %vm554_vm2, %v2238_v1 }
 0xa27   :  { %10285 = vmatprep.subr.msk.mxu0 %vm554_vm2, %v2236_v18 }
 0xa2a   :  { %10286 = vmatpush3.xpose.msk.msra.mxu0 %vm554_vm2, %v2236_v18 }
 0xa2b   :  { %10287 = vmatprep.subr.msk.mxu0 %vm554_vm2, %v2234_v55 }
 0xa2e   :  { %10288 = vmatpush3.xpose.msk.msra.mxu0 %vm554_vm2, %v2234_v55 }
 0xa2f   :  { %10289 = vmatprep.subr.msk.mxu0 %vm554_vm2, %v2232_v30 }
 0xa32   :  { %10290 = vmatpush3.xpose.msk.msra.mxu0 %vm554_vm2, %v2232_v30 }
 0xa3e   :  { %v2018_v47 = vpop.xlane.xlu0 %2017 }
 0xa3f   :  { %11187 = vrcp.f32 %v2018_v47 }
 0xa40   :  { %v2021_v60 = vpop.xlane.xlu1 %2020 }
 0xa41   :  { %11189 = vrcp.f32 %v2021_v60 }
 0xa42   :  { %v2024_v44 = vpop.xlane.xlu0 %2023 }
 0xa43   :  { %11191 = vrcp.f32 %v2024_v44 }
 0xa44   :  { %v2027_v54 = vpop.xlane.xlu1 %2026 }
 0xa45   :  { %11193 = vrcp.f32 %v2027_v54 }
 0xa46   :  { %v2030_v63 = vpop.xlane.xlu0 %2029 }
 0xa47   :  { %11195 = vrcp.f32 %v2030_v63 }
 0xa48   :  { %v2033_v2 = vpop.xlane.xlu1 %2032 }
 0xa49   :  { %11197 = vrcp.f32 %v2033_v2 }
 0xa4a   :  { %v2230_v53 = vpop.permute.xlu0 %2229 }
 0xa4b   :  { %10291 = vmatprep.subr.msk.mxu0 %vm554_vm2, %v2230_v53 }
 0xa4c   :  { %v11188_v48 = vpop.eup %11187  ;;  %10292 = vmatpush3.xpose.msk.msra.mxu0 %vm554_vm2, %v2230_v53  ;;  %v2228_v22 = vpop.permute.xlu1 %2227 }
 0xa4d   :  { %10293 = vmatprep.subr.msk.mxu0 %vm554_vm2, %v2228_v22  ;;  %v2044_v52 = vmul.f32 %v11188_v48, %v12649_v17 }
 0xa4e   :  { %v11190_v6 = vpop.eup %11189  ;;  %v2212_v51 = vpop.permute.xlu0 %2211 }
 0xa4f   :  { %10270 = vmatprep.mubr.msk.f32.mxu0 %vm129_vm1, %v2044_v52  ;;  %v2045_v5 = vmul.f32 %v11190_v6, %v12651_v4 }
 0xa50   :  { %v11192_v56 = vpop.eup %11191  ;;  %10294 = vmatpush3.xpose.msk.msra.mxu0 %vm554_vm2, %v2228_v22  ;;  %v2214_v7 = vpop.permute.xlu1 %2213 }
 0xa51   :  { %10271 = vmatmul.mubr.msk.f32.gmra.mxu0 %vm129_vm1, %v2045_v5  ;;  %v2046_v16 = vmul.f32 %v11192_v56, %v12655_v15 }
 0xa52   :  { %v11194_v43 = vpop.eup %11193  ;;  %v2216_v59 = vpop.permute.xlu0 %2215 }
 0xa53   :  { %10273 = vmatprep.mubr.msk.f32.mxu0 %vm129_vm1, %v2046_v16  ;;  %v2047_v58 = vmul.f32 %v11194_v43, %v12659_v26 }
 0xa54   :  { %v11196_v11 = vpop.eup %11195  ;;  %v2218_v12 = vpop.permute.xlu1 %2217 }
 0xa55   :  { %10274 = vmatmul.mubr.msk.f32.gmra.mxu0 %vm129_vm1, %v2047_v58  ;;  %v2048_v13 = vmul.f32 %v11196_v11, %v12663_v10 }
 0xa56   :  { %v11198_v17 = vpop.eup %11197  ;;  %v2220_v4 = vpop.permute.xlu0 %2219 }
 0xa57   :  { %10276 = vmatprep.mubr.msk.f32.mxu0 %vm129_vm1, %v2048_v13  ;;  %v2049_v21 = vmul.f32 %v11198_v17, %v12667_v14 }
 0xa58   :  { %v2222_v45 = vpop.permute.xlu1 %2221 }
 0xa59   :  { %10277 = vmatmul.mubr.msk.f32.gmra.mxu0 %vm129_vm1, %v2049_v21 }
 0xa5a   :  { %v2224_v15 = vpop.permute.xlu0 %2223  ;;  %10295 = vmatprep.mubr.msk.f32.mxu0 %vm554_vm2, %v2212_v51 }
 0xa5c   :  { %v2226_v3 = vpop.permute.xlu1 %2225 }
 0xa5d   :  { %10296 = vmatmul.mubr.msk.f32.vlgmr.msra.gmra.mxu0 %vm554_vm2, %v2214_v7 }
 0xa5e   :  { %10298 = vmatprep.mubr.msk.f32.mxu0 %vm554_vm2, %v2216_v59  ;;  %v2489_v26 = vpop.permute.xlu0 %2488 }
 0xa60   :  { %v2491_v25 = vpop.permute.xlu1 %2490 }
 0xa61   :  { %10299 = vmatmul.mubr.msk.f32.gmra.mxu0 %vm554_vm2, %v2218_v12  ;;  %10307 = vmatprep.subr.mxu1 %v2491_v25 }
 0xa62   :  { %10301 = vmatprep.mubr.msk.f32.mxu0 %vm554_vm2, %v2220_v4  ;;  %10308 = vmatpush3.msra.mxu1 %v2491_v25  ;;  %v2483_v14 = vpop.permute.xlu0 %2482 }
 0xa63   :  { %10309 = vmatprep.subr.mxu1 %v2489_v26 }
 0xa64   :  { %10310 = vmatpush3.msra.mxu1 %v2489_v26  ;;  %v2487_v10 = vpop.permute.xlu1 %2486 }
 0xa65   :  { %10302 = vmatmul.mubr.msk.f32.gmra.mxu0 %vm554_vm2, %v2222_v45  ;;  %10311 = vmatprep.subr.mxu1 %v2487_v10 }
 0xa66   :  { %10304 = vmatprep.mubr.msk.f32.mxu0 %vm554_vm2, %v2224_v15  ;;  %10312 = vmatpush3.msra.mxu1 %v2487_v10  ;;  %v2479_v23 = vpop.permute.xlu0 %2478 }
 0xa68   :  { %v2485_v46 = vpop.permute.xlu1 %2484 }
 0xa69   :  { %10305 = vmatmul.mubr.msk.f32.gmra.mxu0 %vm554_vm2, %v2226_v3  ;;  %10313 = vmatprep.subr.mxu1 %v2485_v46 }
 0xa6a   :  { %10314 = vmatpush3.msra.mxu1 %v2485_v46  ;;  %v12755_v57 = vpop.permute.xlu0 %2667 }
 0xa6b   :  { %10315 = vmatprep.subr.mxu1 %v2483_v14 }
 0xa6c   :  { %10316 = vmatpush3.msra.mxu1 %v2483_v14  ;;  %v2481_v1 = vpop.permute.xlu1 %2480 }
 0xa6d   :  { %10317 = vmatprep.subr.mxu1 %v2481_v1 }
 0xa6e   :  { %10318 = vmatpush3.msra.mxu1 %v2481_v1 }
 0xa6f   :  { %10319 = vmatprep.subr.mxu1 %v2479_v23 }
 0xa70   :  { %10320 = vmatpush3.msra.mxu1 %v2479_v23  ;;  %v2477_v18 = vpop.permute.xlu1 %2476 }
 0xa71   :  { %10321 = vmatprep.subr.mxu1 %v2477_v18 }
 0xa72   :  { %10322 = vmatpush3.msra.mxu1 %v2477_v18 }
 0xa73   :  { %10335 = vmatprep.subr.msk.mxu1 %vm554_vm2, %v12755_v57 }
 0xa74   :  { %v12779_v45 = vpop.permute.xlu1 %2665 }
 0xadd   :  { %v10269_v50 = vpop.f32.mrf.mxu0 }
 0xade   :  { %2204 = vst.msk [vmem:[#allocation2 + $0xc8] sm:$0xff] %vm554_vm2, %v10269_v50 }
 0xadf   :  { %v2164_v62 = vpop.f32.mrf.mxu0 }
 0xae0   :  { %2203 = vst.msk [vmem:[#allocation2 + $0xc0] sm:$0xff] %vm554_vm2, %v2164_v62 }
 0xb11   :  { %v10272_v49 = vpop.f32.mrf.mxu0 }
 0xb12   :  { %2206 = vst.msk [vmem:[#allocation2 + $0xd8] sm:$0xff] %vm554_vm2, %v10272_v49 }
 0xb13   :  { %v2174_v61 = vpop.f32.mrf.mxu0 }
 0xb14   :  { %2205 = vst.msk [vmem:[#allocation2 + $0xd0] sm:$0xff] %vm554_vm2, %v2174_v61 }
 0xb15   :  { %v10275_v19 = vpop.f32.mrf.mxu0 }
 0xb16   :  { %2208 = vst.msk [vmem:[#allocation2 + $0xe8] sm:$0xff] %vm554_vm2, %v10275_v19 }
 0xb17   :  { %v2184_v55 = vpop.f32.mrf.mxu0 }
 0xb18   :  { %2207 = vst.msk [vmem:[#allocation2 + $0xe0] sm:$0xff] %vm554_vm2, %v2184_v55 }
 0xb19   :  { %v10278_v30 = vpop.f32.mrf.mxu0 }
 0xb1a   :  { %2210 = vst.msk [vmem:[#allocation2 + $0xf8] sm:$0xff] %vm554_vm2, %v10278_v30 }
 0xb1b   :  { %v2194_v47 = vpop.f32.mrf.mxu0 }
 0xb1c   :  { %2209 = vst.msk [vmem:[#allocation2 + $0xf0] sm:$0xff] %vm554_vm2, %v2194_v47 }
 0xb1d   :  { %v10297_v60 = vpop.f32.mrf.mxu0 }
 0xb1e   :  { %v2381_v44 = vmul.f32 0.35355338, %v10297_v60 }
 0xb1f   :  { %v2341_v54 = vpop.f32.mrf.mxu0 }
 0xb20   :  { %v2380_v63 = vmul.f32 0.35355338, %v2341_v54  ;;  %v2391_v2 = vsel %vm129_vm1, %v2381_v44, -inf }
 0xb21   :  { %2392 = vmax.xlane.f32.xlu1 %v2391_v2  ;;  %v10300_v53 = vpop.f32.mrf.mxu0 }
 0xb22   :  { %v2383_v48 = vmul.f32 0.35355338, %v10300_v53  ;;  %v2388_v22 = vsel %vm129_vm1, %v2380_v63, -inf }
 0xb23   :  { %2389 = vmax.xlane.f32.xlu0 %v2388_v22  ;;  %v2351_v52 = vpop.f32.mrf.mxu0 }
 0xb24   :  { %v2382_v51 = vmul.f32 0.35355338, %v2351_v52  ;;  %v2397_v5 = vsel %vm129_vm1, %v2383_v48, -inf }
 0xb25   :  { %v10303_v6 = vpop.f32.mrf.mxu0 }
 0xb26   :  { %v2385_v43 = vmul.f32 0.35355338, %v10303_v6  ;;  %v2394_v59 = vsel %vm129_vm1, %v2382_v51, -inf }
 0xb27   :  { %2398 = vmax.xlane.f32.xlu0 %v2397_v5  ;;  %v2361_v56 = vpop.f32.mrf.mxu0 }
 0xb28   :  { %v2384_v7 = vmul.f32 0.35355338, %v2361_v56  ;;  %v2403_v17 = vsel %vm129_vm1, %v2385_v43, -inf }
 0xb29   :  { %v10306_v16 = vpop.f32.mrf.mxu0 }
 0xb2a   :  { %v2400_v58 = vsel %vm129_vm1, %v2384_v7, -inf  ;;  %v2387_v13 = vmul.f32 0.35355338, %v10306_v16 }
 0xb2b   :  { %2395 = vmax.xlane.f32.xlu0 %v2394_v59  ;;  %2401 = vmax.xlane.f32.xlu1 %v2400_v58  ;;  %v2371_v11 = vpop.f32.mrf.mxu0 }
 0xb2c   :  { %v2386_v12 = vmul.f32 0.35355338, %v2371_v11  ;;  %v2409_v21 = vsel %vm129_vm1, %v2387_v13, -inf }
 0xb2e   :  { %v2406_v4 = vsel %vm129_vm1, %v2386_v12, -inf }
 0xb2f   :  { %2404 = vmax.xlane.f32.xlu0 %v2403_v17  ;;  %2407 = vmax.xlane.f32.xlu1 %v2406_v4 }
 0xb33   :  { %2410 = vmax.xlane.f32.xlu0 %v2409_v21 }
 0xb40   :  { %2661 = vrot.lane.b32.xlu1 %v11984_v24, %s11771_s19 }
 0xb49   :  { %2663 = vrot.lane.b32.xlu0 %v11978_v20, %s11771_s19 }
 0xbaa   :  { %v2393_v15 = vpop.xlane.xlu1 %2392 }
 0xbab   :  { %v2413_v3 = vsub.f32 %v2381_v44, %v2393_v15 }
 0xbac   :  { %v2390_v26 = vpop.xlane.xlu0 %2389 }
 0xbad   :  { %v2422_v25 = vmul.f32 1.442695, %v2413_v3  ;;  %v2412_v10 = vsub.f32 %v2380_v63, %v2390_v26 }
 0xbaf   :  { %11199 = vpow2.f32 %v2422_v25  ;;  %v2420_v14 = vmul.f32 1.442695, %v2412_v10 }
 0xbb0   :  { %v2399_v50 = vpop.xlane.xlu0 %2398 }
 0xbb1   :  { %11201 = vpow2.f32 %v2420_v14  ;;  %v2415_v55 = vsub.f32 %v2383_v48, %v2399_v50 }
 0xbb3   :  { %v2426_v44 = vmul.f32 1.442695, %v2415_v55 }
 0xbb4   :  { %v2396_v62 = vpop.xlane.xlu0 %2395  ;;  %v2402_v49 = vpop.xlane.xlu1 %2401 }
 0xbb5   :  { %v2414_v61 = vsub.f32 %v2382_v51, %v2396_v62  ;;  %v2416_v47 = vsub.f32 %v2384_v7, %v2402_v49 }
 0xbb7   :  { %v2424_v30 = vmul.f32 1.442695, %v2414_v61  ;;  %v2428_v2 = vmul.f32 1.442695, %v2416_v47 }
 0xbb8   :  { %v2405_v19 = vpop.xlane.xlu0 %2404  ;;  %v2408_v60 = vpop.xlane.xlu1 %2407 }
 0xbb9   :  { %v2417_v54 = vsub.f32 %v2385_v43, %v2405_v19  ;;  %11203 = vpow2.f32 %v2424_v30  ;;  %v2418_v53 = vsub.f32 %v2386_v12, %v2408_v60 }
 0xbba   :  { %11205 = vpow2.f32 %v2426_v44 }
 0xbbb   :  { %v2430_v22 = vmul.f32 1.442695, %v2417_v54  ;;  %11207 = vpow2.f32 %v2428_v2  ;;  %v2432_v6 = vmul.f32 1.442695, %v2418_v53 }
 0xbbc   :  { %v12781_v46 = vpop.eup %11199  ;;  %v2411_v63 = vpop.xlane.xlu0 %2410 }
 0xbbd   :  { %v2439_v23 = vsel %vm129_vm1, %v12781_v46, 0.0  ;;  %v2419_v52 = vsub.f32 %v2387_v13, %v2411_v63  ;;  %11209 = vpow2.f32 %v2430_v22  ;;  %v2662_v21 = vpop.permute.xlu1 %2661 }
 0xbbe   :  { %v12785_v1 = vpop.eup %11201  ;;  %2440 = vadd.xlane.f32.xlu0 %v2439_v23  ;;  %11211 = vpow2.f32 %v2432_v6 }
 0xbbf   :  { %v2436_v18 = vsel %vm129_vm1, %v12785_v1, 0.0  ;;  %v2434_v5 = vmul.f32 1.442695, %v2419_v52 }
 0xbc0   :  { %2437 = vadd.xlane.f32.xlu1 %v2436_v18  ;;  %v2664_v4 = vpop.permute.xlu0 %2663 }
 0xbc1   :  { %11213 = vpow2.f32 %v2434_v5 }
 0xbc6   :  { %v12793_v51 = vpop.eup %11203 }
 0xbc7   :  { %v12795_v48 = vpop.eup %11205  ;;  %v2442_v56 = vsel %vm129_vm1, %v12793_v51, 0.0 }
 0xbc8   :  { %v12799_v7 = vpop.eup %11207  ;;  %v2445_v16 = vsel %vm129_vm1, %v12795_v48, 0.0 }
 0xbc9   :  { %v2448_v59 = vsel %vm129_vm1, %v12799_v7, 0.0 }
 0xbca   :  { %v12803_v43 = vpop.eup %11209 }
 0xbcb   :  { %v12807_v58 = vpop.eup %11211  ;;  %v2451_v11 = vsel %vm129_vm1, %v12803_v43, 0.0 }
 0xbcc   :  { %v2454_v13 = vsel %vm129_vm1, %v12807_v58, 0.0 }
 0xbce   :  { %v12811_v12 = vpop.eup %11213 }
 0xbcf   :  { %v2457_v17 = vsel %vm129_vm1, %v12811_v12, 0.0 }
 0xbd1   :  { %2657 = vrot.lane.b32.xlu1 %v11991_v28, %s11771_s19 }
 0xbd4   :  { %2659 = vrot.lane.b32.xlu0 %v12021_v34, %s11771_s19 }
 0xbf3   :  { %2443 = vadd.xlane.f32.xlu0 %v2442_v56 }
 0xbf5   :  { %2446 = vadd.xlane.f32.xlu1 %v2445_v16 }
 0xbf7   :  { %2449 = vadd.xlane.f32.xlu0 %v2448_v59 }
 0xbf9   :  { %2452 = vadd.xlane.f32.xlu1 %v2451_v11 }
 0xbfb   :  { %2455 = vadd.xlane.f32.xlu0 %v2454_v13 }
 0xbfd   :  { %2458 = vadd.xlane.f32.xlu1 %v2457_v17 }
 0xc0e   :  { %2653 = vrot.lane.b32.xlu1 %v11973_v9, %s11771_s19 }
 0xc11   :  { %2655 = vrot.lane.b32.xlu0 %v12038_v37, %s11771_s19 }
 0xc12   :  { %2639 = vrot.lane.b32.xlu1 %v12038_v37, %s11772_s1 }
 0xc15   :  { %2637 = vrot.lane.b32.xlu0 %v11973_v9, %s11772_s1 }
 0xc16   :  { %2643 = vrot.lane.b32.xlu1 %v12021_v34, %s11772_s1 }
 0xc19   :  { %2641 = vrot.lane.b32.xlu0 %v11991_v28, %s11772_s1 }
 0xc1a   :  { %2647 = vrot.lane.b32.xlu1 %v11978_v20, %s11772_s1 }
 0xc1d   :  { %2645 = vrot.lane.b32.xlu0 %v11984_v24, %s11772_s1 }
 0xc1e   :  { %2651 = vrot.lane.b32.xlu1 %v11994_v29, %s11772_s1 }
 0xc21   :  { %2649 = vrot.lane.b32.xlu0 %v12004_v39, %s11772_s1 }
 0xc22   :  { %2916 = vrot.lane.b32.xlu1 %v11997_v31, %s11772_s1 }
 0xc25   :  { %2914 = vrot.lane.b32.xlu0 %v12007_v32, %s11772_s1 }
 0xc26   :  { %2912 = vrot.lane.b32.xlu1 %v12012_v33, %s11772_s1 }
 0xc29   :  { %2908 = vrot.lane.b32.xlu0 %v12029_v36, %s11772_s1 }
 0xc2a   :  { %2910 = vrot.lane.b32.xlu1 %v12024_v35, %s11772_s1 }
 0xc2d   :  { %2904 = vrot.lane.b32.xlu0 %v12046_v41, %s11772_s1 }
 0xc2e   :  { %2906 = vrot.lane.b32.xlu1 %v12041_v38, %s11772_s1 }
 0xc31   :  { %3093 = vrot.lane.b32.xlu0 %v11994_v29, %s11758_s20 }
 0xc32   :  { %2902 = vrot.lane.b32.xlu1 %v12055_v42, %s11772_s1 }
 0xc36   :  { %3091 = vrot.lane.b32.xlu1 %v12004_v39, %s11758_s20 }
 0xc47   :  { %v2441_v15 = vpop.xlane.xlu0 %2440 }
 0xc48   :  { %11215 = vrcp.f32 %v2441_v15 }
 0xc49   :  { %v2438_v3 = vpop.xlane.xlu1 %2437 }
 0xc4a   :  { %11217 = vrcp.f32 %v2438_v3 }
 0xc4d   :  { %v2658_v23 = vpop.permute.xlu1 %2657 }
 0xc55   :  { %v11216_v26 = vpop.eup %11215 }
 0xc56   :  { %v2469_v14 = vmul.f32 %v11216_v26, %v12781_v46  ;;  %v2660_v46 = vpop.permute.xlu0 %2659 }
 0xc57   :  { %v11218_v25 = vpop.eup %11217 }
 0xc58   :  { %v2468_v10 = vmul.f32 %v11218_v25, %v12785_v1 }
 0xc5a   :  { %10323 = vmatprep.mubr.msk.f32.mxu1 %vm129_vm1, %v2468_v10 }
 0xc5b   :  { %10324 = vmatmul.mubr.msk.f32.vlgmr.msra.gmra.mxu1 %vm129_vm1, %v2469_v14 }
 0xc5c   :  { %10336 = vmatpush3.xpose.msk.msra.mxu1 %vm554_vm2, %v12755_v57 }
 0xc5d   :  { %10337 = vmatprep.subr.msk.mxu1 %vm554_vm2, %v12779_v45 }
 0xc60   :  { %10338 = vmatpush3.xpose.msk.msra.mxu1 %vm554_vm2, %v12779_v45 }
 0xc61   :  { %10339 = vmatprep.subr.msk.mxu1 %vm554_vm2, %v2664_v4 }
 0xc64   :  { %10340 = vmatpush3.xpose.msk.msra.mxu1 %vm554_vm2, %v2664_v4 }
 0xc65   :  { %10341 = vmatprep.subr.msk.mxu1 %vm554_vm2, %v2662_v21 }
 0xc68   :  { %10342 = vmatpush3.xpose.msk.msra.mxu1 %vm554_vm2, %v2662_v21 }
 0xc69   :  { %10343 = vmatprep.subr.msk.mxu1 %vm554_vm2, %v2660_v46 }
 0xc6c   :  { %10344 = vmatpush3.xpose.msk.msra.mxu1 %vm554_vm2, %v2660_v46 }
 0xc6d   :  { %10345 = vmatprep.subr.msk.mxu1 %vm554_vm2, %v2658_v23 }
 0xc70   :  { %10346 = vmatpush3.xpose.msk.msra.mxu1 %vm554_vm2, %v2658_v23 }
 0xc7c   :  { %v2444_v57 = vpop.xlane.xlu0 %2443 }
 0xc7d   :  { %11219 = vrcp.f32 %v2444_v57 }
 0xc7e   :  { %v2447_v45 = vpop.xlane.xlu1 %2446 }
 0xc7f   :  { %11221 = vrcp.f32 %v2447_v45 }
 0xc80   :  { %v2450_v1 = vpop.xlane.xlu0 %2449 }
 0xc81   :  { %11223 = vrcp.f32 %v2450_v1 }
 0xc82   :  { %v2453_v18 = vpop.xlane.xlu1 %2452 }
 0xc83   :  { %11225 = vrcp.f32 %v2453_v18 }
 0xc84   :  { %v2456_v50 = vpop.xlane.xlu0 %2455 }
 0xc85   :  { %11227 = vrcp.f32 %v2456_v50 }
 0xc86   :  { %v2459_v62 = vpop.xlane.xlu1 %2458 }
 0xc87   :  { %11229 = vrcp.f32 %v2459_v62 }
 0xc88   :  { %v2656_v49 = vpop.permute.xlu0 %2655 }
 0xc89   :  { %10347 = vmatprep.subr.msk.mxu1 %vm554_vm2, %v2656_v49 }
 0xc8a   :  { %v11220_v61 = vpop.eup %11219  ;;  %10348 = vmatpush3.xpose.msk.msra.mxu1 %vm554_vm2, %v2656_v49  ;;  %v2654_v19 = vpop.permute.xlu1 %2653 }
 0xc8b   :  { %10349 = vmatprep.subr.msk.mxu1 %vm554_vm2, %v2654_v19  ;;  %v2470_v55 = vmul.f32 %v11220_v61, %v12793_v51 }
 0xc8c   :  { %v11222_v30 = vpop.eup %11221  ;;  %v2638_v47 = vpop.permute.xlu0 %2637 }
 0xc8d   :  { %10326 = vmatprep.mubr.msk.f32.mxu1 %vm129_vm1, %v2470_v55  ;;  %v2471_v60 = vmul.f32 %v11222_v30, %v12795_v48 }
 0xc8e   :  { %v11224_v44 = vpop.eup %11223  ;;  %10350 = vmatpush3.xpose.msk.msra.mxu1 %vm554_vm2, %v2654_v19  ;;  %v2640_v54 = vpop.permute.xlu1 %2639 }
 0xc8f   :  { %10327 = vmatmul.mubr.msk.f32.gmra.mxu1 %vm129_vm1, %v2471_v60  ;;  %v2472_v63 = vmul.f32 %v11224_v44, %v12799_v7 }
 0xc90   :  { %v11226_v2 = vpop.eup %11225  ;;  %v2642_v53 = vpop.permute.xlu0 %2641 }
 0xc91   :  { %10329 = vmatprep.mubr.msk.f32.mxu1 %vm129_vm1, %v2472_v63  ;;  %v2473_v22 = vmul.f32 %v11226_v2, %v12803_v43 }
 0xc92   :  { %v11228_v52 = vpop.eup %11227  ;;  %v2644_v6 = vpop.permute.xlu1 %2643 }
 0xc93   :  { %10330 = vmatmul.mubr.msk.f32.gmra.mxu1 %vm129_vm1, %v2473_v22  ;;  %v2474_v5 = vmul.f32 %v11228_v52, %v12807_v58 }
 0xc94   :  { %v11230_v51 = vpop.eup %11229  ;;  %v2646_v48 = vpop.permute.xlu0 %2645 }
 0xc95   :  { %10332 = vmatprep.mubr.msk.f32.mxu1 %vm129_vm1, %v2474_v5  ;;  %v2475_v56 = vmul.f32 %v11230_v51, %v12811_v12 }
 0xc96   :  { %v2648_v16 = vpop.permute.xlu1 %2647 }
 0xc97   :  { %10333 = vmatmul.mubr.msk.f32.gmra.mxu1 %vm129_vm1, %v2475_v56 }
 0xc98   :  { %v2650_v7 = vpop.permute.xlu0 %2649  ;;  %10351 = vmatprep.mubr.msk.f32.mxu1 %vm554_vm2, %v2638_v47 }
 0xc9a   :  { %v2652_v59 = vpop.permute.xlu1 %2651 }
 0xc9b   :  { %10352 = vmatmul.mubr.msk.f32.vlgmr.msra.gmra.mxu1 %vm554_vm2, %v2640_v54 }
 0xc9c   :  { %10354 = vmatprep.mubr.msk.f32.mxu1 %vm554_vm2, %v2642_v53  ;;  %v2915_v43 = vpop.permute.xlu0 %2914 }
 0xc9e   :  { %v2917_v11 = vpop.permute.xlu1 %2916 }
 0xc9f   :  { %10355 = vmatmul.mubr.msk.f32.gmra.mxu1 %vm554_vm2, %v2644_v6  ;;  %10363 = vmatprep.subr.mxu0 %v2917_v11 }
 0xca0   :  { %10357 = vmatprep.mubr.msk.f32.mxu1 %vm554_vm2, %v2646_v48  ;;  %10364 = vmatpush3.msra.mxu0 %v2917_v11  ;;  %v2909_v12 = vpop.permute.xlu0 %2908 }
 0xca1   :  { %10365 = vmatprep.subr.mxu0 %v2915_v43 }
 0xca2   :  { %10366 = vmatpush3.msra.mxu0 %v2915_v43  ;;  %v2913_v58 = vpop.permute.xlu1 %2912 }
 0xca3   :  { %10358 = vmatmul.mubr.msk.f32.gmra.mxu1 %vm554_vm2, %v2648_v16  ;;  %10367 = vmatprep.subr.mxu0 %v2913_v58 }
 0xca4   :  { %10360 = vmatprep.mubr.msk.f32.mxu1 %vm554_vm2, %v2650_v7  ;;  %10368 = vmatpush3.msra.mxu0 %v2913_v58  ;;  %v2905_v17 = vpop.permute.xlu0 %2904 }
 0xca6   :  { %v2911_v13 = vpop.permute.xlu1 %2910 }
 0xca7   :  { %10361 = vmatmul.mubr.msk.f32.gmra.mxu1 %vm554_vm2, %v2652_v59  ;;  %10369 = vmatprep.subr.mxu0 %v2911_v13 }
 0xca8   :  { %10370 = vmatpush3.msra.mxu0 %v2911_v13  ;;  %v12899_v15 = vpop.permute.xlu0 %3093 }
 0xca9   :  { %10371 = vmatprep.subr.mxu0 %v2909_v12 }
 0xcaa   :  { %10372 = vmatpush3.msra.mxu0 %v2909_v12  ;;  %v2907_v4 = vpop.permute.xlu1 %2906 }
 0xcab   :  { %10373 = vmatprep.subr.mxu0 %v2907_v4 }
 0xcac   :  { %10374 = vmatpush3.msra.mxu0 %v2907_v4 }
 0xcad   :  { %10375 = vmatprep.subr.mxu0 %v2905_v17 }
 0xcae   :  { %10376 = vmatpush3.msra.mxu0 %v2905_v17  ;;  %v2903_v21 = vpop.permute.xlu1 %2902 }
 0xcaf   :  { %10377 = vmatprep.subr.mxu0 %v2903_v21 }
 0xcb0   :  { %10378 = vmatpush3.msra.mxu0 %v2903_v21 }
 0xcb1   :  { %10391 = vmatprep.subr.msk.mxu0 %vm554_vm2, %v12899_v15 }
 0xcb2   :  { %v12923_v16 = vpop.permute.xlu1 %3091 }
 0xd1b   :  { %v10325_v3 = vpop.f32.mrf.mxu1 }
 0xd1c   :  { %2630 = vst.msk [vmem:[#allocation2 + $0x108] sm:$0xff] %vm554_vm2, %v10325_v3 }
 0xd1d   :  { %v2590_v26 = vpop.f32.mrf.mxu1 }
 0xd1e   :  { %2629 = vst.msk [vmem:[#allocation2 + $0x100] sm:$0xff] %vm554_vm2, %v2590_v26 }
 0xd4f   :  { %v10328_v25 = vpop.f32.mrf.mxu1 }
 0xd50   :  { %2632 = vst.msk [vmem:[#allocation2 + $0x118] sm:$0xff] %vm554_vm2, %v10328_v25 }
 0xd51   :  { %v2600_v10 = vpop.f32.mrf.mxu1 }
 0xd52   :  { %2631 = vst.msk [vmem:[#allocation2 + $0x110] sm:$0xff] %vm554_vm2, %v2600_v10 }
 0xd53   :  { %v10331_v14 = vpop.f32.mrf.mxu1 }
 0xd54   :  { %2634 = vst.msk [vmem:[#allocation2 + $0x128] sm:$0xff] %vm554_vm2, %v10331_v14 }
 0xd55   :  { %v2610_v46 = vpop.f32.mrf.mxu1 }
 0xd56   :  { %2633 = vst.msk [vmem:[#allocation2 + $0x120] sm:$0xff] %vm554_vm2, %v2610_v46 }
 0xd57   :  { %v10334_v23 = vpop.f32.mrf.mxu1 }
 0xd58   :  { %2636 = vst.msk [vmem:[#allocation2 + $0x138] sm:$0xff] %vm554_vm2, %v10334_v23 }
 0xd59   :  { %v2620_v57 = vpop.f32.mrf.mxu1 }
 0xd5a   :  { %2635 = vst.msk [vmem:[#allocation2 + $0x130] sm:$0xff] %vm554_vm2, %v2620_v57 }
 0xd5b   :  { %v10353_v45 = vpop.f32.mrf.mxu1 }
 0xd5c   :  { %v2807_v1 = vmul.f32 0.35355338, %v10353_v45 }
 0xd5d   :  { %v2767_v18 = vpop.f32.mrf.mxu1 }
 0xd5e   :  { %v2806_v50 = vmul.f32 0.35355338, %v2767_v18  ;;  %v2817_v62 = vsel %vm129_vm1, %v2807_v1, -inf }
 0xd5f   :  { %2818 = vmax.xlane.f32.xlu1 %v2817_v62  ;;  %v10356_v49 = vpop.f32.mrf.mxu1 }
 0xd60   :  { %v2809_v61 = vmul.f32 0.35355338, %v10356_v49  ;;  %v2814_v19 = vsel %vm129_vm1, %v2806_v50, -inf }
 0xd61   :  { %2815 = vmax.xlane.f32.xlu0 %v2814_v19  ;;  %v2777_v55 = vpop.f32.mrf.mxu1 }
 0xd62   :  { %v2808_v47 = vmul.f32 0.35355338, %v2777_v55  ;;  %v2823_v60 = vsel %vm129_vm1, %v2809_v61, -inf }
 0xd63   :  { %v10359_v30 = vpop.f32.mrf.mxu1 }
 0xd64   :  { %v2811_v2 = vmul.f32 0.35355338, %v10359_v30  ;;  %v2820_v53 = vsel %vm129_vm1, %v2808_v47, -inf }
 0xd65   :  { %2824 = vmax.xlane.f32.xlu0 %v2823_v60  ;;  %v2787_v44 = vpop.f32.mrf.mxu1 }
 0xd66   :  { %v2810_v54 = vmul.f32 0.35355338, %v2787_v44  ;;  %v2829_v51 = vsel %vm129_vm1, %v2811_v2, -inf }
 0xd67   :  { %v10362_v63 = vpop.f32.mrf.mxu1 }
 0xd68   :  { %v2826_v22 = vsel %vm129_vm1, %v2810_v54, -inf  ;;  %v2813_v5 = vmul.f32 0.35355338, %v10362_v63 }
 0xd69   :  { %2821 = vmax.xlane.f32.xlu0 %v2820_v53  ;;  %2827 = vmax.xlane.f32.xlu1 %v2826_v22  ;;  %v2797_v52 = vpop.f32.mrf.mxu1 }
 0xd6a   :  { %v2812_v6 = vmul.f32 0.35355338, %v2797_v52  ;;  %v2835_v56 = vsel %vm129_vm1, %v2813_v5, -inf }
 0xd6c   :  { %v2832_v48 = vsel %vm129_vm1, %v2812_v6, -inf }
 0xd6d   :  { %2830 = vmax.xlane.f32.xlu0 %v2829_v51  ;;  %2833 = vmax.xlane.f32.xlu1 %v2832_v48 }
 0xd71   :  { %2836 = vmax.xlane.f32.xlu0 %v2835_v56 }
 0xd7e   :  { %3087 = vrot.lane.b32.xlu1 %v11984_v24, %s11758_s20 }
 0xd87   :  { %3089 = vrot.lane.b32.xlu0 %v11978_v20, %s11758_s20 }
 0xde8   :  { %v2819_v7 = vpop.xlane.xlu1 %2818 }
 0xde9   :  { %v2839_v59 = vsub.f32 %v2807_v1, %v2819_v7 }
 0xdea   :  { %v2816_v43 = vpop.xlane.xlu0 %2815 }
 0xdeb   :  { %v2848_v11 = vmul.f32 1.442695, %v2839_v59  ;;  %v2838_v58 = vsub.f32 %v2806_v50, %v2816_v43 }
 0xded   :  { %11231 = vpow2.f32 %v2848_v11  ;;  %v2846_v12 = vmul.f32 1.442695, %v2838_v58 }
 0xdee   :  { %v2825_v3 = vpop.xlane.xlu0 %2824 }
 0xdef   :  { %11233 = vpow2.f32 %v2846_v12  ;;  %v2841_v46 = vsub.f32 %v2809_v61, %v2825_v3 }
 0xdf1   :  { %v2852_v1 = vmul.f32 1.442695, %v2841_v46 }
 0xdf2   :  { %v2822_v26 = vpop.xlane.xlu0 %2821  ;;  %v2828_v25 = vpop.xlane.xlu1 %2827 }
 0xdf3   :  { %v2840_v10 = vsub.f32 %v2808_v47, %v2822_v26  ;;  %v2842_v57 = vsub.f32 %v2810_v54, %v2828_v25 }
 0xdf5   :  { %v2850_v23 = vmul.f32 1.442695, %v2840_v10  ;;  %v2854_v62 = vmul.f32 1.442695, %v2842_v57 }
 0xdf6   :  { %v2831_v14 = vpop.xlane.xlu0 %2830  ;;  %v2834_v45 = vpop.xlane.xlu1 %2833 }
 0xdf7   :  { %v2843_v18 = vsub.f32 %v2811_v2, %v2831_v14  ;;  %11235 = vpow2.f32 %v2850_v23  ;;  %v2844_v49 = vsub.f32 %v2812_v6, %v2834_v45 }
 0xdf8   :  { %11237 = vpow2.f32 %v2852_v1 }
 0xdf9   :  { %v2856_v19 = vmul.f32 1.442695, %v2843_v18  ;;  %11239 = vpow2.f32 %v2854_v62  ;;  %v2858_v30 = vmul.f32 1.442695, %v2844_v49 }
 0xdfa   :  { %v12925_v13 = vpop.eup %11231  ;;  %v2837_v50 = vpop.xlane.xlu0 %2836 }
 0xdfb   :  { %v2865_v17 = vsel %vm129_vm1, %v12925_v13, 0.0  ;;  %v2845_v55 = vsub.f32 %v2813_v5, %v2837_v50  ;;  %11241 = vpow2.f32 %v2856_v19  ;;  %v3088_v56 = vpop.permute.xlu1 %3087 }
 0xdfc   :  { %v12929_v4 = vpop.eup %11233  ;;  %2866 = vadd.xlane.f32.xlu0 %v2865_v17  ;;  %11243 = vpow2.f32 %v2858_v30 }
 0xdfd   :  { %v2862_v21 = vsel %vm129_vm1, %v12929_v4, 0.0  ;;  %v2860_v60 = vmul.f32 1.442695, %v2845_v55 }
 0xdfe   :  { %2863 = vadd.xlane.f32.xlu1 %v2862_v21  ;;  %v3090_v48 = vpop.permute.xlu0 %3089 }
 0xdff   :  { %11245 = vpow2.f32 %v2860_v60 }
 0xe04   :  { %v12937_v47 = vpop.eup %11235 }
 0xe05   :  { %v12939_v61 = vpop.eup %11237  ;;  %v2868_v44 = vsel %vm129_vm1, %v12937_v47, 0.0 }
 0xe06   :  { %v12943_v54 = vpop.eup %11239  ;;  %v2871_v63 = vsel %vm129_vm1, %v12939_v61, 0.0 }
 0xe07   :  { %v2874_v53 = vsel %vm129_vm1, %v12943_v54, 0.0 }
 0xe08   :  { %v12947_v2 = vpop.eup %11241 }
 0xe09   :  { %v12951_v22 = vpop.eup %11243  ;;  %v2877_v52 = vsel %vm129_vm1, %v12947_v2, 0.0 }
 0xe0a   :  { %v2880_v5 = vsel %vm129_vm1, %v12951_v22, 0.0 }
 0xe0c   :  { %v12955_v6 = vpop.eup %11245 }
 0xe0d   :  { %v2883_v51 = vsel %vm129_vm1, %v12955_v6, 0.0 }
 0xe0f   :  { %3083 = vrot.lane.b32.xlu1 %v11991_v28, %s11758_s20 }
 0xe12   :  { %3085 = vrot.lane.b32.xlu0 %v12021_v34, %s11758_s20 }
 0xe31   :  { %2869 = vadd.xlane.f32.xlu0 %v2868_v44 }
 0xe33   :  { %2872 = vadd.xlane.f32.xlu1 %v2871_v63 }
 0xe35   :  { %2875 = vadd.xlane.f32.xlu0 %v2874_v53 }
 0xe37   :  { %2878 = vadd.xlane.f32.xlu1 %v2877_v52 }
 0xe39   :  { %2881 = vadd.xlane.f32.xlu0 %v2880_v5 }
 0xe3b   :  { %2884 = vadd.xlane.f32.xlu1 %v2883_v51 }
 0xe4c   :  { %3079 = vrot.lane.b32.xlu1 %v11973_v9, %s11758_s20 }
 0xe4f   :  { %3081 = vrot.lane.b32.xlu0 %v12038_v37, %s11758_s20 }
 0xe50   :  { %3065 = vrot.lane.b32.xlu1 %v12038_v37, %s11773_s21 }
 0xe53   :  { %3063 = vrot.lane.b32.xlu0 %v11973_v9, %s11773_s21 }
 0xe54   :  { %3069 = vrot.lane.b32.xlu1 %v12021_v34, %s11773_s21 }
 0xe57   :  { %3067 = vrot.lane.b32.xlu0 %v11991_v28, %s11773_s21 }
 0xe58   :  { %3073 = vrot.lane.b32.xlu1 %v11978_v20, %s11773_s21 }
 0xe5b   :  { %3071 = vrot.lane.b32.xlu0 %v11984_v24, %s11773_s21 }
 0xe5c   :  { %3077 = vrot.lane.b32.xlu1 %v11994_v29, %s11773_s21 }
 0xe5f   :  { %3075 = vrot.lane.b32.xlu0 %v12004_v39, %s11773_s21 }
 0xe60   :  { %3342 = vrot.lane.b32.xlu1 %v11997_v31, %s11773_s21 }
 0xe63   :  { %3340 = vrot.lane.b32.xlu0 %v12007_v32, %s11773_s21 }
 0xe64   :  { %3338 = vrot.lane.b32.xlu1 %v12012_v33, %s11773_s21 }
 0xe67   :  { %3334 = vrot.lane.b32.xlu0 %v12029_v36, %s11773_s21 }
 0xe68   :  { %3336 = vrot.lane.b32.xlu1 %v12024_v35, %s11773_s21 }
 0xe6b   :  { %3330 = vrot.lane.b32.xlu0 %v12046_v41, %s11773_s21 }
 0xe6c   :  { %3332 = vrot.lane.b32.xlu1 %v12041_v38, %s11773_s21 }
 0xe6f   :  { %3519 = vrot.lane.b32.xlu0 %v11994_v29, %s11755_s11 }
 0xe70   :  { %3328 = vrot.lane.b32.xlu1 %v12055_v42, %s11773_s21 }
 0xe74   :  { %3517 = vrot.lane.b32.xlu1 %v12004_v39, %s11755_s11 }
 0xe85   :  { %v2867_v7 = vpop.xlane.xlu0 %2866 }
 0xe86   :  { %11247 = vrcp.f32 %v2867_v7 }
 0xe87   :  { %v2864_v59 = vpop.xlane.xlu1 %2863 }
 0xe88   :  { %11249 = vrcp.f32 %v2864_v59 }
 0xe8b   :  { %v3084_v17 = vpop.permute.xlu1 %3083 }
 0xe93   :  { %v11248_v43 = vpop.eup %11247 }
 0xe94   :  { %v2895_v12 = vmul.f32 %v11248_v43, %v12925_v13  ;;  %v3086_v13 = vpop.permute.xlu0 %3085 }
 0xe95   :  { %v11250_v11 = vpop.eup %11249 }
 0xe96   :  { %v2894_v58 = vmul.f32 %v11250_v11, %v12929_v4 }
 0xe98   :  { %10379 = vmatprep.mubr.msk.f32.mxu0 %vm129_vm1, %v2894_v58 }
 0xe99   :  { %10380 = vmatmul.mubr.msk.f32.vlgmr.msra.gmra.mxu0 %vm129_vm1, %v2895_v12 }
 0xe9a   :  { %10392 = vmatpush3.xpose.msk.msra.mxu0 %vm554_vm2, %v12899_v15 }
 0xe9b   :  { %10393 = vmatprep.subr.msk.mxu0 %vm554_vm2, %v12923_v16 }
 0xe9e   :  { %10394 = vmatpush3.xpose.msk.msra.mxu0 %vm554_vm2, %v12923_v16 }
 0xe9f   :  { %10395 = vmatprep.subr.msk.mxu0 %vm554_vm2, %v3090_v48 }
 0xea2   :  { %10396 = vmatpush3.xpose.msk.msra.mxu0 %vm554_vm2, %v3090_v48 }
 0xea3   :  { %10397 = vmatprep.subr.msk.mxu0 %vm554_vm2, %v3088_v56 }
 0xea6   :  { %10398 = vmatpush3.xpose.msk.msra.mxu0 %vm554_vm2, %v3088_v56 }
 0xea7   :  { %10399 = vmatprep.subr.msk.mxu0 %vm554_vm2, %v3086_v13 }
 0xeaa   :  { %10400 = vmatpush3.xpose.msk.msra.mxu0 %vm554_vm2, %v3086_v13 }
 0xeab   :  { %10401 = vmatprep.subr.msk.mxu0 %vm554_vm2, %v3084_v17 }
 0xeae   :  { %10402 = vmatpush3.xpose.msk.msra.mxu0 %vm554_vm2, %v3084_v17 }
 0xeba   :  { %v2870_v15 = vpop.xlane.xlu0 %2869 }
 0xebb   :  { %11251 = vrcp.f32 %v2870_v15 }
 0xebc   :  { %v2873_v16 = vpop.xlane.xlu1 %2872 }
 0xebd   :  { %11253 = vrcp.f32 %v2873_v16 }
 0xebe   :  { %v2876_v4 = vpop.xlane.xlu0 %2875 }
 0xebf   :  { %11255 = vrcp.f32 %v2876_v4 }
 0xec0   :  { %v2879_v21 = vpop.xlane.xlu1 %2878 }
 0xec1   :  { %11257 = vrcp.f32 %v2879_v21 }
 0xec2   :  { %v2882_v3 = vpop.xlane.xlu0 %2881 }
 0xec3   :  { %11259 = vrcp.f32 %v2882_v3 }
 0xec4   :  { %v2885_v26 = vpop.xlane.xlu1 %2884 }
 0xec5   :  { %11261 = vrcp.f32 %v2885_v26 }
 0xec6   :  { %v3082_v25 = vpop.permute.xlu0 %3081 }
 0xec7   :  { %10403 = vmatprep.subr.msk.mxu0 %vm554_vm2, %v3082_v25 }
 0xec8   :  { %v11252_v10 = vpop.eup %11251  ;;  %10404 = vmatpush3.xpose.msk.msra.mxu0 %vm554_vm2, %v3082_v25  ;;  %v3080_v14 = vpop.permute.xlu1 %3079 }
 0xec9   :  { %10405 = vmatprep.subr.msk.mxu0 %vm554_vm2, %v3080_v14  ;;  %v2896_v46 = vmul.f32 %v11252_v10, %v12937_v47 }
 0xeca   :  { %v11254_v23 = vpop.eup %11253  ;;  %v3064_v57 = vpop.permute.xlu0 %3063 }
 0xecb   :  { %10382 = vmatprep.mubr.msk.f32.mxu0 %vm129_vm1, %v2896_v46  ;;  %v2897_v45 = vmul.f32 %v11254_v23, %v12939_v61 }
 0xecc   :  { %v11256_v1 = vpop.eup %11255  ;;  %10406 = vmatpush3.xpose.msk.msra.mxu0 %vm554_vm2, %v3080_v14  ;;  %v3066_v18 = vpop.permute.xlu1 %3065 }
 0xecd   :  { %10383 = vmatmul.mubr.msk.f32.gmra.mxu0 %vm129_vm1, %v2897_v45  ;;  %v2898_v50 = vmul.f32 %v11256_v1, %v12943_v54 }
 0xece   :  { %v11258_v62 = vpop.eup %11257  ;;  %v3068_v49 = vpop.permute.xlu0 %3067 }
 0xecf   :  { %10385 = vmatprep.mubr.msk.f32.mxu0 %vm129_vm1, %v2898_v50  ;;  %v2899_v19 = vmul.f32 %v11258_v62, %v12947_v2 }
 0xed0   :  { %v11260_v55 = vpop.eup %11259  ;;  %v3070_v30 = vpop.permute.xlu1 %3069 }
 0xed1   :  { %10386 = vmatmul.mubr.msk.f32.gmra.mxu0 %vm129_vm1, %v2899_v19  ;;  %v2900_v60 = vmul.f32 %v11260_v55, %v12951_v22 }
 0xed2   :  { %v11262_v47 = vpop.eup %11261  ;;  %v3072_v61 = vpop.permute.xlu0 %3071 }
 0xed3   :  { %10388 = vmatprep.mubr.msk.f32.mxu0 %vm129_vm1, %v2900_v60  ;;  %v2901_v44 = vmul.f32 %v11262_v47, %v12955_v6 }
 0xed4   :  { %v3074_v63 = vpop.permute.xlu1 %3073 }
 0xed5   :  { %10389 = vmatmul.mubr.msk.f32.gmra.mxu0 %vm129_vm1, %v2901_v44 }
 0xed6   :  { %v3076_v54 = vpop.permute.xlu0 %3075  ;;  %10407 = vmatprep.mubr.msk.f32.mxu0 %vm554_vm2, %v3064_v57 }
 0xed8   :  { %v3078_v53 = vpop.permute.xlu1 %3077 }
 0xed9   :  { %10408 = vmatmul.mubr.msk.f32.vlgmr.msra.gmra.mxu0 %vm554_vm2, %v3066_v18 }
 0xeda   :  { %10410 = vmatprep.mubr.msk.f32.mxu0 %vm554_vm2, %v3068_v49  ;;  %v3341_v2 = vpop.permute.xlu0 %3340 }
 0xedc   :  { %v3343_v52 = vpop.permute.xlu1 %3342 }
 0xedd   :  { %10411 = vmatmul.mubr.msk.f32.gmra.mxu0 %vm554_vm2, %v3070_v30  ;;  %10419 = vmatprep.subr.mxu1 %v3343_v52 }
 0xede   :  { %10413 = vmatprep.mubr.msk.f32.mxu0 %vm554_vm2, %v3072_v61  ;;  %10420 = vmatpush3.msra.mxu1 %v3343_v52  ;;  %v3335_v6 = vpop.permute.xlu0 %3334 }
 0xedf   :  { %10421 = vmatprep.subr.mxu1 %v3341_v2 }
 0xee0   :  { %10422 = vmatpush3.msra.mxu1 %v3341_v2  ;;  %v3339_v22 = vpop.permute.xlu1 %3338 }
 0xee1   :  { %10414 = vmatmul.mubr.msk.f32.gmra.mxu0 %vm554_vm2, %v3074_v63  ;;  %10423 = vmatprep.subr.mxu1 %v3339_v22 }
 0xee2   :  { %10416 = vmatprep.mubr.msk.f32.mxu0 %vm554_vm2, %v3076_v54  ;;  %10424 = vmatpush3.msra.mxu1 %v3339_v22  ;;  %v3331_v51 = vpop.permute.xlu0 %3330 }
 0xee4   :  { %v3337_v5 = vpop.permute.xlu1 %3336 }
 0xee5   :  { %10417 = vmatmul.mubr.msk.f32.gmra.mxu0 %vm554_vm2, %v3078_v53  ;;  %10425 = vmatprep.subr.mxu1 %v3337_v5 }
 0xee6   :  { %10426 = vmatpush3.msra.mxu1 %v3337_v5  ;;  %v13043_v7 = vpop.permute.xlu0 %3519 }
 0xee7   :  { %10427 = vmatprep.subr.mxu1 %v3335_v6 }
 0xee8   :  { %10428 = vmatpush3.msra.mxu1 %v3335_v6  ;;  %v3333_v48 = vpop.permute.xlu1 %3332 }
 0xee9   :  { %10429 = vmatprep.subr.mxu1 %v3333_v48 }
 0xeea   :  { %10430 = vmatpush3.msra.mxu1 %v3333_v48 }
 0xeeb   :  { %10431 = vmatprep.subr.mxu1 %v3331_v51 }
 0xeec   :  { %10432 = vmatpush3.msra.mxu1 %v3331_v51  ;;  %v3329_v56 = vpop.permute.xlu1 %3328 }
 0xeed   :  { %10433 = vmatprep.subr.mxu1 %v3329_v56 }
 0xeee   :  { %10434 = vmatpush3.msra.mxu1 %v3329_v56 }
 0xeef   :  { %10447 = vmatprep.subr.msk.mxu1 %vm554_vm2, %v13043_v7 }
 0xef0   :  { %v13067_v63 = vpop.permute.xlu1 %3517 }
 0xf59   :  { %v10381_v59 = vpop.f32.mrf.mxu0 }
 0xf5a   :  { %3056 = vst.msk [vmem:[#allocation2 + $0x148] sm:$0xff] %vm554_vm2, %v10381_v59 }
 0xf5b   :  { %v3016_v43 = vpop.f32.mrf.mxu0 }
 0xf5c   :  { %3055 = vst.msk [vmem:[#allocation2 + $0x140] sm:$0xff] %vm554_vm2, %v3016_v43 }
 0xf8d   :  { %v10384_v11 = vpop.f32.mrf.mxu0 }
 0xf8e   :  { %3058 = vst.msk [vmem:[#allocation2 + $0x158] sm:$0xff] %vm554_vm2, %v10384_v11 }
 0xf8f   :  { %v3026_v58 = vpop.f32.mrf.mxu0 }
 0xf90   :  { %3057 = vst.msk [vmem:[#allocation2 + $0x150] sm:$0xff] %vm554_vm2, %v3026_v58 }
 0xf91   :  { %v10387_v12 = vpop.f32.mrf.mxu0 }
 0xf92   :  { %3060 = vst.msk [vmem:[#allocation2 + $0x168] sm:$0xff] %vm554_vm2, %v10387_v12 }
 0xf93   :  { %v3036_v13 = vpop.f32.mrf.mxu0 }
 0xf94   :  { %3059 = vst.msk [vmem:[#allocation2 + $0x160] sm:$0xff] %vm554_vm2, %v3036_v13 }
 0xf95   :  { %v10390_v17 = vpop.f32.mrf.mxu0 }
 0xf96   :  { %3062 = vst.msk [vmem:[#allocation2 + $0x178] sm:$0xff] %vm554_vm2, %v10390_v17 }
 0xf97   :  { %v3046_v15 = vpop.f32.mrf.mxu0 }
 0xf98   :  { %3061 = vst.msk [vmem:[#allocation2 + $0x170] sm:$0xff] %vm554_vm2, %v3046_v15 }
 0xf99   :  { %v10409_v16 = vpop.f32.mrf.mxu0 }
 0xf9a   :  { %v3233_v4 = vmul.f32 0.35355338, %v10409_v16 }
 0xf9b   :  { %v3193_v21 = vpop.f32.mrf.mxu0 }
 0xf9c   :  { %v3232_v3 = vmul.f32 0.35355338, %v3193_v21  ;;  %v3243_v26 = vsel %vm129_vm1, %v3233_v4, -inf }
 0xf9d   :  { %3244 = vmax.xlane.f32.xlu1 %v3243_v26  ;;  %v10412_v25 = vpop.f32.mrf.mxu0 }
 0xf9e   :  { %v3235_v10 = vmul.f32 0.35355338, %v10412_v25  ;;  %v3240_v14 = vsel %vm129_vm1, %v3232_v3, -inf }
 0xf9f   :  { %3241 = vmax.xlane.f32.xlu0 %v3240_v14  ;;  %v3203_v46 = vpop.f32.mrf.mxu0 }
 0xfa0   :  { %v3234_v57 = vmul.f32 0.35355338, %v3203_v46  ;;  %v3249_v45 = vsel %vm129_vm1, %v3235_v10, -inf }
 0xfa1   :  { %v10415_v23 = vpop.f32.mrf.mxu0 }
 0xfa2   :  { %v3237_v62 = vmul.f32 0.35355338, %v10415_v23  ;;  %v3246_v49 = vsel %vm129_vm1, %v3234_v57, -inf }
 0xfa3   :  { %3250 = vmax.xlane.f32.xlu0 %v3249_v45  ;;  %v3213_v1 = vpop.f32.mrf.mxu0 }
 0xfa4   :  { %v3236_v18 = vmul.f32 0.35355338, %v3213_v1  ;;  %v3255_v47 = vsel %vm129_vm1, %v3237_v62, -inf }
 0xfa5   :  { %v10418_v50 = vpop.f32.mrf.mxu0 }
 0xfa6   :  { %v3252_v19 = vsel %vm129_vm1, %v3236_v18, -inf  ;;  %v3239_v60 = vmul.f32 0.35355338, %v10418_v50 }
 0xfa7   :  { %3247 = vmax.xlane.f32.xlu0 %v3246_v49  ;;  %3253 = vmax.xlane.f32.xlu1 %v3252_v19  ;;  %v3223_v55 = vpop.f32.mrf.mxu0 }
 0xfa8   :  { %v3238_v30 = vmul.f32 0.35355338, %v3223_v55  ;;  %v3261_v44 = vsel %vm129_vm1, %v3239_v60, -inf }
 0xfaa   :  { %v3258_v61 = vsel %vm129_vm1, %v3238_v30, -inf }
 0xfab   :  { %3256 = vmax.xlane.f32.xlu0 %v3255_v47  ;;  %3259 = vmax.xlane.f32.xlu1 %v3258_v61 }
 0xfaf   :  { %3262 = vmax.xlane.f32.xlu0 %v3261_v44 }
 0xfbc   :  { %3513 = vrot.lane.b32.xlu1 %v11984_v24, %s11755_s11 }
 0xfc5   :  { %3515 = vrot.lane.b32.xlu0 %v11978_v20, %s11755_s11 }
0x1026   :  { %v3245_v54 = vpop.xlane.xlu1 %3244 }
0x1027   :  { %v3265_v53 = vsub.f32 %v3233_v4, %v3245_v54 }
0x1028   :  { %v3242_v2 = vpop.xlane.xlu0 %3241 }
0x1029   :  { %v3274_v52 = vmul.f32 1.442695, %v3265_v53  ;;  %v3264_v22 = vsub.f32 %v3232_v3, %v3242_v2 }
0x102b   :  { %11263 = vpow2.f32 %v3274_v52  ;;  %v3272_v6 = vmul.f32 1.442695, %v3264_v22 }
0x102c   :  { %v3251_v59 = vpop.xlane.xlu0 %3250 }
0x102d   :  { %11265 = vpow2.f32 %v3272_v6  ;;  %v3267_v13 = vsub.f32 %v3235_v10, %v3251_v59 }
0x102f   :  { %v3278_v4 = vmul.f32 1.442695, %v3267_v13 }
0x1030   :  { %v3248_v43 = vpop.xlane.xlu0 %3247  ;;  %v3254_v11 = vpop.xlane.xlu1 %3253 }
0x1031   :  { %v3266_v58 = vsub.f32 %v3234_v57, %v3248_v43  ;;  %v3268_v15 = vsub.f32 %v3236_v18, %v3254_v11 }
0x1033   :  { %v3276_v17 = vmul.f32 1.442695, %v3266_v58  ;;  %v3280_v26 = vmul.f32 1.442695, %v3268_v15 }
0x1034   :  { %v3257_v12 = vpop.xlane.xlu0 %3256  ;;  %v3260_v16 = vpop.xlane.xlu1 %3259 }
0x1035   :  { %v3269_v21 = vsub.f32 %v3237_v62, %v3257_v12  ;;  %11267 = vpow2.f32 %v3276_v17  ;;  %v3270_v25 = vsub.f32 %v3238_v30, %v3260_v16 }
0x1036   :  { %11269 = vpow2.f32 %v3278_v4 }
0x1037   :  { %v3282_v14 = vmul.f32 1.442695, %v3269_v21  ;;  %11271 = vpow2.f32 %v3280_v26  ;;  %v3284_v23 = vmul.f32 1.442695, %v3270_v25  ;;  %v11585_v26 = vld [vmem:[#allocation6 + $0x38] sm:$0xff] }
0x1038   :  { %v13069_v5 = vpop.eup %11263  ;;  %v3263_v3 = vpop.xlane.xlu0 %3262 }
0x1039   :  { %v3291_v51 = vsel %vm129_vm1, %v13069_v5, 0.0  ;;  %v3271_v46 = vsub.f32 %v3239_v60, %v3263_v3  ;;  %11273 = vpow2.f32 %v3282_v14  ;;  %v11586_v14 = vld [vmem:[#allocation6 + $0x30] sm:$0xff] }
0x103a   :  { %v13073_v48 = vpop.eup %11265  ;;  %3292 = vadd.xlane.f32.xlu0 %v3291_v51  ;;  %11275 = vpow2.f32 %v3284_v23  ;;  %v11587_v23 = vld [vmem:[#allocation6 + $0x28] sm:$0xff] }
0x103b   :  { %v3288_v56 = vsel %vm129_vm1, %v13073_v48, 0.0  ;;  %v3286_v45 = vmul.f32 1.442695, %v3271_v46 }
0x103c   :  { %3289 = vadd.xlane.f32.xlu1 %v3288_v56 }
0x103d   :  { %11277 = vpow2.f32 %v3286_v45  ;;  %v11588_v45 = vld [vmem:[#allocation6 + $0x20] sm:$0xff] }
0x1042   :  { %v13081_v57 = vpop.eup %11267 }
0x1043   :  { %v13083_v10 = vpop.eup %11269  ;;  %v3294_v1 = vsel %vm129_vm1, %v13081_v57, 0.0 }
0x1044   :  { %v13087_v18 = vpop.eup %11271  ;;  %v3297_v50 = vsel %vm129_vm1, %v13083_v10, 0.0 }
0x1045   :  { %v3300_v49 = vsel %vm129_vm1, %v13087_v18, 0.0 }
0x1046   :  { %v13091_v62 = vpop.eup %11273 }
0x1047   :  { %v13095_v19 = vpop.eup %11275  ;;  %v3303_v55 = vsel %vm129_vm1, %v13091_v62, 0.0 }
0x1048   :  { %v3306_v60 = vsel %vm129_vm1, %v13095_v19, 0.0 }
0x104a   :  { %v13099_v30 = vpop.eup %11277 }
0x104b   :  { %v3309_v47 = vsel %vm129_vm1, %v13099_v30, 0.0 }
0x104d   :  { %3509 = vrot.lane.b32.xlu1 %v11991_v28, %s11755_s11 }
0x1050   :  { %3511 = vrot.lane.b32.xlu0 %v12021_v34, %s11755_s11 }
0x106f   :  { %3295 = vadd.xlane.f32.xlu0 %v3294_v1 }
0x1071   :  { %3298 = vadd.xlane.f32.xlu1 %v3297_v50  ;;  %v11591_v50 = vld [vmem:[#allocation6 + $0x8] sm:$0xff] }
0x1073   :  { %3301 = vadd.xlane.f32.xlu0 %v3300_v49  ;;  %v11593_v49 = vld [vmem:[#allocation8 + $0x78] sm:$0xff] }
0x1075   :  { %3304 = vadd.xlane.f32.xlu1 %v3303_v55 }
0x1077   :  { %3307 = vadd.xlane.f32.xlu0 %v3306_v60 }
0x1079   :  { %3310 = vadd.xlane.f32.xlu1 %v3309_v47 }
0x108a   :  { %3505 = vrot.lane.b32.xlu1 %v11973_v9, %s11755_s11 }
0x108d   :  { %3507 = vrot.lane.b32.xlu0 %v12038_v37, %s11755_s11 }
0x108e   :  { %3491 = vrot.lane.b32.xlu1 %v12038_v37, %s11774_s22  ;;  %v3516_v37 = vpop.permute.xlu0 %3515 }
0x1091   :  { %3489 = vrot.lane.b32.xlu0 %v11973_v9, %s11774_s22  ;;  %v3514_v9 = vpop.permute.xlu1 %3513 }
0x1092   :  { %3495 = vrot.lane.b32.xlu1 %v12021_v34, %s11774_s22 }
0x1095   :  { %3493 = vrot.lane.b32.xlu0 %v11991_v28, %s11774_s22 }
0x1096   :  { %3499 = vrot.lane.b32.xlu1 %v11978_v20, %s11774_s22 }
0x1099   :  { %3497 = vrot.lane.b32.xlu0 %v11984_v24, %s11774_s22 }
0x109a   :  { %3503 = vrot.lane.b32.xlu1 %v11994_v29, %s11774_s22 }
0x109d   :  { %3501 = vrot.lane.b32.xlu0 %v12004_v39, %s11774_s22 }
0x10c3   :  { %v3293_v61 = vpop.xlane.xlu0 %3292 }
0x10c4   :  { %11279 = vrcp.f32 %v3293_v61 }
0x10c5   :  { %v3290_v34 = vpop.xlane.xlu1 %3289 }
0x10c6   :  { %11281 = vrcp.f32 %v3290_v34 }
0x10c7   :  { %v3512_v24 = vpop.permute.xlu0 %3511 }
0x10c9   :  { %v3510_v29 = vpop.permute.xlu1 %3509 }
0x10d1   :  { %v11280_v44 = vpop.eup %11279 }
0x10d2   :  { %v3321_v20 = vmul.f32 %v11280_v44, %v13069_v5 }
0x10d3   :  { %v11282_v28 = vpop.eup %11281 }
0x10d4   :  { %v3320_v54 = vmul.f32 %v11282_v28, %v13073_v48 }
0x10d6   :  { %10435 = vmatprep.mubr.msk.f32.mxu1 %vm129_vm1, %v3320_v54 }
0x10d7   :  { %10436 = vmatmul.mubr.msk.f32.vlgmr.msra.gmra.mxu1 %vm129_vm1, %v3321_v20 }
0x10d8   :  { %10448 = vmatpush3.xpose.msk.msra.mxu1 %vm554_vm2, %v13043_v7 }
0x10d9   :  { %10449 = vmatprep.subr.msk.mxu1 %vm554_vm2, %v13067_v63 }
0x10dc   :  { %10450 = vmatpush3.xpose.msk.msra.mxu1 %vm554_vm2, %v13067_v63 }
0x10dd   :  { %10451 = vmatprep.subr.msk.mxu1 %vm554_vm2, %v3516_v37 }
0x10e0   :  { %10452 = vmatpush3.xpose.msk.msra.mxu1 %vm554_vm2, %v3516_v37 }
0x10e1   :  { %10453 = vmatprep.subr.msk.mxu1 %vm554_vm2, %v3514_v9 }
0x10e4   :  { %10454 = vmatpush3.xpose.msk.msra.mxu1 %vm554_vm2, %v3514_v9 }
0x10e5   :  { %10455 = vmatprep.subr.msk.mxu1 %vm554_vm2, %v3512_v24 }
0x10e8   :  { %10456 = vmatpush3.xpose.msk.msra.mxu1 %vm554_vm2, %v3512_v24 }
0x10e9   :  { %10457 = vmatprep.subr.msk.mxu1 %vm554_vm2, %v3510_v29 }
0x10ec   :  { %10458 = vmatpush3.xpose.msk.msra.mxu1 %vm554_vm2, %v3510_v29 }
0x10f8   :  { %v3296_v39 = vpop.xlane.xlu0 %3295 }
0x10f9   :  { %11283 = vrcp.f32 %v3296_v39 }
0x10fa   :  { %v3299_v7 = vpop.xlane.xlu1 %3298 }
0x10fb   :  { %11285 = vrcp.f32 %v3299_v7 }
0x10fc   :  { %v3302_v63 = vpop.xlane.xlu0 %3301 }
0x10fd   :  { %11287 = vrcp.f32 %v3302_v63 }
0x10fe   :  { %v3305_v53 = vpop.xlane.xlu1 %3304 }
0x10ff   :  { %11289 = vrcp.f32 %v3305_v53 }
0x1100   :  { %v3308_v2 = vpop.xlane.xlu0 %3307 }
0x1101   :  { %11291 = vrcp.f32 %v3308_v2 }
0x1102   :  { %v3311_v52 = vpop.xlane.xlu1 %3310 }
0x1103   :  { %11293 = vrcp.f32 %v3311_v52 }
0x1104   :  { %v3508_v22 = vpop.permute.xlu0 %3507 }
0x1105   :  { %10459 = vmatprep.subr.msk.mxu1 %vm554_vm2, %v3508_v22 }
0x1106   :  { %v11284_v6 = vpop.eup %11283  ;;  %10460 = vmatpush3.xpose.msk.msra.mxu1 %vm554_vm2, %v3508_v22  ;;  %v3506_v5 = vpop.permute.xlu1 %3505 }
0x1107   :  { %10461 = vmatprep.subr.msk.mxu1 %vm554_vm2, %v3506_v5  ;;  %v3322_v51 = vmul.f32 %v11284_v6, %v13081_v57 }
0x1108   :  { %v11286_v48 = vpop.eup %11285  ;;  %v3490_v58 = vpop.permute.xlu0 %3489 }
0x1109   :  { %10438 = vmatprep.mubr.msk.f32.mxu1 %vm129_vm1, %v3322_v51  ;;  %v3323_v56 = vmul.f32 %v11286_v48, %v13083_v10  ;;  %v11589_v10 = vld [vmem:[#allocation6 + $0x18] sm:$0xff] }
0x110a   :  { %v11288_v59 = vpop.eup %11287  ;;  %10462 = vmatpush3.xpose.msk.msra.mxu1 %vm554_vm2, %v3506_v5  ;;  %v3492_v16 = vpop.permute.xlu1 %3491 }
0x110b   :  { %10439 = vmatmul.mubr.msk.f32.gmra.mxu1 %vm129_vm1, %v3323_v56  ;;  %v3324_v43 = vmul.f32 %v11288_v59, %v13087_v18  ;;  %10531 = vmatprep.subr.mxu1 %v11760_v0  ;;  %v11590_v18 = vld [vmem:[#allocation6 + $0x10] sm:$0xff] }
0x110c   :  { %v11290_v11 = vpop.eup %11289  ;;  %v3494_v21 = vpop.permute.xlu0 %3493 }
0x110d   :  { %10441 = vmatprep.mubr.msk.f32.mxu1 %vm129_vm1, %v3324_v43  ;;  %v3325_v12 = vmul.f32 %v11290_v11, %v13091_v62  ;;  %v11592_v62 = vld [vmem:[#allocation6] sm:$0xff] }
0x110e   :  { %v11292_v13 = vpop.eup %11291  ;;  %v3496_v3 = vpop.permute.xlu1 %3495 }
0x110f   :  { %10442 = vmatmul.mubr.msk.f32.gmra.mxu1 %vm129_vm1, %v3325_v12  ;;  %v3326_v17 = vmul.f32 %v11292_v13, %v13095_v19 }
0x1110   :  { %v11294_v15 = vpop.eup %11293  ;;  %v3498_v25 = vpop.permute.xlu0 %3497 }
0x1111   :  { %10444 = vmatprep.mubr.msk.f32.mxu1 %vm129_vm1, %v3326_v17  ;;  %v3327_v4 = vmul.f32 %v11294_v15, %v13099_v30 }
0x1112   :  { %v3500_v46 = vpop.permute.xlu1 %3499 }
0x1113   :  { %10445 = vmatmul.mubr.msk.f32.gmra.mxu1 %vm129_vm1, %v3327_v4 }
0x1114   :  { %10463 = vmatprep.mubr.msk.f32.mxu1 %vm554_vm2, %v3490_v58  ;;  %v3502_v57 = vpop.permute.xlu0 %3501 }
0x1116   :  { %v3504_v1 = vpop.permute.xlu1 %3503 }
0x1117   :  { %10464 = vmatmul.mubr.msk.f32.vlgmr.msra.gmra.mxu1 %vm554_vm2, %v3492_v16 }
0x1118   :  { %10466 = vmatprep.mubr.msk.f32.mxu1 %vm554_vm2, %v3494_v21  ;;  %10532 = vmatpush3.msra.mxu1 %v11585_v26 }
0x1119   :  { %10533 = vmatprep.subr.mxu1 %v11760_v0 }
0x111a   :  { %10534 = vmatpush3.msra.mxu1 %v11586_v14 }
0x111b   :  { %10467 = vmatmul.mubr.msk.f32.gmra.mxu1 %vm554_vm2, %v3496_v3  ;;  %10535 = vmatprep.subr.mxu1 %v11760_v0 }
0x111c   :  { %10469 = vmatprep.mubr.msk.f32.mxu1 %vm554_vm2, %v3498_v25  ;;  %10536 = vmatpush3.msra.mxu1 %v11587_v23 }
0x111d   :  { %10537 = vmatprep.subr.mxu1 %v11760_v0 }
0x111e   :  { %10538 = vmatpush3.msra.mxu1 %v11588_v45 }
0x111f   :  { %10470 = vmatmul.mubr.msk.f32.gmra.mxu1 %vm554_vm2, %v3500_v46  ;;  %10539 = vmatprep.subr.mxu1 %v11760_v0 }
0x1120   :  { %10472 = vmatprep.mubr.msk.f32.mxu1 %vm554_vm2, %v3502_v57  ;;  %10540 = vmatpush3.msra.mxu1 %v11589_v10 }
0x1121   :  { %10541 = vmatprep.subr.mxu1 %v11760_v0 }
0x1122   :  { %10542 = vmatpush3.msra.mxu1 %v11590_v18 }
0x1123   :  { %10473 = vmatmul.mubr.msk.f32.gmra.mxu1 %vm554_vm2, %v3504_v1  ;;  %10543 = vmatprep.subr.mxu1 %v11760_v0 }
0x1124   :  { %10544 = vmatpush3.msra.mxu1 %v11591_v50  ;;  %10547 = vmatprep.mubr.msk.f32.mxu1 %vm11761_vm0, %v11760_v0 }
0x1125   :  { %10545 = vmatprep.subr.mxu1 %v11760_v0 }
0x1126   :  { %10546 = vmatpush3.msra.mxu1 %v11592_v62 }
0x1127   :  { %4896 = vmatprep.subr.mxu1 %v11593_v49 }
0x1197   :  { %v10437_v19 = vpop.f32.mrf.mxu1 }
0x1198   :  { %3482 = vst.msk [vmem:[#allocation2 + $0x188] sm:$0xff] %vm554_vm2, %v10437_v19 }
0x1199   :  { %v3442_v55 = vpop.f32.mrf.mxu1 }
0x119a   :  { %3481 = vst.msk [vmem:[#allocation2 + $0x180] sm:$0xff] %vm554_vm2, %v3442_v55 }
0x11cb   :  { %v10440_v30 = vpop.f32.mrf.mxu1 }
0x11cc   :  { %3484 = vst.msk [vmem:[#allocation2 + $0x198] sm:$0xff] %vm554_vm2, %v10440_v30 }
0x11cd   :  { %v3452_v60 = vpop.f32.mrf.mxu1 }
0x11ce   :  { %3483 = vst.msk [vmem:[#allocation2 + $0x190] sm:$0xff] %vm554_vm2, %v3452_v60 }
0x11cf   :  { %v10443_v47 = vpop.f32.mrf.mxu1 }
0x11d0   :  { %3486 = vst.msk [vmem:[#allocation2 + $0x1a8] sm:$0xff] %vm554_vm2, %v10443_v47 }
0x11d1   :  { %v3462_v37 = vpop.f32.mrf.mxu1 }
0x11d2   :  { %3485 = vst.msk [vmem:[#allocation2 + $0x1a0] sm:$0xff] %vm554_vm2, %v3462_v37 }
0x11d3   :  { %v10446_v9 = vpop.f32.mrf.mxu1 }
0x11d4   :  { %3488 = vst.msk [vmem:[#allocation2 + $0x1b8] sm:$0xff] %vm554_vm2, %v10446_v9 }
0x11d5   :  { %v3472_v61 = vpop.f32.mrf.mxu1 }
0x11d6   :  { %3487 = vst.msk [vmem:[#allocation2 + $0x1b0] sm:$0xff] %vm554_vm2, %v3472_v61 }
0x11d7   :  { %v10465_v34 = vpop.f32.mrf.mxu1 }
0x11d8   :  { %v3659_v44 = vmul.f32 0.35355338, %v10465_v34 }
0x11d9   :  { %v3619_v28 = vpop.f32.mrf.mxu1 }
0x11da   :  { %v3658_v54 = vmul.f32 0.35355338, %v3619_v28  ;;  %v3669_v20 = vsel %vm129_vm1, %v3659_v44, -inf }
0x11db   :  { %3670 = vmax.xlane.f32.xlu1 %v3669_v20  ;;  %v10468_v24 = vpop.f32.mrf.mxu1  ;;  %v3948_v20 = vld [vmem:[#allocation2 + $0x1] ss:$8 sm:$0xf0] }
0x11dc   :  { %v3666_v29 = vsel %vm129_vm1, %v3658_v54, -inf  ;;  %v3661_v53 = vmul.f32 0.35355338, %v10468_v24  ;;  %v3947_v24 = vld [vmem:[#allocation2 + $0x1] ss:$8 sm:$0xf] }
0x11dd   :  { %3667 = vmax.xlane.f32.xlu0 %v3666_v29  ;;  %v3629_v39 = vpop.f32.mrf.mxu1  ;;  %v3949_v29 = vor.u32 %v3948_v20, %v3947_v24  ;;  %v4088_v24 = vld [vmem:[#allocation2 + $0xc5] ss:$8 sm:$0xf0] }
0x11de   :  { %v3660_v7 = vmul.f32 0.35355338, %v3629_v39  ;;  %v3675_v5 = vsel %vm129_vm1, %v3661_v53, -inf  ;;  %v3980_v39 = vld [vmem:[#allocation2 + $0x2] ss:$8 sm:$0xf0] }
0x11df   :  { %v10471_v63 = vpop.f32.mrf.mxu1 }
0x11e0   :  { %v3672_v2 = vsel %vm129_vm1, %v3660_v7, -inf  ;;  %v3663_v6 = vmul.f32 0.35355338, %v10471_v63 }
0x11e1   :  { %3673 = vmax.xlane.f32.xlu0 %v3672_v2  ;;  %v3639_v52 = vpop.f32.mrf.mxu1  ;;  %v4012_v2 = vld [vmem:[#allocation2 + $0x3] ss:$8 sm:$0xf0] }
0x11e2   :  { %v3662_v22 = vmul.f32 0.35355338, %v3639_v52  ;;  %v3681_v59 = vsel %vm129_vm1, %v3663_v6, -inf }
0x11e3   :  { %v10474_v48 = vpop.f32.mrf.mxu1 }
0x11e4   :  { %v3678_v51 = vsel %vm129_vm1, %v3662_v22, -inf  ;;  %v3665_v56 = vmul.f32 0.35355338, %v10474_v48  ;;  %v4044_v48 = vld [vmem:[#allocation2 + $0x4] ss:$8 sm:$0xf0] }
0x11e5   :  { %3676 = vmax.xlane.f32.xlu0 %v3675_v5  ;;  %3679 = vmax.xlane.f32.xlu1 %v3678_v51  ;;  %v3649_v11 = vpop.f32.mrf.mxu1 }
0x11e6   :  { %v3687_v43 = vsel %vm129_vm1, %v3665_v56, -inf  ;;  %v13200_v58 = vmul.f32 0.35355338, %v3649_v11  ;;  %v4048_v11 = vld [vmem:[#allocation2 + $0x44] ss:$8 sm:$0xf0] }
0x11e8   :  { %v3684_v12 = vsel %vm129_vm1, %v13200_v58, -inf }
0x11e9   :  { %3682 = vmax.xlane.f32.xlu0 %v3681_v59 }
0x11ed   :  { %3688 = vmax.xlane.f32.xlu0 %v3687_v43 }
0x11f6   :  { %3768 = vrot.lane.b32.xlu1 %v11997_v31, %s11774_s22 }
0x11fa   :  { %3764 = vrot.lane.b32.xlu1 %v12012_v33, %s11774_s22 }
0x1203   :  { %3766 = vrot.lane.b32.xlu0 %v12007_v32, %s11774_s22 }
0x1207   :  { %3760 = vrot.lane.b32.xlu0 %v12029_v36, %s11774_s22 }
0x121e   :  { %3685 = vmax.xlane.f32.xlu1 %v3684_v12 }
0x122f   :  { %3762 = vrot.lane.b32.xlu1 %v12024_v35, %s11774_s22 }
0x1233   :  { %3758 = vrot.lane.b32.xlu1 %v12041_v38, %s11774_s22 }
0x1264   :  { %v3671_v31 = vpop.xlane.xlu1 %3670 }
0x1265   :  { %v3691_v33 = vsub.f32 %v3659_v44, %v3671_v31  ;;  %v3960_v31 = vld [vmem:[#allocation2 + $0xc1] ss:$8 sm:$0xf0] }
0x1266   :  { %v3668_v13 = vpop.xlane.xlu0 %3667 }
0x1267   :  { %v3700_v32 = vmul.f32 1.442695, %v3691_v33  ;;  %v3690_v17 = vsub.f32 %v3658_v54, %v3668_v13  ;;  %v3959_v33 = vld [vmem:[#allocation2 + $0xc1] ss:$8 sm:$0xf] }
0x1268   :  { %v3961_v13 = vor.u32 %v3960_v31, %v3959_v33  ;;  %v3987_v31 = vld [vmem:[#allocation2 + $0x82] ss:$8 sm:$0xf] }
0x1269   :  { %11295 = vpow2.f32 %v3700_v32  ;;  %v3698_v36 = vmul.f32 1.442695, %v3690_v17  ;;  %v4080_v32 = vld [vmem:[#allocation2 + $0x45] ss:$8 sm:$0xf0] }
0x126a   :  { %v3674_v15 = vpop.xlane.xlu0 %3673 }
0x126b   :  { %11297 = vpow2.f32 %v3698_v36  ;;  %v3692_v16 = vsub.f32 %v3660_v7, %v3674_v15  ;;  %v3979_v7 = vld [vmem:[#allocation2 + $0x2] ss:$8 sm:$0xf]  ;;  %v4079_v36 = vld [vmem:[#allocation2 + $0x45] ss:$8 sm:$0xf] }
0x126c   :  { %v3981_v63 = vor.u32 %v3980_v39, %v3979_v7  ;;  %v4015_v39 = vld [vmem:[#allocation2 + $0x43] ss:$8 sm:$0xf] }
0x126d   :  { %v3702_v4 = vmul.f32 1.442695, %v3692_v16  ;;  %v4081_v16 = vor.u32 %v4080_v32, %v4079_v36  ;;  %v4152_v32 = vld [vmem:[#allocation2 + $0xc7] ss:$8 sm:$0xf0] }
0x126e   :  { %v3677_v21 = vpop.xlane.xlu0 %3676  ;;  %v3680_v3 = vpop.xlane.xlu1 %3679  ;;  %v4108_v36 = vld [vmem:[#allocation2 + $0x6] ss:$8 sm:$0xf0] }
0x126f   :  { %11299 = vpow2.f32 %v3702_v4  ;;  %v3693_v26 = vsub.f32 %v3661_v53, %v3677_v21  ;;  %v3694_v25 = vsub.f32 %v3662_v22, %v3680_v3  ;;  %v4011_v22 = vld [vmem:[#allocation2 + $0x3] ss:$8 sm:$0xf]  ;;  %v3992_v4 = vld [vmem:[#allocation2 + $0xc2] ss:$8 sm:$0xf0] }
0x1270   :  { %v4013_v5 = vor.u32 %v4012_v2, %v4011_v22  ;;  %v3991_v21 = vld [vmem:[#allocation2 + $0xc2] ss:$8 sm:$0xf]  ;;  %v3956_v2 = vld [vmem:[#allocation2 + $0x81] ss:$8 sm:$0xf0] }
0x1271   :  { %v3704_v35 = vmul.f32 1.442695, %v3693_v26  ;;  %v3706_v14 = vmul.f32 1.442695, %v3694_v25  ;;  %v3993_v3 = vor.u32 %v3992_v4, %v3991_v21 }
0x1272   :  { %v3683_v46 = vpop.xlane.xlu0 %3682  ;;  %v3769_v38 = vpop.permute.xlu1 %3768  ;;  %v4112_v26 = vld [vmem:[#allocation2 + $0x46] ss:$8 sm:$0xf0]  ;;  %v3955_v22 = vld [vmem:[#allocation2 + $0x81] ss:$8 sm:$0xf] }
0x1273   :  { %11301 = vpow2.f32 %v3704_v35  ;;  %v3695_v23 = vsub.f32 %v3663_v6, %v3683_v46  ;;  %10475 = vmatprep.subr.mxu0 %v3769_v38  ;;  %v4111_v25 = vld [vmem:[#allocation2 + $0x46] ss:$8 sm:$0xf]  ;;  %v4023_v46 = vld [vmem:[#allocation2 + $0xc3] ss:$8 sm:$0xf] }
0x1274   :  { %11303 = vpow2.f32 %v3706_v14  ;;  %10476 = vmatpush3.msra.mxu0 %v3769_v38  ;;  %v4113_v35 = vor.u32 %v4112_v26, %v4111_v25  ;;  %v4024_v14 = vld [vmem:[#allocation2 + $0xc3] ss:$8 sm:$0xf0]  ;;  %v4063_v25 = vld [vmem:[#allocation2 + $0x144] ss:$8 sm:$0xf] }
0x1275   :  { %v3708_v45 = vmul.f32 1.442695, %v3695_v23  ;;  %v4025_v38 = vor.u32 %v4024_v14, %v4023_v46  ;;  %v4144_v23 = vld [vmem:[#allocation2 + $0x47] ss:$8 sm:$0xf0] }
0x1276   :  { %v13208_v57 = vpop.eup %11295  ;;  %v3689_v10 = vpop.xlane.xlu0 %3688  ;;  %v4020_v26 = vld [vmem:[#allocation2 + $0x83] ss:$8 sm:$0xf0] }
0x1277   :  { %11305 = vpow2.f32 %v3708_v45  ;;  %v3697_v1 = vsub.f32 %v3665_v56, %v3689_v10  ;;  %v3717_v18 = vsel %vm129_vm1, %v13208_v57, 0.0  ;;  %v3765_v30 = vpop.permute.xlu1 %3764  ;;  %v4043_v56 = vld [vmem:[#allocation2 + $0x4] ss:$8 sm:$0xf] }
0x1278   :  { %v13212_v50 = vpop.eup %11297  ;;  %3718 = vadd.xlane.f32.xlu0 %v3717_v18  ;;  %v4045_v59 = vor.u32 %v4044_v48, %v4043_v56  ;;  %v4143_v45 = vld [vmem:[#allocation2 + $0x47] ss:$8 sm:$0xf]  ;;  %v3952_v18 = vld [vmem:[#allocation2 + $0x41] ss:$8 sm:$0xf0] }
0x1279   :  { %v3712_v62 = vmul.f32 1.442695, %v3697_v1  ;;  %v3714_v49 = vsel %vm129_vm1, %v13212_v50, 0.0  ;;  %v4145_v10 = vor.u32 %v4144_v23, %v4143_v45  ;;  %v4056_v1 = vld [vmem:[#allocation2 + $0xc4] ss:$8 sm:$0xf0] }
0x127a   :  { %v3767_v19 = vpop.permute.xlu0 %3766  ;;  %3715 = vadd.xlane.f32.xlu1 %v3714_v49  ;;  %v3951_v49 = vld [vmem:[#allocation2 + $0x41] ss:$8 sm:$0xf]  ;;  %v4076_v48 = vld [vmem:[#allocation2 + $0x5] ss:$8 sm:$0xf0] }
0x127b   :  { %11307 = vpow2.f32 %v3712_v62  ;;  %10477 = vmatprep.subr.mxu0 %v3767_v19  ;;  %v4055_v62 = vld [vmem:[#allocation2 + $0xc4] ss:$8 sm:$0xf]  ;;  %v4075_v56 = vld [vmem:[#allocation2 + $0x5] ss:$8 sm:$0xf] }
0x127c   :  { %v13216_v55 = vpop.eup %11299  ;;  %10478 = vmatpush3.msra.mxu0 %v3767_v19  ;;  %v4057_v19 = vor.u32 %v4056_v1, %v4055_v62  ;;  %v4140_v23 = vld [vmem:[#allocation2 + $0x7] ss:$8 sm:$0xf0]  ;;  %v4095_v45 = vld [vmem:[#allocation2 + $0x145] ss:$8 sm:$0xf] }
0x127d   :  { %10479 = vmatprep.subr.mxu0 %v3765_v30  ;;  %v3720_v60 = vsel %vm129_vm1, %v13216_v55, 0.0  ;;  %v4128_v62 = vld [vmem:[#allocation2 + $0x146] ss:$8 sm:$0xf0] }
0x127e   :  { %3721 = vadd.xlane.f32.xlu1 %v3720_v60  ;;  %10480 = vmatpush3.msra.mxu0 %v3765_v30  ;;  %v3953_v30 = vor.u32 %v3952_v18, %v3951_v49  ;;  %v3968_v60 = vld [vmem:[#allocation2 + $0x141] ss:$8 sm:$0xf0]  ;;  %v4052_v49 = vld [vmem:[#allocation2 + $0x84] ss:$8 sm:$0xf0] }
0x1280   :  { %v13220_v47 = vpop.eup %11301 }
0x1281   :  { %v13222_v37 = vpop.eup %11303  ;;  %v3723_v9 = vsel %vm129_vm1, %v13220_v47, 0.0 }
0x1282   :  { %3724 = vadd.xlane.f32.xlu0 %v3723_v9  ;;  %v3726_v61 = vsel %vm129_vm1, %v13222_v37, 0.0  ;;  %v3984_v9 = vld [vmem:[#allocation2 + $0x42] ss:$8 sm:$0xf0] }
0x1283   :  { %3727 = vadd.xlane.f32.xlu1 %v3726_v61  ;;  %v3967_v61 = vld [vmem:[#allocation2 + $0x141] ss:$8 sm:$0xf] }
0x1284   :  { %v13228_v34 = vpop.eup %11305 }
0x1285   :  { %v3729_v44 = vsel %vm129_vm1, %v13228_v34, 0.0 }
0x1286   :  { %3730 = vadd.xlane.f32.xlu0 %v3729_v44  ;;  %v3983_v44 = vld [vmem:[#allocation2 + $0x42] ss:$8 sm:$0xf] }
0x1287   :  { %v3985_v20 = vor.u32 %v3984_v9, %v3983_v44  ;;  %v3964_v44 = vld [vmem:[#allocation2 + $0x101] ss:$8 sm:$0xf0] }
0x1288   :  { %v13232_v28 = vpop.eup %11307 }
0x1289   :  { %v3735_v54 = vsel %vm129_vm1, %v13232_v28, 0.0 }
0x128a   :  { %3736 = vadd.xlane.f32.xlu0 %v3735_v54  ;;  %v3969_v54 = vor.u32 %v3968_v60, %v3967_v61  ;;  %v4160_v61 = vld [vmem:[#allocation2 + $0x147] ss:$8 sm:$0xf0] }
0x12a0   :  { %3756 = vrot.lane.b32.xlu0 %v12046_v41, %s11774_s22  ;;  %v3761_v41 = vpop.permute.xlu0 %3760 }
0x12a4   :  { %4178 = vrot.lane.b32.xlu0 %v3949_v29, %s11755_s11  ;;  %v4016_v29 = vld [vmem:[#allocation2 + $0x43] ss:$8 sm:$0xf0] }
0x12a7   :  { %v3686_v53 = vpop.xlane.xlu1 %3685 }
0x12a8   :  { %v3696_v52 = vsub.f32 %v13200_v58, %v3686_v53  ;;  %4210 = vrot.lane.b32.xlu0 %v3981_v63, %s11758_s20  ;;  %v4047_v58 = vld [vmem:[#allocation2 + $0x44] ss:$8 sm:$0xf]  ;;  %v4017_v63 = vor.u32 %v4016_v29, %v4015_v39  ;;  %v4000_v53 = vld [vmem:[#allocation2 + $0x142] ss:$8 sm:$0xf0] }
0x12a9   :  { %v4049_v12 = vor.u32 %v4048_v11, %v4047_v58  ;;  %v4032_v11 = vld [vmem:[#allocation2 + $0x143] ss:$8 sm:$0xf0]  ;;  %v3988_v58 = vld [vmem:[#allocation2 + $0x82] ss:$8 sm:$0xf0] }
0x12aa   :  { %v3710_v6 = vmul.f32 1.442695, %v3696_v52  ;;  %v3999_v52 = vld [vmem:[#allocation2 + $0x142] ss:$8 sm:$0xf] }
0x12ab   :  { %v3763_v51 = vpop.permute.xlu1 %3762  ;;  %v4084_v39 = vld [vmem:[#allocation2 + $0x85] ss:$8 sm:$0xf0] }
0x12ac   :  { %11309 = vpow2.f32 %v3710_v6  ;;  %4242 = vrot.lane.b32.xlu0 %v4013_v5, %s11771_s19  ;;  %10481 = vmatprep.subr.mxu0 %v3763_v51  ;;  %v4001_v6 = vor.u32 %v4000_v53, %v3999_v52  ;;  %v3957_v5 = vor.u32 %v3956_v2, %v3955_v22  ;;  %v4132_v52 = vld [vmem:[#allocation2 + $0x186] ss:$8 sm:$0xf0]  ;;  %v3996_v22 = vld [vmem:[#allocation2 + $0x102] ss:$8 sm:$0xf0] }
0x12ad   :  { %10482 = vmatpush3.msra.mxu0 %v3763_v51  ;;  %v4120_v51 = vld [vmem:[#allocation2 + $0xc6] ss:$8 sm:$0xf0] }
0x12ae   :  { %10483 = vmatprep.subr.mxu0 %v3761_v41 }
0x12af   :  { %10484 = vmatpush3.msra.mxu0 %v3761_v41  ;;  %v3759_v43 = vpop.permute.xlu1 %3758  ;;  %v4119_v41 = vld [vmem:[#allocation2 + $0xc6] ss:$8 sm:$0xf] }
0x12b0   :  { %4274 = vrot.lane.b32.xlu0 %v4045_v59, %s11769_s17  ;;  %10485 = vmatprep.subr.mxu0 %v3759_v43  ;;  %v4121_v59 = vor.u32 %v4120_v51, %v4119_v41  ;;  %v4116_v41 = vld [vmem:[#allocation2 + $0x86] ss:$8 sm:$0xf0] }
0x12b1   :  { %10486 = vmatpush3.msra.mxu0 %v3759_v43  ;;  %v4077_v43 = vor.u32 %v4076_v48, %v4075_v56  ;;  %v4115_v56 = vld [vmem:[#allocation2 + $0x86] ss:$8 sm:$0xf] }
0x12b4   :  { %4276 = vrot.lane.b32.xlu0 %v4049_v12, %s11769_s17  ;;  %v4031_v12 = vld [vmem:[#allocation2 + $0x143] ss:$8 sm:$0xf] }
0x12b5   :  { %v4033_v33 = vor.u32 %v4032_v11, %v4031_v12  ;;  %v4028_v11 = vld [vmem:[#allocation2 + $0x103] ss:$8 sm:$0xf0] }
0x12b8   :  { %4184 = vrot.lane.b32.xlu0 %v3961_v13, %s11755_s11  ;;  %v3989_v13 = vor.u32 %v3988_v58, %v3987_v31  ;;  %v4027_v58 = vld [vmem:[#allocation2 + $0x103] ss:$8 sm:$0xf] }
0x12b9   :  { %v13245_v17 = vpop.eup %11309  ;;  %v4029_v12 = vor.u32 %v4028_v11, %v4027_v58 }
0x12ba   :  { %v3732_v15 = vsel %vm129_vm1, %v13245_v17, 0.0 }
0x12bb   :  { %3733 = vadd.xlane.f32.xlu1 %v3732_v15  ;;  %v4151_v15 = vld [vmem:[#allocation2 + $0xc7] ss:$8 sm:$0xf] }
0x12bc   :  { %4308 = vrot.lane.b32.xlu0 %v4081_v16, %s11767_s15  ;;  %v4107_v16 = vld [vmem:[#allocation2 + $0x6] ss:$8 sm:$0xf]  ;;  %v4153_v4 = vor.u32 %v4152_v32, %v4151_v15  ;;  %v4060_v15 = vld [vmem:[#allocation2 + $0x104] ss:$8 sm:$0xf0] }
0x12bd   :  { %v4109_v21 = vor.u32 %v4108_v36, %v4107_v16  ;;  %v4059_v16 = vld [vmem:[#allocation2 + $0x104] ss:$8 sm:$0xf] }
0x12c0   :  { %4216 = vrot.lane.b32.xlu0 %v3993_v3, %s11758_s20  ;;  %v4064_v3 = vld [vmem:[#allocation2 + $0x144] ss:$8 sm:$0xf0] }
0x12c1   :  { %v4065_v14 = vor.u32 %v4064_v3, %v4063_v25  ;;  %v3972_v3 = vld [vmem:[#allocation2 + $0x181] ss:$8 sm:$0xf0] }
0x12c2   :  { %v3971_v25 = vld [vmem:[#allocation2 + $0x181] ss:$8 sm:$0xf] }
0x12c4   :  { %4340 = vrot.lane.b32.xlu0 %v4113_v35, %s11765_s13  ;;  %v4019_v35 = vld [vmem:[#allocation2 + $0x83] ss:$8 sm:$0xf] }
0x12c5   :  { %v4021_v46 = vor.u32 %v4020_v26, %v4019_v35  ;;  %v3973_v35 = vor.u32 %v3972_v3, %v3971_v25 }
0x12c8   :  { %4248 = vrot.lane.b32.xlu0 %v4025_v38, %s11771_s19  ;;  %v4096_v38 = vld [vmem:[#allocation2 + $0x145] ss:$8 sm:$0xf0] }
0x12c9   :  { %v4097_v1 = vor.u32 %v4096_v38, %v4095_v45  ;;  %v4092_v38 = vld [vmem:[#allocation2 + $0x105] ss:$8 sm:$0xf0] }
0x12cc   :  { %4372 = vrot.lane.b32.xlu0 %v4145_v10, %s11763_s9  ;;  %3754 = vrot.lane.b32.xlu1 %v12055_v42, %s11774_s22  ;;  %v4087_v42 = vld [vmem:[#allocation2 + $0xc5] ss:$8 sm:$0xf]  ;;  %v4139_v10 = vld [vmem:[#allocation2 + $0x7] ss:$8 sm:$0xf] }
0x12cd   :  { %v4089_v7 = vor.u32 %v4088_v24, %v4087_v42  ;;  %v4141_v18 = vor.u32 %v4140_v23, %v4139_v10  ;;  %v4100_v42 = vld [vmem:[#allocation2 + $0x185] ss:$8 sm:$0xf0] }
0x12ce   :  { %v4091_v23 = vld [vmem:[#allocation2 + $0x105] ss:$8 sm:$0xf] }
0x12cf   :  { %v4093_v45 = vor.u32 %v4092_v38, %v4091_v23 }
0x12d0   :  { %4280 = vrot.lane.b32.xlu0 %v4057_v19, %s11769_s17  ;;  %4180 = vrot.lane.b32.xlu1 %v3953_v30, %s11755_s11  ;;  %v4127_v19 = vld [vmem:[#allocation2 + $0x146] ss:$8 sm:$0xf]  ;;  %v4051_v30 = vld [vmem:[#allocation2 + $0x84] ss:$8 sm:$0xf] }
0x12d1   :  { %v4129_v60 = vor.u32 %v4128_v62, %v4127_v19  ;;  %v4053_v9 = vor.u32 %v4052_v49, %v4051_v30  ;;  %v4124_v49 = vld [vmem:[#allocation2 + $0x106] ss:$8 sm:$0xf0] }
0x12d2   :  { %v13298_v19 = vld [vmem:[#allocation3 + $0x40] sm:$0xff] }
0x12d3   :  { %v4616_v30 = vsel %vm129_vm1, %v13298_v19, 0.0 }
0x12d4   :  { %4188 = vrot.lane.b32.xlu0 %v3969_v54, %s11755_s11  ;;  %4212 = vrot.lane.b32.xlu1 %v3985_v20, %s11758_s20  ;;  %v4159_v54 = vld [vmem:[#allocation2 + $0x147] ss:$8 sm:$0xf]  ;;  %v3963_v20 = vld [vmem:[#allocation2 + $0x101] ss:$8 sm:$0xf] }
0x12d5   :  { %v4161_v24 = vor.u32 %v4160_v61, %v4159_v54  ;;  %v3965_v29 = vor.u32 %v3964_v44, %v3963_v20  ;;  %v13307_v61 = vld [vmem:[#allocation3 + $0x50] sm:$0xff] }
0x12d6   :  { %v4619_v20 = vsel %vm129_vm1, %v13307_v61, 0.0 }
0x12d8   :  { %4312 = vrot.lane.b32.xlu0 %v4089_v7, %s11767_s15  ;;  %4244 = vrot.lane.b32.xlu1 %v4017_v63, %s11771_s19  ;;  %v4099_v7 = vld [vmem:[#allocation2 + $0x185] ss:$8 sm:$0xf] }
0x12d9   :  { %v4083_v63 = vld [vmem:[#allocation2 + $0x85] ss:$8 sm:$0xf]  ;;  %v4101_v53 = vor.u32 %v4100_v42, %v4099_v7 }
0x12da   :  { %v4085_v2 = vor.u32 %v4084_v39, %v4083_v63  ;;  %v4035_v63 = vld [vmem:[#allocation2 + $0x183] ss:$8 sm:$0xf] }
0x12dc   :  { %4220 = vrot.lane.b32.xlu0 %v4001_v6, %s11758_s20  ;;  %4182 = vrot.lane.b32.xlu1 %v3957_v5, %s11755_s11  ;;  %v4131_v6 = vld [vmem:[#allocation2 + $0x186] ss:$8 sm:$0xf]  ;;  %v3995_v5 = vld [vmem:[#allocation2 + $0x102] ss:$8 sm:$0xf] }
0x12dd   :  { %v4133_v51 = vor.u32 %v4132_v52, %v4131_v6  ;;  %v3997_v48 = vor.u32 %v3996_v22, %v3995_v5  ;;  %v4156_v6 = vld [vmem:[#allocation2 + $0x107] ss:$8 sm:$0xf0] }
0x12de   :  { %v13322_v5 = vld [vmem:[#allocation3 + $0x68] sm:$0xff] }
0x12e0   :  { %4344 = vrot.lane.b32.xlu0 %v4121_v59, %s11765_s13  ;;  %4306 = vrot.lane.b32.xlu1 %v4077_v43, %s11767_s15  ;;  %v4117_v59 = vor.u32 %v4116_v41, %v4115_v56  ;;  %v4155_v41 = vld [vmem:[#allocation2 + $0x107] ss:$8 sm:$0xf] }
0x12e1   :  { %v13327_v56 = vld [vmem:[#allocation3 + $0x70] sm:$0xff] }
0x12e2   :  { %v4627_v11 = vsel %vm129_vm1, %v13327_v56, 0.0 }
0x12e4   :  { %4252 = vrot.lane.b32.xlu0 %v4033_v33, %s11771_s19  ;;  %4214 = vrot.lane.b32.xlu1 %v3989_v13, %s11758_s20  ;;  %v4148_v33 = vld [vmem:[#allocation2 + $0x87] ss:$8 sm:$0xf0] }
0x12e5   :  { %v4147_v13 = vld [vmem:[#allocation2 + $0x87] ss:$8 sm:$0xf] }
0x12e6   :  { %v4149_v32 = vor.u32 %v4148_v33, %v4147_v13  ;;  %v13333_v33 = vld [vmem:[#allocation3 + $0x78] sm:$0xff] }
0x12e8   :  { %4376 = vrot.lane.b32.xlu0 %v4153_v4, %s11763_s9  ;;  %4338 = vrot.lane.b32.xlu1 %v4109_v21, %s11765_s13  ;;  %v4061_v4 = vor.u32 %v4060_v15, %v4059_v16  ;;  %v4067_v15 = vld [vmem:[#allocation2 + $0x184] ss:$8 sm:$0xf] }
0x12ec   :  { %4284 = vrot.lane.b32.xlu0 %v4065_v14, %s11769_s17  ;;  %4246 = vrot.lane.b32.xlu1 %v4021_v46, %s11771_s19 }
0x12f0   :  { %4316 = vrot.lane.b32.xlu0 %v4097_v1, %s11767_s15  ;;  %4370 = vrot.lane.b32.xlu1 %v4141_v18, %s11763_s9  ;;  %v4004_v1 = vld [vmem:[#allocation2 + $0x182] ss:$8 sm:$0xf0] }
0x12f1   :  { %v4003_v18 = vld [vmem:[#allocation2 + $0x182] ss:$8 sm:$0xf] }
0x12f2   :  { %v4005_v62 = vor.u32 %v4004_v1, %v4003_v18  ;;  %v11594_v1 = vld [vmem:[#allocation8 + $0x70] sm:$0xff] }
0x12f4   :  { %4348 = vrot.lane.b32.xlu0 %v4129_v60, %s11765_s13  ;;  %4278 = vrot.lane.b32.xlu1 %v4053_v9, %s11769_s17  ;;  %v4123_v9 = vld [vmem:[#allocation2 + $0x106] ss:$8 sm:$0xf] }
0x12f5   :  { %v4125_v54 = vor.u32 %v4124_v49, %v4123_v9  ;;  %v11596_v49 = vld [vmem:[#allocation8 + $0x60] sm:$0xff]  ;;  %v11598_v9 = vld [vmem:[#allocation8 + $0x50] sm:$0xff] }
0x12f8   :  { %4380 = vrot.lane.b32.xlu0 %v4161_v24, %s11763_s9  ;;  %4186 = vrot.lane.b32.xlu1 %v3965_v29, %s11755_s11  ;;  %v4036_v24 = vld [vmem:[#allocation2 + $0x183] ss:$8 sm:$0xf0] }
0x12f9   :  { %v13311_v29 = vld [vmem:[#allocation3 + $0x58] sm:$0xff]  ;;  %v4037_v52 = vor.u32 %v4036_v24, %v4035_v63  ;;  %v11602_v24 = vld [vmem:[#allocation8 + $0x30] sm:$0xff] }
0x12fa   :  { %v4621_v39 = vsel %vm129_vm1, %v13311_v29, 0.0  ;;  %v11605_v63 = vld [vmem:[#allocation8 + $0x18] sm:$0xff] }
0x12fc   :  { %4318 = vrot.lane.b32.xlu0 %v4101_v53, %s11767_s15  ;;  %4310 = vrot.lane.b32.xlu1 %v4085_v2, %s11767_s15  ;;  %v13318_v53 = vld [vmem:[#allocation3 + $0x60] sm:$0xff] }
0x12fd   :  { %v4623_v22 = vsel %vm129_vm1, %v13318_v53, 0.0 }
0x1300   :  { %4350 = vrot.lane.b32.xlu0 %v4133_v51, %s11765_s13  ;;  %4218 = vrot.lane.b32.xlu1 %v3997_v48, %s11758_s20  ;;  %v4625_v48 = vsel %vm129_vm1, %v13322_v5, 0.0 }
0x1301   :  { %v13283_v31 = vpop.xlane.xlu0 %3718 }
0x1303   :  { %v3716_v43 = vpop.xlane.xlu1 %3715 }
0x1304   :  { %11311 = vrcp.f32 %v3716_v43  ;;  %4342 = vrot.lane.b32.xlu1 %v4117_v59, %s11765_s13  ;;  %v4157_v43 = vor.u32 %v4156_v6, %v4155_v41  ;;  %v119_v41 = vld [vmem:[#allocation9 + $0x38] sm:$0xff] }
0x1305   :  { %11313 = vrcp.f32 %v13283_v31 }
0x1308   :  { %4250 = vrot.lane.b32.xlu1 %v4029_v12, %s11771_s19  ;;  %v4068_v12 = vld [vmem:[#allocation2 + $0x184] ss:$8 sm:$0xf0] }
0x130b   :  { %v13286_v36 = vpop.xlane.xlu0 %3724 }
0x130c   :  { %4374 = vrot.lane.b32.xlu1 %v4149_v32, %s11763_s9  ;;  %v4629_v32 = vsel %vm129_vm1, %v13333_v33, 0.0 }
0x130f   :  { %v13289_v21 = vpop.xlane.xlu0 %3730 }
0x1310   :  { %4282 = vrot.lane.b32.xlu1 %v4061_v4, %s11769_s17  ;;  %v4069_v4 = vor.u32 %v4068_v12, %v4067_v15  ;;  %v117_v15 = vld [vmem:[#allocation9 + $0x28] sm:$0xff] }
0x1311   :  { %v11312_v26 = vpop.eup %11311 }
0x1312   :  { %v3746_v14 = vmul.f32 %v11312_v26, %v13212_v50  ;;  %v13300_v50 = vld [vmem:[#allocation3 + $0x48] sm:$0xff]  ;;  %v11314_v6 = vpop.eup %11313 }
0x1313   :  { %v13293_v46 = vpop.xlane.xlu0 %3736  ;;  %v4617_v60 = vsel %vm129_vm1, %v13300_v50, 0.0 }
0x1314   :  { %4190 = vrot.lane.b32.xlu1 %v3973_v35, %s11755_s11  ;;  %10491 = vmatprep.mubr.msk.f32.mxu0 %vm129_vm1, %v3746_v14  ;;  %v4618_v44 = vadd.f32 %v4617_v60, %v4616_v30  ;;  %v11597_v60 = vld [vmem:[#allocation8 + $0x58] sm:$0xff] }
0x1316   :  { %v4620_v42 = vadd.f32 %v4619_v20, %v4618_v44  ;;  %v11599_v44 = vld [vmem:[#allocation8 + $0x48] sm:$0xff]  ;;  %v11601_v20 = vld [vmem:[#allocation8 + $0x38] sm:$0xff] }
0x1317   :  { %v3757_v10 = vpop.permute.xlu0 %3756 }
0x1318   :  { %4314 = vrot.lane.b32.xlu1 %v4093_v45, %s11767_s15  ;;  %10487 = vmatprep.subr.mxu0 %v3757_v10  ;;  %v4622_v2 = vadd.f32 %v4621_v39, %v4620_v42  ;;  %v3722_v45 = vpop.xlane.xlu1 %3721  ;;  %v11603_v42 = vld [vmem:[#allocation8 + $0x28] sm:$0xff]  ;;  %v11604_v39 = vld [vmem:[#allocation8 + $0x20] sm:$0xff] }
0x1319   :  { %10488 = vmatpush3.msra.mxu0 %v3757_v10  ;;  %11315 = vrcp.f32 %v3722_v45  ;;  %v114_v45 = vld [vmem:[#allocation9 + $0x10] sm:$0xff] }
0x131a   :  { %v4624_v51 = vadd.f32 %v4623_v22, %v4622_v2  ;;  %11317 = vrcp.f32 %v13286_v36  ;;  %v11606_v2 = vld [vmem:[#allocation8 + $0x10] sm:$0xff]  ;;  %v11607_v22 = vld [vmem:[#allocation8 + $0x8] sm:$0xff] }
0x131b   :  { %v13316_v7 = vpop.permute.xlu0 %4178 }
0x131c   :  { %4222 = vrot.lane.b32.xlu1 %v4005_v62, %s11758_s20  ;;  %v4626_v59 = vadd.f32 %v4625_v48, %v4624_v51  ;;  %v11595_v62 = vld [vmem:[#allocation8 + $0x68] sm:$0xff]  ;;  %v3728_v30 = vpop.xlane.xlu1 %3727  ;;  %v11608_v51 = vld [vmem:[#allocation8] sm:$0xff] }
0x131d   :  { %11319 = vrcp.f32 %v3728_v30 }
0x131e   :  { %v4628_v13 = vadd.f32 %v4627_v11, %v4626_v59  ;;  %11321 = vrcp.f32 %v13289_v21  ;;  %v3747_v59 = vmul.f32 %v11314_v6, %v13208_v57  ;;  %v118_v11 = vld [vmem:[#allocation9 + $0x30] sm:$0xff] }
0x131f   :  { %v13331_v58 = vpop.permute.xlu0 %4210  ;;  %11323 = vrcp.f32 %v13293_v46 }
0x1320   :  { %4346 = vrot.lane.b32.xlu1 %v4125_v54, %s11765_s13  ;;  %v4630_v16 = vadd.f32 %v4629_v32, %v4628_v13  ;;  %v11600_v54 = vld [vmem:[#allocation8 + $0x40] sm:$0xff] }
0x1322   :  { %v4631_v3 = vrot.slane %v4630_v16, 4 }
0x1323   :  { %v13339_v26 = vpop.permute.xlu0 %4242 }
0x1324   :  { %4254 = vrot.lane.b32.xlu1 %v4037_v52, %s11771_s19  ;;  %v4632_v25 = vadd.f32 %v4631_v3, %v4630_v16 }
0x1326   :  { %v4633_v35 = vrot.slane %v4632_v25, 2  ;;  %v11316_v21 = vpop.eup %11315 }
0x1327   :  { %v13341_v38 = vpop.permute.xlu0 %4274  ;;  %v3748_v46 = vmul.f32 %v11316_v21, %v13216_v55  ;;  %v116_v55 = vld [vmem:[#allocation9 + $0x20] sm:$0xff] }
0x1328   :  { %4378 = vrot.lane.b32.xlu1 %v4157_v43, %s11763_s9  ;;  %v4634_v14 = vadd.f32 %v4633_v35, %v4632_v25  ;;  %v11318_v43 = vpop.eup %11317  ;;  %v115_v25 = vld [vmem:[#allocation9 + $0x18] sm:$0xff] }
0x1329   :  { %v3749_v16 = vmul.f32 %v11318_v43, %v13220_v47 }
0x132a   :  { %v4635_v23 = vrot.slane %v4634_v14, 1  ;;  %v11320_v12 = vpop.eup %11319 }
0x132b   :  { %v13346_v18 = vpop.permute.xlu0 %4276  ;;  %v11322_v57 = vpop.eup %11321 }
0x132c   :  { %4286 = vrot.lane.b32.xlu1 %v4069_v4, %s11769_s17  ;;  %v4636_v10 = vadd.f32 %v4635_v23, %v4634_v14  ;;  %v3750_v4 = vmul.f32 %v11320_v12, %v13222_v37  ;;  %v11324_v35 = vpop.eup %11323  ;;  %v3751_v23 = vmul.f32 %v11322_v57, %v13228_v34  ;;  %v11611_v57 = vld [vmem:[#allocation6 + $0x28] sm:$0xff] }
0x132e   :  { %10548 = vmatmul.mubr.msk.f32.vlgmr.msra.gmra.mxu1 %vm129_vm1, %v4636_v10 }
0x132f   :  { %4897 = vmatpush1.msra.mxu1 %v11594_v1  ;;  %4944 = vmatprep.mubr.f32.mxu1 %v11760_v0  ;;  %v13349_v31 = vpop.permute.xlu0 %4184  ;;  %v113_v1 = vld [vmem:[#allocation9 + $0x8] sm:$0xff] }
0x1330   :  { %4898 = vmatprep.subr.mxu1 %v11595_v62  ;;  %v3753_v62 = vmul.f32 %v11324_v35, %v13232_v28  ;;  %v11614_v35 = vld [vmem:[#allocation6 + $0x10] sm:$0xff] }
0x1331   :  { %4899 = vmatpush1.msra.mxu1 %v11596_v49  ;;  %v112_v49 = vld [vmem:[#allocation9] sm:$0xff] }
0x1332   :  { %4900 = vmatprep.subr.mxu1 %v11597_v60 }
0x1333   :  { %4901 = vmatpush1.msra.mxu1 %v11598_v9  ;;  %v13353_v52 = vpop.permute.xlu0 %4308 }
0x1334   :  { %4902 = vmatprep.subr.mxu1 %v11599_v44  ;;  %v3919_v44 = vld [vmem:[#allocation2 + $0x40] ss:$8 sm:$0xf] }
0x1335   :  { %4903 = vmatpush1.msra.mxu1 %v11600_v54 }
0x1336   :  { %4904 = vmatprep.subr.mxu1 %v11601_v20 }
0x1337   :  { %4905 = vmatpush1.msra.mxu1 %v11602_v24  ;;  %v13357_v13 = vpop.permute.xlu0 %4216 }
0x1338   :  { %4906 = vmatprep.subr.mxu1 %v11603_v42  ;;  %v3916_v42 = vld [vmem:[#allocation2] ss:$8 sm:$0xf0] }
0x1339   :  { %4907 = vmatpush1.msra.mxu1 %v11604_v39 }
0x133a   :  { %4908 = vmatprep.subr.mxu1 %v11605_v63 }
0x133b   :  { %4909 = vmatpush1.msra.mxu1 %v11606_v2  ;;  %v4341_v14 = vpop.permute.xlu0 %4340 }
0x133c   :  { %4910 = vmatprep.subr.mxu1 %v11607_v22 }
0x133d   :  { %4911 = vmatpush1.msra.mxu1 %v11608_v51 }
0x133f   :  { %v13370_v34 = vpop.permute.xlu0 %4248 }
0x1343   :  { %v4373_v9 = vpop.permute.xlu0 %4372 }
0x1344   :  { %v3734_v36 = vpop.xlane.xlu1 %3733 }
0x1345   :  { %11325 = vrcp.f32 %v3734_v36  ;;  %v3915_v36 = vld [vmem:[#allocation2] ss:$8 sm:$0xf] }
0x1346   :  { %v3917_v22 = vor.u32 %v3916_v42, %v3915_v36 }
0x1347   :  { %v13381_v63 = vpop.permute.xlu0 %4280 }
0x1348   :  { %v3755_v48 = vpop.permute.xlu1 %3754  ;;  %v4394_v51 = vsel %vm554_vm2, %v3917_v22, %v13316_v7 }
0x1349   :  { %10489 = vmatprep.subr.mxu0 %v3755_v48  ;;  %v4403_v21 = vsel %vm4402_vm3, %v4394_v51, %v13331_v58 }
0x134a   :  { %10490 = vmatpush3.msra.mxu0 %v3755_v48 }
0x134b   :  { %10492 = vmatmul.mubr.msk.f32.vlgmr.msra.gmra.mxu0 %vm129_vm1, %v3747_v59  ;;  %10503 = vmatprep.subr.mxu0 %v119_v41  ;;  %v4412_v59 = vsel %vm4411_vm4, %v4403_v21, %v13339_v26  ;;  %v13393_v43 = vpop.permute.xlu0 %4188 }
0x134c   :  { %10494 = vmatprep.mubr.msk.f32.mxu0 %vm129_vm1, %v3748_v46  ;;  %v4181_v32 = vpop.permute.xlu1 %4180  ;;  %10504 = vmatpush3.msra.mxu0 %v119_v41 }
0x134d   :  { %10505 = vmatprep.subr.mxu0 %v118_v11 }
0x134e   :  { %10506 = vmatpush3.msra.mxu0 %v118_v11 }
0x134f   :  { %10495 = vmatmul.mubr.msk.f32.gmra.mxu0 %vm129_vm1, %v3749_v16  ;;  %10507 = vmatprep.subr.mxu0 %v117_v15  ;;  %v4313_v26 = vpop.permute.xlu0 %4312 }
0x1350   :  { %10497 = vmatprep.mubr.msk.f32.mxu0 %vm129_vm1, %v3750_v4  ;;  %v4213_v3 = vpop.permute.xlu1 %4212  ;;  %10508 = vmatpush3.msra.mxu0 %v117_v15  ;;  %v11609_v15 = vld [vmem:[#allocation6 + $0x38] sm:$0xff] }
0x1351   :  { %10509 = vmatprep.subr.mxu0 %v116_v55 }
0x1352   :  { %v11326_v47 = vpop.eup %11325  ;;  %10510 = vmatpush3.msra.mxu0 %v116_v55  ;;  %v11612_v55 = vld [vmem:[#allocation6 + $0x20] sm:$0xff] }
0x1353   :  { %10498 = vmatmul.mubr.msk.f32.gmra.mxu0 %vm129_vm1, %v3751_v23  ;;  %v3752_v37 = vmul.f32 %v11326_v47, %v13245_v17  ;;  %10511 = vmatprep.subr.mxu0 %v115_v25  ;;  %v3920_v17 = vld [vmem:[#allocation2 + $0x40] ss:$8 sm:$0xf0]  ;;  %v13408_v4 = vpop.permute.xlu0 %4220 }
0x1354   :  { %v4245_v10 = vpop.permute.xlu1 %4244  ;;  %10512 = vmatpush3.msra.mxu0 %v115_v25  ;;  %v3921_v28 = vor.u32 %v3920_v17, %v3919_v44  ;;  %v11613_v25 = vld [vmem:[#allocation6 + $0x18] sm:$0xff]  ;;  %v11615_v47 = vld [vmem:[#allocation6 + $0x8] sm:$0xff] }
0x1355   :  { %10500 = vmatprep.mubr.msk.f32.mxu0 %vm129_vm1, %v3752_v37  ;;  %10513 = vmatprep.subr.mxu0 %v114_v45  ;;  %v11616_v37 = vld [vmem:[#allocation6] sm:$0xff] }
0x1356   :  { %10514 = vmatpush3.msra.mxu0 %v114_v45  ;;  %v4395_v54 = vsel %vm554_vm2, %v3921_v28, %v4181_v32  ;;  %v3924_v45 = vld [vmem:[#allocation2 + $0x80] ss:$8 sm:$0xf0] }
0x1357   :  { %10501 = vmatmul.mubr.msk.f32.gmra.mxu0 %vm129_vm1, %v3753_v62  ;;  %10515 = vmatprep.subr.mxu0 %v113_v1  ;;  %v4404_v24 = vsel %vm4402_vm3, %v4395_v54, %v4213_v3 }
0x1358   :  { %v13373_v30 = vpop.permute.xlu1 %4182  ;;  %10516 = vmatpush3.msra.mxu0 %v113_v1  ;;  %v4413_v39 = vsel %vm4411_vm4, %v4404_v24, %v4245_v10  ;;  %v3928_v10 = vld [vmem:[#allocation2 + $0xc0] ss:$8 sm:$0xf0] }
0x1359   :  { %10517 = vmatprep.subr.mxu0 %v112_v49  ;;  %v4422_v6 = vsel %vm4420_vm5, %v4413_v39, %v13346_v18  ;;  %v4421_v18 = vsel %vm4420_vm5, %v4412_v59, %v13341_v38  ;;  %v11610_v38 = vld [vmem:[#allocation6 + $0x30] sm:$0xff] }
0x135a   :  { %10518 = vmatpush3.msra.mxu0 %v112_v49  ;;  %v4431_v48 = vsel %vm4429_vm6, %v4422_v6, %v13353_v52  ;;  %v3923_v1 = vld [vmem:[#allocation2 + $0x80] ss:$8 sm:$0xf] }
0x135b   :  { %10550 = vmatprep.subr.mxu0 %v11760_v0  ;;  %v4440_v46 = vsel %vm4438_vm7, %v4431_v48, %v4341_v14  ;;  %v4345_v14 = vpop.permute.xlu0 %4344  ;;  %v3927_v49 = vld [vmem:[#allocation2 + $0xc0] ss:$8 sm:$0xf]  ;;  %v3925_v17 = vor.u32 %v3924_v45, %v3923_v1 }
0x135c   :  { %v4307_v60 = vpop.permute.xlu1 %4306  ;;  %v4449_v52 = vsel %vm4447_vm8, %v4440_v46, %v4373_v9  ;;  %v3929_v9 = vor.u32 %v3928_v10, %v3927_v49 }
0x135d   :  { %v4430_v7 = vsel %vm4429_vm6, %v4421_v18, %v4307_v60  ;;  %v4396_v44 = vsel %vm554_vm2, %v3925_v17, %v13373_v30 }
0x135e   :  { %v4397_v28 = vsel %vm554_vm2, %v3929_v9, %v13349_v31 }
0x135f   :  { %v4253_v60 = vpop.permute.xlu0 %4252  ;;  %v4406_v42 = vsel %vm4402_vm3, %v4397_v28, %v13357_v13 }
0x1360   :  { %v13377_v20 = vpop.permute.xlu1 %4214  ;;  %v4415_v36 = vsel %vm4411_vm4, %v4406_v42, %v13370_v34 }
0x1361   :  { %v4405_v54 = vsel %vm4402_vm3, %v4396_v44, %v13377_v20  ;;  %v4424_v30 = vsel %vm4420_vm5, %v4415_v36, %v13381_v63 }
0x1362   :  { %v4433_v6 = vsel %vm4429_vm6, %v4424_v30, %v4313_v26 }
0x1363   :  { %v4377_v22 = vpop.permute.xlu0 %4376  ;;  %v4442_v13 = vsel %vm4438_vm7, %v4433_v6, %v4345_v14 }
0x1364   :  { %v4339_v2 = vpop.permute.xlu1 %4338  ;;  %v4451_v48 = vsel %vm4447_vm8, %v4442_v13, %v4377_v22 }
0x1365   :  { %v4439_v58 = vsel %vm4438_vm7, %v4430_v7, %v4339_v2  ;;  %v3932_v7 = vld [vmem:[#allocation2 + $0x100] ss:$8 sm:$0xf0] }
0x1368   :  { %v4247_v41 = vpop.permute.xlu1 %4246 }
0x1369   :  { %v4414_v39 = vsel %vm4411_vm4, %v4405_v54, %v4247_v41  ;;  %v4285_v41 = vpop.permute.xlu0 %4284 }
0x136c   :  { %v4371_v11 = vpop.permute.xlu1 %4370 }
0x136d   :  { %v4448_v12 = vsel %vm4447_vm8, %v4439_v58, %v4371_v11  ;;  %v4317_v18 = vpop.permute.xlu0 %4316  ;;  %v3936_v58 = vld [vmem:[#allocation2 + $0x140] ss:$8 sm:$0xf0] }
0x136e   :  { %10519 = vmatprep.mubr.msk.f32.mxu0 %vm129_vm1, %v4448_v12  ;;  %v3931_v11 = vld [vmem:[#allocation2 + $0x100] ss:$8 sm:$0xf] }
0x136f   :  { %10520 = vmatmul.mubr.msk.f32.vlgmr.msra.gmra.mxu0 %vm129_vm1, %v4449_v52  ;;  %v3935_v52 = vld [vmem:[#allocation2 + $0x140] ss:$8 sm:$0xf] }
0x1370   :  { %v4279_v32 = vpop.permute.xlu1 %4278  ;;  %10551 = vmatpush3.msra.mxu0 %v11609_v15  ;;  %v3937_v15 = vor.u32 %v3936_v58, %v3935_v52  ;;  %v4164_v52 = vld [vmem:[#allocation2 + $0x187] ss:$8 sm:$0xf0] }
0x1371   :  { %10552 = vmatprep.subr.mxu0 %v11760_v0  ;;  %v4423_v2 = vsel %vm4420_vm5, %v4414_v39, %v4279_v32  ;;  %v4349_v26 = vpop.permute.xlu0 %4348  ;;  %v3933_v32 = vor.u32 %v3932_v7, %v3931_v11 }
0x1372   :  { %10553 = vmatpush3.msra.mxu0 %v11610_v38 }
0x1373   :  { %10554 = vmatprep.subr.mxu0 %v11760_v0 }
0x1374   :  { %v13406_v16 = vpop.permute.xlu1 %4186  ;;  %10555 = vmatpush3.msra.mxu0 %v11611_v57  ;;  %v4399_v57 = vsel %vm554_vm2, %v3937_v15, %v13393_v43 }
0x1375   :  { %10556 = vmatprep.subr.mxu0 %v11760_v0  ;;  %v4398_v38 = vsel %vm554_vm2, %v3933_v32, %v13406_v16  ;;  %v13481_v32 = vld [vmem:[%s15071_s7] ss:$0 sm:$0xff] }
0x1376   :  { %10557 = vmatpush3.msra.mxu0 %v11612_v55 }
0x1377   :  { %10558 = vmatprep.subr.mxu0 %v11760_v0 }
0x1378   :  { %v4311_v3 = vpop.permute.xlu1 %4310  ;;  %10559 = vmatpush3.msra.mxu0 %v11613_v25  ;;  %v4408_v25 = vsel %vm4402_vm3, %v4399_v57, %v13408_v4 }
0x1379   :  { %10560 = vmatprep.subr.mxu0 %v11760_v0  ;;  %v4432_v31 = vsel %vm4429_vm6, %v4423_v2, %v4311_v3  ;;  %v4417_v14 = vsel %vm4411_vm4, %v4408_v25, %v4253_v60 }
0x137a   :  { %10561 = vmatpush3.msra.mxu0 %v11614_v35  ;;  %v4426_v45 = vsel %vm4420_vm5, %v4417_v14, %v4285_v41  ;;  %v11617_v14 = vld [vmem:[#allocation3 + $0x8] sm:$0xff] }
0x137b   :  { %10562 = vmatprep.subr.mxu0 %v11760_v0  ;;  %v4435_v43 = vsel %vm4429_vm6, %v4426_v45, %v4317_v18 }
0x137c   :  { %v4219_v23 = vpop.permute.xlu1 %4218  ;;  %10563 = vmatpush3.msra.mxu0 %v11615_v47  ;;  %v4444_v1 = vsel %vm4438_vm7, %v4435_v43, %v4349_v26  ;;  %v4163_v26 = vld [vmem:[#allocation2 + $0x187] ss:$8 sm:$0xf] }
0x137d   :  { %10564 = vmatprep.subr.mxu0 %v11760_v0  ;;  %v4407_v55 = vsel %vm4402_vm3, %v4398_v38, %v4219_v23  ;;  %v4165_v57 = vor.u32 %v4164_v52, %v4163_v26 }
0x137e   :  { %10565 = vmatpush3.msra.mxu0 %v11616_v37  ;;  %v4381_v37 = vpop.permute.xlu0 %4380 }
0x1380   :  { %v4343_v62 = vpop.permute.xlu1 %4342 }
0x1381   :  { %v4441_v20 = vsel %vm4438_vm7, %v4432_v31, %v4343_v62  ;;  %v4453_v62 = vsel %vm4447_vm8, %v4444_v1, %v4381_v37  ;;  %v11618_v37 = vld [vmem:[#allocation3] sm:$0xff]  ;;  %v11619_v1 = vld [vmem:[#allocation3 + $0x18] sm:$0xff] }
0x1384   :  { %v4251_v24 = vpop.permute.xlu1 %4250 }
0x1385   :  { %v4416_v35 = vsel %vm4411_vm4, %v4407_v55, %v4251_v24 }
0x1388   :  { %v4375_v51 = vpop.permute.xlu1 %4374 }
0x1389   :  { %v4450_v21 = vsel %vm4447_vm8, %v4441_v20, %v4375_v51 }
0x138a   :  { %10522 = vmatprep.mubr.msk.f32.mxu0 %vm129_vm1, %v4450_v21 }
0x138b   :  { %10523 = vmatmul.mubr.msk.f32.gmra.mxu0 %vm129_vm1, %v4451_v48 }
0x138c   :  { %v4283_v34 = vpop.permute.xlu1 %4282 }
0x138d   :  { %v4425_v47 = vsel %vm4420_vm5, %v4416_v35, %v4283_v34 }
0x1390   :  { %v13437_v63 = vpop.permute.xlu1 %4190 }
0x1394   :  { %v4315_v59 = vpop.permute.xlu1 %4314 }
0x1395   :  { %v4434_v16 = vsel %vm4429_vm6, %v4425_v47, %v4315_v59 }
0x1398   :  { %v13439_v46 = vpop.permute.xlu1 %4222 }
0x139c   :  { %v4347_v12 = vpop.permute.xlu1 %4346 }
0x139d   :  { %v4443_v23 = vsel %vm4438_vm7, %v4434_v16, %v4347_v12 }
0x13a0   :  { %v13446_v3 = vpop.permute.xlu1 %4254 }
0x13a4   :  { %v4379_v10 = vpop.permute.xlu1 %4378 }
0x13a5   :  { %v4452_v4 = vsel %vm4447_vm8, %v4443_v23, %v4379_v10 }
0x13a6   :  { %10525 = vmatprep.mubr.msk.f32.mxu0 %vm129_vm1, %v4452_v4 }
0x13a7   :  { %10526 = vmatmul.mubr.msk.f32.gmra.mxu0 %vm129_vm1, %v4453_v62 }
0x13ee   :  { %v13462_v49 = vpop.f32.mrf.mxu1 }
0x13f0   :  { %v10549_v17 = vpop.f32.mrf.mxu1 }
0x13f1   :  { %v11620_v17 = vld [vmem:[#allocation3 + $0x10] sm:$0xff] }
0x140b   :  { %v10493_v60 = vpop.f32.mrf.mxu0 }
0x140c   :  { %3908 = vst.msk [vmem:[#allocation2 + $0x1c8] sm:$0xff] %vm554_vm2, %v10493_v60 }
0x140d   :  { %v3868_v9 = vpop.f32.mrf.mxu0 }
0x140e   :  { %3907 = vst.msk [vmem:[#allocation2 + $0x1c0] sm:$0xff] %vm554_vm2, %v3868_v9  ;;  %v4710_v9 = vmul.f32 0.0078125, %v13462_v49 }
0x140f   :  { %v10496_v44 = vpop.f32.mrf.mxu0 }
0x1410   :  { %3910 = vst.msk [vmem:[#allocation2 + $0x1d8] sm:$0xff] %vm554_vm2, %v10496_v44 }
0x1411   :  { %v3878_v28 = vpop.f32.mrf.mxu0 }
0x1412   :  { %3909 = vst.msk [vmem:[#allocation2 + $0x1d0] sm:$0xff] %vm554_vm2, %v3878_v28 }
0x1413   :  { %v10499_v54 = vpop.f32.mrf.mxu0 }
0x1414   :  { %3912 = vst.msk [vmem:[#allocation2 + $0x1e8] sm:$0xff] %vm554_vm2, %v10499_v54  ;;  %v4714_v54 = vrot.slane %v4710_v9, %v11888_v40 }
0x1415   :  { %v3888_v24 = vpop.f32.mrf.mxu0 }
0x1416   :  { %3911 = vst.msk [vmem:[#allocation2 + $0x1e0] sm:$0xff] %vm554_vm2, %v3888_v24  ;;  %v13506_v49 = vsub.f32 %v13307_v61, %v4714_v54  ;;  %v13520_v61 = vsub.f32 %v13318_v53, %v4714_v54  ;;  %v13538_v52 = vsub.f32 %v13333_v33, %v4714_v54 }
0x1417   :  { %v10502_v42 = vpop.f32.mrf.mxu0 }
0x1418   :  { %3914 = vst.msk [vmem:[#allocation2 + $0x1f8] sm:$0xff] %vm554_vm2, %v10502_v42  ;;  %v11621_v42 = vld [vmem:[#allocation3 + $0x28] sm:$0xff] }
0x1419   :  { %v3898_v39 = vpop.f32.mrf.mxu0  ;;  %v4071_v36 = vld [vmem:[#allocation2 + $0x1c4] ss:$8 sm:$0xf]  ;;  %v3975_v2 = vld [vmem:[#allocation2 + $0x1c1] ss:$8 sm:$0xf] }
0x141a   :  { %3913 = vst.msk [vmem:[#allocation2 + $0x1f0] sm:$0xff] %vm554_vm2, %v3898_v39  ;;  %v4103_v13 = vld [vmem:[#allocation2 + $0x1c5] ss:$8 sm:$0xf] }
0x141b   :  { %v4007_v21 = vld [vmem:[#allocation2 + $0x1c2] ss:$8 sm:$0xf]  ;;  %v4135_v18 = vld [vmem:[#allocation2 + $0x1c6] ss:$8 sm:$0xf] }
0x141c   :  { %v4039_v7 = vld [vmem:[#allocation2 + $0x1c3] ss:$8 sm:$0xf]  ;;  %v4167_v15 = vld [vmem:[#allocation2 + $0x1c7] ss:$8 sm:$0xf] }
0x1421   :  { %v4072_v30 = vld [vmem:[#allocation2 + $0x1c4] ss:$8 sm:$0xf0]  ;;  %v3976_v22 = vld [vmem:[#allocation2 + $0x1c1] ss:$8 sm:$0xf0] }
0x1422   :  { %v4073_v31 = vor.u32 %v4072_v30, %v4071_v36  ;;  %v3977_v6 = vor.u32 %v3976_v22, %v3975_v2  ;;  %v4104_v20 = vld [vmem:[#allocation2 + $0x1c5] ss:$8 sm:$0xf0]  ;;  %v4008_v51 = vld [vmem:[#allocation2 + $0x1c2] ss:$8 sm:$0xf0]  ;;  %v13499_v22 = vsub.f32 %v13298_v19, %v4714_v54  ;;  %v4725_v19 = vmul.f32 %v13506_v49, %v13506_v49 }
0x1423   :  { %v4105_v48 = vor.u32 %v4104_v20, %v4103_v13  ;;  %v4009_v34 = vor.u32 %v4008_v51, %v4007_v21  ;;  %v4136_v41 = vld [vmem:[#allocation2 + $0x1c6] ss:$8 sm:$0xf0]  ;;  %v4040_v59 = vld [vmem:[#allocation2 + $0x1c3] ss:$8 sm:$0xf0]  ;;  %v13513_v51 = vsub.f32 %v13311_v29, %v4714_v54  ;;  %v13526_v29 = vsub.f32 %v13322_v5, %v4714_v54 }
0x1424   :  { %4288 = vrot.lane.b32.xlu1 %v4073_v31, %s11769_s17  ;;  %4192 = vrot.lane.b32.xlu0 %v3977_v6, %s11755_s11  ;;  %v4137_v58 = vor.u32 %v4136_v41, %v4135_v18  ;;  %v4041_v11 = vor.u32 %v4040_v59, %v4039_v7  ;;  %v4168_v12 = vld [vmem:[#allocation2 + $0x1c7] ss:$8 sm:$0xf0]  ;;  %v13502_v31 = vsub.f32 %v13300_v50, %v4714_v54 }
0x1425   :  { %v4169_v38 = vor.u32 %v4168_v12, %v4167_v15  ;;  %v11622_v2 = vld [vmem:[#allocation3 + $0x20] sm:$0xff]  ;;  %v4723_v6 = vmul.f32 %v13499_v22, %v13499_v22  ;;  %v4727_v59 = vmul.f32 %v13520_v61, %v13520_v61  ;;  %v4728_v53 = vmul.f32 %v13526_v29, %v13526_v29 }
0x1426   :  { %v4724_v20 = vmul.f32 %v13502_v31, %v13502_v31 }
0x1427   :  { %v4731_v50 = vsel %vm129_vm1, %v4723_v6, 0.0  ;;  %v4740_v26 = vsel %vm129_vm1, %v4728_v53, 0.0  ;;  %v11623_v53 = vld [vmem:[#allocation3 + $0x38] sm:$0xff] }
0x1428   :  { %4320 = vrot.lane.b32.xlu1 %v4105_v48, %s11767_s15  ;;  %4224 = vrot.lane.b32.xlu0 %v4009_v34, %s11758_s20  ;;  %v4732_v13 = vsel %vm129_vm1, %v4724_v20, 0.0  ;;  %v4726_v48 = vmul.f32 %v13513_v51, %v13513_v51  ;;  %v4734_v34 = vsel %vm129_vm1, %v4725_v19, 0.0 }
0x1429   :  { %v4733_v21 = vadd.f32 %v4732_v13, %v4731_v50 }
0x142a   :  { %v4736_v18 = vsel %vm129_vm1, %v4726_v48, 0.0 }
0x142b   :  { %v4735_v41 = vadd.f32 %v4734_v34, %v4733_v21 }
0x142c   :  { %4352 = vrot.lane.b32.xlu1 %v4137_v58, %s11765_s13  ;;  %4256 = vrot.lane.b32.xlu0 %v4041_v11, %s11771_s19  ;;  %v13532_v58 = vsub.f32 %v13327_v56, %v4714_v54  ;;  %v4738_v11 = vsel %vm129_vm1, %v4727_v59, 0.0 }
0x142d   :  { %v4737_v7 = vadd.f32 %v4736_v18, %v4735_v41 }
0x142e   :  { %v4729_v5 = vmul.f32 %v13532_v58, %v13532_v58 }
0x142f   :  { %v10521_v55 = vpop.f32.mrf.mxu0  ;;  %v4739_v12 = vadd.f32 %v4738_v11, %v4737_v7 }
0x1430   :  { %v4558_v25 = vadd.f32 %v10521_v55, %v13481_v32  ;;  %4384 = vrot.lane.b32.xlu1 %v4169_v38, %s11763_s9  ;;  %4382 = vrot.lane.b32.xlu0 %v4165_v57, %s11763_s9  ;;  %v4730_v38 = vmul.f32 %v13538_v52, %v13538_v52  ;;  %v4742_v56 = vsel %vm129_vm1, %v4729_v5, 0.0  ;;  %v4319_v55 = vpop.permute.xlu0 %4318 }
0x1431   :  { %v4552_v35 = vpop.f32.mrf.mxu0  ;;  %v4741_v15 = vadd.f32 %v4740_v26, %v4739_v12  ;;  %v11624_v26 = vld [vmem:[#allocation3 + $0x30] sm:$0xff] }
0x1432   :  { %v4592_v47 = vadd.f32 %v11617_v14, %v4558_v25  ;;  %v4553_v45 = vadd.f32 %v13481_v32, %v4552_v35  ;;  %v4744_v25 = vsel %vm129_vm1, %v4730_v38, 0.0 }
0x1433   :  { %v4743_v57 = vadd.f32 %v4742_v56, %v4741_v15 }
0x1434   :  { %4600 = vst.msk [vmem:[#allocation11 + $0x8] sm:$0xff] %vm129_vm1, %v4592_v47  ;;  %v4591_v16 = vadd.f32 %v11618_v37, %v4553_v45  ;;  %v4351_v14 = vpop.permute.xlu0 %4350  ;;  %v4287_v47 = vpop.permute.xlu1 %4286  ;;  %v3940_v45 = vld [vmem:[#allocation2 + $0x180] ss:$8 sm:$0xf0] }
0x1435   :  { %v4745_v35 = vadd.f32 %v4744_v25, %v4743_v57  ;;  %v3939_v37 = vld [vmem:[#allocation2 + $0x180] ss:$8 sm:$0xf] }
0x1436   :  { %4599 = vst.msk [vmem:[#allocation11] sm:$0xff] %vm129_vm1, %v4591_v16 }
0x1437   :  { %v4746_v33 = vrot.slane %v4745_v35, 4 }
0x144b   :  { %v10524_v43 = vpop.f32.mrf.mxu0 }
0x144c   :  { %v4568_v23 = vadd.f32 %v10524_v43, %v13481_v32 }
0x144d   :  { %v4562_v10 = vpop.f32.mrf.mxu0 }
0x144e   :  { %v4594_v4 = vadd.f32 %v11619_v1, %v4568_v23  ;;  %v4563_v62 = vadd.f32 %v13481_v32, %v4562_v10  ;;  %v3941_v23 = vor.u32 %v3940_v45, %v3939_v37  ;;  %v4747_v10 = vadd.f32 %v4746_v33, %v4745_v35  ;;  %v3944_v1 = vld [vmem:[#allocation2 + $0x1c0] ss:$8 sm:$0xf0] }
0x144f   :  { %v11626_v33 = vld [vmem:[%s15067_s3] ss:$0 sm:$0xff] }
0x1450   :  { %4602 = vst.msk [vmem:[#allocation11 + $0x18] sm:$0xff] %vm129_vm1, %v4594_v4  ;;  %v4593_v60 = vadd.f32 %v11620_v17, %v4563_v62  ;;  %v4400_v4 = vsel %vm554_vm2, %v3941_v23, %v13437_v63  ;;  %v3943_v17 = vld [vmem:[#allocation2 + $0x1c0] ss:$8 sm:$0xf]  ;;  %v4748_v54 = vrot.slane %v4747_v10, 2 }
0x1451   :  { %v4409_v62 = vsel %vm4402_vm3, %v4400_v4, %v13439_v46 }
0x1452   :  { %4601 = vst.msk [vmem:[#allocation11 + $0x10] sm:$0xff] %vm129_vm1, %v4593_v60 }
0x1467   :  { %v10527_v44 = vpop.f32.mrf.mxu0 }
0x1468   :  { %v4578_v28 = vadd.f32 %v10527_v44, %v13481_v32  ;;  %v4418_v44 = vsel %vm4411_vm4, %v4409_v62, %v13446_v3 }
0x1469   :  { %v4572_v24 = vpop.f32.mrf.mxu0 }
0x146a   :  { %v4596_v39 = vadd.f32 %v11621_v42, %v4578_v28  ;;  %v4573_v36 = vadd.f32 %v13481_v32, %v4572_v24  ;;  %v3945_v28 = vor.u32 %v3944_v1, %v3943_v17  ;;  %v4427_v24 = vsel %vm4420_vm5, %v4418_v44, %v4287_v47 }
0x146b   :  { %v4436_v63 = vsel %vm4429_vm6, %v4427_v24, %v4319_v55 }
0x146c   :  { %4604 = vst.msk [vmem:[#allocation11 + $0x28] sm:$0xff] %vm129_vm1, %v4596_v39  ;;  %v4595_v30 = vadd.f32 %v11622_v2, %v4573_v36  ;;  %v4445_v50 = vsel %vm4438_vm7, %v4436_v63, %v4351_v14 }
0x146e   :  { %4603 = vst.msk [vmem:[#allocation11 + $0x20] sm:$0xff] %vm129_vm1, %v4595_v30  ;;  %v4749_v30 = vadd.f32 %v4748_v54, %v4747_v10 }
0x1470   :  { %v4750_v34 = vrot.slane %v4749_v30, 1 }
0x1472   :  { %v4751_v41 = vadd.f32 %v4750_v34, %v4749_v30 }
0x1496   :  { %v4193_v16 = vpop.permute.xlu0 %4192  ;;  %v4289_v43 = vpop.permute.xlu1 %4288 }
0x1497   :  { %v4401_v42 = vsel %vm554_vm2, %v3945_v28, %v4193_v16 }
0x149a   :  { %v4225_v60 = vpop.permute.xlu0 %4224  ;;  %v4321_v9 = vpop.permute.xlu1 %4320 }
0x149b   :  { %v4410_v39 = vsel %vm4402_vm3, %v4401_v42, %v4225_v60 }
0x149e   :  { %v4257_v36 = vpop.permute.xlu0 %4256  ;;  %v4353_v2 = vpop.permute.xlu1 %4352 }
0x149f   :  { %v4419_v46 = vsel %vm4411_vm4, %v4410_v39, %v4257_v36 }
0x14a0   :  { %v4428_v6 = vsel %vm4420_vm5, %v4419_v46, %v4289_v43 }
0x14a1   :  { %v4437_v20 = vsel %vm4429_vm6, %v4428_v6, %v4321_v9 }
0x14a2   :  { %v4446_v3 = vsel %vm4438_vm7, %v4437_v20, %v4353_v2  ;;  %v4383_v19 = vpop.permute.xlu0 %4382  ;;  %v4385_v13 = vpop.permute.xlu1 %4384 }
0x14a3   :  { %v4454_v21 = vsel %vm4447_vm8, %v4445_v50, %v4383_v19  ;;  %v4455_v48 = vsel %vm4447_vm8, %v4446_v3, %v4385_v13 }
0x14a4   :  { %10528 = vmatprep.mubr.msk.f32.mxu0 %vm129_vm1, %v4454_v21 }
0x14a5   :  { %10529 = vmatmul.mubr.msk.f32.gmra.mxu0 %vm129_vm1, %v4455_v48 }
0x14a6   :  { %10566 = vmatprep.mubr.msk.f32.mxu0 %vm11761_vm0, %v11760_v0 }
0x14a9   :  { %10567 = vmatmul.mubr.msk.f32.vlgmr.msra.gmra.mxu0 %vm129_vm1, %v4751_v41 }
0x1565   :  { %v10530_v59 = vpop.f32.mrf.mxu0 }
0x1566   :  { %v4588_v18 = vadd.f32 %v10530_v59, %v13481_v32 }
0x1567   :  { %v4582_v7 = vpop.f32.mrf.mxu0 }
0x1568   :  { %v4598_v11 = vadd.f32 %v11623_v53, %v4588_v18  ;;  %v4583_v12 = vadd.f32 %v13481_v32, %v4582_v7  ;;  %v11625_v32 = vld [vmem:[%s15066_s2] ss:$0 sm:$0xff] }
0x1569   :  { %v4821_v5 = vpop.f32.mrf.mxu0 }
0x156a   :  { %4606 = vst.msk [vmem:[#allocation11 + $0x38] sm:$0xff] %vm129_vm1, %v4598_v11  ;;  %v4597_v15 = vadd.f32 %v11624_v26, %v4583_v12  ;;  %v4825_v38 = vmul.f32 0.0078125, %v4821_v5 }
0x156b   :  { %v10568_v56 = vpop.f32.mrf.mxu0 }
0x156c   :  { %4605 = vst.msk [vmem:[#allocation11 + $0x30] sm:$0xff] %vm129_vm1, %v4597_v15  ;;  %v4826_v57 = vadd.f32 1e-05, %v4825_v38 }
0x156e   :  { %11327 = vrsqrt.f32 %v4826_v57 }
0x157b   :  { %v11328_v55 = vpop.eup %11327 }
0x157c   :  { %v4831_v25 = vrot.slane %v11328_v55, %v11888_v40 }
0x157e   :  { %v4832_v35 = vmul.f32 %v4831_v25, %v13499_v22  ;;  %v4833_v14 = vmul.f32 %v4831_v25, %v13502_v31  ;;  %v4834_v16 = vmul.f32 %v4831_v25, %v13506_v49  ;;  %v4835_v31 = vmul.f32 %v4831_v25, %v13513_v51 }
0x157f   :  { %v4836_v10 = vmul.f32 %v4831_v25, %v13520_v61  ;;  %v4837_v4 = vmul.f32 %v4831_v25, %v13526_v29  ;;  %v4838_v17 = vmul.f32 %v4831_v25, %v13532_v58  ;;  %v4839_v9 = vmul.f32 %v4831_v25, %v13538_v52 }
0x1580   :  { %v4840_v47 = vmul.f32 %v11625_v32, %v4832_v35  ;;  %v4841_v37 = vmul.f32 %v11625_v32, %v4833_v14  ;;  %v4842_v22 = vmul.f32 %v11625_v32, %v4834_v16  ;;  %v4843_v23 = vmul.f32 %v11625_v32, %v4835_v31 }
0x1581   :  { %v4844_v1 = vmul.f32 %v11625_v32, %v4836_v10  ;;  %v4845_v62 = vmul.f32 %v11625_v32, %v4837_v4  ;;  %v4846_v60 = vmul.f32 %v11625_v32, %v4838_v17  ;;  %v4847_v44 = vmul.f32 %v11625_v32, %v4839_v9 }
0x1582   :  { %v4848_v45 = vadd.f32 %v11626_v33, %v4840_v47  ;;  %v4849_v40 = vadd.f32 %v11626_v33, %v4841_v37  ;;  %v4850_v43 = vadd.f32 %v11626_v33, %v4842_v22  ;;  %v4851_v49 = vadd.f32 %v11626_v33, %v4843_v23 }
0x1583   :  { %v4852_v51 = vadd.f32 %v11626_v33, %v4844_v1  ;;  %v4853_v61 = vadd.f32 %v11626_v33, %v4845_v62  ;;  %v4854_v29 = vadd.f32 %v11626_v33, %v4846_v60  ;;  %v4855_v28 = vadd.f32 %v11626_v33, %v4847_v44 }
0x1584   :  { %9229 = vmatmul.mubr.msk.f32.vlgmr.msra.gmra.mxu1 %vm129_vm1, %v4848_v45 }
0x1585   :  { %4950 = vmatprep.mubr.f32.mxu1 %v11760_v0 }
0x1588   :  { %9230 = vmatmul.mubr.msk.f32.gmra.mxu1 %vm129_vm1, %v4849_v40 }
0x1589   :  { %4956 = vmatprep.mubr.f32.mxu1 %v11760_v0 }
0x158c   :  { %9231 = vmatmul.mubr.msk.f32.gmra.mxu1 %vm129_vm1, %v4850_v43 }
0x158d   :  { %4962 = vmatprep.mubr.f32.mxu1 %v11760_v0 }
0x1590   :  { %9232 = vmatmul.mubr.msk.f32.gmra.mxu1 %vm129_vm1, %v4851_v49 }
0x1591   :  { %4968 = vmatprep.mubr.f32.mxu1 %v11760_v0 }
0x1594   :  { %9233 = vmatmul.mubr.msk.f32.gmra.mxu1 %vm129_vm1, %v4852_v51 }
0x1595   :  { %4974 = vmatprep.mubr.f32.mxu1 %v11760_v0 }
0x1598   :  { %9234 = vmatmul.mubr.msk.f32.gmra.mxu1 %vm129_vm1, %v4853_v61 }
0x1599   :  { %4980 = vmatprep.mubr.f32.mxu1 %v11760_v0 }
0x159c   :  { %9235 = vmatmul.mubr.msk.f32.gmra.mxu1 %vm129_vm1, %v4854_v29 }
0x159d   :  { %4986 = vmatprep.mubr.f32.mxu1 %v11760_v0 }
0x15a0   :  { %9236 = vmatmul.mubr.msk.f32.gmra.mxu1 %vm129_vm1, %v4855_v28 }
0x1644   :  { %v4946_v58 = vpop.f32.mrf.mxu1 }
0x1645   :  { %v13604_v54 = vadd.f32 %v4946_v58, %v11970_v8 }
0x1646   :  { %v4948_v24 = vpop.f32.mrf.mxu1 }
0x1647   :  { %10585 = vmatprep.mubr.msk.f32.mxu0 %vm554_vm2, %v13604_v54 }
0x1648   :  { %v4952_v52 = vpop.f32.mrf.mxu1 }
0x1649   :  { %v13664_v5 = vadd.f32 %v4952_v52, %v11970_v8 }
0x164a   :  { %v4954_v42 = vpop.f32.mrf.mxu1 }
0x164b   :  { %v13672_v15 = vadd.f32 %v4954_v42, %v11988_v27 }
0x164c   :  { %v4958_v39 = vpop.f32.mrf.mxu1 }
0x164d   :  { %v13634_v18 = vadd.f32 %v4958_v39, %v11970_v8 }
0x164e   :  { %v4960_v36 = vpop.f32.mrf.mxu1 }
0x164f   :  { %v13667_v26 = vadd.f32 %v4960_v36, %v11988_v27 }
0x1650   :  { %v4964_v2 = vpop.f32.mrf.mxu1 }
0x1651   :  { %v13647_v53 = vadd.f32 %v4964_v2, %v11970_v8 }
0x1652   :  { %v4966_v63 = vpop.f32.mrf.mxu1 }
0x1653   :  { %v13655_v12 = vadd.f32 %v4966_v63, %v11988_v27 }
0x1654   :  { %v4970_v46 = vpop.f32.mrf.mxu1 }
0x1655   :  { %v13614_v13 = vadd.f32 %v4970_v46, %v11970_v8 }
0x1656   :  { %v4972_v30 = vpop.f32.mrf.mxu1 }
0x1657   :  { %v13650_v11 = vadd.f32 %v4972_v30, %v11988_v27 }
0x1658   :  { %v4976_v0 = vpop.f32.mrf.mxu1 }
0x1659   :  { %v13627_v41 = vadd.f32 %v4976_v0, %v11970_v8 }
0x165a   :  { %v4978_v6 = vpop.f32.mrf.mxu1 }
0x165b   :  { %v13638_v7 = vadd.f32 %v4978_v6, %v11988_v27 }
0x165c   :  { %v4982_v20 = vpop.f32.mrf.mxu1 }
0x165d   :  { %v13609_v3 = vadd.f32 %v4982_v20, %v11970_v8 }
0x165e   :  { %v4984_v19 = vpop.f32.mrf.mxu1 }
0x165f   :  { %5013 = vrot.lane.b32.xlu1 %v13609_v3, %s11762_s5  ;;  %v13630_v59 = vadd.f32 %v4984_v19, %v11988_v27 }
0x1660   :  { %v4988_v50 = vpop.f32.mrf.mxu1 }
0x1661   :  { %v13617_v21 = vadd.f32 %v4988_v50, %v11970_v8  ;;  %v13681_v8 = vadd.f32 %v4948_v24, %v11988_v27 }
0x1662   :  { %v4990_v48 = vpop.f32.mrf.mxu1 }
0x1663   :  { %v13620_v34 = vadd.f32 %v4990_v48, %v11988_v27  ;;  %5015 = vrot.lane.b32.xlu0 %v13617_v21, %s11762_s5  ;;  %5009 = vrot.lane.b32.xlu1 %v13614_v13, %s11762_s5 }
0x1665   :  { %10597 = vmatprep.subr.mxu1 %v13620_v34 }
0x1666   :  { %10598 = vmatpush3.msra.mxu1 %v13620_v34 }
0x1667   :  { %10599 = vmatprep.subr.mxu1 %v13630_v59  ;;  %5011 = vrot.lane.b32.xlu0 %v13627_v41, %s11762_s5 }
0x1668   :  { %5005 = vrot.lane.b32.xlu1 %v13634_v18, %s11762_s5  ;;  %10600 = vmatpush3.msra.mxu1 %v13630_v59 }
0x1669   :  { %10601 = vmatprep.subr.mxu1 %v13638_v7 }
0x166a   :  { %10602 = vmatpush3.msra.mxu1 %v13638_v7 }
0x166b   :  { %10603 = vmatprep.subr.mxu1 %v13650_v11  ;;  %5007 = vrot.lane.b32.xlu0 %v13647_v53, %s11762_s5 }
0x166c   :  { %5001 = vrot.lane.b32.xlu1 %v13604_v54, %s11762_s5  ;;  %10604 = vmatpush3.msra.mxu1 %v13650_v11 }
0x166d   :  { %10605 = vmatprep.subr.mxu1 %v13655_v12 }
0x166e   :  { %10606 = vmatpush3.msra.mxu1 %v13655_v12 }
0x166f   :  { %10607 = vmatprep.subr.mxu1 %v13667_v26  ;;  %5003 = vrot.lane.b32.xlu0 %v13664_v5, %s11762_s5 }
0x1670   :  { %5415 = vrot.lane.b32.xlu1 %v13609_v3, %s11763_s9  ;;  %10608 = vmatpush3.msra.mxu1 %v13667_v26 }
0x1671   :  { %10609 = vmatprep.subr.mxu1 %v13672_v15 }
0x1672   :  { %10610 = vmatpush3.msra.mxu1 %v13672_v15 }
0x1673   :  { %5417 = vrot.lane.b32.xlu0 %v13617_v21, %s11763_s9  ;;  %10611 = vmatprep.subr.mxu1 %v13681_v8 }
0x1674   :  { %5411 = vrot.lane.b32.xlu1 %v13614_v13, %s11763_s9  ;;  %10612 = vmatpush3.msra.mxu1 %v13681_v8 }
0x1677   :  { %5413 = vrot.lane.b32.xlu0 %v13627_v41, %s11763_s9 }
0x1678   :  { %5407 = vrot.lane.b32.xlu1 %v13634_v18, %s11763_s9 }
0x167b   :  { %5409 = vrot.lane.b32.xlu0 %v13647_v53, %s11763_s9 }
0x167c   :  { %5403 = vrot.lane.b32.xlu1 %v13604_v54, %s11763_s9 }
0x167f   :  { %5405 = vrot.lane.b32.xlu0 %v13664_v5, %s11763_s9 }
0x1680   :  { %5389 = vrot.lane.b32.xlu1 %v13664_v5, %s11764_s12 }
0x1683   :  { %5387 = vrot.lane.b32.xlu0 %v13604_v54, %s11764_s12 }
0x1684   :  { %5393 = vrot.lane.b32.xlu1 %v13647_v53, %s11764_s12 }
0x1687   :  { %5391 = vrot.lane.b32.xlu0 %v13634_v18, %s11764_s12 }
0x1688   :  { %5397 = vrot.lane.b32.xlu1 %v13627_v41, %s11764_s12 }
0x168b   :  { %5395 = vrot.lane.b32.xlu0 %v13614_v13, %s11764_s12 }
0x168c   :  { %5401 = vrot.lane.b32.xlu1 %v13617_v21, %s11764_s12 }
0x168f   :  { %5399 = vrot.lane.b32.xlu0 %v13609_v3, %s11764_s12 }
0x1690   :  { %5670 = vrot.lane.b32.xlu1 %v13638_v7, %s11764_s12 }
0x1693   :  { %5672 = vrot.lane.b32.xlu0 %v13630_v59, %s11764_s12 }
0x1694   :  { %5668 = vrot.lane.b32.xlu1 %v13650_v11, %s11764_s12 }
0x1697   :  { %5666 = vrot.lane.b32.xlu0 %v13655_v12, %s11764_s12 }
0x1698   :  { %5664 = vrot.lane.b32.xlu1 %v13667_v26, %s11764_s12 }
0x169b   :  { %5662 = vrot.lane.b32.xlu0 %v13672_v15, %s11764_s12 }
0x169c   :  { %5660 = vrot.lane.b32.xlu1 %v13681_v8, %s11764_s12 }
0x169f   :  { %5851 = vrot.lane.b32.xlu0 %v13617_v21, %s11765_s13 }
0x16a0   :  { %5849 = vrot.lane.b32.xlu1 %v13609_v3, %s11765_s13 }
0x16a4   :  { %5674 = vrot.lane.b32.xlu1 %v13620_v34, %s11764_s12 }
0x16d1   :  { %v5014_v27 = vpop.permute.xlu1 %5013 }
0x16d5   :  { %v5016_v38 = vpop.permute.xlu0 %5015  ;;  %v5010_v56 = vpop.permute.xlu1 %5009 }
0x16d6   :  { %10569 = vmatprep.subr.msk.mxu0 %vm554_vm2, %v5016_v38 }
0x16d7   :  { %10570 = vmatpush3.xpose.msk.msra.mxu0 %vm554_vm2, %v5016_v38 }
0x16d8   :  { %10571 = vmatprep.subr.msk.mxu0 %vm554_vm2, %v5014_v27 }
0x16d9   :  { %v5012_v57 = vpop.permute.xlu0 %5011 }
0x16da   :  { %v5006_v55 = vpop.permute.xlu1 %5005 }
0x16db   :  { %10572 = vmatpush3.xpose.msk.msra.mxu0 %vm554_vm2, %v5014_v27 }
0x16dc   :  { %10573 = vmatprep.subr.msk.mxu0 %vm554_vm2, %v5012_v57 }
0x16dd   :  { %v5008_v25 = vpop.permute.xlu0 %5007 }
0x16de   :  { %v5002_v35 = vpop.permute.xlu1 %5001 }
0x16df   :  { %10574 = vmatpush3.xpose.msk.msra.mxu0 %vm554_vm2, %v5012_v57 }
0x16e0   :  { %10575 = vmatprep.subr.msk.mxu0 %vm554_vm2, %v5010_v56 }
0x16e1   :  { %v5004_v32 = vpop.permute.xlu0 %5003 }
0x16e2   :  { %v5416_v14 = vpop.permute.xlu1 %5415 }
0x16e3   :  { %10576 = vmatpush3.xpose.msk.msra.mxu0 %vm554_vm2, %v5010_v56 }
0x16e4   :  { %10577 = vmatprep.subr.msk.mxu0 %vm554_vm2, %v5008_v25 }
0x16e5   :  { %v5418_v33 = vpop.permute.xlu0 %5417 }
0x16e6   :  { %v5412_v47 = vpop.permute.xlu1 %5411 }
0x16e7   :  { %10578 = vmatpush3.xpose.msk.msra.mxu0 %vm554_vm2, %v5008_v25 }
0x16e8   :  { %10579 = vmatprep.subr.msk.mxu0 %vm554_vm2, %v5006_v55 }
0x16e9   :  { %v5414_v16 = vpop.permute.xlu0 %5413 }
0x16ea   :  { %v5408_v45 = vpop.permute.xlu1 %5407 }
0x16eb   :  { %10580 = vmatpush3.xpose.msk.msra.mxu0 %vm554_vm2, %v5006_v55 }
0x16ec   :  { %10581 = vmatprep.subr.msk.mxu0 %vm554_vm2, %v5004_v32 }
0x16ed   :  { %v5410_v22 = vpop.permute.xlu0 %5409 }
0x16ee   :  { %v5404_v37 = vpop.permute.xlu1 %5403 }
0x16ef   :  { %10582 = vmatpush3.xpose.msk.msra.mxu0 %vm554_vm2, %v5004_v32 }
0x16f0   :  { %10583 = vmatprep.subr.msk.mxu0 %vm554_vm2, %v5002_v35 }
0x16f1   :  { %v5406_v23 = vpop.permute.xlu0 %5405 }
0x16f2   :  { %v5390_v40 = vpop.permute.xlu1 %5389 }
0x16f3   :  { %10584 = vmatpush3.xpose.msk.msra.mxu0 %vm554_vm2, %v5002_v35 }
0x16f4   :  { %10625 = vmatprep.subr.msk.mxu0 %vm554_vm2, %v5418_v33 }
0x16f5   :  { %v5388_v49 = vpop.permute.xlu0 %5387 }
0x16f6   :  { %v5394_v31 = vpop.permute.xlu1 %5393  ;;  %10586 = vmatmul.mubr.msk.f32.vlgmr.msra.gmra.mxu0 %vm554_vm2, %v13664_v5 }
0x16f7   :  { %10588 = vmatprep.mubr.msk.f32.mxu0 %vm554_vm2, %v13634_v18  ;;  %10626 = vmatpush3.xpose.msk.msra.mxu0 %vm554_vm2, %v5418_v33 }
0x16f8   :  { %10627 = vmatprep.subr.msk.mxu0 %vm554_vm2, %v5416_v14 }
0x16f9   :  { %v5392_v17 = vpop.permute.xlu0 %5391 }
0x16fa   :  { %v5398_v43 = vpop.permute.xlu1 %5397  ;;  %10589 = vmatmul.mubr.msk.f32.gmra.mxu0 %vm554_vm2, %v13647_v53 }
0x16fb   :  { %10591 = vmatprep.mubr.msk.f32.mxu0 %vm554_vm2, %v13614_v13  ;;  %10628 = vmatpush3.xpose.msk.msra.mxu0 %vm554_vm2, %v5416_v14 }
0x16fc   :  { %10629 = vmatprep.subr.msk.mxu0 %vm554_vm2, %v5414_v16 }
0x16fd   :  { %v5396_v9 = vpop.permute.xlu0 %5395 }
0x16fe   :  { %v5402_v10 = vpop.permute.xlu1 %5401  ;;  %10592 = vmatmul.mubr.msk.f32.gmra.mxu0 %vm554_vm2, %v13627_v41 }
0x16ff   :  { %10594 = vmatprep.mubr.msk.f32.mxu0 %vm554_vm2, %v13609_v3  ;;  %10630 = vmatpush3.xpose.msk.msra.mxu0 %vm554_vm2, %v5414_v16 }
0x1700   :  { %10631 = vmatprep.subr.msk.mxu0 %vm554_vm2, %v5412_v47 }
0x1701   :  { %v5400_v29 = vpop.permute.xlu0 %5399 }
0x1702   :  { %v13772_v1 = vpop.permute.xlu1 %5670  ;;  %10595 = vmatmul.mubr.msk.f32.gmra.mxu0 %vm554_vm2, %v13617_v21 }
0x1703   :  { %10632 = vmatpush3.xpose.msk.msra.mxu0 %vm554_vm2, %v5412_v47  ;;  %10641 = vmatprep.mubr.msk.f32.mxu0 %vm554_vm2, %v5388_v49 }
0x1704   :  { %10633 = vmatprep.subr.msk.mxu0 %vm554_vm2, %v5410_v22 }
0x1706   :  { %v13779_v4 = vpop.permute.xlu1 %5668 }
0x1707   :  { %10634 = vmatpush3.xpose.msk.msra.mxu0 %vm554_vm2, %v5410_v22 }
0x1708   :  { %10635 = vmatprep.subr.msk.mxu0 %vm554_vm2, %v5408_v45 }
0x170a   :  { %v13783_v51 = vpop.permute.xlu1 %5664 }
0x170b   :  { %10636 = vmatpush3.xpose.msk.msra.mxu0 %vm554_vm2, %v5408_v45 }
0x170c   :  { %10637 = vmatprep.subr.msk.mxu0 %vm554_vm2, %v5406_v23 }
0x170e   :  { %v13787_v62 = vpop.permute.xlu1 %5660 }
0x170f   :  { %10638 = vmatpush3.xpose.msk.msra.mxu0 %vm554_vm2, %v5406_v23 }
0x1710   :  { %10639 = vmatprep.subr.msk.mxu0 %vm554_vm2, %v5404_v37 }
0x1712   :  { %v13791_v61 = vpop.permute.xlu1 %5849 }
0x1713   :  { %10640 = vmatpush3.xpose.msk.msra.mxu0 %vm554_vm2, %v5404_v37 }
0x1716   :  { %v13794_v60 = vpop.permute.xlu1 %5674  ;;  %10642 = vmatmul.mubr.msk.f32.vlgmr.msra.gmra.mxu0 %vm554_vm2, %v5390_v40 }
0x1717   :  { %10653 = vmatprep.subr.mxu1 %v13794_v60  ;;  %10644 = vmatprep.mubr.msk.f32.mxu0 %vm554_vm2, %v5392_v17 }
0x171a   :  { %10645 = vmatmul.mubr.msk.f32.gmra.mxu0 %vm554_vm2, %v5394_v31 }
0x171b   :  { %10647 = vmatprep.mubr.msk.f32.mxu0 %vm554_vm2, %v5396_v9 }
0x171e   :  { %10648 = vmatmul.mubr.msk.f32.gmra.mxu0 %vm554_vm2, %v5398_v43 }
0x171f   :  { %10650 = vmatprep.mubr.msk.f32.mxu0 %vm554_vm2, %v5400_v29 }
0x1722   :  { %10651 = vmatmul.mubr.msk.f32.gmra.mxu0 %vm554_vm2, %v5402_v10 }
0x17b6   :  { %v10587_v44 = vpop.f32.mrf.mxu0 }
0x17b7   :  { %v13804_v28 = vmul.f32 0.35355338, %v10587_v44 }
0x17b8   :  { %v5115_v58 = vpop.f32.mrf.mxu0 }
0x17b9   :  { %v13806_v24 = vmul.f32 0.35355338, %v5115_v58  ;;  %v5165_v52 = vsel %vm129_vm1, %v13804_v28, -inf }
0x17ba   :  { %5166 = vmax.xlane.f32.xlu1 %v5165_v52  ;;  %v10590_v42 = vpop.f32.mrf.mxu0 }
0x17bb   :  { %v13810_v39 = vmul.f32 0.35355338, %v10590_v42  ;;  %v5162_v36 = vsel %vm129_vm1, %v13806_v24, -inf }
0x17bc   :  { %5163 = vmax.xlane.f32.xlu0 %v5162_v36  ;;  %v5125_v2 = vpop.f32.mrf.mxu0 }
0x17bd   :  { %v13814_v46 = vmul.f32 0.35355338, %v5125_v2  ;;  %v5171_v30 = vsel %vm129_vm1, %v13810_v39, -inf }
0x17be   :  { %v10593_v63 = vpop.f32.mrf.mxu0 }
0x17bf   :  { %v13820_v19 = vmul.f32 0.35355338, %v10593_v63  ;;  %v5168_v50 = vsel %vm129_vm1, %v13814_v46, -inf  ;;  %v13872_v63 = vpop.permute.xlu0 %5672 }
0x17c0   :  { %5172 = vmax.xlane.f32.xlu0 %v5171_v30  ;;  %v5135_v0 = vpop.f32.mrf.mxu0 }
0x17c1   :  { %v13818_v6 = vmul.f32 0.35355338, %v5135_v0  ;;  %v5177_v57 = vsel %vm129_vm1, %v13820_v19, -inf }
0x17c2   :  { %v10596_v20 = vpop.f32.mrf.mxu0 }
0x17c3   :  { %v5174_v48 = vsel %vm129_vm1, %v13818_v6, -inf  ;;  %v13828_v56 = vmul.f32 0.35355338, %v10596_v20  ;;  %v13874_v30 = vpop.permute.xlu0 %5666 }
0x17c4   :  { %5169 = vmax.xlane.f32.xlu0 %v5168_v50  ;;  %5175 = vmax.xlane.f32.xlu1 %v5174_v48  ;;  %v5145_v27 = vpop.f32.mrf.mxu0 }
0x17c5   :  { %v13826_v38 = vmul.f32 0.35355338, %v5145_v27  ;;  %v5183_v25 = vsel %vm129_vm1, %v13828_v56, -inf }
0x17c7   :  { %v5180_v55 = vsel %vm129_vm1, %v13826_v38, -inf  ;;  %v13876_v0 = vpop.permute.xlu0 %5662 }
0x17c8   :  { %5178 = vmax.xlane.f32.xlu0 %v5177_v57  ;;  %5181 = vmax.xlane.f32.xlu1 %v5180_v55 }
0x17cb   :  { %v13878_v20 = vpop.permute.xlu0 %5851 }
0x17cc   :  { %5184 = vmax.xlane.f32.xlu0 %v5183_v25 }
0x17d6   :  { %v10643_v35 = vpop.f32.mrf.mxu0 }
0x17d7   :  { %v13836_v14 = vmul.f32 0.35355338, %v10643_v35 }
0x17d8   :  { %v5517_v32 = vpop.f32.mrf.mxu0 }
0x17d9   :  { %v13838_v47 = vmul.f32 0.35355338, %v5517_v32  ;;  %v5567_v33 = vsel %vm129_vm1, %v13836_v14, -inf }
0x17da   :  { %5568 = vmax.xlane.f32.xlu0 %v5567_v33  ;;  %v10646_v45 = vpop.f32.mrf.mxu0 }
0x17db   :  { %v13842_v37 = vmul.f32 0.35355338, %v10646_v45  ;;  %v5564_v16 = vsel %vm129_vm1, %v13838_v47, -inf }
0x17dc   :  { %v5527_v40 = vpop.f32.mrf.mxu0  ;;  %5565 = vmax.xlane.f32.xlu1 %v5564_v16 }
0x17dd   :  { %v13846_v22 = vmul.f32 0.35355338, %v5527_v40  ;;  %v5573_v31 = vsel %vm129_vm1, %v13842_v37, -inf }
0x17de   :  { %5574 = vmax.xlane.f32.xlu0 %v5573_v31  ;;  %v10649_v43 = vpop.f32.mrf.mxu0 }
0x17df   :  { %v13850_v23 = vmul.f32 0.35355338, %v10649_v43  ;;  %v5570_v10 = vsel %vm129_vm1, %v13846_v22, -inf }
0x17e0   :  { %v5537_v49 = vpop.f32.mrf.mxu0  ;;  %5571 = vmax.xlane.f32.xlu1 %v5570_v10 }
0x17e1   :  { %v13854_v17 = vmul.f32 0.35355338, %v5537_v49  ;;  %v5579_v9 = vsel %vm129_vm1, %v13850_v23, -inf }
0x17e2   :  { %5580 = vmax.xlane.f32.xlu0 %v5579_v9  ;;  %v10652_v29 = vpop.f32.mrf.mxu0 }
0x17e3   :  { %v13858_v44 = vmul.f32 0.35355338, %v10652_v29  ;;  %v5576_v58 = vsel %vm129_vm1, %v13854_v17, -inf }
0x17e4   :  { %v5547_v52 = vpop.f32.mrf.mxu0  ;;  %5577 = vmax.xlane.f32.xlu1 %v5576_v58 }
0x17e5   :  { %v13862_v42 = vmul.f32 0.35355338, %v5547_v52  ;;  %v5585_v36 = vsel %vm129_vm1, %v13858_v44, -inf }
0x17e6   :  { %5586 = vmax.xlane.f32.xlu0 %v5585_v36 }
0x17e7   :  { %v5582_v2 = vsel %vm129_vm1, %v13862_v42, -inf }
0x17e8   :  { %5583 = vmax.xlane.f32.xlu1 %v5582_v2 }
0x17f9   :  { %5845 = vrot.lane.b32.xlu1 %v13614_v13, %s11765_s13 }
0x17fc   :  { %5847 = vrot.lane.b32.xlu0 %v13627_v41, %s11765_s13 }
0x1843   :  { %v5167_v50 = vpop.xlane.xlu1 %5166 }
0x1844   :  { %v5187_v48 = vsub.f32 %v13804_v28, %v5167_v50 }
0x1845   :  { %v5164_v27 = vpop.xlane.xlu0 %5163 }
0x1846   :  { %v5196_v57 = vmul.f32 1.442695, %v5187_v48  ;;  %v5186_v55 = vsub.f32 %v13806_v24, %v5164_v27 }
0x1848   :  { %11329 = vpow2.f32 %v5196_v57  ;;  %v5194_v25 = vmul.f32 1.442695, %v5186_v55 }
0x1849   :  { %v5173_v35 = vpop.xlane.xlu0 %5172 }
0x184a   :  { %11331 = vpow2.f32 %v5194_v25  ;;  %v5189_v32 = vsub.f32 %v13810_v39, %v5173_v35 }
0x184c   :  { %v5200_v33 = vmul.f32 1.442695, %v5189_v32 }
0x184d   :  { %v5170_v45 = vpop.xlane.xlu0 %5169  ;;  %v5176_v16 = vpop.xlane.xlu1 %5175 }
0x184e   :  { %11333 = vpow2.f32 %v5200_v33  ;;  %v5188_v40 = vsub.f32 %v13814_v46, %v5170_v45  ;;  %v5190_v31 = vsub.f32 %v13818_v6, %v5176_v16 }
0x1850   :  { %v5198_v43 = vmul.f32 1.442695, %v5188_v40  ;;  %v5202_v28 = vmul.f32 1.442695, %v5190_v31 }
0x1851   :  { %v5179_v10 = vpop.xlane.xlu0 %5178  ;;  %v5182_v49 = vpop.xlane.xlu1 %5181 }
0x1852   :  { %11335 = vpow2.f32 %v5198_v43  ;;  %v5191_v24 = vsub.f32 %v13820_v19, %v5179_v10  ;;  %v5192_v9 = vsub.f32 %v13826_v38, %v5182_v49 }
0x1853   :  { %11337 = vpow2.f32 %v5202_v28 }
0x1854   :  { %v5204_v29 = vmul.f32 1.442695, %v5191_v24  ;;  %v5206_v39 = vmul.f32 1.442695, %v5192_v9 }
0x1855   :  { %v13887_v58 = vpop.eup %11329  ;;  %v5185_v52 = vpop.xlane.xlu0 %5184 }
0x1856   :  { %11339 = vpow2.f32 %v5204_v29  ;;  %v5193_v46 = vsub.f32 %v13828_v56, %v5185_v52  ;;  %v5213_v6 = vsel %vm129_vm1, %v13887_v58, 0.0 }
0x1857   :  { %v13892_v36 = vpop.eup %11331  ;;  %5214 = vadd.xlane.f32.xlu0 %v5213_v6  ;;  %11341 = vpow2.f32 %v5206_v39 }
0x1858   :  { %v5208_v2 = vmul.f32 1.442695, %v5193_v46  ;;  %v5210_v19 = vsel %vm129_vm1, %v13892_v36, 0.0 }
0x1859   :  { %5211 = vadd.xlane.f32.xlu1 %v5210_v19 }
0x185a   :  { %11343 = vpow2.f32 %v5208_v2 }
0x185b   :  { %v13896_v38 = vpop.eup %11333 }
0x185c   :  { %v5219_v50 = vsel %vm129_vm1, %v13896_v38, 0.0 }
0x185d   :  { %5220 = vadd.xlane.f32.xlu0 %v5219_v50 }
0x185f   :  { %v13900_v56 = vpop.eup %11335 }
0x1860   :  { %v5216_v48 = vsel %vm129_vm1, %v13900_v56, 0.0  ;;  %v13904_v27 = vpop.eup %11337 }
0x1861   :  { %5217 = vadd.xlane.f32.xlu1 %v5216_v48  ;;  %v5222_v32 = vsel %vm129_vm1, %v13904_v27, 0.0 }
0x1863   :  { %v13906_v57 = vpop.eup %11339  ;;  %v5569_v55 = vpop.xlane.xlu0 %5568 }
0x1864   :  { %v5589_v25 = vsub.f32 %v13836_v14, %v5569_v55  ;;  %v5225_v35 = vsel %vm129_vm1, %v13906_v57, 0.0  ;;  %v13913_v33 = vpop.eup %11341 }
0x1865   :  { %5226 = vadd.xlane.f32.xlu0 %v5225_v35  ;;  %5223 = vadd.xlane.f32.xlu1 %v5222_v32  ;;  %v5566_v45 = vpop.xlane.xlu1 %5565  ;;  %v5228_v28 = vsel %vm129_vm1, %v13913_v33, 0.0 }
0x1866   :  { %v5598_v16 = vmul.f32 1.442695, %v5589_v25  ;;  %v5588_v40 = vsub.f32 %v13838_v47, %v5566_v45 }
0x1867   :  { %v13916_v31 = vpop.eup %11343  ;;  %v5575_v29 = vpop.xlane.xlu0 %5574 }
0x1868   :  { %11345 = vpow2.f32 %v5598_v16  ;;  %v5596_v43 = vmul.f32 1.442695, %v5588_v40  ;;  %v5231_v14 = vsel %vm129_vm1, %v13916_v31, 0.0  ;;  %v5591_v6 = vsub.f32 %v13842_v37, %v5575_v29 }
0x1869   :  { %5232 = vadd.xlane.f32.xlu0 %v5231_v14  ;;  %5229 = vadd.xlane.f32.xlu1 %v5228_v28  ;;  %v5572_v9 = vpop.xlane.xlu1 %5571 }
0x186a   :  { %11347 = vpow2.f32 %v5596_v43  ;;  %v5590_v52 = vsub.f32 %v13846_v22, %v5572_v9  ;;  %v5602_v48 = vmul.f32 1.442695, %v5591_v6 }
0x186b   :  { %v5581_v46 = vpop.xlane.xlu0 %5580 }
0x186c   :  { %v5600_v2 = vmul.f32 1.442695, %v5590_v52  ;;  %v5593_v55 = vsub.f32 %v13850_v23, %v5581_v46 }
0x186d   :  { %v5578_v39 = vpop.xlane.xlu1 %5577 }
0x186e   :  { %v5592_v19 = vsub.f32 %v13854_v17, %v5578_v39  ;;  %11349 = vpow2.f32 %v5600_v2  ;;  %v5606_v45 = vmul.f32 1.442695, %v5593_v55 }
0x186f   :  { %v5587_v25 = vpop.xlane.xlu0 %5586  ;;  %11351 = vpow2.f32 %v5602_v48 }
0x1870   :  { %v5604_v35 = vmul.f32 1.442695, %v5592_v19  ;;  %v5595_v16 = vsub.f32 %v13858_v44, %v5587_v25 }
0x1871   :  { %v5584_v50 = vpop.xlane.xlu1 %5583 }
0x1872   :  { %v5594_v32 = vsub.f32 %v13862_v42, %v5584_v50  ;;  %11353 = vpow2.f32 %v5604_v35  ;;  %v5610_v37 = vmul.f32 1.442695, %v5595_v16 }
0x1873   :  { %11355 = vpow2.f32 %v5606_v45  ;;  %v13986_v39 = vpop.permute.xlu0 %5847 }
0x1874   :  { %v5608_v22 = vmul.f32 1.442695, %v5594_v32 }
0x1875   :  { %v13922_v10 = vpop.eup %11345  ;;  %v13988_v52 = vpop.permute.xlu1 %5845 }
0x1876   :  { %v5615_v49 = vsel %vm129_vm1, %v13922_v10, 0.0  ;;  %11357 = vpow2.f32 %v5608_v22 }
0x1877   :  { %v13926_v24 = vpop.eup %11347  ;;  %5616 = vadd.xlane.f32.xlu0 %v5615_v49  ;;  %11359 = vpow2.f32 %v5610_v37 }
0x1878   :  { %v5612_v47 = vsel %vm129_vm1, %v13926_v24, 0.0 }
0x1879   :  { %5613 = vadd.xlane.f32.xlu1 %v5612_v47 }
0x187b   :  { %v13940_v17 = vpop.eup %11349 }
0x187c   :  { %v13942_v40 = vpop.eup %11351  ;;  %v5618_v23 = vsel %vm129_vm1, %v13940_v17, 0.0 }
0x187d   :  { %v5621_v42 = vsel %vm129_vm1, %v13942_v40, 0.0 }
0x187f   :  { %v13946_v43 = vpop.eup %11353 }
0x1880   :  { %v13950_v44 = vpop.eup %11355  ;;  %v5624_v14 = vsel %vm129_vm1, %v13946_v43, 0.0 }
0x1881   :  { %v5627_v49 = vsel %vm129_vm1, %v13950_v44, 0.0 }
0x1883   :  { %v13954_v28 = vpop.eup %11357 }
0x1884   :  { %v13958_v47 = vpop.eup %11359  ;;  %v5630_v9 = vsel %vm129_vm1, %v13954_v28, 0.0 }
0x1885   :  { %v5633_v29 = vsel %vm129_vm1, %v13958_v47, 0.0 }
0x188a   :  { %5841 = vrot.lane.b32.xlu1 %v13634_v18, %s11765_s13 }
0x188d   :  { %5843 = vrot.lane.b32.xlu0 %v13647_v53, %s11765_s13 }
0x18ac   :  { %5619 = vadd.xlane.f32.xlu0 %v5618_v23 }
0x18ae   :  { %5622 = vadd.xlane.f32.xlu1 %v5621_v42 }
0x18b0   :  { %5625 = vadd.xlane.f32.xlu0 %v5624_v14 }
0x18b2   :  { %5628 = vadd.xlane.f32.xlu1 %v5627_v49 }
0x18b4   :  { %5631 = vadd.xlane.f32.xlu0 %v5630_v9 }
0x18b6   :  { %5634 = vadd.xlane.f32.xlu1 %v5633_v29 }
0x18c7   :  { %5837 = vrot.lane.b32.xlu1 %v13604_v54, %s11765_s13 }
0x18ca   :  { %5839 = vrot.lane.b32.xlu0 %v13664_v5, %s11765_s13 }
0x18cb   :  { %5823 = vrot.lane.b32.xlu1 %v13664_v5, %s11766_s14 }
0x18ce   :  { %5821 = vrot.lane.b32.xlu0 %v13604_v54, %s11766_s14 }
0x18cf   :  { %5827 = vrot.lane.b32.xlu1 %v13647_v53, %s11766_s14 }
0x18d2   :  { %5825 = vrot.lane.b32.xlu0 %v13634_v18, %s11766_s14 }
0x18d3   :  { %5831 = vrot.lane.b32.xlu1 %v13627_v41, %s11766_s14 }
0x18d6   :  { %5829 = vrot.lane.b32.xlu0 %v13614_v13, %s11766_s14 }
0x18d7   :  { %5835 = vrot.lane.b32.xlu1 %v13617_v21, %s11766_s14 }
0x18da   :  { %5833 = vrot.lane.b32.xlu0 %v13609_v3, %s11766_s14 }
0x18db   :  { %6100 = vrot.lane.b32.xlu1 %v13620_v34, %s11766_s14 }
0x18de   :  { %6098 = vrot.lane.b32.xlu0 %v13630_v59, %s11766_s14 }
0x18df   :  { %6096 = vrot.lane.b32.xlu1 %v13638_v7, %s11766_s14 }
0x18e0   :  { %v5215_v46 = vpop.xlane.xlu0 %5214 }
0x18e1   :  { %11361 = vrcp.f32 %v5215_v46 }
0x18e2   :  { %6092 = vrot.lane.b32.xlu0 %v13655_v12, %s11766_s14  ;;  %v5212_v6 = vpop.xlane.xlu1 %5211 }
0x18e3   :  { %11363 = vrcp.f32 %v5212_v6  ;;  %6094 = vrot.lane.b32.xlu1 %v13650_v11, %s11766_s14 }
0x18e6   :  { %6088 = vrot.lane.b32.xlu0 %v13672_v15, %s11766_s14  ;;  %v5221_v2 = vpop.xlane.xlu0 %5220 }
0x18e7   :  { %6090 = vrot.lane.b32.xlu1 %v13667_v26, %s11766_s14  ;;  %11365 = vrcp.f32 %v5221_v2 }
0x18ea   :  { %6277 = vrot.lane.b32.xlu0 %v13617_v21, %s11767_s15  ;;  %v5218_v19 = vpop.xlane.xlu1 %5217 }
0x18eb   :  { %11367 = vrcp.f32 %v5218_v19  ;;  %6086 = vrot.lane.b32.xlu1 %v13681_v8, %s11766_s14 }
0x18ee   :  { %v5227_v50 = vpop.xlane.xlu0 %5226  ;;  %v5224_v48 = vpop.xlane.xlu1 %5223 }
0x18ef   :  { %v11362_v55 = vpop.eup %11361  ;;  %11369 = vrcp.f32 %v5227_v50  ;;  %6275 = vrot.lane.b32.xlu1 %v13609_v3, %s11767_s15 }
0x18f0   :  { %v11364_v25 = vpop.eup %11363  ;;  %11371 = vrcp.f32 %v5224_v48  ;;  %v5243_v32 = vmul.f32 %v11362_v55, %v13887_v58 }
0x18f1   :  { %v5242_v35 = vmul.f32 %v11364_v25, %v13892_v36 }
0x18f2   :  { %v5233_v45 = vpop.xlane.xlu0 %5232  ;;  %v5230_v16 = vpop.xlane.xlu1 %5229 }
0x18f3   :  { %11373 = vrcp.f32 %v5233_v45  ;;  %10613 = vmatprep.mubr.msk.f32.mxu1 %vm129_vm1, %v5242_v35 }
0x18f4   :  { %11375 = vrcp.f32 %v5230_v16  ;;  %10614 = vmatmul.mubr.msk.f32.vlgmr.msra.gmra.mxu1 %vm129_vm1, %v5243_v32  ;;  %v11366_v22 = vpop.eup %11365 }
0x18f5   :  { %10654 = vmatpush3.msra.mxu1 %v13794_v60  ;;  %v5245_v36 = vmul.f32 %v11366_v22, %v13896_v38 }
0x18f6   :  { %10655 = vmatprep.subr.mxu1 %v13872_v63 }
0x18f7   :  { %10656 = vmatpush3.msra.mxu1 %v13872_v63 }
0x18f8   :  { %v11368_v37 = vpop.eup %11367  ;;  %10657 = vmatprep.subr.mxu1 %v13772_v1 }
0x18f9   :  { %10658 = vmatpush3.msra.mxu1 %v13772_v1  ;;  %v5244_v58 = vmul.f32 %v11368_v37, %v13900_v56 }
0x18fa   :  { %10659 = vmatprep.subr.mxu1 %v13779_v4 }
0x18fb   :  { %10660 = vmatpush3.msra.mxu1 %v13779_v4  ;;  %10616 = vmatprep.mubr.msk.f32.mxu1 %vm129_vm1, %v5244_v58 }
0x18fc   :  { %v11370_v60 = vpop.eup %11369  ;;  %10661 = vmatprep.subr.mxu1 %v13874_v30  ;;  %10617 = vmatmul.mubr.msk.f32.gmra.mxu1 %vm129_vm1, %v5245_v36 }
0x18fd   :  { %v11372_v63 = vpop.eup %11371  ;;  %10662 = vmatpush3.msra.mxu1 %v13874_v30  ;;  %v5247_v1 = vmul.f32 %v11370_v60, %v13906_v57 }
0x18fe   :  { %10663 = vmatprep.subr.mxu1 %v13783_v51  ;;  %v5246_v56 = vmul.f32 %v11372_v63, %v13904_v27 }
0x18ff   :  { %10664 = vmatpush3.msra.mxu1 %v13783_v51 }
0x1900   :  { %v11374_v38 = vpop.eup %11373  ;;  %10619 = vmatprep.mubr.msk.f32.mxu1 %vm129_vm1, %v5246_v56  ;;  %10665 = vmatprep.subr.mxu1 %v13876_v0  ;;  %v5617_v4 = vpop.xlane.xlu0 %5616 }
0x1901   :  { %v11376_v23 = vpop.eup %11375  ;;  %10620 = vmatmul.mubr.msk.f32.gmra.mxu1 %vm129_vm1, %v5247_v1  ;;  %v5249_v42 = vmul.f32 %v11374_v38, %v13916_v31  ;;  %11377 = vrcp.f32 %v5617_v4 }
0x1902   :  { %10666 = vmatpush3.msra.mxu1 %v13876_v0  ;;  %v5614_v30 = vpop.xlane.xlu1 %5613  ;;  %v5248_v57 = vmul.f32 %v11376_v23, %v13913_v33 }
0x1903   :  { %10667 = vmatprep.subr.mxu1 %v13787_v62  ;;  %11379 = vrcp.f32 %v5614_v30 }
0x1904   :  { %10668 = vmatpush3.msra.mxu1 %v13787_v62  ;;  %10622 = vmatprep.mubr.msk.f32.mxu1 %vm129_vm1, %v5248_v57  ;;  %v5844_v62 = vpop.permute.xlu0 %5843 }
0x1905   :  { %10681 = vmatprep.subr.msk.mxu1 %vm554_vm2, %v13878_v20  ;;  %10623 = vmatmul.mubr.msk.f32.gmra.mxu1 %vm129_vm1, %v5249_v42 }
0x190e   :  { %v11378_v51 = vpop.eup %11377 }
0x190f   :  { %v5645_v0 = vmul.f32 %v11378_v51, %v13922_v10 }
0x1910   :  { %v11380_v27 = vpop.eup %11379 }
0x1911   :  { %v5644_v31 = vmul.f32 %v11380_v27, %v13926_v24 }
0x1913   :  { %10669 = vmatprep.mubr.msk.f32.mxu1 %vm129_vm1, %v5644_v31 }
0x1914   :  { %10670 = vmatmul.mubr.msk.f32.vlgmr.msra.gmra.mxu1 %vm129_vm1, %v5645_v0 }
0x1915   :  { %10682 = vmatpush3.xpose.msk.msra.mxu1 %vm554_vm2, %v13878_v20  ;;  %v5842_v20 = vpop.permute.xlu1 %5841 }
0x1916   :  { %10683 = vmatprep.subr.msk.mxu1 %vm554_vm2, %v13791_v61 }
0x1919   :  { %10684 = vmatpush3.xpose.msk.msra.mxu1 %vm554_vm2, %v13791_v61 }
0x191a   :  { %10685 = vmatprep.subr.msk.mxu1 %vm554_vm2, %v13986_v39 }
0x191d   :  { %10686 = vmatpush3.xpose.msk.msra.mxu1 %vm554_vm2, %v13986_v39 }
0x191e   :  { %10687 = vmatprep.subr.msk.mxu1 %vm554_vm2, %v13988_v52 }
0x1921   :  { %10688 = vmatpush3.xpose.msk.msra.mxu1 %vm554_vm2, %v13988_v52 }
0x1922   :  { %10689 = vmatprep.subr.msk.mxu1 %vm554_vm2, %v5844_v62 }
0x1925   :  { %10690 = vmatpush3.xpose.msk.msra.mxu1 %vm554_vm2, %v5844_v62 }
0x1926   :  { %10691 = vmatprep.subr.msk.mxu1 %vm554_vm2, %v5842_v20 }
0x1929   :  { %10692 = vmatpush3.xpose.msk.msra.mxu1 %vm554_vm2, %v5842_v20 }
0x1935   :  { %v5620_v61 = vpop.xlane.xlu0 %5619 }
0x1936   :  { %11381 = vrcp.f32 %v5620_v61 }
0x1937   :  { %v5623_v33 = vpop.xlane.xlu1 %5622 }
0x1938   :  { %11383 = vrcp.f32 %v5623_v33 }
0x1939   :  { %v5626_v10 = vpop.xlane.xlu0 %5625 }
0x193a   :  { %11385 = vrcp.f32 %v5626_v10 }
0x193b   :  { %v5629_v24 = vpop.xlane.xlu1 %5628 }
0x193c   :  { %11387 = vrcp.f32 %v5629_v24 }
0x193d   :  { %v5632_v14 = vpop.xlane.xlu0 %5631 }
0x193e   :  { %11389 = vrcp.f32 %v5632_v14 }
0x193f   :  { %v5635_v49 = vpop.xlane.xlu1 %5634 }
0x1940   :  { %11391 = vrcp.f32 %v5635_v49 }
0x1941   :  { %v5840_v9 = vpop.permute.xlu0 %5839 }
0x1942   :  { %10693 = vmatprep.subr.msk.mxu1 %vm554_vm2, %v5840_v9 }
0x1943   :  { %v11382_v29 = vpop.eup %11381  ;;  %10694 = vmatpush3.xpose.msk.msra.mxu1 %vm554_vm2, %v5840_v9  ;;  %v5838_v39 = vpop.permute.xlu1 %5837 }
0x1944   :  { %10695 = vmatprep.subr.msk.mxu1 %vm554_vm2, %v5838_v39  ;;  %v5646_v52 = vmul.f32 %v11382_v29, %v13940_v17 }
0x1945   :  { %v11384_v46 = vpop.eup %11383  ;;  %v5822_v6 = vpop.permute.xlu0 %5821 }
0x1946   :  { %10672 = vmatprep.mubr.msk.f32.mxu1 %vm129_vm1, %v5646_v52  ;;  %v5647_v2 = vmul.f32 %v11384_v46, %v13942_v40 }
0x1947   :  { %v11386_v19 = vpop.eup %11385  ;;  %10696 = vmatpush3.xpose.msk.msra.mxu1 %vm554_vm2, %v5838_v39  ;;  %v5824_v50 = vpop.permute.xlu1 %5823 }
0x1948   :  { %10673 = vmatmul.mubr.msk.f32.gmra.mxu1 %vm129_vm1, %v5647_v2  ;;  %v5648_v48 = vmul.f32 %v11386_v19, %v13946_v43 }
0x1949   :  { %v11388_v55 = vpop.eup %11387  ;;  %v5826_v25 = vpop.permute.xlu0 %5825 }
0x194a   :  { %10675 = vmatprep.mubr.msk.f32.mxu1 %vm129_vm1, %v5648_v48  ;;  %v5649_v17 = vmul.f32 %v11388_v55, %v13950_v44 }
0x194b   :  { %v11390_v35 = vpop.eup %11389  ;;  %v5828_v32 = vpop.permute.xlu1 %5827 }
0x194c   :  { %10676 = vmatmul.mubr.msk.f32.gmra.mxu1 %vm129_vm1, %v5649_v17  ;;  %v5650_v40 = vmul.f32 %v11390_v35, %v13954_v28 }
0x194d   :  { %v11392_v45 = vpop.eup %11391  ;;  %v5830_v16 = vpop.permute.xlu0 %5829 }
0x194e   :  { %10678 = vmatprep.mubr.msk.f32.mxu1 %vm129_vm1, %v5650_v40  ;;  %v5651_v22 = vmul.f32 %v11392_v45, %v13958_v47 }
0x194f   :  { %v5832_v37 = vpop.permute.xlu1 %5831 }
0x1950   :  { %10679 = vmatmul.mubr.msk.f32.gmra.mxu1 %vm129_vm1, %v5651_v22 }
0x1951   :  { %v5834_v43 = vpop.permute.xlu0 %5833  ;;  %10697 = vmatprep.mubr.msk.f32.mxu1 %vm554_vm2, %v5822_v6 }
0x1953   :  { %v5836_v58 = vpop.permute.xlu1 %5835 }
0x1954   :  { %10698 = vmatmul.mubr.msk.f32.vlgmr.msra.gmra.mxu1 %vm554_vm2, %v5824_v50 }
0x1955   :  { %10700 = vmatprep.mubr.msk.f32.mxu1 %vm554_vm2, %v5826_v25  ;;  %v6099_v44 = vpop.permute.xlu0 %6098 }
0x1957   :  { %v6101_v36 = vpop.permute.xlu1 %6100 }
0x1958   :  { %10701 = vmatmul.mubr.msk.f32.gmra.mxu1 %vm554_vm2, %v5828_v32  ;;  %10709 = vmatprep.subr.mxu0 %v6101_v36 }
0x1959   :  { %10703 = vmatprep.mubr.msk.f32.mxu1 %vm554_vm2, %v5830_v16  ;;  %10710 = vmatpush3.msra.mxu0 %v6101_v36  ;;  %v6093_v47 = vpop.permute.xlu0 %6092 }
0x195a   :  { %10711 = vmatprep.subr.mxu0 %v6099_v44 }
0x195b   :  { %10712 = vmatpush3.msra.mxu0 %v6099_v44  ;;  %v6097_v28 = vpop.permute.xlu1 %6096 }
0x195c   :  { %10704 = vmatmul.mubr.msk.f32.gmra.mxu1 %vm554_vm2, %v5832_v37  ;;  %10713 = vmatprep.subr.mxu0 %v6097_v28 }
0x195d   :  { %10706 = vmatprep.mubr.msk.f32.mxu1 %vm554_vm2, %v5834_v43  ;;  %10714 = vmatpush3.msra.mxu0 %v6097_v28  ;;  %v6089_v63 = vpop.permute.xlu0 %6088 }
0x195f   :  { %v6095_v60 = vpop.permute.xlu1 %6094 }
0x1960   :  { %10707 = vmatmul.mubr.msk.f32.gmra.mxu1 %vm554_vm2, %v5836_v58  ;;  %10715 = vmatprep.subr.mxu0 %v6095_v60 }
0x1961   :  { %10716 = vmatpush3.msra.mxu0 %v6095_v60  ;;  %v14087_v38 = vpop.permute.xlu0 %6277 }
0x1962   :  { %10717 = vmatprep.subr.mxu0 %v6093_v47 }
0x1963   :  { %10718 = vmatpush3.msra.mxu0 %v6093_v47  ;;  %v6091_v1 = vpop.permute.xlu1 %6090 }
0x1964   :  { %10719 = vmatprep.subr.mxu0 %v6091_v1 }
0x1965   :  { %10720 = vmatpush3.msra.mxu0 %v6091_v1 }
0x1966   :  { %10721 = vmatprep.subr.mxu0 %v6089_v63 }
0x1967   :  { %10722 = vmatpush3.msra.mxu0 %v6089_v63  ;;  %v6087_v56 = vpop.permute.xlu1 %6086 }
0x1968   :  { %10723 = vmatprep.subr.mxu0 %v6087_v56 }
0x1969   :  { %10724 = vmatpush3.msra.mxu0 %v6087_v56 }
0x196a   :  { %10737 = vmatprep.subr.msk.mxu0 %vm554_vm2, %v14087_v38 }
0x196b   :  { %v14119_v36 = vpop.permute.xlu1 %6275 }
0x19b4   :  { %v10615_v4 = vpop.f32.mrf.mxu1 }
0x19b5   :  { %5380 = vst.msk [vmem:[#allocation2 + $0x8] sm:$0xff] %vm554_vm2, %v10615_v4 }
0x19b6   :  { %v5340_v23 = vpop.f32.mrf.mxu1 }
0x19b7   :  { %5379 = vst.msk [vmem:[#allocation2] sm:$0xff] %vm554_vm2, %v5340_v23 }
0x19bc   :  { %v10618_v42 = vpop.f32.mrf.mxu1 }
0x19bd   :  { %5382 = vst.msk [vmem:[#allocation2 + $0x18] sm:$0xff] %vm554_vm2, %v10618_v42 }
0x19be   :  { %v5350_v30 = vpop.f32.mrf.mxu1 }
0x19bf   :  { %5381 = vst.msk [vmem:[#allocation2 + $0x10] sm:$0xff] %vm554_vm2, %v5350_v30 }
0x19c1   :  { %v10621_v57 = vpop.f32.mrf.mxu1 }
0x19c2   :  { %5384 = vst.msk [vmem:[#allocation2 + $0x28] sm:$0xff] %vm554_vm2, %v10621_v57 }
0x19c3   :  { %v5360_v51 = vpop.f32.mrf.mxu1 }
0x19c4   :  { %5383 = vst.msk [vmem:[#allocation2 + $0x20] sm:$0xff] %vm554_vm2, %v5360_v51 }
0x19c5   :  { %v10624_v27 = vpop.f32.mrf.mxu1 }
0x19c6   :  { %5386 = vst.msk [vmem:[#allocation2 + $0x38] sm:$0xff] %vm554_vm2, %v10624_v27 }
0x19c7   :  { %v5370_v31 = vpop.f32.mrf.mxu1 }
0x19c8   :  { %5385 = vst.msk [vmem:[#allocation2 + $0x30] sm:$0xff] %vm554_vm2, %v5370_v31 }
0x19d4   :  { %v10671_v0 = vpop.f32.mrf.mxu1 }
0x19d5   :  { %5814 = vst.msk [vmem:[#allocation2 + $0x48] sm:$0xff] %vm554_vm2, %v10671_v0 }
0x19d6   :  { %v5774_v62 = vpop.f32.mrf.mxu1 }
0x19d7   :  { %5813 = vst.msk [vmem:[#allocation2 + $0x40] sm:$0xff] %vm554_vm2, %v5774_v62 }
0x1a08   :  { %v10674_v20 = vpop.f32.mrf.mxu1 }
0x1a09   :  { %5816 = vst.msk [vmem:[#allocation2 + $0x58] sm:$0xff] %vm554_vm2, %v10674_v20 }
0x1a0a   :  { %v5784_v61 = vpop.f32.mrf.mxu1 }
0x1a0b   :  { %5815 = vst.msk [vmem:[#allocation2 + $0x50] sm:$0xff] %vm554_vm2, %v5784_v61 }
0x1a0c   :  { %v10677_v33 = vpop.f32.mrf.mxu1 }
0x1a0d   :  { %5818 = vst.msk [vmem:[#allocation2 + $0x68] sm:$0xff] %vm554_vm2, %v10677_v33 }
0x1a0e   :  { %v5794_v10 = vpop.f32.mrf.mxu1 }
0x1a0f   :  { %5817 = vst.msk [vmem:[#allocation2 + $0x60] sm:$0xff] %vm554_vm2, %v5794_v10 }
0x1a10   :  { %v10680_v24 = vpop.f32.mrf.mxu1 }
0x1a11   :  { %5820 = vst.msk [vmem:[#allocation2 + $0x78] sm:$0xff] %vm554_vm2, %v10680_v24 }
0x1a12   :  { %v5804_v14 = vpop.f32.mrf.mxu1 }
0x1a13   :  { %5819 = vst.msk [vmem:[#allocation2 + $0x70] sm:$0xff] %vm554_vm2, %v5804_v14 }
0x1a14   :  { %v10699_v49 = vpop.f32.mrf.mxu1 }
0x1a15   :  { %v5991_v9 = vmul.f32 0.35355338, %v10699_v49 }
0x1a16   :  { %v5951_v29 = vpop.f32.mrf.mxu1 }
0x1a17   :  { %v5990_v39 = vmul.f32 0.35355338, %v5951_v29  ;;  %v6001_v52 = vsel %vm129_vm1, %v5991_v9, -inf }
0x1a18   :  { %6002 = vmax.xlane.f32.xlu1 %v6001_v52  ;;  %v10702_v46 = vpop.f32.mrf.mxu1 }
0x1a19   :  { %v5993_v6 = vmul.f32 0.35355338, %v10702_v46  ;;  %v5998_v2 = vsel %vm129_vm1, %v5990_v39, -inf }
0x1a1a   :  { %5999 = vmax.xlane.f32.xlu0 %v5998_v2  ;;  %v5961_v19 = vpop.f32.mrf.mxu1 }
0x1a1b   :  { %v5992_v48 = vmul.f32 0.35355338, %v5961_v19  ;;  %v6007_v55 = vsel %vm129_vm1, %v5993_v6, -inf }
0x1a1c   :  { %v10705_v50 = vpop.f32.mrf.mxu1 }
0x1a1d   :  { %v5995_v32 = vmul.f32 0.35355338, %v10705_v50  ;;  %v6004_v40 = vsel %vm129_vm1, %v5992_v48, -inf }
0x1a1e   :  { %6008 = vmax.xlane.f32.xlu0 %v6007_v55  ;;  %v5971_v25 = vpop.f32.mrf.mxu1 }
0x1a1f   :  { %v5994_v17 = vmul.f32 0.35355338, %v5971_v25  ;;  %v6013_v43 = vsel %vm129_vm1, %v5995_v32, -inf }
0x1a20   :  { %v10708_v35 = vpop.f32.mrf.mxu1 }
0x1a21   :  { %v6010_v45 = vsel %vm129_vm1, %v5994_v17, -inf  ;;  %v5997_v37 = vmul.f32 0.35355338, %v10708_v35 }
0x1a22   :  { %6005 = vmax.xlane.f32.xlu0 %v6004_v40  ;;  %6011 = vmax.xlane.f32.xlu1 %v6010_v45  ;;  %v5981_v16 = vpop.f32.mrf.mxu1 }
0x1a23   :  { %v5996_v22 = vmul.f32 0.35355338, %v5981_v16  ;;  %v6019_v44 = vsel %vm129_vm1, %v5997_v37, -inf }
0x1a25   :  { %v6016_v58 = vsel %vm129_vm1, %v5996_v22, -inf }
0x1a26   :  { %6014 = vmax.xlane.f32.xlu0 %v6013_v43  ;;  %6017 = vmax.xlane.f32.xlu1 %v6016_v58 }
0x1a2a   :  { %6020 = vmax.xlane.f32.xlu0 %v6019_v44 }
0x1a37   :  { %6271 = vrot.lane.b32.xlu1 %v13614_v13, %s11767_s15 }
0x1a40   :  { %6273 = vrot.lane.b32.xlu0 %v13627_v41, %s11767_s15 }
0x1aa1   :  { %v6003_v28 = vpop.xlane.xlu1 %6002 }
0x1aa2   :  { %v6023_v47 = vsub.f32 %v5991_v9, %v6003_v28 }
0x1aa3   :  { %v6000_v60 = vpop.xlane.xlu0 %5999 }
0x1aa4   :  { %v6032_v63 = vmul.f32 1.442695, %v6023_v47  ;;  %v6022_v1 = vsub.f32 %v5990_v39, %v6000_v60 }
0x1aa6   :  { %11393 = vpow2.f32 %v6032_v63  ;;  %v6030_v56 = vmul.f32 1.442695, %v6022_v1 }
0x1aa7   :  { %v6009_v57 = vpop.xlane.xlu0 %6008 }
0x1aa8   :  { %11395 = vpow2.f32 %v6030_v56  ;;  %v6025_v62 = vsub.f32 %v5993_v6, %v6009_v57 }
0x1aaa   :  { %v6036_v10 = vmul.f32 1.442695, %v6025_v62 }
0x1aab   :  { %v6006_v51 = vpop.xlane.xlu0 %6005  ;;  %v6012_v27 = vpop.xlane.xlu1 %6011 }
0x1aac   :  { %v6024_v31 = vsub.f32 %v5992_v48, %v6006_v51  ;;  %v6026_v61 = vsub.f32 %v5994_v17, %v6012_v27 }
0x1aae   :  { %v6034_v20 = vmul.f32 1.442695, %v6024_v31  ;;  %v6038_v49 = vmul.f32 1.442695, %v6026_v61 }
0x1aaf   :  { %v6015_v0 = vpop.xlane.xlu0 %6014  ;;  %v6018_v33 = vpop.xlane.xlu1 %6017 }
0x1ab0   :  { %v6027_v24 = vsub.f32 %v5995_v32, %v6015_v0  ;;  %11397 = vpow2.f32 %v6034_v20  ;;  %v6028_v9 = vsub.f32 %v5996_v22, %v6018_v33 }
0x1ab1   :  { %11399 = vpow2.f32 %v6036_v10 }
0x1ab2   :  { %v6040_v29 = vmul.f32 1.442695, %v6027_v24  ;;  %11401 = vpow2.f32 %v6038_v49  ;;  %v6042_v52 = vmul.f32 1.442695, %v6028_v9 }
0x1ab3   :  { %v14121_v4 = vpop.eup %11393  ;;  %v6021_v14 = vpop.xlane.xlu0 %6020 }
0x1ab4   :  { %v6049_v23 = vsel %vm129_vm1, %v14121_v4, 0.0  ;;  %v6029_v39 = vsub.f32 %v5997_v37, %v6021_v14  ;;  %11403 = vpow2.f32 %v6040_v29  ;;  %v6272_v22 = vpop.permute.xlu1 %6271 }
0x1ab5   :  { %v14125_v42 = vpop.eup %11395  ;;  %6050 = vadd.xlane.f32.xlu0 %v6049_v23  ;;  %11405 = vpow2.f32 %v6042_v52 }
0x1ab6   :  { %v6046_v30 = vsel %vm129_vm1, %v14125_v42, 0.0  ;;  %v6044_v46 = vmul.f32 1.442695, %v6029_v39 }
0x1ab7   :  { %6047 = vadd.xlane.f32.xlu1 %v6046_v30  ;;  %v6274_v16 = vpop.permute.xlu0 %6273 }
0x1ab8   :  { %11407 = vpow2.f32 %v6044_v46 }
0x1abd   :  { %v14133_v2 = vpop.eup %11397 }
0x1abe   :  { %v14135_v6 = vpop.eup %11399  ;;  %v6052_v19 = vsel %vm129_vm1, %v14133_v2, 0.0 }
0x1abf   :  { %v14139_v50 = vpop.eup %11401  ;;  %v6055_v48 = vsel %vm129_vm1, %v14135_v6, 0.0 }
0x1ac0   :  { %v6058_v25 = vsel %vm129_vm1, %v14139_v50, 0.0 }
0x1ac1   :  { %v14143_v55 = vpop.eup %11403 }
0x1ac2   :  { %v14147_v17 = vpop.eup %11405  ;;  %v6061_v35 = vsel %vm129_vm1, %v14143_v55, 0.0 }
0x1ac3   :  { %v6064_v40 = vsel %vm129_vm1, %v14147_v17, 0.0 }
0x1ac5   :  { %v14151_v32 = vpop.eup %11407 }
0x1ac6   :  { %v6067_v45 = vsel %vm129_vm1, %v14151_v32, 0.0 }
0x1ac8   :  { %6267 = vrot.lane.b32.xlu1 %v13634_v18, %s11767_s15 }
0x1acb   :  { %6269 = vrot.lane.b32.xlu0 %v13647_v53, %s11767_s15 }
0x1aea   :  { %6053 = vadd.xlane.f32.xlu0 %v6052_v19 }
0x1aec   :  { %6056 = vadd.xlane.f32.xlu1 %v6055_v48 }
0x1aee   :  { %6059 = vadd.xlane.f32.xlu0 %v6058_v25 }
0x1af0   :  { %6062 = vadd.xlane.f32.xlu1 %v6061_v35 }
0x1af2   :  { %6065 = vadd.xlane.f32.xlu0 %v6064_v40 }
0x1af4   :  { %6068 = vadd.xlane.f32.xlu1 %v6067_v45 }
0x1b05   :  { %6263 = vrot.lane.b32.xlu1 %v13604_v54, %s11767_s15 }
0x1b08   :  { %6265 = vrot.lane.b32.xlu0 %v13664_v5, %s11767_s15 }
0x1b09   :  { %6249 = vrot.lane.b32.xlu1 %v13664_v5, %s11768_s16 }
0x1b0c   :  { %6247 = vrot.lane.b32.xlu0 %v13604_v54, %s11768_s16 }
0x1b0d   :  { %6253 = vrot.lane.b32.xlu1 %v13647_v53, %s11768_s16 }
0x1b10   :  { %6251 = vrot.lane.b32.xlu0 %v13634_v18, %s11768_s16 }
0x1b11   :  { %6257 = vrot.lane.b32.xlu1 %v13627_v41, %s11768_s16 }
0x1b14   :  { %6255 = vrot.lane.b32.xlu0 %v13614_v13, %s11768_s16 }
0x1b15   :  { %6261 = vrot.lane.b32.xlu1 %v13617_v21, %s11768_s16 }
0x1b18   :  { %6259 = vrot.lane.b32.xlu0 %v13609_v3, %s11768_s16 }
0x1b19   :  { %6526 = vrot.lane.b32.xlu1 %v13620_v34, %s11768_s16 }
0x1b1c   :  { %6524 = vrot.lane.b32.xlu0 %v13630_v59, %s11768_s16 }
0x1b1d   :  { %6522 = vrot.lane.b32.xlu1 %v13638_v7, %s11768_s16 }
0x1b20   :  { %6518 = vrot.lane.b32.xlu0 %v13655_v12, %s11768_s16 }
0x1b21   :  { %6520 = vrot.lane.b32.xlu1 %v13650_v11, %s11768_s16 }
0x1b24   :  { %6514 = vrot.lane.b32.xlu0 %v13672_v15, %s11768_s16 }
0x1b25   :  { %6516 = vrot.lane.b32.xlu1 %v13667_v26, %s11768_s16 }
0x1b28   :  { %6703 = vrot.lane.b32.xlu0 %v13617_v21, %s11769_s17 }
0x1b29   :  { %6512 = vrot.lane.b32.xlu1 %v13681_v8, %s11768_s16 }
0x1b2d   :  { %6701 = vrot.lane.b32.xlu1 %v13609_v3, %s11769_s17 }
0x1b3e   :  { %v6051_v37 = vpop.xlane.xlu0 %6050 }
0x1b3f   :  { %11409 = vrcp.f32 %v6051_v37 }
0x1b40   :  { %v6048_v43 = vpop.xlane.xlu1 %6047 }
0x1b41   :  { %11411 = vrcp.f32 %v6048_v43 }
0x1b42   :  { %v6270_v60 = vpop.permute.xlu0 %6269 }
0x1b44   :  { %v6268_v63 = vpop.permute.xlu1 %6267 }
0x1b4c   :  { %v11410_v58 = vpop.eup %11409 }
0x1b4d   :  { %v6079_v47 = vmul.f32 %v11410_v58, %v14121_v4 }
0x1b4e   :  { %v11412_v44 = vpop.eup %11411 }
0x1b4f   :  { %v6078_v28 = vmul.f32 %v11412_v44, %v14125_v42 }
0x1b51   :  { %10725 = vmatprep.mubr.msk.f32.mxu0 %vm129_vm1, %v6078_v28 }
0x1b52   :  { %10726 = vmatmul.mubr.msk.f32.vlgmr.msra.gmra.mxu0 %vm129_vm1, %v6079_v47 }
0x1b53   :  { %10738 = vmatpush3.xpose.msk.msra.mxu0 %vm554_vm2, %v14087_v38 }
0x1b54   :  { %10739 = vmatprep.subr.msk.mxu0 %vm554_vm2, %v14119_v36 }
0x1b57   :  { %10740 = vmatpush3.xpose.msk.msra.mxu0 %vm554_vm2, %v14119_v36 }
0x1b58   :  { %10741 = vmatprep.subr.msk.mxu0 %vm554_vm2, %v6274_v16 }
0x1b5b   :  { %10742 = vmatpush3.xpose.msk.msra.mxu0 %vm554_vm2, %v6274_v16 }
0x1b5c   :  { %10743 = vmatprep.subr.msk.mxu0 %vm554_vm2, %v6272_v22 }
0x1b5f   :  { %10744 = vmatpush3.xpose.msk.msra.mxu0 %vm554_vm2, %v6272_v22 }
0x1b60   :  { %10745 = vmatprep.subr.msk.mxu0 %vm554_vm2, %v6270_v60 }
0x1b63   :  { %10746 = vmatpush3.xpose.msk.msra.mxu0 %vm554_vm2, %v6270_v60 }
0x1b64   :  { %10747 = vmatprep.subr.msk.mxu0 %vm554_vm2, %v6268_v63 }
0x1b67   :  { %10748 = vmatpush3.xpose.msk.msra.mxu0 %vm554_vm2, %v6268_v63 }
0x1b73   :  { %v6054_v38 = vpop.xlane.xlu0 %6053 }
0x1b74   :  { %11413 = vrcp.f32 %v6054_v38 }
0x1b75   :  { %v6057_v36 = vpop.xlane.xlu1 %6056 }
0x1b76   :  { %11415 = vrcp.f32 %v6057_v36 }
0x1b77   :  { %v6060_v1 = vpop.xlane.xlu0 %6059 }
0x1b78   :  { %11417 = vrcp.f32 %v6060_v1 }
0x1b79   :  { %v6063_v56 = vpop.xlane.xlu1 %6062 }
0x1b7a   :  { %11419 = vrcp.f32 %v6063_v56 }
0x1b7b   :  { %v6066_v4 = vpop.xlane.xlu0 %6065 }
0x1b7c   :  { %11421 = vrcp.f32 %v6066_v4 }
0x1b7d   :  { %v6069_v23 = vpop.xlane.xlu1 %6068 }
0x1b7e   :  { %11423 = vrcp.f32 %v6069_v23 }
0x1b7f   :  { %v6266_v42 = vpop.permute.xlu0 %6265 }
0x1b80   :  { %10749 = vmatprep.subr.msk.mxu0 %vm554_vm2, %v6266_v42 }
0x1b81   :  { %v11414_v30 = vpop.eup %11413  ;;  %10750 = vmatpush3.xpose.msk.msra.mxu0 %vm554_vm2, %v6266_v42  ;;  %v6264_v57 = vpop.permute.xlu1 %6263 }
0x1b82   :  { %10751 = vmatprep.subr.msk.mxu0 %vm554_vm2, %v6264_v57  ;;  %v6080_v51 = vmul.f32 %v11414_v30, %v14133_v2 }
0x1b83   :  { %v11416_v27 = vpop.eup %11415  ;;  %v6248_v31 = vpop.permute.xlu0 %6247 }
0x1b84   :  { %10728 = vmatprep.mubr.msk.f32.mxu0 %vm129_vm1, %v6080_v51  ;;  %v6081_v0 = vmul.f32 %v11416_v27, %v14135_v6 }
0x1b85   :  { %v11418_v62 = vpop.eup %11417  ;;  %10752 = vmatpush3.xpose.msk.msra.mxu0 %vm554_vm2, %v6264_v57  ;;  %v6250_v20 = vpop.permute.xlu1 %6249 }
0x1b86   :  { %10729 = vmatmul.mubr.msk.f32.gmra.mxu0 %vm129_vm1, %v6081_v0  ;;  %v6082_v61 = vmul.f32 %v11418_v62, %v14139_v50 }
0x1b87   :  { %v11420_v33 = vpop.eup %11419  ;;  %v6252_v10 = vpop.permute.xlu0 %6251 }
0x1b88   :  { %10731 = vmatprep.mubr.msk.f32.mxu0 %vm129_vm1, %v6082_v61  ;;  %v6083_v24 = vmul.f32 %v11420_v33, %v14143_v55 }
0x1b89   :  { %v11422_v14 = vpop.eup %11421  ;;  %v6254_v49 = vpop.permute.xlu1 %6253 }
0x1b8a   :  { %10732 = vmatmul.mubr.msk.f32.gmra.mxu0 %vm129_vm1, %v6083_v24  ;;  %v6084_v9 = vmul.f32 %v11422_v14, %v14147_v17 }
0x1b8b   :  { %v11424_v29 = vpop.eup %11423  ;;  %v6256_v39 = vpop.permute.xlu0 %6255 }
0x1b8c   :  { %10734 = vmatprep.mubr.msk.f32.mxu0 %vm129_vm1, %v6084_v9  ;;  %v6085_v52 = vmul.f32 %v11424_v29, %v14151_v32 }
0x1b8d   :  { %v6258_v46 = vpop.permute.xlu1 %6257 }
0x1b8e   :  { %10735 = vmatmul.mubr.msk.f32.gmra.mxu0 %vm129_vm1, %v6085_v52 }
0x1b8f   :  { %v6260_v2 = vpop.permute.xlu0 %6259  ;;  %10753 = vmatprep.mubr.msk.f32.mxu0 %vm554_vm2, %v6248_v31 }
0x1b91   :  { %v6262_v6 = vpop.permute.xlu1 %6261 }
0x1b92   :  { %10754 = vmatmul.mubr.msk.f32.vlgmr.msra.gmra.mxu0 %vm554_vm2, %v6250_v20 }
0x1b93   :  { %10756 = vmatprep.mubr.msk.f32.mxu0 %vm554_vm2, %v6252_v10  ;;  %v6525_v19 = vpop.permute.xlu0 %6524 }
0x1b95   :  { %v6527_v50 = vpop.permute.xlu1 %6526 }
0x1b96   :  { %10757 = vmatmul.mubr.msk.f32.gmra.mxu0 %vm554_vm2, %v6254_v49  ;;  %10765 = vmatprep.subr.mxu1 %v6527_v50 }
0x1b97   :  { %10759 = vmatprep.mubr.msk.f32.mxu0 %vm554_vm2, %v6256_v39  ;;  %10766 = vmatpush3.msra.mxu1 %v6527_v50  ;;  %v6519_v55 = vpop.permute.xlu0 %6518 }
0x1b98   :  { %10767 = vmatprep.subr.mxu1 %v6525_v19 }
0x1b99   :  { %10768 = vmatpush3.msra.mxu1 %v6525_v19  ;;  %v6523_v48 = vpop.permute.xlu1 %6522 }
0x1b9a   :  { %10760 = vmatmul.mubr.msk.f32.gmra.mxu0 %vm554_vm2, %v6258_v46  ;;  %10769 = vmatprep.subr.mxu1 %v6523_v48 }
0x1b9b   :  { %10762 = vmatprep.mubr.msk.f32.mxu0 %vm554_vm2, %v6260_v2  ;;  %10770 = vmatpush3.msra.mxu1 %v6523_v48  ;;  %v6515_v17 = vpop.permute.xlu0 %6514 }
0x1b9d   :  { %v6521_v25 = vpop.permute.xlu1 %6520 }
0x1b9e   :  { %10763 = vmatmul.mubr.msk.f32.gmra.mxu0 %vm554_vm2, %v6262_v6  ;;  %10771 = vmatprep.subr.mxu1 %v6521_v25 }
0x1b9f   :  { %10772 = vmatpush3.msra.mxu1 %v6521_v25  ;;  %v14239_v40 = vpop.permute.xlu0 %6703 }
0x1ba0   :  { %10773 = vmatprep.subr.mxu1 %v6519_v55 }
0x1ba1   :  { %10774 = vmatpush3.msra.mxu1 %v6519_v55  ;;  %v6517_v35 = vpop.permute.xlu1 %6516 }
0x1ba2   :  { %10775 = vmatprep.subr.mxu1 %v6517_v35 }
0x1ba3   :  { %10776 = vmatpush3.msra.mxu1 %v6517_v35 }
0x1ba4   :  { %10777 = vmatprep.subr.mxu1 %v6515_v17 }
0x1ba5   :  { %10778 = vmatpush3.msra.mxu1 %v6515_v17  ;;  %v6513_v32 = vpop.permute.xlu1 %6512 }
0x1ba6   :  { %10779 = vmatprep.subr.mxu1 %v6513_v32 }
0x1ba7   :  { %10780 = vmatpush3.msra.mxu1 %v6513_v32 }
0x1ba8   :  { %10793 = vmatprep.subr.msk.mxu1 %vm554_vm2, %v14239_v40 }
0x1ba9   :  { %v14263_v9 = vpop.permute.xlu1 %6701 }
0x1c12   :  { %v10727_v45 = vpop.f32.mrf.mxu0 }
0x1c13   :  { %6240 = vst.msk [vmem:[#allocation2 + $0x88] sm:$0xff] %vm554_vm2, %v10727_v45 }
0x1c14   :  { %v6200_v16 = vpop.f32.mrf.mxu0 }
0x1c15   :  { %6239 = vst.msk [vmem:[#allocation2 + $0x80] sm:$0xff] %vm554_vm2, %v6200_v16 }
0x1c46   :  { %v10730_v22 = vpop.f32.mrf.mxu0 }
0x1c47   :  { %6242 = vst.msk [vmem:[#allocation2 + $0x98] sm:$0xff] %vm554_vm2, %v10730_v22 }
0x1c48   :  { %v6210_v37 = vpop.f32.mrf.mxu0 }
0x1c49   :  { %6241 = vst.msk [vmem:[#allocation2 + $0x90] sm:$0xff] %vm554_vm2, %v6210_v37 }
0x1c4a   :  { %v10733_v43 = vpop.f32.mrf.mxu0 }
0x1c4b   :  { %6244 = vst.msk [vmem:[#allocation2 + $0xa8] sm:$0xff] %vm554_vm2, %v10733_v43 }
0x1c4c   :  { %v6220_v58 = vpop.f32.mrf.mxu0 }
0x1c4d   :  { %6243 = vst.msk [vmem:[#allocation2 + $0xa0] sm:$0xff] %vm554_vm2, %v6220_v58 }
0x1c4e   :  { %v10736_v44 = vpop.f32.mrf.mxu0 }
0x1c4f   :  { %6246 = vst.msk [vmem:[#allocation2 + $0xb8] sm:$0xff] %vm554_vm2, %v10736_v44 }
0x1c50   :  { %v6230_v28 = vpop.f32.mrf.mxu0 }
0x1c51   :  { %6245 = vst.msk [vmem:[#allocation2 + $0xb0] sm:$0xff] %vm554_vm2, %v6230_v28 }
0x1c52   :  { %v10755_v47 = vpop.f32.mrf.mxu0 }
0x1c53   :  { %v6417_v60 = vmul.f32 0.35355338, %v10755_v47 }
0x1c54   :  { %v6377_v63 = vpop.f32.mrf.mxu0 }
0x1c55   :  { %v6416_v38 = vmul.f32 0.35355338, %v6377_v63  ;;  %v6427_v36 = vsel %vm129_vm1, %v6417_v60, -inf }
0x1c56   :  { %6428 = vmax.xlane.f32.xlu1 %v6427_v36  ;;  %v10758_v1 = vpop.f32.mrf.mxu0 }
0x1c57   :  { %v6419_v56 = vmul.f32 0.35355338, %v10758_v1  ;;  %v6424_v4 = vsel %vm129_vm1, %v6416_v38, -inf }
0x1c58   :  { %6425 = vmax.xlane.f32.xlu0 %v6424_v4  ;;  %v6387_v23 = vpop.f32.mrf.mxu0 }
0x1c59   :  { %v6418_v30 = vmul.f32 0.35355338, %v6387_v23  ;;  %v6433_v57 = vsel %vm129_vm1, %v6419_v56, -inf }
0x1c5a   :  { %v10761_v42 = vpop.f32.mrf.mxu0 }
0x1c5b   :  { %v6421_v0 = vmul.f32 0.35355338, %v10761_v42  ;;  %v6430_v62 = vsel %vm129_vm1, %v6418_v30, -inf }
0x1c5c   :  { %6434 = vmax.xlane.f32.xlu0 %v6433_v57  ;;  %v6397_v51 = vpop.f32.mrf.mxu0 }
0x1c5d   :  { %v6420_v27 = vmul.f32 0.35355338, %v6397_v51  ;;  %v6439_v24 = vsel %vm129_vm1, %v6421_v0, -inf }
0x1c5e   :  { %v10764_v31 = vpop.f32.mrf.mxu0 }
0x1c5f   :  { %v6436_v20 = vsel %vm129_vm1, %v6420_v27, -inf  ;;  %v6423_v10 = vmul.f32 0.35355338, %v10764_v31 }
0x1c60   :  { %6431 = vmax.xlane.f32.xlu0 %v6430_v62  ;;  %6437 = vmax.xlane.f32.xlu1 %v6436_v20  ;;  %v6407_v61 = vpop.f32.mrf.mxu0 }
0x1c61   :  { %v6422_v33 = vmul.f32 0.35355338, %v6407_v61  ;;  %v6445_v49 = vsel %vm129_vm1, %v6423_v10, -inf }
0x1c63   :  { %v6442_v14 = vsel %vm129_vm1, %v6422_v33, -inf }
0x1c64   :  { %6440 = vmax.xlane.f32.xlu0 %v6439_v24  ;;  %6443 = vmax.xlane.f32.xlu1 %v6442_v14 }
0x1c68   :  { %6446 = vmax.xlane.f32.xlu0 %v6445_v49 }
0x1c75   :  { %6697 = vrot.lane.b32.xlu1 %v13614_v13, %s11769_s17 }
0x1c7e   :  { %6699 = vrot.lane.b32.xlu0 %v13627_v41, %s11769_s17 }
0x1cdf   :  { %v6429_v29 = vpop.xlane.xlu1 %6428 }
0x1ce0   :  { %v6449_v39 = vsub.f32 %v6417_v60, %v6429_v29 }
0x1ce1   :  { %v6426_v52 = vpop.xlane.xlu0 %6425 }
0x1ce2   :  { %v6458_v46 = vmul.f32 1.442695, %v6449_v39  ;;  %v6448_v2 = vsub.f32 %v6416_v38, %v6426_v52 }
0x1ce4   :  { %11425 = vpow2.f32 %v6458_v46  ;;  %v6456_v6 = vmul.f32 1.442695, %v6448_v2 }
0x1ce5   :  { %v6435_v25 = vpop.xlane.xlu0 %6434 }
0x1ce6   :  { %11427 = vpow2.f32 %v6456_v6  ;;  %v6451_v16 = vsub.f32 %v6419_v56, %v6435_v25 }
0x1ce8   :  { %v6462_v58 = vmul.f32 1.442695, %v6451_v16 }
0x1ce9   :  { %v6432_v17 = vpop.xlane.xlu0 %6431  ;;  %v6438_v35 = vpop.xlane.xlu1 %6437 }
0x1cea   :  { %v6450_v32 = vsub.f32 %v6418_v30, %v6432_v17  ;;  %v6452_v37 = vsub.f32 %v6420_v27, %v6438_v35 }
0x1cec   :  { %v6460_v22 = vmul.f32 1.442695, %v6450_v32  ;;  %v6464_v47 = vmul.f32 1.442695, %v6452_v37 }
0x1ced   :  { %v6441_v45 = vpop.xlane.xlu0 %6440  ;;  %v6444_v43 = vpop.xlane.xlu1 %6443 }
0x1cee   :  { %v6453_v44 = vsub.f32 %v6421_v0, %v6441_v45  ;;  %11429 = vpow2.f32 %v6460_v22  ;;  %v6454_v60 = vsub.f32 %v6422_v33, %v6444_v43 }
0x1cef   :  { %11431 = vpow2.f32 %v6462_v58 }
0x1cf0   :  { %v6466_v63 = vmul.f32 1.442695, %v6453_v44  ;;  %11433 = vpow2.f32 %v6464_v47  ;;  %v6468_v36 = vmul.f32 1.442695, %v6454_v60 }
0x1cf1   :  { %v14265_v19 = vpop.eup %11425  ;;  %v6447_v28 = vpop.xlane.xlu0 %6446 }
0x1cf2   :  { %v6475_v50 = vsel %vm129_vm1, %v14265_v19, 0.0  ;;  %v6455_v38 = vsub.f32 %v6423_v10, %v6447_v28  ;;  %11435 = vpow2.f32 %v6466_v63  ;;  %v6698_v33 = vpop.permute.xlu1 %6697 }
0x1cf3   :  { %v14269_v48 = vpop.eup %11427  ;;  %6476 = vadd.xlane.f32.xlu0 %v6475_v50  ;;  %11437 = vpow2.f32 %v6468_v36 }
0x1cf4   :  { %v6472_v55 = vsel %vm129_vm1, %v14269_v48, 0.0  ;;  %v6470_v1 = vmul.f32 1.442695, %v6455_v38 }
0x1cf5   :  { %6473 = vadd.xlane.f32.xlu1 %v6472_v55  ;;  %v6700_v61 = vpop.permute.xlu0 %6699 }
0x1cf6   :  { %11439 = vpow2.f32 %v6470_v1 }
0x1cfb   :  { %v14277_v4 = vpop.eup %11429 }
0x1cfc   :  { %v14279_v56 = vpop.eup %11431  ;;  %v6478_v23 = vsel %vm129_vm1, %v14277_v4, 0.0 }
0x1cfd   :  { %v14283_v42 = vpop.eup %11433  ;;  %v6481_v30 = vsel %vm129_vm1, %v14279_v56, 0.0 }
0x1cfe   :  { %v6484_v51 = vsel %vm129_vm1, %v14283_v42, 0.0 }
0x1cff   :  { %v14287_v57 = vpop.eup %11435 }
0x1d00   :  { %v14291_v27 = vpop.eup %11437  ;;  %v6487_v31 = vsel %vm129_vm1, %v14287_v57, 0.0 }
0x1d01   :  { %v6490_v62 = vsel %vm129_vm1, %v14291_v27, 0.0 }
0x1d03   :  { %v14295_v0 = vpop.eup %11439 }
0x1d04   :  { %v6493_v20 = vsel %vm129_vm1, %v14295_v0, 0.0 }
0x1d06   :  { %6693 = vrot.lane.b32.xlu1 %v13634_v18, %s11769_s17 }
0x1d09   :  { %6695 = vrot.lane.b32.xlu0 %v13647_v53, %s11769_s17 }
0x1d28   :  { %6479 = vadd.xlane.f32.xlu0 %v6478_v23 }
0x1d2a   :  { %6482 = vadd.xlane.f32.xlu1 %v6481_v30 }
0x1d2c   :  { %6485 = vadd.xlane.f32.xlu0 %v6484_v51 }
0x1d2e   :  { %6488 = vadd.xlane.f32.xlu1 %v6487_v31 }
0x1d30   :  { %6491 = vadd.xlane.f32.xlu0 %v6490_v62 }
0x1d32   :  { %6494 = vadd.xlane.f32.xlu1 %v6493_v20 }
0x1d43   :  { %6689 = vrot.lane.b32.xlu1 %v13604_v54, %s11769_s17 }
0x1d46   :  { %6691 = vrot.lane.b32.xlu0 %v13664_v5, %s11769_s17 }
0x1d47   :  { %6675 = vrot.lane.b32.xlu1 %v13664_v5, %s11770_s18 }
0x1d4a   :  { %6673 = vrot.lane.b32.xlu0 %v13604_v54, %s11770_s18 }
0x1d4b   :  { %6679 = vrot.lane.b32.xlu1 %v13647_v53, %s11770_s18 }
0x1d4e   :  { %6677 = vrot.lane.b32.xlu0 %v13634_v18, %s11770_s18 }
0x1d4f   :  { %6683 = vrot.lane.b32.xlu1 %v13627_v41, %s11770_s18 }
0x1d52   :  { %6681 = vrot.lane.b32.xlu0 %v13614_v13, %s11770_s18 }
0x1d53   :  { %6687 = vrot.lane.b32.xlu1 %v13617_v21, %s11770_s18 }
0x1d56   :  { %6685 = vrot.lane.b32.xlu0 %v13609_v3, %s11770_s18 }
0x1d57   :  { %6952 = vrot.lane.b32.xlu1 %v13620_v34, %s11770_s18 }
0x1d5a   :  { %6950 = vrot.lane.b32.xlu0 %v13630_v59, %s11770_s18 }
0x1d5b   :  { %6948 = vrot.lane.b32.xlu1 %v13638_v7, %s11770_s18 }
0x1d5e   :  { %6944 = vrot.lane.b32.xlu0 %v13655_v12, %s11770_s18 }
0x1d5f   :  { %6946 = vrot.lane.b32.xlu1 %v13650_v11, %s11770_s18 }
0x1d62   :  { %6940 = vrot.lane.b32.xlu0 %v13672_v15, %s11770_s18 }
0x1d63   :  { %6942 = vrot.lane.b32.xlu1 %v13667_v26, %s11770_s18 }
0x1d66   :  { %7129 = vrot.lane.b32.xlu0 %v13617_v21, %s11771_s19 }
0x1d67   :  { %6938 = vrot.lane.b32.xlu1 %v13681_v8, %s11770_s18 }
0x1d6b   :  { %7127 = vrot.lane.b32.xlu1 %v13609_v3, %s11771_s19 }
0x1d7c   :  { %v6477_v10 = vpop.xlane.xlu0 %6476 }
0x1d7d   :  { %11441 = vrcp.f32 %v6477_v10 }
0x1d7e   :  { %v6474_v24 = vpop.xlane.xlu1 %6473 }
0x1d7f   :  { %11443 = vrcp.f32 %v6474_v24 }
0x1d80   :  { %v6696_v52 = vpop.permute.xlu0 %6695 }
0x1d82   :  { %v6694_v46 = vpop.permute.xlu1 %6693 }
0x1d8a   :  { %v11442_v14 = vpop.eup %11441 }
0x1d8b   :  { %v6505_v39 = vmul.f32 %v11442_v14, %v14265_v19 }
0x1d8c   :  { %v11444_v49 = vpop.eup %11443 }
0x1d8d   :  { %v6504_v29 = vmul.f32 %v11444_v49, %v14269_v48 }
0x1d8f   :  { %10781 = vmatprep.mubr.msk.f32.mxu1 %vm129_vm1, %v6504_v29 }
0x1d90   :  { %10782 = vmatmul.mubr.msk.f32.vlgmr.msra.gmra.mxu1 %vm129_vm1, %v6505_v39 }
0x1d91   :  { %10794 = vmatpush3.xpose.msk.msra.mxu1 %vm554_vm2, %v14239_v40 }
0x1d92   :  { %10795 = vmatprep.subr.msk.mxu1 %vm554_vm2, %v14263_v9 }
0x1d95   :  { %10796 = vmatpush3.xpose.msk.msra.mxu1 %vm554_vm2, %v14263_v9 }
0x1d96   :  { %10797 = vmatprep.subr.msk.mxu1 %vm554_vm2, %v6700_v61 }
0x1d99   :  { %10798 = vmatpush3.xpose.msk.msra.mxu1 %vm554_vm2, %v6700_v61 }
0x1d9a   :  { %10799 = vmatprep.subr.msk.mxu1 %vm554_vm2, %v6698_v33 }
0x1d9d   :  { %10800 = vmatpush3.xpose.msk.msra.mxu1 %vm554_vm2, %v6698_v33 }
0x1d9e   :  { %10801 = vmatprep.subr.msk.mxu1 %vm554_vm2, %v6696_v52 }
0x1da1   :  { %10802 = vmatpush3.xpose.msk.msra.mxu1 %vm554_vm2, %v6696_v52 }
0x1da2   :  { %10803 = vmatprep.subr.msk.mxu1 %vm554_vm2, %v6694_v46 }
0x1da5   :  { %10804 = vmatpush3.xpose.msk.msra.mxu1 %vm554_vm2, %v6694_v46 }
0x1db1   :  { %v6480_v40 = vpop.xlane.xlu0 %6479 }
0x1db2   :  { %11445 = vrcp.f32 %v6480_v40 }
0x1db3   :  { %v6483_v9 = vpop.xlane.xlu1 %6482 }
0x1db4   :  { %11447 = vrcp.f32 %v6483_v9 }
0x1db5   :  { %v6486_v2 = vpop.xlane.xlu0 %6485 }
0x1db6   :  { %11449 = vrcp.f32 %v6486_v2 }
0x1db7   :  { %v6489_v6 = vpop.xlane.xlu1 %6488 }
0x1db8   :  { %11451 = vrcp.f32 %v6489_v6 }
0x1db9   :  { %v6492_v19 = vpop.xlane.xlu0 %6491 }
0x1dba   :  { %11453 = vrcp.f32 %v6492_v19 }
0x1dbb   :  { %v6495_v50 = vpop.xlane.xlu1 %6494 }
0x1dbc   :  { %11455 = vrcp.f32 %v6495_v50 }
0x1dbd   :  { %v6692_v48 = vpop.permute.xlu0 %6691 }
0x1dbe   :  { %10805 = vmatprep.subr.msk.mxu1 %vm554_vm2, %v6692_v48 }
0x1dbf   :  { %v11446_v55 = vpop.eup %11445  ;;  %10806 = vmatpush3.xpose.msk.msra.mxu1 %vm554_vm2, %v6692_v48  ;;  %v6690_v25 = vpop.permute.xlu1 %6689 }
0x1dc0   :  { %10807 = vmatprep.subr.msk.mxu1 %vm554_vm2, %v6690_v25  ;;  %v6506_v17 = vmul.f32 %v11446_v55, %v14277_v4 }
0x1dc1   :  { %v11448_v35 = vpop.eup %11447  ;;  %v6674_v32 = vpop.permute.xlu0 %6673 }
0x1dc2   :  { %10784 = vmatprep.mubr.msk.f32.mxu1 %vm129_vm1, %v6506_v17  ;;  %v6507_v45 = vmul.f32 %v11448_v35, %v14279_v56 }
0x1dc3   :  { %v11450_v16 = vpop.eup %11449  ;;  %10808 = vmatpush3.xpose.msk.msra.mxu1 %vm554_vm2, %v6690_v25  ;;  %v6676_v22 = vpop.permute.xlu1 %6675 }
0x1dc4   :  { %10785 = vmatmul.mubr.msk.f32.gmra.mxu1 %vm129_vm1, %v6507_v45  ;;  %v6508_v37 = vmul.f32 %v11450_v16, %v14283_v42 }
0x1dc5   :  { %v11452_v43 = vpop.eup %11451  ;;  %v6678_v58 = vpop.permute.xlu0 %6677 }
0x1dc6   :  { %10787 = vmatprep.mubr.msk.f32.mxu1 %vm129_vm1, %v6508_v37  ;;  %v6509_v44 = vmul.f32 %v11452_v43, %v14287_v57 }
0x1dc7   :  { %v11454_v28 = vpop.eup %11453  ;;  %v6680_v47 = vpop.permute.xlu1 %6679 }
0x1dc8   :  { %10788 = vmatmul.mubr.msk.f32.gmra.mxu1 %vm129_vm1, %v6509_v44  ;;  %v6510_v60 = vmul.f32 %v11454_v28, %v14291_v27 }
0x1dc9   :  { %v11456_v63 = vpop.eup %11455  ;;  %v6682_v38 = vpop.permute.xlu0 %6681 }
0x1dca   :  { %10790 = vmatprep.mubr.msk.f32.mxu1 %vm129_vm1, %v6510_v60  ;;  %v6511_v36 = vmul.f32 %v11456_v63, %v14295_v0 }
0x1dcb   :  { %v6684_v1 = vpop.permute.xlu1 %6683 }
0x1dcc   :  { %10791 = vmatmul.mubr.msk.f32.gmra.mxu1 %vm129_vm1, %v6511_v36 }
0x1dcd   :  { %v6686_v4 = vpop.permute.xlu0 %6685  ;;  %10809 = vmatprep.mubr.msk.f32.mxu1 %vm554_vm2, %v6674_v32 }
0x1dcf   :  { %v6688_v56 = vpop.permute.xlu1 %6687 }
0x1dd0   :  { %10810 = vmatmul.mubr.msk.f32.vlgmr.msra.gmra.mxu1 %vm554_vm2, %v6676_v22 }
0x1dd1   :  { %10812 = vmatprep.mubr.msk.f32.mxu1 %vm554_vm2, %v6678_v58  ;;  %v6951_v23 = vpop.permute.xlu0 %6950 }
0x1dd3   :  { %v6953_v42 = vpop.permute.xlu1 %6952 }
0x1dd4   :  { %10813 = vmatmul.mubr.msk.f32.gmra.mxu1 %vm554_vm2, %v6680_v47  ;;  %10821 = vmatprep.subr.mxu0 %v6953_v42 }
0x1dd5   :  { %10815 = vmatprep.mubr.msk.f32.mxu1 %vm554_vm2, %v6682_v38  ;;  %10822 = vmatpush3.msra.mxu0 %v6953_v42  ;;  %v6945_v57 = vpop.permute.xlu0 %6944 }
0x1dd6   :  { %10823 = vmatprep.subr.mxu0 %v6951_v23 }
0x1dd7   :  { %10824 = vmatpush3.msra.mxu0 %v6951_v23  ;;  %v6949_v30 = vpop.permute.xlu1 %6948 }
0x1dd8   :  { %10816 = vmatmul.mubr.msk.f32.gmra.mxu1 %vm554_vm2, %v6684_v1  ;;  %10825 = vmatprep.subr.mxu0 %v6949_v30 }
0x1dd9   :  { %10818 = vmatprep.mubr.msk.f32.mxu1 %vm554_vm2, %v6686_v4  ;;  %10826 = vmatpush3.msra.mxu0 %v6949_v30  ;;  %v6941_v27 = vpop.permute.xlu0 %6940 }
0x1ddb   :  { %v6947_v51 = vpop.permute.xlu1 %6946 }
0x1ddc   :  { %10819 = vmatmul.mubr.msk.f32.gmra.mxu1 %vm554_vm2, %v6688_v56  ;;  %10827 = vmatprep.subr.mxu0 %v6947_v51 }
0x1ddd   :  { %10828 = vmatpush3.msra.mxu0 %v6947_v51  ;;  %v14383_v62 = vpop.permute.xlu0 %7129 }
0x1dde   :  { %10829 = vmatprep.subr.mxu0 %v6945_v57 }
0x1ddf   :  { %10830 = vmatpush3.msra.mxu0 %v6945_v57  ;;  %v6943_v31 = vpop.permute.xlu1 %6942 }
0x1de0   :  { %10831 = vmatprep.subr.mxu0 %v6943_v31 }
0x1de1   :  { %10832 = vmatpush3.msra.mxu0 %v6943_v31 }
0x1de2   :  { %10833 = vmatprep.subr.mxu0 %v6941_v27 }
0x1de3   :  { %10834 = vmatpush3.msra.mxu0 %v6941_v27  ;;  %v6939_v0 = vpop.permute.xlu1 %6938 }
0x1de4   :  { %10835 = vmatprep.subr.mxu0 %v6939_v0 }
0x1de5   :  { %10836 = vmatpush3.msra.mxu0 %v6939_v0 }
0x1de6   :  { %10849 = vmatprep.subr.msk.mxu0 %vm554_vm2, %v14383_v62 }
0x1de7   :  { %v14407_v60 = vpop.permute.xlu1 %7127 }
0x1e50   :  { %v10783_v20 = vpop.f32.mrf.mxu1 }
0x1e51   :  { %6666 = vst.msk [vmem:[#allocation2 + $0xc8] sm:$0xff] %vm554_vm2, %v10783_v20 }
0x1e52   :  { %v6626_v61 = vpop.f32.mrf.mxu1 }
0x1e53   :  { %6665 = vst.msk [vmem:[#allocation2 + $0xc0] sm:$0xff] %vm554_vm2, %v6626_v61 }
0x1e84   :  { %v10786_v33 = vpop.f32.mrf.mxu1 }
0x1e85   :  { %6668 = vst.msk [vmem:[#allocation2 + $0xd8] sm:$0xff] %vm554_vm2, %v10786_v33 }
0x1e86   :  { %v6636_v10 = vpop.f32.mrf.mxu1 }
0x1e87   :  { %6667 = vst.msk [vmem:[#allocation2 + $0xd0] sm:$0xff] %vm554_vm2, %v6636_v10 }
0x1e88   :  { %v10789_v24 = vpop.f32.mrf.mxu1 }
0x1e89   :  { %6670 = vst.msk [vmem:[#allocation2 + $0xe8] sm:$0xff] %vm554_vm2, %v10789_v24 }
0x1e8a   :  { %v6646_v14 = vpop.f32.mrf.mxu1 }
0x1e8b   :  { %6669 = vst.msk [vmem:[#allocation2 + $0xe0] sm:$0xff] %vm554_vm2, %v6646_v14 }
0x1e8c   :  { %v10792_v49 = vpop.f32.mrf.mxu1 }
0x1e8d   :  { %6672 = vst.msk [vmem:[#allocation2 + $0xf8] sm:$0xff] %vm554_vm2, %v10792_v49 }
0x1e8e   :  { %v6656_v29 = vpop.f32.mrf.mxu1 }
0x1e8f   :  { %6671 = vst.msk [vmem:[#allocation2 + $0xf0] sm:$0xff] %vm554_vm2, %v6656_v29 }
0x1e90   :  { %v10811_v39 = vpop.f32.mrf.mxu1 }
0x1e91   :  { %v6843_v52 = vmul.f32 0.35355338, %v10811_v39 }
0x1e92   :  { %v6803_v46 = vpop.f32.mrf.mxu1 }
0x1e93   :  { %v6842_v40 = vmul.f32 0.35355338, %v6803_v46  ;;  %v6853_v9 = vsel %vm129_vm1, %v6843_v52, -inf }
0x1e94   :  { %6854 = vmax.xlane.f32.xlu1 %v6853_v9  ;;  %v10814_v2 = vpop.f32.mrf.mxu1 }
0x1e95   :  { %v6845_v6 = vmul.f32 0.35355338, %v10814_v2  ;;  %v6850_v19 = vsel %vm129_vm1, %v6842_v40, -inf }
0x1e96   :  { %6851 = vmax.xlane.f32.xlu0 %v6850_v19  ;;  %v6813_v50 = vpop.f32.mrf.mxu1 }
0x1e97   :  { %v6844_v55 = vmul.f32 0.35355338, %v6813_v50  ;;  %v6859_v25 = vsel %vm129_vm1, %v6845_v6, -inf }
0x1e98   :  { %v10817_v48 = vpop.f32.mrf.mxu1 }
0x1e99   :  { %v6847_v45 = vmul.f32 0.35355338, %v10817_v48  ;;  %v6856_v16 = vsel %vm129_vm1, %v6844_v55, -inf }
0x1e9a   :  { %6860 = vmax.xlane.f32.xlu0 %v6859_v25  ;;  %v6823_v17 = vpop.f32.mrf.mxu1 }
0x1e9b   :  { %v6846_v35 = vmul.f32 0.35355338, %v6823_v17  ;;  %v6865_v44 = vsel %vm129_vm1, %v6847_v45, -inf }
0x1e9c   :  { %v10820_v32 = vpop.f32.mrf.mxu1 }
0x1e9d   :  { %v6862_v22 = vsel %vm129_vm1, %v6846_v35, -inf  ;;  %v6849_v58 = vmul.f32 0.35355338, %v10820_v32 }
0x1e9e   :  { %6857 = vmax.xlane.f32.xlu0 %v6856_v16  ;;  %6863 = vmax.xlane.f32.xlu1 %v6862_v22  ;;  %v6833_v37 = vpop.f32.mrf.mxu1 }
0x1e9f   :  { %v6848_v43 = vmul.f32 0.35355338, %v6833_v37  ;;  %v6871_v47 = vsel %vm129_vm1, %v6849_v58, -inf }
0x1ea1   :  { %v6868_v28 = vsel %vm129_vm1, %v6848_v43, -inf }
0x1ea2   :  { %6866 = vmax.xlane.f32.xlu0 %v6865_v44  ;;  %6869 = vmax.xlane.f32.xlu1 %v6868_v28 }
0x1ea6   :  { %6872 = vmax.xlane.f32.xlu0 %v6871_v47 }
0x1eb3   :  { %7123 = vrot.lane.b32.xlu1 %v13614_v13, %s11771_s19 }
0x1ebc   :  { %7125 = vrot.lane.b32.xlu0 %v13627_v41, %s11771_s19 }
0x1f1d   :  { %v6855_v63 = vpop.xlane.xlu1 %6854 }
0x1f1e   :  { %v6875_v38 = vsub.f32 %v6843_v52, %v6855_v63 }
0x1f1f   :  { %v6852_v36 = vpop.xlane.xlu0 %6851 }
0x1f20   :  { %v6884_v1 = vmul.f32 1.442695, %v6875_v38  ;;  %v6874_v4 = vsub.f32 %v6842_v40, %v6852_v36 }
0x1f22   :  { %11457 = vpow2.f32 %v6884_v1  ;;  %v6882_v56 = vmul.f32 1.442695, %v6874_v4 }
0x1f23   :  { %v6861_v51 = vpop.xlane.xlu0 %6860 }
0x1f24   :  { %11459 = vpow2.f32 %v6882_v56  ;;  %v6877_v61 = vsub.f32 %v6845_v6, %v6861_v51 }
0x1f26   :  { %v6888_v14 = vmul.f32 1.442695, %v6877_v61 }
0x1f27   :  { %v6858_v27 = vpop.xlane.xlu0 %6857  ;;  %v6864_v31 = vpop.xlane.xlu1 %6863 }
0x1f28   :  { %v6876_v0 = vsub.f32 %v6844_v55, %v6858_v27  ;;  %v6878_v10 = vsub.f32 %v6846_v35, %v6864_v31 }
0x1f2a   :  { %v6886_v33 = vmul.f32 1.442695, %v6876_v0  ;;  %v6890_v39 = vmul.f32 1.442695, %v6878_v10 }
0x1f2b   :  { %v6867_v20 = vpop.xlane.xlu0 %6866  ;;  %v6870_v24 = vpop.xlane.xlu1 %6869 }
0x1f2c   :  { %v6879_v49 = vsub.f32 %v6847_v45, %v6867_v20  ;;  %11461 = vpow2.f32 %v6886_v33  ;;  %v6880_v52 = vsub.f32 %v6848_v43, %v6870_v24 }
0x1f2d   :  { %11463 = vpow2.f32 %v6888_v14 }
0x1f2e   :  { %v6892_v46 = vmul.f32 1.442695, %v6879_v49  ;;  %11465 = vpow2.f32 %v6890_v39  ;;  %v6894_v9 = vmul.f32 1.442695, %v6880_v52 }
0x1f2f   :  { %v14409_v23 = vpop.eup %11457  ;;  %v6873_v29 = vpop.xlane.xlu0 %6872 }
0x1f30   :  { %v6901_v42 = vsel %vm129_vm1, %v14409_v23, 0.0  ;;  %v6881_v40 = vsub.f32 %v6849_v58, %v6873_v29  ;;  %11467 = vpow2.f32 %v6892_v46  ;;  %v7124_v43 = vpop.permute.xlu1 %7123 }
0x1f31   :  { %v14413_v30 = vpop.eup %11459  ;;  %6902 = vadd.xlane.f32.xlu0 %v6901_v42  ;;  %11469 = vpow2.f32 %v6894_v9 }
0x1f32   :  { %v6898_v57 = vsel %vm129_vm1, %v14413_v30, 0.0  ;;  %v6896_v2 = vmul.f32 1.442695, %v6881_v40 }
0x1f33   :  { %6899 = vadd.xlane.f32.xlu1 %v6898_v57  ;;  %v7126_v37 = vpop.permute.xlu0 %7125 }
0x1f34   :  { %11471 = vpow2.f32 %v6896_v2 }
0x1f39   :  { %v14421_v19 = vpop.eup %11461 }
0x1f3a   :  { %v14423_v6 = vpop.eup %11463  ;;  %v6904_v50 = vsel %vm129_vm1, %v14421_v19, 0.0 }
0x1f3b   :  { %v14427_v48 = vpop.eup %11465  ;;  %v6907_v55 = vsel %vm129_vm1, %v14423_v6, 0.0 }
0x1f3c   :  { %v6910_v17 = vsel %vm129_vm1, %v14427_v48, 0.0 }
0x1f3d   :  { %v14431_v25 = vpop.eup %11467 }
0x1f3e   :  { %v14435_v35 = vpop.eup %11469  ;;  %v6913_v32 = vsel %vm129_vm1, %v14431_v25, 0.0 }
0x1f3f   :  { %v6916_v16 = vsel %vm129_vm1, %v14435_v35, 0.0 }
0x1f41   :  { %v14439_v45 = vpop.eup %11471 }
0x1f42   :  { %v6919_v22 = vsel %vm129_vm1, %v14439_v45, 0.0 }
0x1f44   :  { %7119 = vrot.lane.b32.xlu1 %v13634_v18, %s11771_s19 }
0x1f47   :  { %7121 = vrot.lane.b32.xlu0 %v13647_v53, %s11771_s19 }
0x1f66   :  { %6905 = vadd.xlane.f32.xlu0 %v6904_v50 }
0x1f68   :  { %6908 = vadd.xlane.f32.xlu1 %v6907_v55 }
0x1f6a   :  { %6911 = vadd.xlane.f32.xlu0 %v6910_v17 }
0x1f6c   :  { %6914 = vadd.xlane.f32.xlu1 %v6913_v32 }
0x1f6e   :  { %6917 = vadd.xlane.f32.xlu0 %v6916_v16 }
0x1f70   :  { %6920 = vadd.xlane.f32.xlu1 %v6919_v22 }
0x1f81   :  { %7115 = vrot.lane.b32.xlu1 %v13604_v54, %s11771_s19 }
0x1f84   :  { %7117 = vrot.lane.b32.xlu0 %v13664_v5, %s11771_s19 }
0x1f85   :  { %7101 = vrot.lane.b32.xlu1 %v13664_v5, %s11772_s1 }
0x1f88   :  { %7099 = vrot.lane.b32.xlu0 %v13604_v54, %s11772_s1 }
0x1f89   :  { %7105 = vrot.lane.b32.xlu1 %v13647_v53, %s11772_s1 }
0x1f8c   :  { %7103 = vrot.lane.b32.xlu0 %v13634_v18, %s11772_s1 }
0x1f8d   :  { %7109 = vrot.lane.b32.xlu1 %v13627_v41, %s11772_s1 }
0x1f90   :  { %7107 = vrot.lane.b32.xlu0 %v13614_v13, %s11772_s1 }
0x1f91   :  { %7113 = vrot.lane.b32.xlu1 %v13617_v21, %s11772_s1 }
0x1f94   :  { %7111 = vrot.lane.b32.xlu0 %v13609_v3, %s11772_s1 }
0x1f95   :  { %7378 = vrot.lane.b32.xlu1 %v13620_v34, %s11772_s1 }
0x1f98   :  { %7376 = vrot.lane.b32.xlu0 %v13630_v59, %s11772_s1 }
0x1f99   :  { %7374 = vrot.lane.b32.xlu1 %v13638_v7, %s11772_s1 }
0x1f9c   :  { %7370 = vrot.lane.b32.xlu0 %v13655_v12, %s11772_s1 }
0x1f9d   :  { %7372 = vrot.lane.b32.xlu1 %v13650_v11, %s11772_s1 }
0x1fa0   :  { %7366 = vrot.lane.b32.xlu0 %v13672_v15, %s11772_s1 }
0x1fa1   :  { %7368 = vrot.lane.b32.xlu1 %v13667_v26, %s11772_s1 }
0x1fa4   :  { %7555 = vrot.lane.b32.xlu0 %v13617_v21, %s11758_s20 }
0x1fa5   :  { %7364 = vrot.lane.b32.xlu1 %v13681_v8, %s11772_s1 }
0x1fa9   :  { %7553 = vrot.lane.b32.xlu1 %v13609_v3, %s11758_s20 }
0x1fba   :  { %v6903_v58 = vpop.xlane.xlu0 %6902 }
0x1fbb   :  { %11473 = vrcp.f32 %v6903_v58 }
0x1fbc   :  { %v6900_v44 = vpop.xlane.xlu1 %6899 }
0x1fbd   :  { %11475 = vrcp.f32 %v6900_v44 }
0x1fbe   :  { %v7122_v36 = vpop.permute.xlu0 %7121 }
0x1fc0   :  { %v7120_v1 = vpop.permute.xlu1 %7119 }
0x1fc8   :  { %v11474_v28 = vpop.eup %11473 }
0x1fc9   :  { %v6931_v38 = vmul.f32 %v11474_v28, %v14409_v23 }
0x1fca   :  { %v11476_v47 = vpop.eup %11475 }
0x1fcb   :  { %v6930_v63 = vmul.f32 %v11476_v47, %v14413_v30 }
0x1fcd   :  { %10837 = vmatprep.mubr.msk.f32.mxu0 %vm129_vm1, %v6930_v63 }
0x1fce   :  { %10838 = vmatmul.mubr.msk.f32.vlgmr.msra.gmra.mxu0 %vm129_vm1, %v6931_v38 }
0x1fcf   :  { %10850 = vmatpush3.xpose.msk.msra.mxu0 %vm554_vm2, %v14383_v62 }
0x1fd0   :  { %10851 = vmatprep.subr.msk.mxu0 %vm554_vm2, %v14407_v60 }
0x1fd3   :  { %10852 = vmatpush3.xpose.msk.msra.mxu0 %vm554_vm2, %v14407_v60 }
0x1fd4   :  { %10853 = vmatprep.subr.msk.mxu0 %vm554_vm2, %v7126_v37 }
0x1fd7   :  { %10854 = vmatpush3.xpose.msk.msra.mxu0 %vm554_vm2, %v7126_v37 }
0x1fd8   :  { %10855 = vmatprep.subr.msk.mxu0 %vm554_vm2, %v7124_v43 }
0x1fdb   :  { %10856 = vmatpush3.xpose.msk.msra.mxu0 %vm554_vm2, %v7124_v43 }
0x1fdc   :  { %10857 = vmatprep.subr.msk.mxu0 %vm554_vm2, %v7122_v36 }
0x1fdf   :  { %10858 = vmatpush3.xpose.msk.msra.mxu0 %vm554_vm2, %v7122_v36 }
0x1fe0   :  { %10859 = vmatprep.subr.msk.mxu0 %vm554_vm2, %v7120_v1 }
0x1fe3   :  { %10860 = vmatpush3.xpose.msk.msra.mxu0 %vm554_vm2, %v7120_v1 }
0x1fef   :  { %v6906_v62 = vpop.xlane.xlu0 %6905 }
0x1ff0   :  { %11477 = vrcp.f32 %v6906_v62 }
0x1ff1   :  { %v6909_v60 = vpop.xlane.xlu1 %6908 }
0x1ff2   :  { %11479 = vrcp.f32 %v6909_v60 }
0x1ff3   :  { %v6912_v4 = vpop.xlane.xlu0 %6911 }
0x1ff4   :  { %11481 = vrcp.f32 %v6912_v4 }
0x1ff5   :  { %v6915_v56 = vpop.xlane.xlu1 %6914 }
0x1ff6   :  { %11483 = vrcp.f32 %v6915_v56 }
0x1ff7   :  { %v6918_v23 = vpop.xlane.xlu0 %6917 }
0x1ff8   :  { %11485 = vrcp.f32 %v6918_v23 }
0x1ff9   :  { %v6921_v42 = vpop.xlane.xlu1 %6920 }
0x1ffa   :  { %11487 = vrcp.f32 %v6921_v42 }
0x1ffb   :  { %v7118_v30 = vpop.permute.xlu0 %7117 }
0x1ffc   :  { %10861 = vmatprep.subr.msk.mxu0 %vm554_vm2, %v7118_v30 }
0x1ffd   :  { %v11478_v57 = vpop.eup %11477  ;;  %10862 = vmatpush3.xpose.msk.msra.mxu0 %vm554_vm2, %v7118_v30  ;;  %v7116_v51 = vpop.permute.xlu1 %7115 }
0x1ffe   :  { %10863 = vmatprep.subr.msk.mxu0 %vm554_vm2, %v7116_v51  ;;  %v6932_v27 = vmul.f32 %v11478_v57, %v14421_v19 }
0x1fff   :  { %v11480_v31 = vpop.eup %11479  ;;  %v7100_v0 = vpop.permute.xlu0 %7099 }
0x2000   :  { %10840 = vmatprep.mubr.msk.f32.mxu0 %vm129_vm1, %v6932_v27  ;;  %v6933_v20 = vmul.f32 %v11480_v31, %v14423_v6 }
0x2001   :  { %v11482_v61 = vpop.eup %11481  ;;  %10864 = vmatpush3.xpose.msk.msra.mxu0 %vm554_vm2, %v7116_v51  ;;  %v7102_v33 = vpop.permute.xlu1 %7101 }
0x2002   :  { %10841 = vmatmul.mubr.msk.f32.gmra.mxu0 %vm129_vm1, %v6933_v20  ;;  %v6934_v10 = vmul.f32 %v11482_v61, %v14427_v48 }
0x2003   :  { %v11484_v24 = vpop.eup %11483  ;;  %v7104_v14 = vpop.permute.xlu0 %7103 }
0x2004   :  { %10843 = vmatprep.mubr.msk.f32.mxu0 %vm129_vm1, %v6934_v10  ;;  %v6935_v49 = vmul.f32 %v11484_v24, %v14431_v25 }
0x2005   :  { %v11486_v29 = vpop.eup %11485  ;;  %v7106_v39 = vpop.permute.xlu1 %7105 }
0x2006   :  { %10844 = vmatmul.mubr.msk.f32.gmra.mxu0 %vm129_vm1, %v6935_v49  ;;  %v6936_v52 = vmul.f32 %v11486_v29, %v14435_v35 }
0x2007   :  { %v11488_v46 = vpop.eup %11487  ;;  %v7108_v40 = vpop.permute.xlu0 %7107 }
0x2008   :  { %10846 = vmatprep.mubr.msk.f32.mxu0 %vm129_vm1, %v6936_v52  ;;  %v6937_v9 = vmul.f32 %v11488_v46, %v14439_v45 }
0x2009   :  { %v7110_v2 = vpop.permute.xlu1 %7109 }
0x200a   :  { %10847 = vmatmul.mubr.msk.f32.gmra.mxu0 %vm129_vm1, %v6937_v9 }
0x200b   :  { %v7112_v19 = vpop.permute.xlu0 %7111  ;;  %10865 = vmatprep.mubr.msk.f32.mxu0 %vm554_vm2, %v7100_v0 }
0x200d   :  { %v7114_v6 = vpop.permute.xlu1 %7113 }
0x200e   :  { %10866 = vmatmul.mubr.msk.f32.vlgmr.msra.gmra.mxu0 %vm554_vm2, %v7102_v33 }
0x200f   :  { %10868 = vmatprep.mubr.msk.f32.mxu0 %vm554_vm2, %v7104_v14  ;;  %v7377_v50 = vpop.permute.xlu0 %7376 }
0x2011   :  { %v7379_v48 = vpop.permute.xlu1 %7378 }
0x2012   :  { %10869 = vmatmul.mubr.msk.f32.gmra.mxu0 %vm554_vm2, %v7106_v39  ;;  %10877 = vmatprep.subr.mxu1 %v7379_v48 }
0x2013   :  { %10871 = vmatprep.mubr.msk.f32.mxu0 %vm554_vm2, %v7108_v40  ;;  %10878 = vmatpush3.msra.mxu1 %v7379_v48  ;;  %v7371_v25 = vpop.permute.xlu0 %7370 }
0x2014   :  { %10879 = vmatprep.subr.mxu1 %v7377_v50 }
0x2015   :  { %10880 = vmatpush3.msra.mxu1 %v7377_v50  ;;  %v7375_v55 = vpop.permute.xlu1 %7374 }
0x2016   :  { %10872 = vmatmul.mubr.msk.f32.gmra.mxu0 %vm554_vm2, %v7110_v2  ;;  %10881 = vmatprep.subr.mxu1 %v7375_v55 }
0x2017   :  { %10874 = vmatprep.mubr.msk.f32.mxu0 %vm554_vm2, %v7112_v19  ;;  %10882 = vmatpush3.msra.mxu1 %v7375_v55  ;;  %v7367_v35 = vpop.permute.xlu0 %7366 }
0x2019   :  { %v7373_v17 = vpop.permute.xlu1 %7372 }
0x201a   :  { %10875 = vmatmul.mubr.msk.f32.gmra.mxu0 %vm554_vm2, %v7114_v6  ;;  %10883 = vmatprep.subr.mxu1 %v7373_v17 }
0x201b   :  { %10884 = vmatpush3.msra.mxu1 %v7373_v17  ;;  %v14527_v16 = vpop.permute.xlu0 %7555 }
0x201c   :  { %10885 = vmatprep.subr.mxu1 %v7371_v25 }
0x201d   :  { %10886 = vmatpush3.msra.mxu1 %v7371_v25  ;;  %v7369_v32 = vpop.permute.xlu1 %7368 }
0x201e   :  { %10887 = vmatprep.subr.mxu1 %v7369_v32 }
0x201f   :  { %10888 = vmatpush3.msra.mxu1 %v7369_v32 }
0x2020   :  { %10889 = vmatprep.subr.mxu1 %v7367_v35 }
0x2021   :  { %10890 = vmatpush3.msra.mxu1 %v7367_v35  ;;  %v7365_v45 = vpop.permute.xlu1 %7364 }
0x2022   :  { %10891 = vmatprep.subr.mxu1 %v7365_v45 }
0x2023   :  { %10892 = vmatpush3.msra.mxu1 %v7365_v45 }
0x2024   :  { %10905 = vmatprep.subr.msk.mxu1 %vm554_vm2, %v14527_v16 }
0x2025   :  { %v14551_v52 = vpop.permute.xlu1 %7553 }
0x208e   :  { %v10839_v22 = vpop.f32.mrf.mxu0 }
0x208f   :  { %7092 = vst.msk [vmem:[#allocation2 + $0x108] sm:$0xff] %vm554_vm2, %v10839_v22 }
0x2090   :  { %v7052_v37 = vpop.f32.mrf.mxu0 }
0x2091   :  { %7091 = vst.msk [vmem:[#allocation2 + $0x100] sm:$0xff] %vm554_vm2, %v7052_v37 }
0x20c2   :  { %v10842_v43 = vpop.f32.mrf.mxu0 }
0x20c3   :  { %7094 = vst.msk [vmem:[#allocation2 + $0x118] sm:$0xff] %vm554_vm2, %v10842_v43 }
0x20c4   :  { %v7062_v58 = vpop.f32.mrf.mxu0 }
0x20c5   :  { %7093 = vst.msk [vmem:[#allocation2 + $0x110] sm:$0xff] %vm554_vm2, %v7062_v58 }
0x20c6   :  { %v10845_v44 = vpop.f32.mrf.mxu0 }
0x20c7   :  { %7096 = vst.msk [vmem:[#allocation2 + $0x128] sm:$0xff] %vm554_vm2, %v10845_v44 }
0x20c8   :  { %v7072_v28 = vpop.f32.mrf.mxu0 }
0x20c9   :  { %7095 = vst.msk [vmem:[#allocation2 + $0x120] sm:$0xff] %vm554_vm2, %v7072_v28 }
0x20ca   :  { %v10848_v47 = vpop.f32.mrf.mxu0 }
0x20cb   :  { %7098 = vst.msk [vmem:[#allocation2 + $0x138] sm:$0xff] %vm554_vm2, %v10848_v47 }
0x20cc   :  { %v7082_v63 = vpop.f32.mrf.mxu0 }
0x20cd   :  { %7097 = vst.msk [vmem:[#allocation2 + $0x130] sm:$0xff] %vm554_vm2, %v7082_v63 }
0x20ce   :  { %v10867_v38 = vpop.f32.mrf.mxu0 }
0x20cf   :  { %v7269_v36 = vmul.f32 0.35355338, %v10867_v38 }
0x20d0   :  { %v7229_v1 = vpop.f32.mrf.mxu0 }
0x20d1   :  { %v7268_v62 = vmul.f32 0.35355338, %v7229_v1  ;;  %v7279_v60 = vsel %vm129_vm1, %v7269_v36, -inf }
0x20d2   :  { %7280 = vmax.xlane.f32.xlu1 %v7279_v60  ;;  %v10870_v4 = vpop.f32.mrf.mxu0 }
0x20d3   :  { %v7271_v56 = vmul.f32 0.35355338, %v10870_v4  ;;  %v7276_v23 = vsel %vm129_vm1, %v7268_v62, -inf }
0x20d4   :  { %7277 = vmax.xlane.f32.xlu0 %v7276_v23  ;;  %v7239_v42 = vpop.f32.mrf.mxu0 }
0x20d5   :  { %v7270_v57 = vmul.f32 0.35355338, %v7239_v42  ;;  %v7285_v51 = vsel %vm129_vm1, %v7271_v56, -inf }
0x20d6   :  { %v10873_v30 = vpop.f32.mrf.mxu0 }
0x20d7   :  { %v7273_v20 = vmul.f32 0.35355338, %v10873_v30  ;;  %v7282_v61 = vsel %vm129_vm1, %v7270_v57, -inf }
0x20d8   :  { %7286 = vmax.xlane.f32.xlu0 %v7285_v51  ;;  %v7249_v27 = vpop.f32.mrf.mxu0 }
0x20d9   :  { %v7272_v31 = vmul.f32 0.35355338, %v7249_v27  ;;  %v7291_v49 = vsel %vm129_vm1, %v7273_v20, -inf }
0x20da   :  { %v10876_v0 = vpop.f32.mrf.mxu0 }
0x20db   :  { %v7288_v33 = vsel %vm129_vm1, %v7272_v31, -inf  ;;  %v7275_v14 = vmul.f32 0.35355338, %v10876_v0 }
0x20dc   :  { %7283 = vmax.xlane.f32.xlu0 %v7282_v61  ;;  %7289 = vmax.xlane.f32.xlu1 %v7288_v33  ;;  %v7259_v10 = vpop.f32.mrf.mxu0 }
0x20dd   :  { %v7274_v24 = vmul.f32 0.35355338, %v7259_v10  ;;  %v7297_v39 = vsel %vm129_vm1, %v7275_v14, -inf }
0x20df   :  { %v7294_v29 = vsel %vm129_vm1, %v7274_v24, -inf }
0x20e0   :  { %7292 = vmax.xlane.f32.xlu0 %v7291_v49  ;;  %7295 = vmax.xlane.f32.xlu1 %v7294_v29 }
0x20e4   :  { %7298 = vmax.xlane.f32.xlu0 %v7297_v39 }
0x20f1   :  { %7549 = vrot.lane.b32.xlu1 %v13614_v13, %s11758_s20 }
0x20fa   :  { %7551 = vrot.lane.b32.xlu0 %v13627_v41, %s11758_s20 }
0x215b   :  { %v7281_v46 = vpop.xlane.xlu1 %7280 }
0x215c   :  { %v7301_v40 = vsub.f32 %v7269_v36, %v7281_v46 }
0x215d   :  { %v7278_v9 = vpop.xlane.xlu0 %7277 }
0x215e   :  { %v7310_v2 = vmul.f32 1.442695, %v7301_v40  ;;  %v7300_v19 = vsub.f32 %v7268_v62, %v7278_v9 }
0x2160   :  { %11489 = vpow2.f32 %v7310_v2  ;;  %v7308_v6 = vmul.f32 1.442695, %v7300_v19 }
0x2161   :  { %v7287_v17 = vpop.xlane.xlu0 %7286 }
0x2162   :  { %11491 = vpow2.f32 %v7308_v6  ;;  %v7303_v37 = vsub.f32 %v7271_v56, %v7287_v17 }
0x2164   :  { %v7314_v28 = vmul.f32 1.442695, %v7303_v37 }
0x2165   :  { %v7284_v35 = vpop.xlane.xlu0 %7283  ;;  %v7290_v32 = vpop.xlane.xlu1 %7289 }
0x2166   :  { %v7302_v45 = vsub.f32 %v7270_v57, %v7284_v35  ;;  %v7304_v58 = vsub.f32 %v7272_v31, %v7290_v32 }
0x2168   :  { %v7312_v43 = vmul.f32 1.442695, %v7302_v45  ;;  %v7316_v38 = vmul.f32 1.442695, %v7304_v58 }
0x2169   :  { %v7293_v22 = vpop.xlane.xlu0 %7292  ;;  %v7296_v44 = vpop.xlane.xlu1 %7295 }
0x216a   :  { %v7305_v47 = vsub.f32 %v7273_v20, %v7293_v22  ;;  %11493 = vpow2.f32 %v7312_v43  ;;  %v7306_v36 = vsub.f32 %v7274_v24, %v7296_v44 }
0x216b   :  { %11495 = vpow2.f32 %v7314_v28 }
0x216c   :  { %v7318_v1 = vmul.f32 1.442695, %v7305_v47  ;;  %11497 = vpow2.f32 %v7316_v38  ;;  %v7320_v60 = vmul.f32 1.442695, %v7306_v36 }
0x216d   :  { %v14553_v50 = vpop.eup %11489  ;;  %v7299_v63 = vpop.xlane.xlu0 %7298 }
0x216e   :  { %v7327_v48 = vsel %vm129_vm1, %v14553_v50, 0.0  ;;  %v7307_v62 = vsub.f32 %v7275_v14, %v7299_v63  ;;  %11499 = vpow2.f32 %v7318_v1  ;;  %v7550_v24 = vpop.permute.xlu1 %7549 }
0x216f   :  { %v14557_v55 = vpop.eup %11491  ;;  %7328 = vadd.xlane.f32.xlu0 %v7327_v48  ;;  %11501 = vpow2.f32 %v7320_v60 }
0x2170   :  { %v7324_v25 = vsel %vm129_vm1, %v14557_v55, 0.0  ;;  %v7322_v4 = vmul.f32 1.442695, %v7307_v62 }
0x2171   :  { %7325 = vadd.xlane.f32.xlu1 %v7324_v25  ;;  %v7552_v10 = vpop.permute.xlu0 %7551 }
0x2172   :  { %11503 = vpow2.f32 %v7322_v4 }
0x2177   :  { %v14565_v23 = vpop.eup %11493 }
0x2178   :  { %v14567_v56 = vpop.eup %11495  ;;  %v7330_v42 = vsel %vm129_vm1, %v14565_v23, 0.0 }
0x2179   :  { %v14571_v30 = vpop.eup %11497  ;;  %v7333_v57 = vsel %vm129_vm1, %v14567_v56, 0.0 }
0x217a   :  { %v7336_v27 = vsel %vm129_vm1, %v14571_v30, 0.0 }
0x217b   :  { %v14575_v51 = vpop.eup %11499 }
0x217c   :  { %v14579_v31 = vpop.eup %11501  ;;  %v7339_v0 = vsel %vm129_vm1, %v14575_v51, 0.0 }
0x217d   :  { %v7342_v61 = vsel %vm129_vm1, %v14579_v31, 0.0 }
0x217f   :  { %v14583_v20 = vpop.eup %11503 }
0x2180   :  { %v7345_v33 = vsel %vm129_vm1, %v14583_v20, 0.0 }
0x2182   :  { %7545 = vrot.lane.b32.xlu1 %v13634_v18, %s11758_s20 }
0x2185   :  { %7547 = vrot.lane.b32.xlu0 %v13647_v53, %s11758_s20 }
0x21a4   :  { %7331 = vadd.xlane.f32.xlu0 %v7330_v42 }
0x21a6   :  { %7334 = vadd.xlane.f32.xlu1 %v7333_v57 }
0x21a8   :  { %7337 = vadd.xlane.f32.xlu0 %v7336_v27 }
0x21aa   :  { %7340 = vadd.xlane.f32.xlu1 %v7339_v0 }
0x21ac   :  { %7343 = vadd.xlane.f32.xlu0 %v7342_v61 }
0x21ae   :  { %7346 = vadd.xlane.f32.xlu1 %v7345_v33 }
0x21bf   :  { %7541 = vrot.lane.b32.xlu1 %v13604_v54, %s11758_s20 }
0x21c2   :  { %7543 = vrot.lane.b32.xlu0 %v13664_v5, %s11758_s20 }
0x21c3   :  { %7527 = vrot.lane.b32.xlu1 %v13664_v5, %s11773_s21 }
0x21c6   :  { %7525 = vrot.lane.b32.xlu0 %v13604_v54, %s11773_s21 }
0x21c7   :  { %7531 = vrot.lane.b32.xlu1 %v13647_v53, %s11773_s21 }
0x21ca   :  { %7529 = vrot.lane.b32.xlu0 %v13634_v18, %s11773_s21 }
0x21cb   :  { %7535 = vrot.lane.b32.xlu1 %v13627_v41, %s11773_s21 }
0x21ce   :  { %7533 = vrot.lane.b32.xlu0 %v13614_v13, %s11773_s21 }
0x21cf   :  { %7539 = vrot.lane.b32.xlu1 %v13617_v21, %s11773_s21 }
0x21d2   :  { %7537 = vrot.lane.b32.xlu0 %v13609_v3, %s11773_s21 }
0x21d3   :  { %7804 = vrot.lane.b32.xlu1 %v13620_v34, %s11773_s21 }
0x21d6   :  { %7802 = vrot.lane.b32.xlu0 %v13630_v59, %s11773_s21 }
0x21d7   :  { %7800 = vrot.lane.b32.xlu1 %v13638_v7, %s11773_s21 }
0x21da   :  { %7796 = vrot.lane.b32.xlu0 %v13655_v12, %s11773_s21 }
0x21db   :  { %7798 = vrot.lane.b32.xlu1 %v13650_v11, %s11773_s21 }
0x21de   :  { %7792 = vrot.lane.b32.xlu0 %v13672_v15, %s11773_s21 }
0x21df   :  { %7794 = vrot.lane.b32.xlu1 %v13667_v26, %s11773_s21 }
0x21e2   :  { %7981 = vrot.lane.b32.xlu0 %v13617_v21, %s11755_s11 }
0x21e3   :  { %7790 = vrot.lane.b32.xlu1 %v13681_v8, %s11773_s21 }
0x21e7   :  { %7979 = vrot.lane.b32.xlu1 %v13609_v3, %s11755_s11 }
0x21f8   :  { %v7329_v14 = vpop.xlane.xlu0 %7328 }
0x21f9   :  { %11505 = vrcp.f32 %v7329_v14 }
0x21fa   :  { %v7326_v49 = vpop.xlane.xlu1 %7325 }
0x21fb   :  { %11507 = vrcp.f32 %v7326_v49 }
0x21fc   :  { %v7548_v9 = vpop.permute.xlu0 %7547 }
0x21fe   :  { %v7546_v2 = vpop.permute.xlu1 %7545 }
0x2206   :  { %v11506_v29 = vpop.eup %11505 }
0x2207   :  { %v7357_v40 = vmul.f32 %v11506_v29, %v14553_v50 }
0x2208   :  { %v11508_v39 = vpop.eup %11507 }
0x2209   :  { %v7356_v46 = vmul.f32 %v11508_v39, %v14557_v55 }
0x220b   :  { %10893 = vmatprep.mubr.msk.f32.mxu1 %vm129_vm1, %v7356_v46 }
0x220c   :  { %10894 = vmatmul.mubr.msk.f32.vlgmr.msra.gmra.mxu1 %vm129_vm1, %v7357_v40 }
0x220d   :  { %10906 = vmatpush3.xpose.msk.msra.mxu1 %vm554_vm2, %v14527_v16 }
0x220e   :  { %10907 = vmatprep.subr.msk.mxu1 %vm554_vm2, %v14551_v52 }
0x2211   :  { %10908 = vmatpush3.xpose.msk.msra.mxu1 %vm554_vm2, %v14551_v52 }
0x2212   :  { %10909 = vmatprep.subr.msk.mxu1 %vm554_vm2, %v7552_v10 }
0x2215   :  { %10910 = vmatpush3.xpose.msk.msra.mxu1 %vm554_vm2, %v7552_v10 }
0x2216   :  { %10911 = vmatprep.subr.msk.mxu1 %vm554_vm2, %v7550_v24 }
0x2219   :  { %10912 = vmatpush3.xpose.msk.msra.mxu1 %vm554_vm2, %v7550_v24 }
0x221a   :  { %10913 = vmatprep.subr.msk.mxu1 %vm554_vm2, %v7548_v9 }
0x221d   :  { %10914 = vmatpush3.xpose.msk.msra.mxu1 %vm554_vm2, %v7548_v9 }
0x221e   :  { %10915 = vmatprep.subr.msk.mxu1 %vm554_vm2, %v7546_v2 }
0x2221   :  { %10916 = vmatpush3.xpose.msk.msra.mxu1 %vm554_vm2, %v7546_v2 }
0x222d   :  { %v7332_v16 = vpop.xlane.xlu0 %7331 }
0x222e   :  { %11509 = vrcp.f32 %v7332_v16 }
0x222f   :  { %v7335_v52 = vpop.xlane.xlu1 %7334 }
0x2230   :  { %11511 = vrcp.f32 %v7335_v52 }
0x2231   :  { %v7338_v19 = vpop.xlane.xlu0 %7337 }
0x2232   :  { %11513 = vrcp.f32 %v7338_v19 }
0x2233   :  { %v7341_v6 = vpop.xlane.xlu1 %7340 }
0x2234   :  { %11515 = vrcp.f32 %v7341_v6 }
0x2235   :  { %v7344_v50 = vpop.xlane.xlu0 %7343 }
0x2236   :  { %11517 = vrcp.f32 %v7344_v50 }
0x2237   :  { %v7347_v48 = vpop.xlane.xlu1 %7346 }
0x2238   :  { %11519 = vrcp.f32 %v7347_v48 }
0x2239   :  { %v7544_v55 = vpop.permute.xlu0 %7543 }
0x223a   :  { %10917 = vmatprep.subr.msk.mxu1 %vm554_vm2, %v7544_v55 }
0x223b   :  { %v11510_v25 = vpop.eup %11509  ;;  %10918 = vmatpush3.xpose.msk.msra.mxu1 %vm554_vm2, %v7544_v55  ;;  %v7542_v17 = vpop.permute.xlu1 %7541 }
0x223c   :  { %10919 = vmatprep.subr.msk.mxu1 %vm554_vm2, %v7542_v17  ;;  %v7358_v35 = vmul.f32 %v11510_v25, %v14565_v23 }
0x223d   :  { %v11512_v32 = vpop.eup %11511  ;;  %v7526_v45 = vpop.permute.xlu0 %7525 }
0x223e   :  { %10896 = vmatprep.mubr.msk.f32.mxu1 %vm129_vm1, %v7358_v35  ;;  %v7359_v22 = vmul.f32 %v11512_v32, %v14567_v56 }
0x223f   :  { %v11514_v37 = vpop.eup %11513  ;;  %10920 = vmatpush3.xpose.msk.msra.mxu1 %vm554_vm2, %v7542_v17  ;;  %v7528_v43 = vpop.permute.xlu1 %7527 }
0x2240   :  { %10897 = vmatmul.mubr.msk.f32.gmra.mxu1 %vm129_vm1, %v7359_v22  ;;  %v7360_v58 = vmul.f32 %v11514_v37, %v14571_v30 }
0x2241   :  { %v11516_v44 = vpop.eup %11515  ;;  %v7530_v28 = vpop.permute.xlu0 %7529 }
0x2242   :  { %10899 = vmatprep.mubr.msk.f32.mxu1 %vm129_vm1, %v7360_v58  ;;  %v7361_v47 = vmul.f32 %v11516_v44, %v14575_v51 }
0x2243   :  { %v11518_v63 = vpop.eup %11517  ;;  %v7532_v38 = vpop.permute.xlu1 %7531 }
0x2244   :  { %10900 = vmatmul.mubr.msk.f32.gmra.mxu1 %vm129_vm1, %v7361_v47  ;;  %v7362_v36 = vmul.f32 %v11518_v63, %v14579_v31 }
0x2245   :  { %v11520_v1 = vpop.eup %11519  ;;  %v7534_v62 = vpop.permute.xlu0 %7533 }
0x2246   :  { %10902 = vmatprep.mubr.msk.f32.mxu1 %vm129_vm1, %v7362_v36  ;;  %v7363_v60 = vmul.f32 %v11520_v1, %v14583_v20 }
0x2247   :  { %v7536_v4 = vpop.permute.xlu1 %7535 }
0x2248   :  { %10903 = vmatmul.mubr.msk.f32.gmra.mxu1 %vm129_vm1, %v7363_v60 }
0x2249   :  { %v7538_v23 = vpop.permute.xlu0 %7537  ;;  %10921 = vmatprep.mubr.msk.f32.mxu1 %vm554_vm2, %v7526_v45 }
0x224b   :  { %v7540_v56 = vpop.permute.xlu1 %7539 }
0x224c   :  { %10922 = vmatmul.mubr.msk.f32.vlgmr.msra.gmra.mxu1 %vm554_vm2, %v7528_v43 }
0x224d   :  { %10924 = vmatprep.mubr.msk.f32.mxu1 %vm554_vm2, %v7530_v28  ;;  %v7803_v42 = vpop.permute.xlu0 %7802 }
0x224f   :  { %v7805_v30 = vpop.permute.xlu1 %7804 }
0x2250   :  { %10925 = vmatmul.mubr.msk.f32.gmra.mxu1 %vm554_vm2, %v7532_v38  ;;  %10933 = vmatprep.subr.mxu0 %v7805_v30 }
0x2251   :  { %10927 = vmatprep.mubr.msk.f32.mxu1 %vm554_vm2, %v7534_v62  ;;  %10934 = vmatpush3.msra.mxu0 %v7805_v30  ;;  %v7797_v51 = vpop.permute.xlu0 %7796 }
0x2252   :  { %10935 = vmatprep.subr.mxu0 %v7803_v42 }
0x2253   :  { %10936 = vmatpush3.msra.mxu0 %v7803_v42  ;;  %v7801_v57 = vpop.permute.xlu1 %7800 }
0x2254   :  { %10928 = vmatmul.mubr.msk.f32.gmra.mxu1 %vm554_vm2, %v7536_v4  ;;  %10937 = vmatprep.subr.mxu0 %v7801_v57 }
0x2255   :  { %10930 = vmatprep.mubr.msk.f32.mxu1 %vm554_vm2, %v7538_v23  ;;  %10938 = vmatpush3.msra.mxu0 %v7801_v57  ;;  %v7793_v31 = vpop.permute.xlu0 %7792 }
0x2257   :  { %v7799_v27 = vpop.permute.xlu1 %7798 }
0x2258   :  { %10931 = vmatmul.mubr.msk.f32.gmra.mxu1 %vm554_vm2, %v7540_v56  ;;  %10939 = vmatprep.subr.mxu0 %v7799_v27 }
0x2259   :  { %10940 = vmatpush3.msra.mxu0 %v7799_v27  ;;  %v14671_v61 = vpop.permute.xlu0 %7981 }
0x225a   :  { %10941 = vmatprep.subr.mxu0 %v7797_v51 }
0x225b   :  { %10942 = vmatpush3.msra.mxu0 %v7797_v51  ;;  %v7795_v0 = vpop.permute.xlu1 %7794 }
0x225c   :  { %10943 = vmatprep.subr.mxu0 %v7795_v0 }
0x225d   :  { %10944 = vmatpush3.msra.mxu0 %v7795_v0 }
0x225e   :  { %10945 = vmatprep.subr.mxu0 %v7793_v31 }
0x225f   :  { %10946 = vmatpush3.msra.mxu0 %v7793_v31  ;;  %v7791_v20 = vpop.permute.xlu1 %7790 }
0x2260   :  { %10947 = vmatprep.subr.mxu0 %v7791_v20 }
0x2261   :  { %10948 = vmatpush3.msra.mxu0 %v7791_v20 }
0x2262   :  { %10961 = vmatprep.subr.msk.mxu0 %vm554_vm2, %v14671_v61 }
0x2263   :  { %v14695_v36 = vpop.permute.xlu1 %7979 }
0x22cc   :  { %v10895_v33 = vpop.f32.mrf.mxu1 }
0x22cd   :  { %7518 = vst.msk [vmem:[#allocation2 + $0x148] sm:$0xff] %vm554_vm2, %v10895_v33 }
0x22ce   :  { %v7478_v10 = vpop.f32.mrf.mxu1 }
0x22cf   :  { %7517 = vst.msk [vmem:[#allocation2 + $0x140] sm:$0xff] %vm554_vm2, %v7478_v10 }
0x2300   :  { %v10898_v24 = vpop.f32.mrf.mxu1 }
0x2301   :  { %7520 = vst.msk [vmem:[#allocation2 + $0x158] sm:$0xff] %vm554_vm2, %v10898_v24 }
0x2302   :  { %v7488_v14 = vpop.f32.mrf.mxu1 }
0x2303   :  { %7519 = vst.msk [vmem:[#allocation2 + $0x150] sm:$0xff] %vm554_vm2, %v7488_v14 }
0x2304   :  { %v10901_v49 = vpop.f32.mrf.mxu1 }
0x2305   :  { %7522 = vst.msk [vmem:[#allocation2 + $0x168] sm:$0xff] %vm554_vm2, %v10901_v49 }
0x2306   :  { %v7498_v29 = vpop.f32.mrf.mxu1 }
0x2307   :  { %7521 = vst.msk [vmem:[#allocation2 + $0x160] sm:$0xff] %vm554_vm2, %v7498_v29 }
0x2308   :  { %v10904_v39 = vpop.f32.mrf.mxu1 }
0x2309   :  { %7524 = vst.msk [vmem:[#allocation2 + $0x178] sm:$0xff] %vm554_vm2, %v10904_v39 }
0x230a   :  { %v7508_v46 = vpop.f32.mrf.mxu1 }
0x230b   :  { %7523 = vst.msk [vmem:[#allocation2 + $0x170] sm:$0xff] %vm554_vm2, %v7508_v46 }
0x230c   :  { %v10923_v40 = vpop.f32.mrf.mxu1 }
0x230d   :  { %v7695_v9 = vmul.f32 0.35355338, %v10923_v40 }
0x230e   :  { %v7655_v2 = vpop.f32.mrf.mxu1 }
0x230f   :  { %v7694_v16 = vmul.f32 0.35355338, %v7655_v2  ;;  %v7705_v52 = vsel %vm129_vm1, %v7695_v9, -inf }
0x2310   :  { %7706 = vmax.xlane.f32.xlu1 %v7705_v52  ;;  %v10926_v19 = vpop.f32.mrf.mxu1 }
0x2311   :  { %v7697_v6 = vmul.f32 0.35355338, %v10926_v19  ;;  %v7702_v50 = vsel %vm129_vm1, %v7694_v16, -inf }
0x2312   :  { %7703 = vmax.xlane.f32.xlu0 %v7702_v50  ;;  %v7665_v48 = vpop.f32.mrf.mxu1 }
0x2313   :  { %v7696_v25 = vmul.f32 0.35355338, %v7665_v48  ;;  %v7711_v17 = vsel %vm129_vm1, %v7697_v6, -inf }
0x2314   :  { %v10929_v55 = vpop.f32.mrf.mxu1 }
0x2315   :  { %v7699_v22 = vmul.f32 0.35355338, %v10929_v55  ;;  %v7708_v37 = vsel %vm129_vm1, %v7696_v25, -inf }
0x2316   :  { %7712 = vmax.xlane.f32.xlu0 %v7711_v17  ;;  %v7675_v35 = vpop.f32.mrf.mxu1 }
0x2317   :  { %v7698_v32 = vmul.f32 0.35355338, %v7675_v35  ;;  %v7717_v47 = vsel %vm129_vm1, %v7699_v22, -inf }
0x2318   :  { %v10932_v45 = vpop.f32.mrf.mxu1 }
0x2319   :  { %v7714_v43 = vsel %vm129_vm1, %v7698_v32, -inf  ;;  %v7701_v28 = vmul.f32 0.35355338, %v10932_v45 }
0x231a   :  { %7709 = vmax.xlane.f32.xlu0 %v7708_v37  ;;  %7715 = vmax.xlane.f32.xlu1 %v7714_v43  ;;  %v7685_v58 = vpop.f32.mrf.mxu1 }
0x231b   :  { %v7700_v44 = vmul.f32 0.35355338, %v7685_v58  ;;  %v7723_v38 = vsel %vm129_vm1, %v7701_v28, -inf }
0x231d   :  { %v7720_v63 = vsel %vm129_vm1, %v7700_v44, -inf }
0x231e   :  { %7718 = vmax.xlane.f32.xlu0 %v7717_v47  ;;  %7721 = vmax.xlane.f32.xlu1 %v7720_v63 }
0x2322   :  { %7724 = vmax.xlane.f32.xlu0 %v7723_v38 }
0x232f   :  { %7975 = vrot.lane.b32.xlu1 %v13614_v13, %s11755_s11 }
0x2338   :  { %7977 = vrot.lane.b32.xlu0 %v13627_v41, %s11755_s11 }
0x2399   :  { %v7707_v1 = vpop.xlane.xlu1 %7706 }
0x239a   :  { %v7727_v62 = vsub.f32 %v7695_v9, %v7707_v1 }
0x239b   :  { %v7704_v60 = vpop.xlane.xlu0 %7703 }
0x239c   :  { %v7736_v4 = vmul.f32 1.442695, %v7727_v62  ;;  %v7726_v23 = vsub.f32 %v7694_v16, %v7704_v60 }
0x239e   :  { %11521 = vpow2.f32 %v7736_v4  ;;  %v7734_v56 = vmul.f32 1.442695, %v7726_v23 }
0x239f   :  { %v7713_v27 = vpop.xlane.xlu0 %7712 }
0x23a0   :  { %11523 = vpow2.f32 %v7734_v56  ;;  %v7729_v10 = vsub.f32 %v7697_v6, %v7713_v27 }
0x23a2   :  { %v7740_v29 = vmul.f32 1.442695, %v7729_v10 }
0x23a3   :  { %v7710_v31 = vpop.xlane.xlu0 %7709  ;;  %v7716_v0 = vpop.xlane.xlu1 %7715 }
0x23a4   :  { %v7728_v20 = vsub.f32 %v7696_v25, %v7710_v31  ;;  %v7730_v14 = vsub.f32 %v7698_v32, %v7716_v0 }
0x23a6   :  { %v7738_v24 = vmul.f32 1.442695, %v7728_v20  ;;  %v7742_v40 = vmul.f32 1.442695, %v7730_v14 }
0x23a7   :  { %v7719_v33 = vpop.xlane.xlu0 %7718  ;;  %v7722_v49 = vpop.xlane.xlu1 %7721 }
0x23a8   :  { %v7731_v39 = vsub.f32 %v7699_v22, %v7719_v33  ;;  %11525 = vpow2.f32 %v7738_v24  ;;  %v7732_v9 = vsub.f32 %v7700_v44, %v7722_v49 }
0x23a9   :  { %11527 = vpow2.f32 %v7740_v29 }
0x23aa   :  { %v7744_v2 = vmul.f32 1.442695, %v7731_v39  ;;  %11529 = vpow2.f32 %v7742_v40  ;;  %v7746_v52 = vmul.f32 1.442695, %v7732_v9 }
0x23ab   :  { %v14697_v42 = vpop.eup %11521  ;;  %v7725_v46 = vpop.xlane.xlu0 %7724 }
0x23ac   :  { %v7753_v30 = vsel %vm129_vm1, %v14697_v42, 0.0  ;;  %v7733_v16 = vsub.f32 %v7701_v28, %v7725_v46  ;;  %11531 = vpow2.f32 %v7744_v2 }
0x23ad   :  { %v14701_v57 = vpop.eup %11523  ;;  %7754 = vadd.xlane.f32.xlu0 %v7753_v30  ;;  %11533 = vpow2.f32 %v7746_v52 }
0x23ae   :  { %v7750_v51 = vsel %vm129_vm1, %v14701_v57, 0.0  ;;  %v7748_v19 = vmul.f32 1.442695, %v7733_v16 }
0x23af   :  { %7751 = vadd.xlane.f32.xlu1 %v7750_v51 }
0x23b0   :  { %11535 = vpow2.f32 %v7748_v19 }
0x23b5   :  { %v14709_v50 = vpop.eup %11525 }
0x23b6   :  { %v14711_v6 = vpop.eup %11527  ;;  %v7756_v48 = vsel %vm129_vm1, %v14709_v50, 0.0 }
0x23b7   :  { %v14715_v55 = vpop.eup %11529  ;;  %v7759_v25 = vsel %vm129_vm1, %v14711_v6, 0.0 }
0x23b8   :  { %v7762_v35 = vsel %vm129_vm1, %v14715_v55, 0.0 }
0x23b9   :  { %v14719_v17 = vpop.eup %11531 }
0x23ba   :  { %v14723_v32 = vpop.eup %11533  ;;  %v7765_v45 = vsel %vm129_vm1, %v14719_v17, 0.0 }
0x23bb   :  { %v7768_v37 = vsel %vm129_vm1, %v14723_v32, 0.0 }
0x23bd   :  { %v14727_v22 = vpop.eup %11535 }
0x23be   :  { %v7771_v43 = vsel %vm129_vm1, %v14727_v22, 0.0 }
0x23c0   :  { %7971 = vrot.lane.b32.xlu1 %v13634_v18, %s11755_s11 }
0x23c3   :  { %7973 = vrot.lane.b32.xlu0 %v13647_v53, %s11755_s11 }
0x23e2   :  { %7757 = vadd.xlane.f32.xlu0 %v7756_v48 }
0x23e4   :  { %7760 = vadd.xlane.f32.xlu1 %v7759_v25 }
0x23e6   :  { %7763 = vadd.xlane.f32.xlu0 %v7762_v35 }
0x23e8   :  { %7766 = vadd.xlane.f32.xlu1 %v7765_v45 }
0x23ea   :  { %7769 = vadd.xlane.f32.xlu0 %v7768_v37 }
0x23ec   :  { %7772 = vadd.xlane.f32.xlu1 %v7771_v43 }
0x23fd   :  { %7967 = vrot.lane.b32.xlu1 %v13604_v54, %s11755_s11 }
0x2400   :  { %7969 = vrot.lane.b32.xlu0 %v13664_v5, %s11755_s11 }
0x2401   :  { %7953 = vrot.lane.b32.xlu1 %v13664_v5, %s11774_s22  ;;  %v7978_v5 = vpop.permute.xlu0 %7977 }
0x2404   :  { %7951 = vrot.lane.b32.xlu0 %v13604_v54, %s11774_s22  ;;  %v7976_v54 = vpop.permute.xlu1 %7975 }
0x2405   :  { %7957 = vrot.lane.b32.xlu1 %v13647_v53, %s11774_s22 }
0x2408   :  { %7955 = vrot.lane.b32.xlu0 %v13634_v18, %s11774_s22 }
0x2409   :  { %7961 = vrot.lane.b32.xlu1 %v13627_v41, %s11774_s22 }
0x240c   :  { %7959 = vrot.lane.b32.xlu0 %v13614_v13, %s11774_s22 }
0x240d   :  { %7965 = vrot.lane.b32.xlu1 %v13617_v21, %s11774_s22 }
0x2410   :  { %7963 = vrot.lane.b32.xlu0 %v13609_v3, %s11774_s22 }
0x2436   :  { %v7755_v58 = vpop.xlane.xlu0 %7754 }
0x2437   :  { %11537 = vrcp.f32 %v7755_v58 }
0x2438   :  { %v7752_v53 = vpop.xlane.xlu1 %7751 }
0x2439   :  { %11539 = vrcp.f32 %v7752_v53 }
0x243a   :  { %v7974_v3 = vpop.permute.xlu0 %7973 }
0x243c   :  { %v7972_v13 = vpop.permute.xlu1 %7971 }
0x2444   :  { %v11538_v44 = vpop.eup %11537 }
0x2445   :  { %v7783_v41 = vmul.f32 %v11538_v44, %v14697_v42 }
0x2446   :  { %v11540_v18 = vpop.eup %11539 }
0x2447   :  { %v7782_v28 = vmul.f32 %v11540_v18, %v14701_v57 }
0x2449   :  { %10949 = vmatprep.mubr.msk.f32.mxu0 %vm129_vm1, %v7782_v28 }
0x244a   :  { %10950 = vmatmul.mubr.msk.f32.vlgmr.msra.gmra.mxu0 %vm129_vm1, %v7783_v41 }
0x244b   :  { %10962 = vmatpush3.xpose.msk.msra.mxu0 %vm554_vm2, %v14671_v61 }
0x244c   :  { %10963 = vmatprep.subr.msk.mxu0 %vm554_vm2, %v14695_v36 }
0x244f   :  { %10964 = vmatpush3.xpose.msk.msra.mxu0 %vm554_vm2, %v14695_v36 }
0x2450   :  { %10965 = vmatprep.subr.msk.mxu0 %vm554_vm2, %v7978_v5 }
0x2453   :  { %10966 = vmatpush3.xpose.msk.msra.mxu0 %vm554_vm2, %v7978_v5 }
0x2454   :  { %10967 = vmatprep.subr.msk.mxu0 %vm554_vm2, %v7976_v54 }
0x2457   :  { %10968 = vmatpush3.xpose.msk.msra.mxu0 %vm554_vm2, %v7976_v54 }
0x2458   :  { %10969 = vmatprep.subr.msk.mxu0 %vm554_vm2, %v7974_v3 }
0x245b   :  { %10970 = vmatpush3.xpose.msk.msra.mxu0 %vm554_vm2, %v7974_v3 }
0x245c   :  { %10971 = vmatprep.subr.msk.mxu0 %vm554_vm2, %v7972_v13 }
0x245f   :  { %10972 = vmatpush3.xpose.msk.msra.mxu0 %vm554_vm2, %v7972_v13 }
0x246b   :  { %v7758_v21 = vpop.xlane.xlu0 %7757 }
0x246c   :  { %11541 = vrcp.f32 %v7758_v21 }
0x246d   :  { %v7761_v61 = vpop.xlane.xlu1 %7760 }
0x246e   :  { %11543 = vrcp.f32 %v7761_v61 }
0x246f   :  { %v7764_v47 = vpop.xlane.xlu0 %7763 }
0x2470   :  { %11545 = vrcp.f32 %v7764_v47 }
0x2471   :  { %v7767_v63 = vpop.xlane.xlu1 %7766 }
0x2472   :  { %11547 = vrcp.f32 %v7767_v63 }
0x2473   :  { %v7770_v38 = vpop.xlane.xlu0 %7769 }
0x2474   :  { %11549 = vrcp.f32 %v7770_v38 }
0x2475   :  { %v7773_v36 = vpop.xlane.xlu1 %7772 }
0x2476   :  { %11551 = vrcp.f32 %v7773_v36 }
0x2477   :  { %v7970_v1 = vpop.permute.xlu0 %7969 }
0x2478   :  { %10973 = vmatprep.subr.msk.mxu0 %vm554_vm2, %v7970_v1 }
0x2479   :  { %v11542_v62 = vpop.eup %11541  ;;  %10974 = vmatpush3.xpose.msk.msra.mxu0 %vm554_vm2, %v7970_v1  ;;  %v7968_v60 = vpop.permute.xlu1 %7967 }
0x247a   :  { %10975 = vmatprep.subr.msk.mxu0 %vm554_vm2, %v7968_v60  ;;  %v7784_v4 = vmul.f32 %v11542_v62, %v14709_v50 }
0x247b   :  { %v11544_v23 = vpop.eup %11543  ;;  %v7952_v51 = vpop.permute.xlu0 %7951 }
0x247c   :  { %10952 = vmatprep.mubr.msk.f32.mxu0 %vm129_vm1, %v7784_v4  ;;  %v7785_v56 = vmul.f32 %v11544_v23, %v14711_v6 }
0x247d   :  { %v11546_v42 = vpop.eup %11545  ;;  %10976 = vmatpush3.xpose.msk.msra.mxu0 %vm554_vm2, %v7968_v60  ;;  %v7954_v33 = vpop.permute.xlu1 %7953 }
0x247e   :  { %10953 = vmatmul.mubr.msk.f32.gmra.mxu0 %vm129_vm1, %v7785_v56  ;;  %v7786_v30 = vmul.f32 %v11546_v42, %v14715_v55 }
0x247f   :  { %v11548_v57 = vpop.eup %11547  ;;  %v7956_v24 = vpop.permute.xlu0 %7955 }
0x2480   :  { %10955 = vmatprep.mubr.msk.f32.mxu0 %vm129_vm1, %v7786_v30  ;;  %v7787_v27 = vmul.f32 %v11548_v57, %v14719_v17 }
0x2481   :  { %v11550_v31 = vpop.eup %11549  ;;  %v7958_v14 = vpop.permute.xlu1 %7957 }
0x2482   :  { %10956 = vmatmul.mubr.msk.f32.gmra.mxu0 %vm129_vm1, %v7787_v27  ;;  %v7788_v0 = vmul.f32 %v11550_v31, %v14723_v32 }
0x2483   :  { %v11552_v20 = vpop.eup %11551  ;;  %v7960_v49 = vpop.permute.xlu0 %7959 }
0x2484   :  { %10958 = vmatprep.mubr.msk.f32.mxu0 %vm129_vm1, %v7788_v0  ;;  %v7789_v10 = vmul.f32 %v11552_v20, %v14727_v22 }
0x2485   :  { %v7962_v29 = vpop.permute.xlu1 %7961 }
0x2486   :  { %10959 = vmatmul.mubr.msk.f32.gmra.mxu0 %vm129_vm1, %v7789_v10 }
0x2487   :  { %10977 = vmatprep.mubr.msk.f32.mxu0 %vm554_vm2, %v7952_v51  ;;  %v7964_v39 = vpop.permute.xlu0 %7963 }
0x2489   :  { %v7966_v46 = vpop.permute.xlu1 %7965 }
0x248a   :  { %10978 = vmatmul.mubr.msk.f32.vlgmr.msra.gmra.mxu0 %vm554_vm2, %v7954_v33 }
0x248b   :  { %10980 = vmatprep.mubr.msk.f32.mxu0 %vm554_vm2, %v7956_v24 }
0x248e   :  { %10981 = vmatmul.mubr.msk.f32.gmra.mxu0 %vm554_vm2, %v7958_v14 }
0x248f   :  { %10983 = vmatprep.mubr.msk.f32.mxu0 %vm554_vm2, %v7960_v49 }
0x2492   :  { %10984 = vmatmul.mubr.msk.f32.gmra.mxu0 %vm554_vm2, %v7962_v29 }
0x2493   :  { %10986 = vmatprep.mubr.msk.f32.mxu0 %vm554_vm2, %v7964_v39 }
0x2496   :  { %10987 = vmatmul.mubr.msk.f32.gmra.mxu0 %vm554_vm2, %v7966_v46 }
0x250a   :  { %v10951_v40 = vpop.f32.mrf.mxu0 }
0x250b   :  { %7944 = vst.msk [vmem:[#allocation2 + $0x188] sm:$0xff] %vm554_vm2, %v10951_v40 }
0x250c   :  { %v7904_v9 = vpop.f32.mrf.mxu0 }
0x250d   :  { %7943 = vst.msk [vmem:[#allocation2 + $0x180] sm:$0xff] %vm554_vm2, %v7904_v9 }
0x253e   :  { %v10954_v2 = vpop.f32.mrf.mxu0 }
0x253f   :  { %7946 = vst.msk [vmem:[#allocation2 + $0x198] sm:$0xff] %vm554_vm2, %v10954_v2 }
0x2540   :  { %v7914_v16 = vpop.f32.mrf.mxu0 }
0x2541   :  { %7945 = vst.msk [vmem:[#allocation2 + $0x190] sm:$0xff] %vm554_vm2, %v7914_v16 }
0x2542   :  { %v10957_v52 = vpop.f32.mrf.mxu0 }
0x2543   :  { %7948 = vst.msk [vmem:[#allocation2 + $0x1a8] sm:$0xff] %vm554_vm2, %v10957_v52 }
0x2544   :  { %v7924_v19 = vpop.f32.mrf.mxu0 }
0x2545   :  { %7947 = vst.msk [vmem:[#allocation2 + $0x1a0] sm:$0xff] %vm554_vm2, %v7924_v19 }
0x2546   :  { %v10960_v50 = vpop.f32.mrf.mxu0 }
0x2547   :  { %7950 = vst.msk [vmem:[#allocation2 + $0x1b8] sm:$0xff] %vm554_vm2, %v10960_v50 }
0x2548   :  { %v7934_v6 = vpop.f32.mrf.mxu0 }
0x2549   :  { %7949 = vst.msk [vmem:[#allocation2 + $0x1b0] sm:$0xff] %vm554_vm2, %v7934_v6 }
0x254a   :  { %v10979_v48 = vpop.f32.mrf.mxu0 }
0x254b   :  { %v8121_v55 = vmul.f32 0.35355338, %v10979_v48  ;;  %v8402_v48 = vld [vmem:[#allocation2 + $0x1] ss:$8 sm:$0xf0] }
0x254c   :  { %v8081_v25 = vpop.f32.mrf.mxu0 }
0x254d   :  { %v8120_v17 = vmul.f32 0.35355338, %v8081_v25  ;;  %v8131_v35 = vsel %vm129_vm1, %v8121_v55, -inf }
0x254e   :  { %8132 = vmax.xlane.f32.xlu1 %v8131_v35  ;;  %v10982_v32 = vpop.f32.mrf.mxu0  ;;  %v8425_v35 = vld [vmem:[#allocation2 + $0x2] ss:$8 sm:$0xf] }
0x254f   :  { %v8128_v45 = vsel %vm129_vm1, %v8120_v17, -inf  ;;  %v8123_v5 = vmul.f32 0.35355338, %v10982_v32 }
0x2550   :  { %8129 = vmax.xlane.f32.xlu0 %v8128_v45  ;;  %v8091_v22 = vpop.f32.mrf.mxu0 }
0x2551   :  { %v8122_v37 = vmul.f32 0.35355338, %v8091_v22  ;;  %v8137_v18 = vsel %vm129_vm1, %v8123_v5, -inf  ;;  %v8450_v22 = vld [vmem:[#allocation2 + $0x3] ss:$8 sm:$0xf0] }
0x2552   :  { %v10985_v43 = vpop.f32.mrf.mxu0 }
0x2553   :  { %v8134_v54 = vsel %vm129_vm1, %v8122_v37, -inf  ;;  %v8125_v44 = vmul.f32 0.35355338, %v10985_v43  ;;  %v8449_v43 = vld [vmem:[#allocation2 + $0x3] ss:$8 sm:$0xf] }
0x2554   :  { %8135 = vmax.xlane.f32.xlu0 %v8134_v54  ;;  %v8101_v58 = vpop.f32.mrf.mxu0  ;;  %v8451_v54 = vor.u32 %v8450_v22, %v8449_v43  ;;  %v8498_v43 = vld [vmem:[#allocation2 + $0x5] ss:$8 sm:$0xf0] }
0x2555   :  { %v8124_v53 = vmul.f32 0.35355338, %v8101_v58  ;;  %v8143_v13 = vsel %vm129_vm1, %v8125_v44, -inf }
0x2556   :  { %v10988_v41 = vpop.f32.mrf.mxu0 }
0x2557   :  { %v8140_v28 = vsel %vm129_vm1, %v8124_v53, -inf  ;;  %v8127_v3 = vmul.f32 0.35355338, %v10988_v41  ;;  %v8477_v41 = vld [vmem:[#allocation2 + $0x44] ss:$8 sm:$0xf0] }
0x2558   :  { %8138 = vmax.xlane.f32.xlu0 %v8137_v18  ;;  %8141 = vmax.xlane.f32.xlu1 %v8140_v28  ;;  %v8111_v61 = vpop.f32.mrf.mxu0 }
0x2559   :  { %v8149_v21 = vsel %vm129_vm1, %v8127_v3, -inf  ;;  %v14818_v47 = vmul.f32 0.35355338, %v8111_v61  ;;  %v8410_v61 = vld [vmem:[#allocation2 + $0xc1] ss:$8 sm:$0xf] }
0x255b   :  { %v8146_v63 = vsel %vm129_vm1, %v14818_v47, -inf }
0x255c   :  { %8144 = vmax.xlane.f32.xlu0 %v8143_v13 }
0x2560   :  { %8150 = vmax.xlane.f32.xlu0 %v8149_v21  ;;  %v8411_v21 = vld [vmem:[#allocation2 + $0xc1] ss:$8 sm:$0xf0] }
0x2569   :  { %8230 = vrot.lane.b32.xlu1 %v13620_v34, %s11774_s22 }
0x256d   :  { %8226 = vrot.lane.b32.xlu1 %v13638_v7, %s11774_s22 }
0x2576   :  { %8228 = vrot.lane.b32.xlu0 %v13630_v59, %s11774_s22 }
0x257a   :  { %8222 = vrot.lane.b32.xlu0 %v13655_v12, %s11774_s22 }
0x2591   :  { %8147 = vmax.xlane.f32.xlu1 %v8146_v63  ;;  %v8501_v63 = vld [vmem:[#allocation2 + $0x45] ss:$8 sm:$0xf0] }
0x25a2   :  { %8224 = vrot.lane.b32.xlu1 %v13650_v11, %s11774_s22 }
0x25a6   :  { %8220 = vrot.lane.b32.xlu1 %v13667_v26, %s11774_s22 }
0x25d7   :  { %v8133_v34 = vpop.xlane.xlu1 %8132 }
0x25d8   :  { %v8153_v7 = vsub.f32 %v8121_v55, %v8133_v34  ;;  %v8401_v55 = vld [vmem:[#allocation2 + $0x1] ss:$8 sm:$0xf] }
0x25d9   :  { %v8130_v38 = vpop.xlane.xlu0 %8129  ;;  %v8403_v25 = vor.u32 %v8402_v48, %v8401_v55 }
0x25da   :  { %v8162_v59 = vmul.f32 1.442695, %v8153_v7  ;;  %v8152_v36 = vsub.f32 %v8120_v17, %v8130_v38  ;;  %v8426_v17 = vld [vmem:[#allocation2 + $0x2] ss:$8 sm:$0xf0] }
0x25db   :  { %v8427_v32 = vor.u32 %v8426_v17, %v8425_v35  ;;  %v8500_v7 = vld [vmem:[#allocation2 + $0x45] ss:$8 sm:$0xf]  ;;  %v8408_v17 = vld [vmem:[#allocation2 + $0x81] ss:$8 sm:$0xf0] }
0x25dc   :  { %11553 = vpow2.f32 %v8162_v59  ;;  %v8160_v12 = vmul.f32 1.442695, %v8152_v36  ;;  %v8502_v59 = vor.u32 %v8501_v63, %v8500_v7  ;;  %v8435_v36 = vld [vmem:[#allocation2 + $0xc2] ss:$8 sm:$0xf0] }
0x25dd   :  { %v8136_v1 = vpop.xlane.xlu0 %8135  ;;  %v8440_v35 = vld [vmem:[#allocation2 + $0x142] ss:$8 sm:$0xf] }
0x25de   :  { %11555 = vpow2.f32 %v8160_v12  ;;  %v8154_v62 = vsub.f32 %v8122_v37, %v8136_v1  ;;  %v8434_v12 = vld [vmem:[#allocation2 + $0xc2] ss:$8 sm:$0xf] }
0x25df   :  { %v8436_v1 = vor.u32 %v8435_v36, %v8434_v12  ;;  %v8488_v36 = vld [vmem:[#allocation2 + $0x144] ss:$8 sm:$0xf]  ;;  %v8455_v12 = vld [vmem:[#allocation2 + $0x83] ss:$8 sm:$0xf] }
0x25e0   :  { %v8164_v60 = vmul.f32 1.442695, %v8154_v62  ;;  %v8525_v62 = vld [vmem:[#allocation2 + $0x46] ss:$8 sm:$0xf0] }
0x25e1   :  { %v8139_v4 = vpop.xlane.xlu0 %8138  ;;  %v8142_v23 = vpop.xlane.xlu1 %8141 }
0x25e2   :  { %11557 = vpow2.f32 %v8164_v60  ;;  %v8155_v56 = vsub.f32 %v8123_v5, %v8139_v4  ;;  %v8156_v42 = vsub.f32 %v8124_v53, %v8142_v23  ;;  %v8474_v53 = vld [vmem:[#allocation2 + $0x4] ss:$8 sm:$0xf0]  ;;  %v8524_v60 = vld [vmem:[#allocation2 + $0x46] ss:$8 sm:$0xf] }
0x25e3   :  { %v8526_v4 = vor.u32 %v8525_v62, %v8524_v60  ;;  %v8459_v23 = vld [vmem:[#allocation2 + $0xc3] ss:$8 sm:$0xf0]  ;;  %v8513_v60 = vld [vmem:[#allocation2 + $0x145] ss:$8 sm:$0xf0] }
0x25e4   :  { %v8166_v11 = vmul.f32 1.442695, %v8155_v56  ;;  %v8168_v30 = vmul.f32 1.442695, %v8156_v42 }
0x25e5   :  { %v8145_v57 = vpop.xlane.xlu0 %8144  ;;  %v8231_v26 = vpop.permute.xlu1 %8230  ;;  %v8458_v56 = vld [vmem:[#allocation2 + $0xc3] ss:$8 sm:$0xf] }
0x25e6   :  { %11559 = vpow2.f32 %v8166_v11  ;;  %v8157_v51 = vsub.f32 %v8125_v44, %v8145_v57  ;;  %10989 = vmatprep.subr.mxu1 %v8231_v26  ;;  %v8473_v44 = vld [vmem:[#allocation2 + $0x4] ss:$8 sm:$0xf]  ;;  %v8460_v42 = vor.u32 %v8459_v23, %v8458_v56  ;;  %v8549_v11 = vld [vmem:[#allocation2 + $0x47] ss:$8 sm:$0xf0] }
0x25e7   :  { %11561 = vpow2.f32 %v8168_v30  ;;  %10990 = vmatpush3.msra.mxu1 %v8231_v26  ;;  %v8475_v18 = vor.u32 %v8474_v53, %v8473_v44  ;;  %v8548_v30 = vld [vmem:[#allocation2 + $0x47] ss:$8 sm:$0xf]  ;;  %v8483_v26 = vld [vmem:[#allocation2 + $0xc4] ss:$8 sm:$0xf0] }
0x25e8   :  { %v8170_v27 = vmul.f32 1.442695, %v8157_v51  ;;  %v8550_v57 = vor.u32 %v8549_v11, %v8548_v30  ;;  %v8405_v51 = vld [vmem:[#allocation2 + $0x41] ss:$8 sm:$0xf0] }
0x25e9   :  { %v14826_v31 = vpop.eup %11553  ;;  %v8151_v0 = vpop.xlane.xlu0 %8150  ;;  %v8432_v44 = vld [vmem:[#allocation2 + $0x82] ss:$8 sm:$0xf0]  ;;  %v8512_v23 = vld [vmem:[#allocation2 + $0x145] ss:$8 sm:$0xf] }
0x25ea   :  { %11563 = vpow2.f32 %v8170_v27  ;;  %v8159_v20 = vsub.f32 %v8127_v3, %v8151_v0  ;;  %v8179_v33 = vsel %vm129_vm1, %v14826_v31, 0.0  ;;  %v8227_v39 = vpop.permute.xlu1 %8226  ;;  %v8476_v3 = vld [vmem:[#allocation2 + $0x44] ss:$8 sm:$0xf] }
0x25eb   :  { %v14830_v10 = vpop.eup %11555  ;;  %8180 = vadd.xlane.f32.xlu0 %v8179_v33  ;;  %v8478_v13 = vor.u32 %v8477_v41, %v8476_v3  ;;  %v8482_v27 = vld [vmem:[#allocation2 + $0xc4] ss:$8 sm:$0xf]  ;;  %v8404_v0 = vld [vmem:[#allocation2 + $0x41] ss:$8 sm:$0xf] }
0x25ec   :  { %v8174_v24 = vmul.f32 1.442695, %v8159_v20  ;;  %v8176_v14 = vsel %vm129_vm1, %v14830_v10, 0.0  ;;  %v8484_v20 = vor.u32 %v8483_v26, %v8482_v27  ;;  %v8406_v33 = vor.u32 %v8405_v51, %v8404_v0  ;;  %v8545_v56 = vld [vmem:[#allocation2 + $0x7] ss:$8 sm:$0xf] }
0x25ed   :  { %v8229_v49 = vpop.permute.xlu0 %8228  ;;  %8177 = vadd.xlane.f32.xlu1 %v8176_v14  ;;  %v8429_v14 = vld [vmem:[#allocation2 + $0x42] ss:$8 sm:$0xf0]  ;;  %v8537_v30 = vld [vmem:[#allocation2 + $0x146] ss:$8 sm:$0xf0] }
0x25ee   :  { %11565 = vpow2.f32 %v8174_v24  ;;  %10991 = vmatprep.subr.mxu1 %v8229_v49  ;;  %v8417_v24 = vld [vmem:[#allocation2 + $0x141] ss:$8 sm:$0xf0]  ;;  %v8536_v26 = vld [vmem:[#allocation2 + $0x146] ss:$8 sm:$0xf] }
0x25ef   :  { %v14834_v29 = vpop.eup %11557  ;;  %10992 = vmatpush3.msra.mxu1 %v8229_v49  ;;  %v8416_v49 = vld [vmem:[#allocation2 + $0x141] ss:$8 sm:$0xf]  ;;  %v8479_v51 = vld [vmem:[#allocation2 + $0x84] ss:$8 sm:$0xf]  ;;  %v8538_v27 = vor.u32 %v8537_v30, %v8536_v26 }
0x25f0   :  { %10993 = vmatprep.subr.mxu1 %v8227_v39  ;;  %v8182_v46 = vsel %vm129_vm1, %v14834_v29, 0.0 }
0x25f1   :  { %8183 = vadd.xlane.f32.xlu1 %v8182_v46  ;;  %10994 = vmatpush3.msra.mxu1 %v8227_v39  ;;  %v8428_v39 = vld [vmem:[#allocation2 + $0x42] ss:$8 sm:$0xf]  ;;  %v8418_v46 = vor.u32 %v8417_v24, %v8416_v49  ;;  %v8560_v24 = vld [vmem:[#allocation2 + $0x147] ss:$8 sm:$0xf] }
0x25f3   :  { %v14838_v40 = vpop.eup %11559 }
0x25f4   :  { %v14840_v9 = vpop.eup %11561  ;;  %v8185_v2 = vsel %vm129_vm1, %v14838_v40, 0.0 }
0x25f5   :  { %8186 = vadd.xlane.f32.xlu0 %v8185_v2  ;;  %v8188_v16 = vsel %vm129_vm1, %v14840_v9, 0.0  ;;  %v8430_v2 = vor.u32 %v8429_v14, %v8428_v39  ;;  %v8413_v14 = vld [vmem:[#allocation2 + $0x101] ss:$8 sm:$0xf] }
0x25f6   :  { %8189 = vadd.xlane.f32.xlu1 %v8188_v16  ;;  %v8507_v16 = vld [vmem:[#allocation2 + $0xc5] ss:$8 sm:$0xf0] }
0x25f7   :  { %v14846_v52 = vpop.eup %11563 }
0x25f8   :  { %v8191_v19 = vsel %vm129_vm1, %v14846_v52, 0.0 }
0x25f9   :  { %8192 = vadd.xlane.f32.xlu0 %v8191_v19  ;;  %v8453_v19 = vld [vmem:[#allocation2 + $0x43] ss:$8 sm:$0xf0] }
0x25fb   :  { %v14850_v50 = vpop.eup %11565 }
0x25fc   :  { %v8197_v6 = vsel %vm129_vm1, %v14850_v50, 0.0 }
0x25fd   :  { %8198 = vadd.xlane.f32.xlu0 %v8197_v6  ;;  %v8452_v6 = vld [vmem:[#allocation2 + $0x43] ss:$8 sm:$0xf] }
0x25fe   :  { %v8454_v55 = vor.u32 %v8453_v19, %v8452_v6  ;;  %v8503_v19 = vld [vmem:[#allocation2 + $0x85] ss:$8 sm:$0xf] }
0x2613   :  { %8218 = vrot.lane.b32.xlu0 %v13672_v15, %s11774_s22  ;;  %v8223_v15 = vpop.permute.xlu0 %8222 }
0x2617   :  { %8577 = vrot.lane.b32.xlu0 %v8403_v25, %s11755_s11  ;;  %v8441_v25 = vld [vmem:[#allocation2 + $0x142] ss:$8 sm:$0xf0] }
0x261a   :  { %v8148_v45 = vpop.xlane.xlu1 %8147 }
0x261b   :  { %v8158_v37 = vsub.f32 %v14818_v47, %v8148_v45  ;;  %8609 = vrot.lane.b32.xlu0 %v8427_v32, %s11758_s20  ;;  %v8412_v47 = vor.u32 %v8411_v21, %v8410_v61  ;;  %v8407_v32 = vld [vmem:[#allocation2 + $0x81] ss:$8 sm:$0xf]  ;;  %v8442_v45 = vor.u32 %v8441_v25, %v8440_v35  ;;  %v8522_v21 = vld [vmem:[#allocation2 + $0x6] ss:$8 sm:$0xf0] }
0x261c   :  { %v8409_v22 = vor.u32 %v8408_v17, %v8407_v32  ;;  %v8554_v61 = vld [vmem:[#allocation2 + $0xc7] ss:$8 sm:$0xf]  ;;  %v8539_v25 = vld [vmem:[#allocation2 + $0x186] ss:$8 sm:$0xf] }
0x261d   :  { %v8172_v5 = vmul.f32 1.442695, %v8158_v37  ;;  %v8531_v37 = vld [vmem:[#allocation2 + $0xc6] ss:$8 sm:$0xf0] }
0x261e   :  { %v8225_v58 = vpop.permute.xlu1 %8224  ;;  %v8437_v17 = vld [vmem:[#allocation2 + $0x102] ss:$8 sm:$0xf] }
0x261f   :  { %11567 = vpow2.f32 %v8172_v5  ;;  %8641 = vrot.lane.b32.xlu0 %v8451_v54, %s11771_s19  ;;  %10995 = vmatprep.subr.mxu1 %v8225_v58  ;;  %v8530_v5 = vld [vmem:[#allocation2 + $0xc6] ss:$8 sm:$0xf]  ;;  %v8497_v54 = vld [vmem:[#allocation2 + $0x5] ss:$8 sm:$0xf] }
0x2620   :  { %10996 = vmatpush3.msra.mxu1 %v8225_v58  ;;  %v8532_v58 = vor.u32 %v8531_v37, %v8530_v5  ;;  %v8499_v53 = vor.u32 %v8498_v43, %v8497_v54  ;;  %v8462_v5 = vld [vmem:[#allocation2 + $0x103] ss:$8 sm:$0xf0] }
0x2621   :  { %10997 = vmatprep.subr.mxu1 %v8223_v15  ;;  %v8461_v54 = vld [vmem:[#allocation2 + $0x103] ss:$8 sm:$0xf] }
0x2622   :  { %10998 = vmatpush3.msra.mxu1 %v8223_v15  ;;  %v8221_v28 = vpop.permute.xlu1 %8220  ;;  %v8465_v15 = vld [vmem:[#allocation2 + $0x143] ss:$8 sm:$0xf0] }
0x2623   :  { %8673 = vrot.lane.b32.xlu0 %v8475_v18, %s11769_s17  ;;  %10999 = vmatprep.subr.mxu1 %v8221_v28  ;;  %v8464_v18 = vld [vmem:[#allocation2 + $0x143] ss:$8 sm:$0xf] }
0x2624   :  { %11000 = vmatpush3.msra.mxu1 %v8221_v28  ;;  %v8431_v28 = vld [vmem:[#allocation2 + $0x82] ss:$8 sm:$0xf]  ;;  %v8466_v41 = vor.u32 %v8465_v15, %v8464_v18  ;;  %v8552_v15 = vld [vmem:[#allocation2 + $0x87] ss:$8 sm:$0xf0] }
0x2625   :  { %v8433_v3 = vor.u32 %v8432_v44, %v8431_v28  ;;  %v8551_v44 = vld [vmem:[#allocation2 + $0x87] ss:$8 sm:$0xf] }
0x2626   :  { %v8553_v18 = vor.u32 %v8552_v15, %v8551_v44 }
0x2627   :  { %8675 = vrot.lane.b32.xlu0 %v8478_v13, %s11769_s17  ;;  %v8555_v13 = vld [vmem:[#allocation2 + $0xc7] ss:$8 sm:$0xf0] }
0x2628   :  { %v8556_v63 = vor.u32 %v8555_v13, %v8554_v61  ;;  %v8420_v61 = vld [vmem:[#allocation2 + $0x181] ss:$8 sm:$0xf0] }
0x262b   :  { %8583 = vrot.lane.b32.xlu0 %v8412_v47, %s11755_s11  ;;  %v8521_v47 = vld [vmem:[#allocation2 + $0x6] ss:$8 sm:$0xf] }
0x262c   :  { %v14863_v34 = vpop.eup %11567  ;;  %v8523_v7 = vor.u32 %v8522_v21, %v8521_v47 }
0x262d   :  { %v8194_v38 = vsel %vm129_vm1, %v14863_v34, 0.0 }
0x262e   :  { %8195 = vadd.xlane.f32.xlu1 %v8194_v38  ;;  %v8489_v38 = vld [vmem:[#allocation2 + $0x144] ss:$8 sm:$0xf0] }
0x262f   :  { %8707 = vrot.lane.b32.xlu0 %v8502_v59, %s11767_s15  ;;  %v8456_v59 = vld [vmem:[#allocation2 + $0x83] ss:$8 sm:$0xf0] }
0x2630   :  { %v8457_v62 = vor.u32 %v8456_v59, %v8455_v12  ;;  %v8509_v12 = vld [vmem:[#allocation2 + $0x105] ss:$8 sm:$0xf] }
0x2633   :  { %8615 = vrot.lane.b32.xlu0 %v8436_v1, %s11758_s20  ;;  %v8490_v1 = vor.u32 %v8489_v38, %v8488_v36  ;;  %v8510_v36 = vld [vmem:[#allocation2 + $0x105] ss:$8 sm:$0xf0] }
0x2637   :  { %8739 = vrot.lane.b32.xlu0 %v8526_v4, %s11765_s13  ;;  %v8546_v4 = vld [vmem:[#allocation2 + $0x7] ss:$8 sm:$0xf0] }
0x2638   :  { %v8547_v11 = vor.u32 %v8546_v4, %v8545_v56  ;;  %v8443_v4 = vld [vmem:[#allocation2 + $0x182] ss:$8 sm:$0xf]  ;;  %v8534_v56 = vld [vmem:[#allocation2 + $0x106] ss:$8 sm:$0xf0] }
0x263b   :  { %8647 = vrot.lane.b32.xlu0 %v8460_v42, %s11771_s19  ;;  %v8514_v42 = vor.u32 %v8513_v60, %v8512_v23  ;;  %v8444_v60 = vld [vmem:[#allocation2 + $0x182] ss:$8 sm:$0xf0] }
0x263c   :  { %v8445_v23 = vor.u32 %v8444_v60, %v8443_v4 }
0x263f   :  { %8771 = vrot.lane.b32.xlu0 %v8550_v57, %s11763_s9  ;;  %8216 = vrot.lane.b32.xlu1 %v13681_v8, %s11774_s22  ;;  %v8506_v8 = vld [vmem:[#allocation2 + $0xc5] ss:$8 sm:$0xf]  ;;  %v8480_v57 = vld [vmem:[#allocation2 + $0x84] ss:$8 sm:$0xf0] }
0x2640   :  { %v8508_v48 = vor.u32 %v8507_v16, %v8506_v8  ;;  %v8481_v0 = vor.u32 %v8480_v57, %v8479_v51  ;;  %v8515_v16 = vld [vmem:[#allocation2 + $0x185] ss:$8 sm:$0xf]  ;;  %v8467_v57 = vld [vmem:[#allocation2 + $0x183] ss:$8 sm:$0xf] }
0x2641   :  { %v8558_v51 = vld [vmem:[#allocation2 + $0x107] ss:$8 sm:$0xf0] }
0x2643   :  { %8679 = vrot.lane.b32.xlu0 %v8484_v20, %s11769_s17  ;;  %8579 = vrot.lane.b32.xlu1 %v8406_v33, %s11755_s11  ;;  %v8561_v20 = vld [vmem:[#allocation2 + $0x147] ss:$8 sm:$0xf0]  ;;  %v8414_v33 = vld [vmem:[#allocation2 + $0x101] ss:$8 sm:$0xf0] }
0x2644   :  { %v8562_v49 = vor.u32 %v8561_v20, %v8560_v24  ;;  %v8415_v39 = vor.u32 %v8414_v33, %v8413_v14  ;;  %v8492_v33 = vld [vmem:[#allocation2 + $0x184] ss:$8 sm:$0xf0] }
0x2645   :  { %v8491_v24 = vld [vmem:[#allocation2 + $0x184] ss:$8 sm:$0xf] }
0x2646   :  { %v8493_v14 = vor.u32 %v8492_v33, %v8491_v24 }
0x2647   :  { %8587 = vrot.lane.b32.xlu0 %v8418_v46, %s11755_s11  ;;  %8611 = vrot.lane.b32.xlu1 %v8430_v2, %s11758_s20  ;;  %v8516_v46 = vld [vmem:[#allocation2 + $0x185] ss:$8 sm:$0xf0] }
0x2648   :  { %v8504_v2 = vld [vmem:[#allocation2 + $0x85] ss:$8 sm:$0xf0]  ;;  %v8517_v8 = vor.u32 %v8516_v46, %v8515_v16 }
0x2649   :  { %v8505_v6 = vor.u32 %v8504_v2, %v8503_v19 }
0x264b   :  { %8711 = vrot.lane.b32.xlu0 %v8508_v48, %s11767_s15  ;;  %8643 = vrot.lane.b32.xlu1 %v8454_v55, %s11771_s19  ;;  %v8540_v48 = vld [vmem:[#allocation2 + $0x186] ss:$8 sm:$0xf0]  ;;  %v8438_v55 = vld [vmem:[#allocation2 + $0x102] ss:$8 sm:$0xf0] }
0x264c   :  { %v8541_v35 = vor.u32 %v8540_v48, %v8539_v25  ;;  %v8439_v32 = vor.u32 %v8438_v55, %v8437_v17 }
0x264f   :  { %8619 = vrot.lane.b32.xlu0 %v8442_v45, %s11758_s20  ;;  %8581 = vrot.lane.b32.xlu1 %v8409_v22, %s11755_s11  ;;  %v8528_v45 = vld [vmem:[#allocation2 + $0x86] ss:$8 sm:$0xf0] }
0x2650   :  { %v8527_v22 = vld [vmem:[#allocation2 + $0x86] ss:$8 sm:$0xf] }
0x2651   :  { %v8529_v37 = vor.u32 %v8528_v45, %v8527_v22 }
0x2653   :  { %8743 = vrot.lane.b32.xlu0 %v8532_v58, %s11765_s13  ;;  %8705 = vrot.lane.b32.xlu1 %v8499_v53, %s11767_s15  ;;  %v8463_v58 = vor.u32 %v8462_v5, %v8461_v54  ;;  %v11628_v54 = vld [vmem:[#allocation9 + $0x30] sm:$0xff] }
0x2657   :  { %8651 = vrot.lane.b32.xlu0 %v8466_v41, %s11771_s19  ;;  %8613 = vrot.lane.b32.xlu1 %v8433_v3, %s11758_s20  ;;  %v8486_v41 = vld [vmem:[#allocation2 + $0x104] ss:$8 sm:$0xf0] }
0x2658   :  { %v8485_v3 = vld [vmem:[#allocation2 + $0x104] ss:$8 sm:$0xf] }
0x2659   :  { %v8487_v13 = vor.u32 %v8486_v41, %v8485_v3  ;;  %v11631_v41 = vld [vmem:[#allocation9 + $0x18] sm:$0xff] }
0x265b   :  { %8775 = vrot.lane.b32.xlu0 %v8556_v63, %s11763_s9  ;;  %8737 = vrot.lane.b32.xlu1 %v8523_v7, %s11765_s13  ;;  %v8419_v63 = vld [vmem:[#allocation2 + $0x181] ss:$8 sm:$0xf] }
0x265c   :  { %v8421_v7 = vor.u32 %v8420_v61, %v8419_v63  ;;  %v11633_v61 = vld [vmem:[#allocation9 + $0x8] sm:$0xff]  ;;  %v11634_v63 = vld [vmem:[#allocation9] sm:$0xff] }
0x265f   :  { %8683 = vrot.lane.b32.xlu0 %v8490_v1, %s11769_s17  ;;  %8645 = vrot.lane.b32.xlu1 %v8457_v62, %s11771_s19  ;;  %v8511_v1 = vor.u32 %v8510_v36, %v8509_v12 }
0x2663   :  { %8715 = vrot.lane.b32.xlu0 %v8514_v42, %s11767_s15  ;;  %8769 = vrot.lane.b32.xlu1 %v8547_v11, %s11763_s9  ;;  %v8468_v11 = vld [vmem:[#allocation2 + $0x183] ss:$8 sm:$0xf0] }
0x2664   :  { %v8469_v26 = vor.u32 %v8468_v11, %v8467_v57 }
0x2667   :  { %8747 = vrot.lane.b32.xlu0 %v8538_v27, %s11765_s13  ;;  %8677 = vrot.lane.b32.xlu1 %v8481_v0, %s11769_s17  ;;  %v8557_v27 = vld [vmem:[#allocation2 + $0x107] ss:$8 sm:$0xf] }
0x2668   :  { %v8559_v0 = vor.u32 %v8558_v51, %v8557_v27 }
0x266b   :  { %8779 = vrot.lane.b32.xlu0 %v8562_v49, %s11763_s9  ;;  %8585 = vrot.lane.b32.xlu1 %v8415_v39, %s11755_s11 }
0x266f   :  { %8717 = vrot.lane.b32.xlu0 %v8517_v8, %s11767_s15  ;;  %8709 = vrot.lane.b32.xlu1 %v8505_v6, %s11767_s15 }
0x2673   :  { %8749 = vrot.lane.b32.xlu0 %v8541_v35, %s11765_s13  ;;  %8617 = vrot.lane.b32.xlu1 %v8439_v32, %s11758_s20 }
0x2674   :  { %v8181_v53 = vpop.xlane.xlu0 %8180 }
0x2676   :  { %v8178_v43 = vpop.xlane.xlu1 %8177 }
0x2677   :  { %11569 = vrcp.f32 %v8178_v43  ;;  %8741 = vrot.lane.b32.xlu1 %v8529_v37, %s11765_s13  ;;  %v11627_v37 = vld [vmem:[#allocation9 + $0x38] sm:$0xff] }
0x2678   :  { %11571 = vrcp.f32 %v8181_v53 }
0x267a   :  { %v8184_v46 = vpop.xlane.xlu1 %8183 }
0x267b   :  { %8649 = vrot.lane.b32.xlu1 %v8463_v58, %s11771_s19  ;;  %11573 = vrcp.f32 %v8184_v46 }
0x267e   :  { %v8187_v28 = vpop.xlane.xlu0 %8186 }
0x267f   :  { %8773 = vrot.lane.b32.xlu1 %v8553_v18, %s11763_s9  ;;  %v8190_v16 = vpop.xlane.xlu1 %8189  ;;  %11575 = vrcp.f32 %v8187_v28  ;;  %v11630_v28 = vld [vmem:[#allocation9 + $0x20] sm:$0xff] }
0x2680   :  { %11577 = vrcp.f32 %v8190_v16 }
0x2682   :  { %v8193_v21 = vpop.xlane.xlu0 %8192 }
0x2683   :  { %8681 = vrot.lane.b32.xlu1 %v8487_v13, %s11769_s17  ;;  %11579 = vrcp.f32 %v8193_v21  ;;  %v11632_v21 = vld [vmem:[#allocation9 + $0x10] sm:$0xff] }
0x2684   :  { %v11570_v47 = vpop.eup %11569 }
0x2685   :  { %v8208_v38 = vmul.f32 %v11570_v47, %v14830_v10  ;;  %v8533_v10 = vld [vmem:[#allocation2 + $0x106] ss:$8 sm:$0xf]  ;;  %v11572_v48 = vpop.eup %11571 }
0x2686   :  { %v8199_v59 = vpop.xlane.xlu0 %8198  ;;  %v8535_v42 = vor.u32 %v8534_v56, %v8533_v10  ;;  %v8209_v17 = vmul.f32 %v11572_v48, %v14826_v31 }
0x2687   :  { %8589 = vrot.lane.b32.xlu1 %v8421_v7, %s11755_s11  ;;  %11005 = vmatprep.mubr.msk.f32.mxu1 %vm129_vm1, %v8208_v38  ;;  %11581 = vrcp.f32 %v8199_v59  ;;  %v8380_v59 = vld [vmem:[#allocation2 + $0x40] ss:$8 sm:$0xf] }
0x2688   :  { %v11574_v55 = vpop.eup %11573 }
0x2689   :  { %v8210_v32 = vmul.f32 %v11574_v55, %v14834_v29  ;;  %v11629_v29 = vld [vmem:[#allocation9 + $0x28] sm:$0xff] }
0x268a   :  { %v8219_v62 = vpop.permute.xlu0 %8218 }
0x268b   :  { %8713 = vrot.lane.b32.xlu1 %v8511_v1, %s11767_s15  ;;  %11001 = vmatprep.subr.mxu1 %v8219_v62 }
0x268c   :  { %11002 = vmatpush3.msra.mxu1 %v8219_v62  ;;  %v11576_v35 = vpop.eup %11575  ;;  %v8378_v62 = vld [vmem:[#allocation2] ss:$8 sm:$0xf0] }
0x268d   :  { %v11578_v45 = vpop.eup %11577  ;;  %v8211_v5 = vmul.f32 %v11576_v35, %v14838_v40  ;;  %v8383_v35 = vld [vmem:[#allocation2 + $0x80] ss:$8 sm:$0xf] }
0x268e   :  { %v14910_v30 = vpop.permute.xlu0 %8577  ;;  %v8212_v58 = vmul.f32 %v11578_v45, %v14840_v9  ;;  %v8386_v45 = vld [vmem:[#allocation2 + $0xc0] ss:$8 sm:$0xf] }
0x268f   :  { %8621 = vrot.lane.b32.xlu1 %v8445_v23, %s11758_s20  ;;  %v8377_v23 = vld [vmem:[#allocation2] ss:$8 sm:$0xf] }
0x2690   :  { %v11580_v31 = vpop.eup %11579  ;;  %v8379_v10 = vor.u32 %v8378_v62, %v8377_v23  ;;  %v8393_v62 = vld [vmem:[#allocation2 + $0x140] ss:$8 sm:$0xf0] }
0x2691   :  { %v8213_v18 = vmul.f32 %v11580_v31, %v14846_v52  ;;  %v8392_v23 = vld [vmem:[#allocation2 + $0x140] ss:$8 sm:$0xf] }
0x2692   :  { %v14913_v20 = vpop.permute.xlu0 %8609  ;;  %v8793_v11 = vsel %vm554_vm2, %v8379_v10, %v14910_v30 }
0x2693   :  { %8745 = vrot.lane.b32.xlu1 %v8535_v42, %s11765_s13  ;;  %v8801_v57 = vsel %vm4402_vm3, %v8793_v11, %v14913_v20 }
0x2694   :  { %v11582_v15 = vpop.eup %11581 }
0x2695   :  { %v8215_v13 = vmul.f32 %v11582_v15, %v14850_v50 }
0x2696   :  { %v14917_v49 = vpop.permute.xlu0 %8641 }
0x2697   :  { %8653 = vrot.lane.b32.xlu1 %v8469_v26, %s11771_s19  ;;  %v8809_v27 = vsel %vm4411_vm4, %v8801_v57, %v14917_v49 }
0x269a   :  { %v14919_v39 = vpop.permute.xlu0 %8673 }
0x269b   :  { %8777 = vrot.lane.b32.xlu1 %v8559_v0, %s11763_s9  ;;  %v8817_v33 = vsel %vm4420_vm5, %v8809_v27, %v14919_v39 }
0x269e   :  { %v14921_v2 = vpop.permute.xlu0 %8675 }
0x269f   :  { %8685 = vrot.lane.b32.xlu1 %v8493_v14, %s11769_s17 }
0x26a2   :  { %v14923_v19 = vpop.permute.xlu0 %8583 }
0x26a6   :  { %v14925_v6 = vpop.permute.xlu0 %8707 }
0x26aa   :  { %v14929_v22 = vpop.permute.xlu0 %8615 }
0x26ae   :  { %v8740_v44 = vpop.permute.xlu0 %8739 }
0x26b2   :  { %v8648_v52 = vpop.permute.xlu0 %8647 }
0x26b6   :  { %v8772_v38 = vpop.permute.xlu0 %8771 }
0x26b7   :  { %v8196_v8 = vpop.xlane.xlu1 %8195 }
0x26b8   :  { %11583 = vrcp.f32 %v8196_v8 }
0x26ba   :  { %v8680_v4 = vpop.permute.xlu0 %8679 }
0x26bb   :  { %v8217_v25 = vpop.permute.xlu1 %8216 }
0x26bc   :  { %11003 = vmatprep.subr.mxu1 %v8217_v25 }
0x26bd   :  { %11004 = vmatpush3.msra.mxu1 %v8217_v25  ;;  %v8384_v25 = vld [vmem:[#allocation2 + $0x80] ss:$8 sm:$0xf0] }
0x26be   :  { %11006 = vmatmul.mubr.msk.f32.vlgmr.msra.gmra.mxu1 %vm129_vm1, %v8209_v17  ;;  %11017 = vmatprep.subr.mxu1 %v11627_v37  ;;  %v14956_v0 = vpop.permute.xlu0 %8587  ;;  %v8387_v17 = vld [vmem:[#allocation2 + $0xc0] ss:$8 sm:$0xf0] }
0x26bf   :  { %11008 = vmatprep.mubr.msk.f32.mxu1 %vm129_vm1, %v8210_v32  ;;  %v8580_v43 = vpop.permute.xlu1 %8579  ;;  %11018 = vmatpush3.msra.mxu1 %v11627_v37  ;;  %v8385_v37 = vor.u32 %v8384_v25, %v8383_v35 }
0x26c0   :  { %11019 = vmatprep.subr.mxu1 %v11628_v54 }
0x26c1   :  { %11020 = vmatpush3.msra.mxu1 %v11628_v54 }
0x26c2   :  { %11009 = vmatmul.mubr.msk.f32.gmra.mxu1 %vm129_vm1, %v8211_v5  ;;  %11021 = vmatprep.subr.mxu1 %v11629_v29  ;;  %v8712_v16 = vpop.permute.xlu0 %8711  ;;  %v8388_v5 = vor.u32 %v8387_v17, %v8386_v45 }
0x26c3   :  { %11011 = vmatprep.mubr.msk.f32.mxu1 %vm129_vm1, %v8212_v58  ;;  %v8612_v53 = vpop.permute.xlu1 %8611  ;;  %11022 = vmatpush3.msra.mxu1 %v11629_v29 }
0x26c4   :  { %11023 = vmatprep.subr.mxu1 %v11630_v28  ;;  %v8796_v31 = vsel %vm554_vm2, %v8388_v5, %v14923_v19 }
0x26c5   :  { %v11584_v40 = vpop.eup %11583  ;;  %11024 = vmatpush3.msra.mxu1 %v11630_v28 }
0x26c6   :  { %11012 = vmatmul.mubr.msk.f32.gmra.mxu1 %vm129_vm1, %v8213_v18  ;;  %v8214_v9 = vmul.f32 %v11584_v40, %v14863_v34  ;;  %11025 = vmatprep.subr.mxu1 %v11631_v41  ;;  %v8381_v34 = vld [vmem:[#allocation2 + $0x40] ss:$8 sm:$0xf0] }
0x26c7   :  { %v8644_v3 = vpop.permute.xlu1 %8643  ;;  %11026 = vmatpush3.msra.mxu1 %v11631_v41  ;;  %v8382_v36 = vor.u32 %v8381_v34, %v8380_v59 }
0x26c8   :  { %11014 = vmatprep.mubr.msk.f32.mxu1 %vm129_vm1, %v8214_v9  ;;  %11027 = vmatprep.subr.mxu1 %v11632_v21 }
0x26c9   :  { %11028 = vmatpush3.msra.mxu1 %v11632_v21  ;;  %v8794_v50 = vsel %vm554_vm2, %v8382_v36, %v8580_v43 }
0x26ca   :  { %11015 = vmatmul.mubr.msk.f32.gmra.mxu1 %vm129_vm1, %v8215_v13  ;;  %11029 = vmatprep.subr.mxu1 %v11633_v61  ;;  %v8802_v1 = vsel %vm4402_vm3, %v8794_v50, %v8612_v53  ;;  %v8804_v53 = vsel %vm4402_vm3, %v8796_v31, %v14929_v22 }
0x26cb   :  { %v8582_v47 = vpop.permute.xlu1 %8581  ;;  %11030 = vmatpush3.msra.mxu1 %v11633_v61  ;;  %v8810_v60 = vsel %vm4411_vm4, %v8802_v1, %v8644_v3  ;;  %v8390_v1 = vld [vmem:[#allocation2 + $0x100] ss:$8 sm:$0xf0] }
0x26cc   :  { %11031 = vmatprep.subr.mxu1 %v11634_v63  ;;  %v8818_v42 = vsel %vm4420_vm5, %v8810_v60, %v14921_v2  ;;  %v8795_v54 = vsel %vm554_vm2, %v8385_v37, %v8582_v47  ;;  %v8389_v60 = vld [vmem:[#allocation2 + $0x100] ss:$8 sm:$0xf] }
0x26cd   :  { %11032 = vmatpush3.msra.mxu1 %v11634_v63  ;;  %v8826_v26 = vsel %vm4429_vm6, %v8818_v42, %v14925_v6  ;;  %v8620_v6 = vpop.permute.xlu0 %8619  ;;  %v8396_v63 = vld [vmem:[#allocation2 + $0x180] ss:$8 sm:$0xf0]  ;;  %v8391_v10 = vor.u32 %v8390_v1, %v8389_v60  ;;  %v8394_v42 = vor.u32 %v8393_v62, %v8392_v23 }
0x26ce   :  { %v8834_v24 = vsel %vm4438_vm7, %v8826_v26, %v8740_v44  ;;  %v8812_v44 = vsel %vm4411_vm4, %v8804_v53, %v8648_v52  ;;  %v11637_v62 = vld [vmem:[#allocation3 + $0x40] sm:$0xff] }
0x26cf   :  { %v8706_v7 = vpop.permute.xlu1 %8705  ;;  %v8842_v2 = vsel %vm4447_vm8, %v8834_v24, %v8772_v38  ;;  %v8820_v28 = vsel %vm4420_vm5, %v8812_v44, %v8680_v4  ;;  %v8798_v57 = vsel %vm554_vm2, %v8394_v42, %v14956_v0 }
0x26d0   :  { %v8825_v14 = vsel %vm4429_vm6, %v8817_v33, %v8706_v7  ;;  %v8828_v41 = vsel %vm4429_vm6, %v8820_v28, %v8712_v16  ;;  %v8395_v7 = vld [vmem:[#allocation2 + $0x180] ss:$8 sm:$0xf]  ;;  %v8806_v27 = vsel %vm4402_vm3, %v8798_v57, %v8620_v6 }
0x26d1   :  { %v8744_v48 = vpop.permute.xlu0 %8743  ;;  %v8397_v38 = vor.u32 %v8396_v63, %v8395_v7  ;;  %v11639_v57 = vld [vmem:[#allocation3 + $0x50] sm:$0xff] }
0x26d2   :  { %v8836_v13 = vsel %vm4438_vm7, %v8828_v41, %v8744_v48 }
0x26d3   :  { %v8614_v12 = vpop.permute.xlu1 %8613 }
0x26d4   :  { %v8803_v58 = vsel %vm4402_vm3, %v8795_v54, %v8614_v12 }
0x26d5   :  { %v8652_v43 = vpop.permute.xlu0 %8651 }
0x26d7   :  { %v8738_v56 = vpop.permute.xlu1 %8737 }
0x26d8   :  { %v8833_v30 = vsel %vm4438_vm7, %v8825_v14, %v8738_v56  ;;  %v8814_v14 = vsel %vm4411_vm4, %v8806_v27, %v8652_v43 }
0x26d9   :  { %v8776_v40 = vpop.permute.xlu0 %8775 }
0x26da   :  { %v8844_v21 = vsel %vm4447_vm8, %v8836_v13, %v8776_v40 }
0x26db   :  { %v8646_v51 = vpop.permute.xlu1 %8645 }
0x26dc   :  { %v8811_v15 = vsel %vm4411_vm4, %v8803_v58, %v8646_v51 }
0x26dd   :  { %v8684_v47 = vpop.permute.xlu0 %8683 }
0x26df   :  { %v8770_v46 = vpop.permute.xlu1 %8769 }
0x26e0   :  { %v8841_v20 = vsel %vm4447_vm8, %v8833_v30, %v8770_v46  ;;  %v8822_v46 = vsel %vm4420_vm5, %v8814_v14, %v8684_v47  ;;  %v8563_v47 = vld [vmem:[#allocation2 + $0x187] ss:$8 sm:$0xf] }
0x26e1   :  { %11033 = vmatprep.mubr.msk.f32.mxu1 %vm129_vm1, %v8841_v20  ;;  %v8716_v59 = vpop.permute.xlu0 %8715  ;;  %v11640_v14 = vld [vmem:[#allocation3 + $0x68] sm:$0xff] }
0x26e2   :  { %11034 = vmatmul.mubr.msk.f32.vlgmr.msra.gmra.mxu1 %vm129_vm1, %v8842_v2  ;;  %v8830_v0 = vsel %vm4429_vm6, %v8822_v46, %v8716_v59 }
0x26e3   :  { %v8678_v49 = vpop.permute.xlu1 %8677 }
0x26e4   :  { %v8819_v18 = vsel %vm4420_vm5, %v8811_v15, %v8678_v49 }
0x26e5   :  { %v8748_v56 = vpop.permute.xlu0 %8747 }
0x26e7   :  { %v8586_v8 = vpop.permute.xlu1 %8585 }
0x26e8   :  { %v8797_v11 = vsel %vm554_vm2, %v8391_v10, %v8586_v8  ;;  %v8838_v8 = vsel %vm4438_vm7, %v8830_v0, %v8748_v56  ;;  %v11638_v10 = vld [vmem:[#allocation3 + $0x58] sm:$0xff] }
0x26e9   :  { %v8780_v20 = vpop.permute.xlu0 %8779 }
0x26eb   :  { %v8710_v39 = vpop.permute.xlu1 %8709 }
0x26ec   :  { %v8827_v9 = vsel %vm4429_vm6, %v8819_v18, %v8710_v39  ;;  %v8846_v39 = vsel %vm4447_vm8, %v8838_v8, %v8780_v20  ;;  %v11641_v20 = vld [vmem:[#allocation3 + $0x60] sm:$0xff] }
0x26ed   :  { %v8718_v0 = vpop.permute.xlu0 %8717 }
0x26ef   :  { %v8618_v55 = vpop.permute.xlu1 %8617 }
0x26f0   :  { %v8805_v26 = vsel %vm4402_vm3, %v8797_v11, %v8618_v55 }
0x26f3   :  { %v8742_v32 = vpop.permute.xlu1 %8741 }
0x26f4   :  { %v8835_v19 = vsel %vm4438_vm7, %v8827_v9, %v8742_v32 }
0x26f7   :  { %v8650_v29 = vpop.permute.xlu1 %8649 }
0x26f8   :  { %v8813_v33 = vsel %vm4411_vm4, %v8805_v26, %v8650_v29 }
0x26fb   :  { %v8774_v3 = vpop.permute.xlu1 %8773 }
0x26fc   :  { %v8843_v22 = vsel %vm4447_vm8, %v8835_v19, %v8774_v3 }
0x26fd   :  { %11036 = vmatprep.mubr.msk.f32.mxu1 %vm129_vm1, %v8843_v22 }
0x26fe   :  { %11037 = vmatmul.mubr.msk.f32.gmra.mxu1 %vm129_vm1, %v8844_v21 }
0x26ff   :  { %v8682_v52 = vpop.permute.xlu1 %8681 }
0x2700   :  { %v8821_v30 = vsel %vm4420_vm5, %v8813_v33, %v8682_v52  ;;  %v8564_v52 = vld [vmem:[#allocation2 + $0x187] ss:$8 sm:$0xf0] }
0x2703   :  { %v8590_v61 = vpop.permute.xlu1 %8589 }
0x2704   :  { %v8799_v36 = vsel %vm554_vm2, %v8397_v38, %v8590_v61  ;;  %v15024_v38 = vld [vmem:[%s15071_s7] ss:$0 sm:$0xff]  ;;  %s11775_s7 = smov [#allocation11]  }
0x2707   :  { %v8714_v34 = vpop.permute.xlu1 %8713 }
0x2708   :  { %v8829_v2 = vsel %vm4429_vm6, %v8821_v30, %v8714_v34  ;;  %v8565_v34 = vor.u32 %v8564_v52, %v8563_v47 }
0x270b   :  { %v8622_v50 = vpop.permute.xlu1 %8621 }
0x270c   :  { %v8807_v12 = vsel %vm4402_vm3, %v8799_v36, %v8622_v50  ;;  %v11636_v50 = vld [vmem:[#allocation3 + $0x48] sm:$0xff] }
0x270f   :  { %v8746_v4 = vpop.permute.xlu1 %8745 }
0x2710   :  { %v8837_v16 = vsel %vm4438_vm7, %v8829_v2, %v8746_v4 }
0x2713   :  { %v8654_v51 = vpop.permute.xlu1 %8653 }
0x2714   :  { %v14994_v24 = vsel %vm4411_vm4, %v8807_v12, %v8654_v51 }
0x2717   :  { %v8778_v49 = vpop.permute.xlu1 %8777 }
0x2718   :  { %v8845_v6 = vsel %vm4447_vm8, %v8837_v16, %v8778_v49  ;;  %v8750_v16 = vpop.permute.xlu0 %8749 }
0x2719   :  { %11039 = vmatprep.mubr.msk.f32.mxu1 %vm129_vm1, %v8845_v6 }
0x271a   :  { %11040 = vmatmul.mubr.msk.f32.gmra.mxu1 %vm129_vm1, %v8846_v39 }
0x271b   :  { %v8686_v49 = vpop.permute.xlu1 %8685 }
0x277e   :  { %v11007_v48 = vpop.f32.mrf.mxu1 }
0x277f   :  { %8370 = vst.msk [vmem:[#allocation2 + $0x1c8] sm:$0xff] %vm554_vm2, %v11007_v48 }
0x2780   :  { %v8330_v55 = vpop.f32.mrf.mxu1 }
0x2781   :  { %8369 = vst.msk [vmem:[#allocation2 + $0x1c0] sm:$0xff] %vm554_vm2, %v8330_v55 }
0x2782   :  { %v11010_v25 = vpop.f32.mrf.mxu1 }
0x2783   :  { %8372 = vst.msk [vmem:[#allocation2 + $0x1d8] sm:$0xff] %vm554_vm2, %v11010_v25 }
0x2784   :  { %v8340_v17 = vpop.f32.mrf.mxu1 }
0x2785   :  { %8371 = vst.msk [vmem:[#allocation2 + $0x1d0] sm:$0xff] %vm554_vm2, %v8340_v17 }
0x2786   :  { %v11013_v35 = vpop.f32.mrf.mxu1 }
0x2787   :  { %8374 = vst.msk [vmem:[#allocation2 + $0x1e8] sm:$0xff] %vm554_vm2, %v11013_v35  ;;  %v8823_v35 = vsel %vm4420_vm5, %v14994_v24, %v8686_v49 }
0x2788   :  { %v8350_v32 = vpop.f32.mrf.mxu1 }
0x2789   :  { %8373 = vst.msk [vmem:[#allocation2 + $0x1e0] sm:$0xff] %vm554_vm2, %v8350_v32 }
0x278a   :  { %v11016_v45 = vpop.f32.mrf.mxu1 }
0x278b   :  { %8376 = vst.msk [vmem:[#allocation2 + $0x1f8] sm:$0xff] %vm554_vm2, %v11016_v45 }
0x278c   :  { %v8360_v37 = vpop.f32.mrf.mxu1  ;;  %v8494_v43 = vld [vmem:[#allocation2 + $0x1c4] ss:$8 sm:$0xf]  ;;  %v8422_v5 = vld [vmem:[#allocation2 + $0x1c1] ss:$8 sm:$0xf] }
0x278d   :  { %8375 = vst.msk [vmem:[#allocation2 + $0x1f0] sm:$0xff] %vm554_vm2, %v8360_v37  ;;  %v8518_v44 = vld [vmem:[#allocation2 + $0x1c5] ss:$8 sm:$0xf] }
0x278e   :  { %v8446_v18 = vld [vmem:[#allocation2 + $0x1c2] ss:$8 sm:$0xf]  ;;  %v8542_v19 = vld [vmem:[#allocation2 + $0x1c6] ss:$8 sm:$0xf] }
0x278f   :  { %v8470_v3 = vld [vmem:[#allocation2 + $0x1c3] ss:$8 sm:$0xf]  ;;  %v8566_v61 = vld [vmem:[#allocation2 + $0x1c7] ss:$8 sm:$0xf] }
0x2790   :  { %v8398_v48 = vld [vmem:[#allocation2 + $0x1c0] ss:$8 sm:$0xf] }
0x2794   :  { %v8495_v54 = vld [vmem:[#allocation2 + $0x1c4] ss:$8 sm:$0xf0]  ;;  %v8423_v31 = vld [vmem:[#allocation2 + $0x1c1] ss:$8 sm:$0xf0] }
0x2795   :  { %v8496_v58 = vor.u32 %v8495_v54, %v8494_v43  ;;  %v8424_v29 = vor.u32 %v8423_v31, %v8422_v5  ;;  %v8519_v53 = vld [vmem:[#allocation2 + $0x1c5] ss:$8 sm:$0xf0]  ;;  %v8447_v15 = vld [vmem:[#allocation2 + $0x1c2] ss:$8 sm:$0xf0]  ;;  %v8831_v5 = vsel %vm4429_vm6, %v8823_v35, %v8718_v0 }
0x2796   :  { %v8520_v28 = vor.u32 %v8519_v53, %v8518_v44  ;;  %v8448_v40 = vor.u32 %v8447_v15, %v8446_v18  ;;  %v8543_v9 = vld [vmem:[#allocation2 + $0x1c6] ss:$8 sm:$0xf0]  ;;  %v8471_v41 = vld [vmem:[#allocation2 + $0x1c3] ss:$8 sm:$0xf0]  ;;  %v8839_v15 = vsel %vm4438_vm7, %v8831_v5, %v8750_v16 }
0x2797   :  { %8687 = vrot.lane.b32.xlu1 %v8496_v58, %s11769_s17  ;;  %8591 = vrot.lane.b32.xlu0 %v8424_v29, %s11755_s11  ;;  %v8544_v13 = vor.u32 %v8543_v9, %v8542_v19  ;;  %v8472_v22 = vor.u32 %v8471_v41, %v8470_v3  ;;  %v8567_v21 = vld [vmem:[#allocation2 + $0x1c7] ss:$8 sm:$0xf0]  ;;  %v8399_v39 = vld [vmem:[#allocation2 + $0x1c0] ss:$8 sm:$0xf0] }
0x2798   :  { %v8568_v63 = vor.u32 %v8567_v21, %v8566_v61  ;;  %v8400_v17 = vor.u32 %v8399_v39, %v8398_v48  ;;  %v11642_v41 = vld [vmem:[#allocation3 + $0x78] sm:$0xff] }
0x279b   :  { %8719 = vrot.lane.b32.xlu1 %v8520_v28, %s11767_s15  ;;  %8623 = vrot.lane.b32.xlu0 %v8448_v40, %s11758_s20  ;;  %s9000_s20 = sshll.u32 %s11775_s7, 4  ;;  %s9001_s20 = int_to_ptr.vmem [resolvable:$true] %s9000_s20 }
0x279c   :  { %s11724_s6 = scalar_lea.vmem %s9001_s20, 2048  ;;  %p11729_p7 = scmp.lt.s32.totalorder %s9001_s20, %s9001_s20 }
0x279d   :  { %p11725_p6 = scmp.ne.s32.totalorder %s9001_s20, %s11724_s6  ;;  %p11730_p8 = scmp.lt.s32.totalorder %s11724_s6, %s11724_s6 }
0x279f   :  { %8751 = vrot.lane.b32.xlu1 %v8544_v13, %s11765_s13  ;;  %8655 = vrot.lane.b32.xlu0 %v8472_v22, %s11771_s19  ;;  %v11643_v13 = vld [vmem:[#allocation3 + $0x70] sm:$0xff]  ;;  %p11731_p9 = por %p11730_p8, %p11729_p7 }
0x27a1   :  { %p11732_p10 = pnand %p11731_p9, %p11725_p6 }
0x27a2   :  { %v11035_v7 = vpop.f32.mrf.mxu1 }
0x27a3   :  { %v8945_v59 = vadd.f32 %v15024_v38, %v11035_v7  ;;  %8783 = vrot.lane.b32.xlu1 %v8568_v63, %s11763_s9  ;;  %8781 = vrot.lane.b32.xlu0 %v8565_v34, %s11763_s9 }
0x27a4   :  { %v8939_v36 = vpop.f32.mrf.mxu1 }
0x27a5   :  { %v8979_v12 = vadd.f32 %v11636_v50, %v8945_v59  ;;  %v8940_v1 = vadd.f32 %v15024_v38, %v8939_v36 }
0x27a7   :  { %8988 = vst.msk [vmem:[#allocation11 + $0x48] sm:$0xff] %vm129_vm1, %v8979_v12  ;;  %v8978_v60 = vadd.f32 %v11637_v62, %v8940_v1 }
0x27a9   :  { %8987 = vst.msk [vmem:[#allocation11 + $0x40] sm:$0xff] %vm129_vm1, %v8978_v60 }
0x27be   :  { %v11038_v4 = vpop.f32.mrf.mxu1 }
0x27bf   :  { %v8955_v23 = vadd.f32 %v15024_v38, %v11038_v4 }
0x27c0   :  { %v8949_v56 = vpop.f32.mrf.mxu1 }
0x27c1   :  { %v8981_v42 = vadd.f32 %v11638_v10, %v8955_v23  ;;  %v8950_v11 = vadd.f32 %v15024_v38, %v8949_v56 }
0x27c3   :  { %8990 = vst.msk [vmem:[#allocation11 + $0x58] sm:$0xff] %vm129_vm1, %v8981_v42  ;;  %v8980_v26 = vadd.f32 %v11639_v57, %v8950_v11 }
0x27c5   :  { %8989 = vst.msk [vmem:[#allocation11 + $0x50] sm:$0xff] %vm129_vm1, %v8980_v26 }
0x27da   :  { %v11041_v51 = vpop.f32.mrf.mxu1 }
0x27db   :  { %v8965_v27 = vadd.f32 %v15024_v38, %v11041_v51 }
0x27dc   :  { %v8959_v33 = vpop.f32.mrf.mxu1 }
0x27dd   :  { %v8983_v30 = vadd.f32 %v11640_v14, %v8965_v27  ;;  %v8960_v46 = vadd.f32 %v15024_v38, %v8959_v33 }
0x27df   :  { %8992 = vst.msk [vmem:[#allocation11 + $0x68] sm:$0xff] %vm129_vm1, %v8983_v30  ;;  %v8982_v2 = vadd.f32 %v11641_v20, %v8960_v46 }
0x27e1   :  { %8991 = vst.msk [vmem:[#allocation11 + $0x60] sm:$0xff] %vm129_vm1, %v8982_v2 }
0x2809   :  { %v8592_v8 = vpop.permute.xlu0 %8591  ;;  %v8688_v6 = vpop.permute.xlu1 %8687 }
0x280a   :  { %v8800_v32 = vsel %vm554_vm2, %v8400_v17, %v8592_v8 }
0x280d   :  { %v8624_v55 = vpop.permute.xlu0 %8623  ;;  %v8720_v25 = vpop.permute.xlu1 %8719 }
0x280e   :  { %v8808_v45 = vsel %vm4402_vm3, %v8800_v32, %v8624_v55 }
0x2811   :  { %v8656_v37 = vpop.permute.xlu0 %8655  ;;  %v8752_v43 = vpop.permute.xlu1 %8751 }
0x2812   :  { %v8816_v54 = vsel %vm4411_vm4, %v8808_v45, %v8656_v37 }
0x2813   :  { %v8824_v31 = vsel %vm4420_vm5, %v8816_v54, %v8688_v6 }
0x2814   :  { %v8832_v58 = vsel %vm4429_vm6, %v8824_v31, %v8720_v25 }
0x2815   :  { %v8840_v29 = vsel %vm4438_vm7, %v8832_v58, %v8752_v43  ;;  %v8782_v53 = vpop.permute.xlu0 %8781  ;;  %v8784_v24 = vpop.permute.xlu1 %8783 }
0x2816   :  { %v8847_v44 = vsel %vm4447_vm8, %v8839_v15, %v8782_v53  ;;  %v8848_v18 = vsel %vm4447_vm8, %v8840_v29, %v8784_v24 }
0x2817   :  { %11042 = vmatprep.mubr.msk.f32.mxu1 %vm129_vm1, %v8847_v44 }
0x2818   :  { %11043 = vmatmul.mubr.msk.f32.gmra.mxu1 %vm129_vm1, %v8848_v18 }
0x28d8   :  { %v11044_v28 = vpop.f32.mrf.mxu1 }
0x28d9   :  { %v8975_v40 = vadd.f32 %v15024_v38, %v11044_v28 }
0x28da   :  { %v8969_v9 = vpop.f32.mrf.mxu1 }
0x28db   :  { %v8985_v19 = vadd.f32 %v11642_v41, %v8975_v40  ;;  %v8970_v3 = vadd.f32 %v15024_v38, %v8969_v9 }
0x28dd   :  { %8994 = vst.msk [vmem:[#allocation11 + $0x78] sm:$0xff] %vm129_vm1, %v8985_v19  ;;  %v8984_v22 = vadd.f32 %v11643_v13, %v8970_v3 }
0x28df   :  { %8993 = vst.msk [vmem:[#allocation11 + $0x70] sm:$0xff] %vm129_vm1, %v8984_v22 }
0x28e0   :  { %11735 = shalt.err (!%p11732_p10)
}
0x28e1   :  { %9006 = dma.vmem_to_hbm [thread:$0]  %s9001_s20, 2048, %s15072_s8, [#allocation5], %s11754_s10, %s11754_s10, %s11755_s11  }
0x28e2   :  { %11750 = dma.done.wait [#allocation5], 2048  }
0x28e3   :  { %11751 = vsyncadd [#allocation5], 4294965248 }
0x28e4   :  { %9010 = vsyncpa [#allocation4], 1 }
0x28e5   :  { %9011 = vsyncpa [#allocation7], 1 }
0x28e6   :  { %9012 = vsyncpa [#allocation10], 1 }
0x28e7   :  { %9013 = vsyncpa [#allocation5], 1 }

</bundles_post_ra>
